<compile_context>
chip_gen: v7x
topology: tpu7x:2x2x1
jax: 0.10.0
libtpu: 0.0.40
codegen_flags: <defaults>
</compile_context>

<pallas_src>
import functools
import math

import jax
import jax.numpy as jnp
from jax.experimental import pallas as pl
from jax.experimental.pallas import tpu as pltpu

# Matmul-input dtype (MXU is native bf16 on v5e/v6e/v7x); accumulation is f32.
MXU_DTYPE = jnp.bfloat16


# --------------------------------------------------------------------------
# In-kernel helpers (traced inside the Pallas kernel body)
# --------------------------------------------------------------------------
def _layernorm(v, w, b, eps=1e-5):
    mu = jnp.mean(v, axis=-1, keepdims=True)
    var = jnp.mean((v - mu) ** 2, axis=-1, keepdims=True)  # biased var (torch LN)
    return (v - mu) * jax.lax.rsqrt(var + eps) * w + b


def _softmax_lastdim(s):
    m = jnp.max(s, axis=-1, keepdims=True)
    p = jnp.exp(s - m)
    denom = jnp.sum(p, axis=-1, keepdims=True)
    return p * pl.reciprocal(denom, approx=True)          # EUP reciprocal, no divide


def _heads_attention(q, k, v, nhead, add_mask):
    """q: (nb, Sq, E) f32; k, v: (nb, Sk, E) f32 -> (nb, Sq, E) f32.

    Heads: small static loop; batch handled by a single batched einsum per head
    (one MXU contraction per head instead of one per (batch, head) pair).
    The 1/sqrt(dh) scale is already folded into the Q projection weights."""
    e = q.shape[-1]
    dh = e // nhead
    outs = []
    for h in range(nhead):
        sl = slice(h * dh, (h + 1) * dh)
        qh = q[:, :, sl].astype(MXU_DTYPE)
        kh = k[:, :, sl].astype(MXU_DTYPE)
        vh = v[:, :, sl].astype(MXU_DTYPE)
        s = jnp.einsum('bqd,bkd->bqk', qh, kh, preferred_element_type=jnp.float32)
        if add_mask is not None:
            s = s + add_mask
        p = _softmax_lastdim(s)
        outs.append(jnp.einsum('bqk,bkd->bqd', p.astype(MXU_DTYPE), vh,
                               preferred_element_type=jnp.float32))
    return jnp.concatenate(outs, axis=-1)


# --------------------------------------------------------------------------
# Whole decoder stack (all layers) for one batch slice per grid step.
# --------------------------------------------------------------------------
def decoder_stack_kernel(x_ref, mem_ref, *rest, num_layers, nhead, params_per_layer):
    out_ref = rest[-1]
    flat_params = rest[:-1]

    nb, S, E = x_ref.shape
    _, Sm, _ = mem_ref.shape

    x = x_ref[...].astype(jnp.float32)        # (nb, S, E)
    mem = mem_ref[...].astype(jnp.float32)    # (nb, Sm, E)

    # Causal additive mask: built + broadcast ONCE, reused by all layers/heads.
    row = jax.lax.broadcasted_iota(jnp.int32, (S, S), 0)
    col = jax.lax.broadcasted_iota(jnp.int32, (S, S), 1)
    causal = jnp.where(col <= row, 0.0, -1e30).astype(jnp.float32)
    causal = jnp.broadcast_to(causal[None, :, :], (nb, S, S))

    x2 = x.reshape(nb * S, E)                 # flatten batch for all linears/LN/FFN
    mem2 = mem.reshape(nb * Sm, E)

    for layer in range(num_layers):
        p = flat_params[layer * params_per_layer:(layer + 1) * params_per_layer]
        (sa_wqkv, sa_bqkv, sa_wo, sa_bo,
         ca_wq, ca_bq, ca_wkv, ca_bkv, ca_wo, ca_bo,
         ff_w1, ff_b1, ff_w2, ff_b2,
         ln1_w, ln1_b, ln2_w, ln2_b, ln3_w, ln3_b) = p

        # ---- masked self-attention (fused QKV projection) + residual + LN1 ----
        qkv = jnp.dot(x2.astype(MXU_DTYPE), sa_wqkv[...],
                      preferred_element_type=jnp.float32) + sa_bqkv[...]
        q = qkv[:, :E].reshape(nb, S, E)
        k = qkv[:, E:2 * E].reshape(nb, S, E)
        v = qkv[:, 2 * E:].reshape(nb, S, E)
        attn = _heads_attention(q, k, v, nhead, causal).reshape(nb * S, E)
        sa = jnp.dot(attn.astype(MXU_DTYPE), sa_wo[...],
                     preferred_element_type=jnp.float32) + sa_bo[...]
        x2 = _layernorm(x2 + sa, ln1_w[...], ln1_b[...])

        # ---- cross-attention over memory (fused KV projection) + LN2 ----
        qc = (jnp.dot(x2.astype(MXU_DTYPE), ca_wq[...],
                      preferred_element_type=jnp.float32) + ca_bq[...]).reshape(nb, S, E)
        kvc = jnp.dot(mem2.astype(MXU_DTYPE), ca_wkv[...],
                      preferred_element_type=jnp.float32) + ca_bkv[...]
        kc = kvc[:, :E].reshape(nb, Sm, E)
        vc = kvc[:, E:].reshape(nb, Sm, E)
        attn = _heads_attention(qc, kc, vc, nhead, None).reshape(nb * S, E)
        ca = jnp.dot(attn.astype(MXU_DTYPE), ca_wo[...],
                     preferred_element_type=jnp.float32) + ca_bo[...]
        x2 = _layernorm(x2 + ca, ln2_w[...], ln2_b[...])

        # ---- feed-forward (relu) + residual + LN3 ----
        h = jnp.maximum(jnp.dot(x2.astype(MXU_DTYPE), ff_w1[...],
                                preferred_element_type=jnp.float32) + ff_b1[...], 0.0)
        ff = jnp.dot(h.astype(MXU_DTYPE), ff_w2[...],
                     preferred_element_type=jnp.float32) + ff_b2[...]
        x2 = _layernorm(x2 + ff, ln3_w[...], ln3_b[...])

    out_ref[...] = x2.reshape(nb, S, E).astype(out_ref.dtype)


def _const_spec(shape):
    nd = len(shape)
    return pl.BlockSpec(shape, lambda b, _nd=nd: (0,) * _nd)


def decoder_stack(tgt_sbe, mem_sbe, layer_params, nhead, *, num_grid=2):
    """PyTorch layout: tgt (T, N, E), memory (S, N, E); returns (T, N, E).

    One fused pallas_call for the whole stack; grid = `num_grid` batch slices
    (2 so both v7x TensorCores stay busy while amortizing per-step overhead)."""
    T, B, E = tgt_sbe.shape
    Sm = mem_sbe.shape[0]
    num_grid = min(num_grid, B)
    assert B % num_grid == 0, "batch must divide the grid split"
    nb = B // num_grid

    # One transpose pair at the stack boundary (tiny layout plumbing).
    x = jnp.transpose(tgt_sbe, (1, 0, 2))     # (B, T, E)
    mem = jnp.transpose(mem_sbe, (1, 0, 2))   # (B, Sm, E)

    flat_params = [w for lp in layer_params for w in lp]
    params_per_layer = len(layer_params[0])
    num_layers = len(layer_params)

    kernel = functools.partial(decoder_stack_kernel, num_layers=num_layers,
                               nhead=nhead, params_per_layer=params_per_layer)

    in_specs = [pl.BlockSpec((nb, T, E), lambda b: (b, 0, 0)),
                pl.BlockSpec((nb, Sm, E), lambda b: (b, 0, 0))]
    in_specs += [_const_spec(w.shape) for w in flat_params]

    out = pl.pallas_call(
        kernel,
        out_shape=jax.ShapeDtypeStruct((B, T, E), tgt_sbe.dtype),
        grid=(num_grid,),
        in_specs=in_specs,
        out_specs=pl.BlockSpec((nb, T, E), lambda b: (b, 0, 0)),
        compiler_params=pltpu.CompilerParams(dimension_semantics=("parallel",)),
    )(x, mem, *flat_params)
    return jnp.transpose(out, (1, 0, 2))      # back to (T, N, E)


# --------------------------------------------------------------------------
# Deterministic synthetic parameters, stored in the fused kernel-friendly layout:
#   * right-multiply weights (y = x @ W + b), i.e. transposed vs nn.Linear
#   * self-attn Q/K/V fused into (E, 3E); cross-attn K/V fused into (E, 2E)
#   * the 1/sqrt(head_dim) score scale folded into the Q projection
#   * matmul weights stored bf16 (MXU inputs); biases + LayerNorm params f32
# --------------------------------------------------------------------------
def init_layer_params(key, d_model, d_ffn, nhead):
    E, F = d_model, d_ffn
    scale = 1.0 / math.sqrt(E // nhead)
    ks = jax.random.split(key, 10)
    w = lambda k, shape: jax.random.normal(k, shape, jnp.float32) * 0.05
    zeros = lambda n: jnp.zeros((1, n), jnp.float32)
    ones = lambda n: jnp.ones((1, n), jnp.float32)
    bf16 = lambda a: a.astype(MXU_DTYPE)

    sa_wqkv = jnp.concatenate([w(ks[0], (E, E)) * scale, w(ks[1], (E, E)),
                               w(ks[2], (E, E))], axis=1)
    ca_wkv = jnp.concatenate([w(ks[5], (E, E)), w(ks[6], (E, E))], axis=1)
    return (
        bf16(sa_wqkv), zeros(3 * E), bf16(w(ks[3], (E, E))), zeros(E),
        bf16(w(ks[4], (E, E)) * scale), zeros(E), bf16(ca_wkv), zeros(2 * E),
        bf16(w(ks[7], (E, E))), zeros(E),
        bf16(w(ks[8], (E, F))), zeros(F), bf16(w(ks[9], (F, E))), zeros(E),
        ones(E), zeros(E), ones(E), zeros(E), ones(E), zeros(E),
    )


if __name__ == "__main__":
    d_model, d_ffn, nhead, num_layers = 32, 64, 4, 2
    T, B, S = 8, 8, 8   # batch == seq (reference causal-mask quirk, see header)

    key = jax.random.PRNGKey(0)
    k_tgt, k_mem, k_par, k_vocab = jax.random.split(key, 4)
    tgt = jax.random.normal(k_tgt, (T, B, d_model), jnp.float32)     # (seq, batch, E)
    memory = jax.random.normal(k_mem, (S, B, d_model), jnp.float32)  # (seq, batch, E)

    layer_keys = jax.random.split(k_par, num_layers)
    params = [init_layer_params(layer_keys[i], d_model, d_ffn, nhead)
              for i in range(num_layers)]

    out = decoder_stack(tgt, memory, params, nhead)
    out = jax.block_until_ready(out)
    assert out.shape == (T, B, d_model)
    assert bool(jnp.all(jnp.isfinite(out)))

    # ProjectionModel's greedy selection step (argmax over softmax of projected
    # logits) applied to the decoder output, as a host-side jnp epilogue.
    # TODO(synk): ProjectionModel's tokenizer (string tokenize/detokenize) and its
    # per-position greedy while-loop with EOS early-exit are host Python control
    # flow around a black-box kernelmodel and have no Pallas equivalent; only the
    # kernelmodel transformer-decoder forward is implemented as a TPU kernel.
    vocab = 16
    w_vocab = jax.random.normal(k_vocab, (d_model, vocab), jnp.float32) * 0.05
    logits = jnp.einsum('tbe,ev->tbv', out, w_vocab)
    next_tokens = jnp.argmax(jax.nn.softmax(logits, axis=-1), axis=-1)
    next_tokens = jax.block_until_ready(next_tokens)
    assert next_tokens.shape == (T, B)

    print("KERNEL_OK")
</pallas_src>

<mosaic_0001>
module attributes {stable_mosaic.version = 11 : i64} {
  func.func @decoder_stack_kernel(%arg0: i32, %arg1: memref<4x8x32xf32, #tpu.memory_space<vmem>>, %arg2: memref<4x8x32xf32, #tpu.memory_space<vmem>>, %arg3: memref<32x96xbf16, #tpu.memory_space<vmem>>, %arg4: memref<1x96xf32, #tpu.memory_space<vmem>>, %arg5: memref<32x32xbf16, #tpu.memory_space<vmem>>, %arg6: memref<1x32xf32, #tpu.memory_space<vmem>>, %arg7: memref<32x32xbf16, #tpu.memory_space<vmem>>, %arg8: memref<1x32xf32, #tpu.memory_space<vmem>>, %arg9: memref<32x64xbf16, #tpu.memory_space<vmem>>, %arg10: memref<1x64xf32, #tpu.memory_space<vmem>>, %arg11: memref<32x32xbf16, #tpu.memory_space<vmem>>, %arg12: memref<1x32xf32, #tpu.memory_space<vmem>>, %arg13: memref<32x64xbf16, #tpu.memory_space<vmem>>, %arg14: memref<1x64xf32, #tpu.memory_space<vmem>>, %arg15: memref<64x32xbf16, #tpu.memory_space<vmem>>, %arg16: memref<1x32xf32, #tpu.memory_space<vmem>>, %arg17: memref<1x32xf32, #tpu.memory_space<vmem>>, %arg18: memref<1x32xf32, #tpu.memory_space<vmem>>, %arg19: memref<1x32xf32, #tpu.memory_space<vmem>>, %arg20: memref<1x32xf32, #tpu.memory_space<vmem>>, %arg21: memref<1x32xf32, #tpu.memory_space<vmem>>, %arg22: memref<1x32xf32, #tpu.memory_space<vmem>>, %arg23: memref<32x96xbf16, #tpu.memory_space<vmem>>, %arg24: memref<1x96xf32, #tpu.memory_space<vmem>>, %arg25: memref<32x32xbf16, #tpu.memory_space<vmem>>, %arg26: memref<1x32xf32, #tpu.memory_space<vmem>>, %arg27: memref<32x32xbf16, #tpu.memory_space<vmem>>, %arg28: memref<1x32xf32, #tpu.memory_space<vmem>>, %arg29: memref<32x64xbf16, #tpu.memory_space<vmem>>, %arg30: memref<1x64xf32, #tpu.memory_space<vmem>>, %arg31: memref<32x32xbf16, #tpu.memory_space<vmem>>, %arg32: memref<1x32xf32, #tpu.memory_space<vmem>>, %arg33: memref<32x64xbf16, #tpu.memory_space<vmem>>, %arg34: memref<1x64xf32, #tpu.memory_space<vmem>>, %arg35: memref<64x32xbf16, #tpu.memory_space<vmem>>, %arg36: memref<1x32xf32, #tpu.memory_space<vmem>>, %arg37: memref<1x32xf32, #tpu.memory_space<vmem>>, %arg38: memref<1x32xf32, #tpu.memory_space<vmem>>, %arg39: memref<1x32xf32, #tpu.memory_space<vmem>>, %arg40: memref<1x32xf32, #tpu.memory_space<vmem>>, %arg41: memref<1x32xf32, #tpu.memory_space<vmem>>, %arg42: memref<1x32xf32, #tpu.memory_space<vmem>>, %arg43: memref<4x8x32xf32, #tpu.memory_space<vmem>>) attributes {dimension_semantics = [#tpu.dimension_semantics<parallel>], iteration_bounds = array<i64: 2>, scalar_prefetch = 0 : i64, scratch_operands = 0 : i64, tpu.core_type = #tpu.core_type<tc>, window_params = [{transform_indices = @transform_0, window_bounds = array<i64: 4, 8, 32>}, {transform_indices = @transform_1, window_bounds = array<i64: 4, 8, 32>}, {pipeline_mode = #tpu.pipeline_mode<synchronous>, transform_indices = @transform_2, window_bounds = array<i64: 32, 96>}, {pipeline_mode = #tpu.pipeline_mode<synchronous>, transform_indices = @transform_3, window_bounds = array<i64: 1, 96>}, {pipeline_mode = #tpu.pipeline_mode<synchronous>, transform_indices = @transform_4, window_bounds = array<i64: 32, 32>}, {pipeline_mode = #tpu.pipeline_mode<synchronous>, transform_indices = @transform_5, window_bounds = array<i64: 1, 32>}, {pipeline_mode = #tpu.pipeline_mode<synchronous>, transform_indices = @transform_6, window_bounds = array<i64: 32, 32>}, {pipeline_mode = #tpu.pipeline_mode<synchronous>, transform_indices = @transform_7, window_bounds = array<i64: 1, 32>}, {pipeline_mode = #tpu.pipeline_mode<synchronous>, transform_indices = @transform_8, window_bounds = array<i64: 32, 64>}, {pipeline_mode = #tpu.pipeline_mode<synchronous>, transform_indices = @transform_9, window_bounds = array<i64: 1, 64>}, {pipeline_mode = #tpu.pipeline_mode<synchronous>, transform_indices = @transform_10, window_bounds = array<i64: 32, 32>}, {pipeline_mode = #tpu.pipeline_mode<synchronous>, transform_indices = @transform_11, window_bounds = array<i64: 1, 32>}, {pipeline_mode = #tpu.pipeline_mode<synchronous>, transform_indices = @transform_12, window_bounds = array<i64: 32, 64>}, {pipeline_mode = #tpu.pipeline_mode<synchronous>, transform_indices = @transform_13, window_bounds = array<i64: 1, 64>}, {pipeline_mode = #tpu.pipeline_mode<synchronous>, transform_indices = @transform_14, window_bounds = array<i64: 64, 32>}, {pipeline_mode = #tpu.pipeline_mode<synchronous>, transform_indices = @transform_15, window_bounds = array<i64: 1, 32>}, {pipeline_mode = #tpu.pipeline_mode<synchronous>, transform_indices = @transform_16, window_bounds = array<i64: 1, 32>}, {pipeline_mode = #tpu.pipeline_mode<synchronous>, transform_indices = @transform_17, window_bounds = array<i64: 1, 32>}, {pipeline_mode = #tpu.pipeline_mode<synchronous>, transform_indices = @transform_18, window_bounds = array<i64: 1, 32>}, {pipeline_mode = #tpu.pipeline_mode<synchronous>, transform_indices = @transform_19, window_bounds = array<i64: 1, 32>}, {pipeline_mode = #tpu.pipeline_mode<synchronous>, transform_indices = @transform_20, window_bounds = array<i64: 1, 32>}, {pipeline_mode = #tpu.pipeline_mode<synchronous>, transform_indices = @transform_21, window_bounds = array<i64: 1, 32>}, {pipeline_mode = #tpu.pipeline_mode<synchronous>, transform_indices = @transform_22, window_bounds = array<i64: 32, 96>}, {pipeline_mode = #tpu.pipeline_mode<synchronous>, transform_indices = @transform_23, window_bounds = array<i64: 1, 96>}, {pipeline_mode = #tpu.pipeline_mode<synchronous>, transform_indices = @transform_24, window_bounds = array<i64: 32, 32>}, {pipeline_mode = #tpu.pipeline_mode<synchronous>, transform_indices = @transform_25, window_bounds = array<i64: 1, 32>}, {pipeline_mode = #tpu.pipeline_mode<synchronous>, transform_indices = @transform_26, window_bounds = array<i64: 32, 32>}, {pipeline_mode = #tpu.pipeline_mode<synchronous>, transform_indices = @transform_27, window_bounds = array<i64: 1, 32>}, {pipeline_mode = #tpu.pipeline_mode<synchronous>, transform_indices = @transform_28, window_bounds = array<i64: 32, 64>}, {pipeline_mode = #tpu.pipeline_mode<synchronous>, transform_indices = @transform_29, window_bounds = array<i64: 1, 64>}, {pipeline_mode = #tpu.pipeline_mode<synchronous>, transform_indices = @transform_30, window_bounds = array<i64: 32, 32>}, {pipeline_mode = #tpu.pipeline_mode<synchronous>, transform_indices = @transform_31, window_bounds = array<i64: 1, 32>}, {pipeline_mode = #tpu.pipeline_mode<synchronous>, transform_indices = @transform_32, window_bounds = array<i64: 32, 64>}, {pipeline_mode = #tpu.pipeline_mode<synchronous>, transform_indices = @transform_33, window_bounds = array<i64: 1, 64>}, {pipeline_mode = #tpu.pipeline_mode<synchronous>, transform_indices = @transform_34, window_bounds = array<i64: 64, 32>}, {pipeline_mode = #tpu.pipeline_mode<synchronous>, transform_indices = @transform_35, window_bounds = array<i64: 1, 32>}, {pipeline_mode = #tpu.pipeline_mode<synchronous>, transform_indices = @transform_36, window_bounds = array<i64: 1, 32>}, {pipeline_mode = #tpu.pipeline_mode<synchronous>, transform_indices = @transform_37, window_bounds = array<i64: 1, 32>}, {pipeline_mode = #tpu.pipeline_mode<synchronous>, transform_indices = @transform_38, window_bounds = array<i64: 1, 32>}, {pipeline_mode = #tpu.pipeline_mode<synchronous>, transform_indices = @transform_39, window_bounds = array<i64: 1, 32>}, {pipeline_mode = #tpu.pipeline_mode<synchronous>, transform_indices = @transform_40, window_bounds = array<i64: 1, 32>}, {pipeline_mode = #tpu.pipeline_mode<synchronous>, transform_indices = @transform_41, window_bounds = array<i64: 1, 32>}, {transform_indices = @transform_42, window_bounds = array<i64: 4, 8, 32>}]} {
    %c0 = arith.constant 0 : index
    %c0_0 = arith.constant 0 : index
    %c0_1 = arith.constant 0 : index
    %0 = vector.load %arg1[%c0, %c0_0, %c0_1] : memref<4x8x32xf32, #tpu.memory_space<vmem>>, vector<4x8x32xf32>
    %c0_2 = arith.constant 0 : index
    %c0_3 = arith.constant 0 : index
    %c0_4 = arith.constant 0 : index
    %1 = vector.load %arg2[%c0_2, %c0_3, %c0_4] : memref<4x8x32xf32, #tpu.memory_space<vmem>>, vector<4x8x32xf32>
    %2 = tpu.iota {dimensions = array<i32: 0>} : vector<8x8xi32>
    %3 = tpu.iota {dimensions = array<i32: 1>} : vector<8x8xi32>
    %4 = arith.cmpi sle, %3, %2 : vector<8x8xi32>
    %cst = arith.constant 0.000000e+00 : f32
    %cst_5 = arith.constant -1.000000e+30 : f32
    %5 = vector.broadcast %cst : f32 to vector<8x8xf32>
    %6 = vector.broadcast %cst_5 : f32 to vector<8x8xf32>
    %7 = arith.select %4, %5, %6 : vector<8x8xi1>, vector<8x8xf32>
    %8 = vector.shape_cast %7 : vector<8x8xf32> to vector<1x8x8xf32>
    %9 = vector.shape_cast %8 : vector<1x8x8xf32> to vector<1x8x8xf32>
    %10 = vector.broadcast %9 : vector<1x8x8xf32> to vector<4x8x8xf32>
    %11 = vector.shape_cast %0 : vector<4x8x32xf32> to vector<32x32xf32>
    %12 = vector.shape_cast %1 : vector<4x8x32xf32> to vector<32x32xf32>
    %13 = arith.truncf %11 : vector<32x32xf32> to vector<32x32xbf16>
    %c0_6 = arith.constant 0 : index
    %c0_7 = arith.constant 0 : index
    %14 = vector.load %arg3[%c0_6, %c0_7] : memref<32x96xbf16, #tpu.memory_space<vmem>>, vector<32x96xbf16>
    %cst_8 = arith.constant dense<0.000000e+00> : vector<32x96xf32>
    %15 = tpu.matmul %13, %14, %cst_8 {dimension_numbers = #tpu.dot_dimension_numbers<[1], [0], [0], [1], [0, 0, 1, 1], [], []>} : vector<32x32xbf16>, vector<32x96xbf16>, vector<32x96xf32> -> vector<32x96xf32>
    %c0_9 = arith.constant 0 : index
    %c0_10 = arith.constant 0 : index
    %16 = vector.load %arg4[%c0_9, %c0_10] : memref<1x96xf32, #tpu.memory_space<vmem>>, vector<1x96xf32>
    %17 = vector.broadcast %16 : vector<1x96xf32> to vector<32x96xf32>
    %18 = arith.addf %15, %17 : vector<32x96xf32>
    %19 = vector.extract_strided_slice %18 {offsets = [0, 0], sizes = [32, 32], strides = [1, 1]} : vector<32x96xf32> to vector<32x32xf32>
    %20 = vector.shape_cast %19 : vector<32x32xf32> to vector<4x8x32xf32>
    %21 = vector.extract_strided_slice %18 {offsets = [0, 32], sizes = [32, 32], strides = [1, 1]} : vector<32x96xf32> to vector<32x32xf32>
    %22 = vector.shape_cast %21 : vector<32x32xf32> to vector<4x8x32xf32>
    %23 = vector.extract_strided_slice %18 {offsets = [0, 64], sizes = [32, 32], strides = [1, 1]} : vector<32x96xf32> to vector<32x32xf32>
    %24 = vector.shape_cast %23 : vector<32x32xf32> to vector<4x8x32xf32>
    %25 = vector.extract_strided_slice %20 {offsets = [0, 0, 0], sizes = [4, 8, 8], strides = [1, 1, 1]} : vector<4x8x32xf32> to vector<4x8x8xf32>
    %26 = arith.truncf %25 : vector<4x8x8xf32> to vector<4x8x8xbf16>
    %27 = vector.extract_strided_slice %22 {offsets = [0, 0, 0], sizes = [4, 8, 8], strides = [1, 1, 1]} : vector<4x8x32xf32> to vector<4x8x8xf32>
    %28 = arith.truncf %27 : vector<4x8x8xf32> to vector<4x8x8xbf16>
    %29 = vector.extract_strided_slice %24 {offsets = [0, 0, 0], sizes = [4, 8, 8], strides = [1, 1, 1]} : vector<4x8x32xf32> to vector<4x8x8xf32>
    %30 = arith.truncf %29 : vector<4x8x8xf32> to vector<4x8x8xbf16>
    "tpu.trace_start"() <{level = 10 : i32, message = "bqd,bkd->bqk"}> : () -> ()
    %cst_11 = arith.constant dense<0.000000e+00> : vector<4x8x8xf32>
    %31 = tpu.matmul %26, %28, %cst_11 {dimension_numbers = #tpu.dot_dimension_numbers<[2], [2], [1], [1], [0, 0, 0, 1, 1, 1], [0], [0]>} : vector<4x8x8xbf16>, vector<4x8x8xbf16>, vector<4x8x8xf32> -> vector<4x8x8xf32>
    "tpu.trace_stop"() : () -> ()
    %32 = arith.addf %31, %10 : vector<4x8x8xf32>
    %cst_12 = arith.constant dense<0xFF800000> : vector<4x8xf32>
    %33 = vector.multi_reduction <maximumf>, %32, %cst_12 [2] : vector<4x8x8xf32> to vector<4x8xf32>
    %34 = vector.shape_cast %33 : vector<4x8xf32> to vector<4x8x1xf32>
    %35 = vector.broadcast %34 : vector<4x8x1xf32> to vector<4x8x8xf32>
    %36 = arith.subf %32, %35 : vector<4x8x8xf32>
    %37 = math.exp %36 : vector<4x8x8xf32>
    %cst_13 = arith.constant dense<0.000000e+00> : vector<4x8xf32>
    %38 = vector.multi_reduction <add>, %37, %cst_13 [2] : vector<4x8x8xf32> to vector<4x8xf32>
    %39 = vector.shape_cast %38 : vector<4x8xf32> to vector<4x8x1xf32>
    %40 = tpu.reciprocal %39 {approx = true} : vector<4x8x1xf32> -> vector<4x8x1xf32>
    %41 = vector.broadcast %40 : vector<4x8x1xf32> to vector<4x8x8xf32>
    %42 = arith.mulf %37, %41 : vector<4x8x8xf32>
    %43 = arith.truncf %42 : vector<4x8x8xf32> to vector<4x8x8xbf16>
    "tpu.trace_start"() <{level = 10 : i32, message = "bqk,bkd->bqd"}> : () -> ()
    %cst_14 = arith.constant dense<0.000000e+00> : vector<4x8x8xf32>
    %44 = tpu.matmul %43, %30, %cst_14 {dimension_numbers = #tpu.dot_dimension_numbers<[2], [1], [1], [2], [0, 0, 0, 1, 1, 2], [0], [0]>} : vector<4x8x8xbf16>, vector<4x8x8xbf16>, vector<4x8x8xf32> -> vector<4x8x8xf32>
    "tpu.trace_stop"() : () -> ()
    %45 = vector.extract_strided_slice %20 {offsets = [0, 0, 8], sizes = [4, 8, 8], strides = [1, 1, 1]} : vector<4x8x32xf32> to vector<4x8x8xf32>
    %46 = arith.truncf %45 : vector<4x8x8xf32> to vector<4x8x8xbf16>
    %47 = vector.extract_strided_slice %22 {offsets = [0, 0, 8], sizes = [4, 8, 8], strides = [1, 1, 1]} : vector<4x8x32xf32> to vector<4x8x8xf32>
    %48 = arith.truncf %47 : vector<4x8x8xf32> to vector<4x8x8xbf16>
    %49 = vector.extract_strided_slice %24 {offsets = [0, 0, 8], sizes = [4, 8, 8], strides = [1, 1, 1]} : vector<4x8x32xf32> to vector<4x8x8xf32>
    %50 = arith.truncf %49 : vector<4x8x8xf32> to vector<4x8x8xbf16>
    "tpu.trace_start"() <{level = 10 : i32, message = "bqd,bkd->bqk"}> : () -> ()
    %cst_15 = arith.constant dense<0.000000e+00> : vector<4x8x8xf32>
    %51 = tpu.matmul %46, %48, %cst_15 {dimension_numbers = #tpu.dot_dimension_numbers<[2], [2], [1], [1], [0, 0, 0, 1, 1, 1], [0], [0]>} : vector<4x8x8xbf16>, vector<4x8x8xbf16>, vector<4x8x8xf32> -> vector<4x8x8xf32>
    "tpu.trace_stop"() : () -> ()
    %52 = arith.addf %51, %10 : vector<4x8x8xf32>
    %cst_16 = arith.constant dense<0xFF800000> : vector<4x8xf32>
    %53 = vector.multi_reduction <maximumf>, %52, %cst_16 [2] : vector<4x8x8xf32> to vector<4x8xf32>
    %54 = vector.shape_cast %53 : vector<4x8xf32> to vector<4x8x1xf32>
    %55 = vector.broadcast %54 : vector<4x8x1xf32> to vector<4x8x8xf32>
    %56 = arith.subf %52, %55 : vector<4x8x8xf32>
    %57 = math.exp %56 : vector<4x8x8xf32>
    %cst_17 = arith.constant dense<0.000000e+00> : vector<4x8xf32>
    %58 = vector.multi_reduction <add>, %57, %cst_17 [2] : vector<4x8x8xf32> to vector<4x8xf32>
    %59 = vector.shape_cast %58 : vector<4x8xf32> to vector<4x8x1xf32>
    %60 = tpu.reciprocal %59 {approx = true} : vector<4x8x1xf32> -> vector<4x8x1xf32>
    %61 = vector.broadcast %60 : vector<4x8x1xf32> to vector<4x8x8xf32>
    %62 = arith.mulf %57, %61 : vector<4x8x8xf32>
    %63 = arith.truncf %62 : vector<4x8x8xf32> to vector<4x8x8xbf16>
    "tpu.trace_start"() <{level = 10 : i32, message = "bqk,bkd->bqd"}> : () -> ()
    %cst_18 = arith.constant dense<0.000000e+00> : vector<4x8x8xf32>
    %64 = tpu.matmul %63, %50, %cst_18 {dimension_numbers = #tpu.dot_dimension_numbers<[2], [1], [1], [2], [0, 0, 0, 1, 1, 2], [0], [0]>} : vector<4x8x8xbf16>, vector<4x8x8xbf16>, vector<4x8x8xf32> -> vector<4x8x8xf32>
    "tpu.trace_stop"() : () -> ()
    %65 = vector.extract_strided_slice %20 {offsets = [0, 0, 16], sizes = [4, 8, 8], strides = [1, 1, 1]} : vector<4x8x32xf32> to vector<4x8x8xf32>
    %66 = arith.truncf %65 : vector<4x8x8xf32> to vector<4x8x8xbf16>
    %67 = vector.extract_strided_slice %22 {offsets = [0, 0, 16], sizes = [4, 8, 8], strides = [1, 1, 1]} : vector<4x8x32xf32> to vector<4x8x8xf32>
    %68 = arith.truncf %67 : vector<4x8x8xf32> to vector<4x8x8xbf16>
    %69 = vector.extract_strided_slice %24 {offsets = [0, 0, 16], sizes = [4, 8, 8], strides = [1, 1, 1]} : vector<4x8x32xf32> to vector<4x8x8xf32>
    %70 = arith.truncf %69 : vector<4x8x8xf32> to vector<4x8x8xbf16>
    "tpu.trace_start"() <{level = 10 : i32, message = "bqd,bkd->bqk"}> : () -> ()
    %cst_19 = arith.constant dense<0.000000e+00> : vector<4x8x8xf32>
    %71 = tpu.matmul %66, %68, %cst_19 {dimension_numbers = #tpu.dot_dimension_numbers<[2], [2], [1], [1], [0, 0, 0, 1, 1, 1], [0], [0]>} : vector<4x8x8xbf16>, vector<4x8x8xbf16>, vector<4x8x8xf32> -> vector<4x8x8xf32>
    "tpu.trace_stop"() : () -> ()
    %72 = arith.addf %71, %10 : vector<4x8x8xf32>
    %cst_20 = arith.constant dense<0xFF800000> : vector<4x8xf32>
    %73 = vector.multi_reduction <maximumf>, %72, %cst_20 [2] : vector<4x8x8xf32> to vector<4x8xf32>
    %74 = vector.shape_cast %73 : vector<4x8xf32> to vector<4x8x1xf32>
    %75 = vector.broadcast %74 : vector<4x8x1xf32> to vector<4x8x8xf32>
    %76 = arith.subf %72, %75 : vector<4x8x8xf32>
    %77 = math.exp %76 : vector<4x8x8xf32>
    %cst_21 = arith.constant dense<0.000000e+00> : vector<4x8xf32>
    %78 = vector.multi_reduction <add>, %77, %cst_21 [2] : vector<4x8x8xf32> to vector<4x8xf32>
    %79 = vector.shape_cast %78 : vector<4x8xf32> to vector<4x8x1xf32>
    %80 = tpu.reciprocal %79 {approx = true} : vector<4x8x1xf32> -> vector<4x8x1xf32>
    %81 = vector.broadcast %80 : vector<4x8x1xf32> to vector<4x8x8xf32>
    %82 = arith.mulf %77, %81 : vector<4x8x8xf32>
    %83 = arith.truncf %82 : vector<4x8x8xf32> to vector<4x8x8xbf16>
    "tpu.trace_start"() <{level = 10 : i32, message = "bqk,bkd->bqd"}> : () -> ()
    %cst_22 = arith.constant dense<0.000000e+00> : vector<4x8x8xf32>
    %84 = tpu.matmul %83, %70, %cst_22 {dimension_numbers = #tpu.dot_dimension_numbers<[2], [1], [1], [2], [0, 0, 0, 1, 1, 2], [0], [0]>} : vector<4x8x8xbf16>, vector<4x8x8xbf16>, vector<4x8x8xf32> -> vector<4x8x8xf32>
    "tpu.trace_stop"() : () -> ()
    %85 = vector.extract_strided_slice %20 {offsets = [0, 0, 24], sizes = [4, 8, 8], strides = [1, 1, 1]} : vector<4x8x32xf32> to vector<4x8x8xf32>
    %86 = arith.truncf %85 : vector<4x8x8xf32> to vector<4x8x8xbf16>
    %87 = vector.extract_strided_slice %22 {offsets = [0, 0, 24], sizes = [4, 8, 8], strides = [1, 1, 1]} : vector<4x8x32xf32> to vector<4x8x8xf32>
    %88 = arith.truncf %87 : vector<4x8x8xf32> to vector<4x8x8xbf16>
    %89 = vector.extract_strided_slice %24 {offsets = [0, 0, 24], sizes = [4, 8, 8], strides = [1, 1, 1]} : vector<4x8x32xf32> to vector<4x8x8xf32>
    %90 = arith.truncf %89 : vector<4x8x8xf32> to vector<4x8x8xbf16>
    "tpu.trace_start"() <{level = 10 : i32, message = "bqd,bkd->bqk"}> : () -> ()
    %cst_23 = arith.constant dense<0.000000e+00> : vector<4x8x8xf32>
    %91 = tpu.matmul %86, %88, %cst_23 {dimension_numbers = #tpu.dot_dimension_numbers<[2], [2], [1], [1], [0, 0, 0, 1, 1, 1], [0], [0]>} : vector<4x8x8xbf16>, vector<4x8x8xbf16>, vector<4x8x8xf32> -> vector<4x8x8xf32>
    "tpu.trace_stop"() : () -> ()
    %92 = arith.addf %91, %10 : vector<4x8x8xf32>
    %cst_24 = arith.constant dense<0xFF800000> : vector<4x8xf32>
    %93 = vector.multi_reduction <maximumf>, %92, %cst_24 [2] : vector<4x8x8xf32> to vector<4x8xf32>
    %94 = vector.shape_cast %93 : vector<4x8xf32> to vector<4x8x1xf32>
    %95 = vector.broadcast %94 : vector<4x8x1xf32> to vector<4x8x8xf32>
    %96 = arith.subf %92, %95 : vector<4x8x8xf32>
    %97 = math.exp %96 : vector<4x8x8xf32>
    %cst_25 = arith.constant dense<0.000000e+00> : vector<4x8xf32>
    %98 = vector.multi_reduction <add>, %97, %cst_25 [2] : vector<4x8x8xf32> to vector<4x8xf32>
    %99 = vector.shape_cast %98 : vector<4x8xf32> to vector<4x8x1xf32>
    %100 = tpu.reciprocal %99 {approx = true} : vector<4x8x1xf32> -> vector<4x8x1xf32>
    %101 = vector.broadcast %100 : vector<4x8x1xf32> to vector<4x8x8xf32>
    %102 = arith.mulf %97, %101 : vector<4x8x8xf32>
    %103 = arith.truncf %102 : vector<4x8x8xf32> to vector<4x8x8xbf16>
    "tpu.trace_start"() <{level = 10 : i32, message = "bqk,bkd->bqd"}> : () -> ()
    %cst_26 = arith.constant dense<0.000000e+00> : vector<4x8x8xf32>
    %104 = tpu.matmul %103, %90, %cst_26 {dimension_numbers = #tpu.dot_dimension_numbers<[2], [1], [1], [2], [0, 0, 0, 1, 1, 2], [0], [0]>} : vector<4x8x8xbf16>, vector<4x8x8xbf16>, vector<4x8x8xf32> -> vector<4x8x8xf32>
    "tpu.trace_stop"() : () -> ()
    %105 = tpu.concatenate %44, %64, %84, %104 in 2 : vector<4x8x8xf32>, vector<4x8x8xf32>, vector<4x8x8xf32>, vector<4x8x8xf32> -> vector<4x8x32xf32>
    %106 = vector.shape_cast %105 : vector<4x8x32xf32> to vector<32x32xf32>
    %107 = arith.truncf %106 : vector<32x32xf32> to vector<32x32xbf16>
    %c0_27 = arith.constant 0 : index
    %c0_28 = arith.constant 0 : index
    %108 = vector.load %arg5[%c0_27, %c0_28] : memref<32x32xbf16, #tpu.memory_space<vmem>>, vector<32x32xbf16>
    %cst_29 = arith.constant dense<0.000000e+00> : vector<32x32xf32>
    %109 = tpu.matmul %107, %108, %cst_29 {dimension_numbers = #tpu.dot_dimension_numbers<[1], [0], [0], [1], [0, 0, 1, 1], [], []>} : vector<32x32xbf16>, vector<32x32xbf16>, vector<32x32xf32> -> vector<32x32xf32>
    %c0_30 = arith.constant 0 : index
    %c0_31 = arith.constant 0 : index
    %110 = vector.load %arg6[%c0_30, %c0_31] : memref<1x32xf32, #tpu.memory_space<vmem>>, vector<1x32xf32>
    %111 = vector.broadcast %110 : vector<1x32xf32> to vector<32x32xf32>
    %112 = arith.addf %109, %111 : vector<32x32xf32>
    %113 = arith.addf %11, %112 : vector<32x32xf32>
    %c0_32 = arith.constant 0 : index
    %c0_33 = arith.constant 0 : index
    %114 = vector.load %arg17[%c0_32, %c0_33] : memref<1x32xf32, #tpu.memory_space<vmem>>, vector<1x32xf32>
    %c0_34 = arith.constant 0 : index
    %c0_35 = arith.constant 0 : index
    %115 = vector.load %arg18[%c0_34, %c0_35] : memref<1x32xf32, #tpu.memory_space<vmem>>, vector<1x32xf32>
    %cst_36 = arith.constant dense<0.000000e+00> : vector<32xf32>
    %116 = vector.multi_reduction <add>, %113, %cst_36 [1] : vector<32x32xf32> to vector<32xf32>
    %117 = vector.shape_cast %116 : vector<32xf32> to vector<32x1xf32>
    %cst_37 = arith.constant 3.200000e+01 : f32
    %118 = vector.broadcast %cst_37 : f32 to vector<32x1xf32>
    %119 = arith.divf %117, %118 : vector<32x1xf32>
    %120 = vector.broadcast %119 : vector<32x1xf32> to vector<32x32xf32>
    %121 = arith.subf %113, %120 : vector<32x32xf32>
    %122 = arith.mulf %121, %121 : vector<32x32xf32>
    %cst_38 = arith.constant dense<0.000000e+00> : vector<32xf32>
    %123 = vector.multi_reduction <add>, %122, %cst_38 [1] : vector<32x32xf32> to vector<32xf32>
    %124 = vector.shape_cast %123 : vector<32xf32> to vector<32x1xf32>
    %cst_39 = arith.constant 3.200000e+01 : f32
    %125 = vector.broadcast %cst_39 : f32 to vector<32x1xf32>
    %126 = arith.divf %124, %125 : vector<32x1xf32>
    %127 = vector.broadcast %119 : vector<32x1xf32> to vector<32x32xf32>
    %128 = arith.subf %113, %127 : vector<32x32xf32>
    %cst_40 = arith.constant 9.99999974E-6 : f32
    %129 = vector.broadcast %cst_40 : f32 to vector<32x1xf32>
    %130 = arith.addf %126, %129 : vector<32x1xf32>
    %131 = math.rsqrt %130 : vector<32x1xf32>
    %132 = vector.broadcast %131 : vector<32x1xf32> to vector<32x32xf32>
    %133 = arith.mulf %128, %132 : vector<32x32xf32>
    %134 = vector.broadcast %114 : vector<1x32xf32> to vector<32x32xf32>
    %135 = arith.mulf %133, %134 : vector<32x32xf32>
    %136 = vector.broadcast %115 : vector<1x32xf32> to vector<32x32xf32>
    %137 = arith.addf %135, %136 : vector<32x32xf32>
    %138 = arith.truncf %137 : vector<32x32xf32> to vector<32x32xbf16>
    %c0_41 = arith.constant 0 : index
    %c0_42 = arith.constant 0 : index
    %139 = vector.load %arg7[%c0_41, %c0_42] : memref<32x32xbf16, #tpu.memory_space<vmem>>, vector<32x32xbf16>
    %cst_43 = arith.constant dense<0.000000e+00> : vector<32x32xf32>
    %140 = tpu.matmul %138, %139, %cst_43 {dimension_numbers = #tpu.dot_dimension_numbers<[1], [0], [0], [1], [0, 0, 1, 1], [], []>} : vector<32x32xbf16>, vector<32x32xbf16>, vector<32x32xf32> -> vector<32x32xf32>
    %c0_44 = arith.constant 0 : index
    %c0_45 = arith.constant 0 : index
    %141 = vector.load %arg8[%c0_44, %c0_45] : memref<1x32xf32, #tpu.memory_space<vmem>>, vector<1x32xf32>
    %142 = vector.broadcast %141 : vector<1x32xf32> to vector<32x32xf32>
    %143 = arith.addf %140, %142 : vector<32x32xf32>
    %144 = vector.shape_cast %143 : vector<32x32xf32> to vector<4x8x32xf32>
    %145 = arith.truncf %12 : vector<32x32xf32> to vector<32x32xbf16>
    %c0_46 = arith.constant 0 : index
    %c0_47 = arith.constant 0 : index
    %146 = vector.load %arg9[%c0_46, %c0_47] : memref<32x64xbf16, #tpu.memory_space<vmem>>, vector<32x64xbf16>
    %cst_48 = arith.constant dense<0.000000e+00> : vector<32x64xf32>
    %147 = tpu.matmul %145, %146, %cst_48 {dimension_numbers = #tpu.dot_dimension_numbers<[1], [0], [0], [1], [0, 0, 1, 1], [], []>} : vector<32x32xbf16>, vector<32x64xbf16>, vector<32x64xf32> -> vector<32x64xf32>
    %c0_49 = arith.constant 0 : index
    %c0_50 = arith.constant 0 : index
    %148 = vector.load %arg10[%c0_49, %c0_50] : memref<1x64xf32, #tpu.memory_space<vmem>>, vector<1x64xf32>
    %149 = vector.broadcast %148 : vector<1x64xf32> to vector<32x64xf32>
    %150 = arith.addf %147, %149 : vector<32x64xf32>
    %151 = vector.extract_strided_slice %150 {offsets = [0, 0], sizes = [32, 32], strides = [1, 1]} : vector<32x64xf32> to vector<32x32xf32>
    %152 = vector.shape_cast %151 : vector<32x32xf32> to vector<4x8x32xf32>
    %153 = vector.extract_strided_slice %150 {offsets = [0, 32], sizes = [32, 32], strides = [1, 1]} : vector<32x64xf32> to vector<32x32xf32>
    %154 = vector.shape_cast %153 : vector<32x32xf32> to vector<4x8x32xf32>
    %155 = vector.extract_strided_slice %144 {offsets = [0, 0, 0], sizes = [4, 8, 8], strides = [1, 1, 1]} : vector<4x8x32xf32> to vector<4x8x8xf32>
    %156 = arith.truncf %155 : vector<4x8x8xf32> to vector<4x8x8xbf16>
    %157 = vector.extract_strided_slice %152 {offsets = [0, 0, 0], sizes = [4, 8, 8], strides = [1, 1, 1]} : vector<4x8x32xf32> to vector<4x8x8xf32>
    %158 = arith.truncf %157 : vector<4x8x8xf32> to vector<4x8x8xbf16>
    %159 = vector.extract_strided_slice %154 {offsets = [0, 0, 0], sizes = [4, 8, 8], strides = [1, 1, 1]} : vector<4x8x32xf32> to vector<4x8x8xf32>
    %160 = arith.truncf %159 : vector<4x8x8xf32> to vector<4x8x8xbf16>
    "tpu.trace_start"() <{level = 10 : i32, message = "bqd,bkd->bqk"}> : () -> ()
    %cst_51 = arith.constant dense<0.000000e+00> : vector<4x8x8xf32>
    %161 = tpu.matmul %156, %158, %cst_51 {dimension_numbers = #tpu.dot_dimension_numbers<[2], [2], [1], [1], [0, 0, 0, 1, 1, 1], [0], [0]>} : vector<4x8x8xbf16>, vector<4x8x8xbf16>, vector<4x8x8xf32> -> vector<4x8x8xf32>
    "tpu.trace_stop"() : () -> ()
    %cst_52 = arith.constant dense<0xFF800000> : vector<4x8xf32>
    %162 = vector.multi_reduction <maximumf>, %161, %cst_52 [2] : vector<4x8x8xf32> to vector<4x8xf32>
    %163 = vector.shape_cast %162 : vector<4x8xf32> to vector<4x8x1xf32>
    %164 = vector.broadcast %163 : vector<4x8x1xf32> to vector<4x8x8xf32>
    %165 = arith.subf %161, %164 : vector<4x8x8xf32>
    %166 = math.exp %165 : vector<4x8x8xf32>
    %cst_53 = arith.constant dense<0.000000e+00> : vector<4x8xf32>
    %167 = vector.multi_reduction <add>, %166, %cst_53 [2] : vector<4x8x8xf32> to vector<4x8xf32>
    %168 = vector.shape_cast %167 : vector<4x8xf32> to vector<4x8x1xf32>
    %169 = tpu.reciprocal %168 {approx = true} : vector<4x8x1xf32> -> vector<4x8x1xf32>
    %170 = vector.broadcast %169 : vector<4x8x1xf32> to vector<4x8x8xf32>
    %171 = arith.mulf %166, %170 : vector<4x8x8xf32>
    %172 = arith.truncf %171 : vector<4x8x8xf32> to vector<4x8x8xbf16>
    "tpu.trace_start"() <{level = 10 : i32, message = "bqk,bkd->bqd"}> : () -> ()
    %cst_54 = arith.constant dense<0.000000e+00> : vector<4x8x8xf32>
    %173 = tpu.matmul %172, %160, %cst_54 {dimension_numbers = #tpu.dot_dimension_numbers<[2], [1], [1], [2], [0, 0, 0, 1, 1, 2], [0], [0]>} : vector<4x8x8xbf16>, vector<4x8x8xbf16>, vector<4x8x8xf32> -> vector<4x8x8xf32>
    "tpu.trace_stop"() : () -> ()
    %174 = vector.extract_strided_slice %144 {offsets = [0, 0, 8], sizes = [4, 8, 8], strides = [1, 1, 1]} : vector<4x8x32xf32> to vector<4x8x8xf32>
    %175 = arith.truncf %174 : vector<4x8x8xf32> to vector<4x8x8xbf16>
    %176 = vector.extract_strided_slice %152 {offsets = [0, 0, 8], sizes = [4, 8, 8], strides = [1, 1, 1]} : vector<4x8x32xf32> to vector<4x8x8xf32>
    %177 = arith.truncf %176 : vector<4x8x8xf32> to vector<4x8x8xbf16>
    %178 = vector.extract_strided_slice %154 {offsets = [0, 0, 8], sizes = [4, 8, 8], strides = [1, 1, 1]} : vector<4x8x32xf32> to vector<4x8x8xf32>
    %179 = arith.truncf %178 : vector<4x8x8xf32> to vector<4x8x8xbf16>
    "tpu.trace_start"() <{level = 10 : i32, message = "bqd,bkd->bqk"}> : () -> ()
    %cst_55 = arith.constant dense<0.000000e+00> : vector<4x8x8xf32>
    %180 = tpu.matmul %175, %177, %cst_55 {dimension_numbers = #tpu.dot_dimension_numbers<[2], [2], [1], [1], [0, 0, 0, 1, 1, 1], [0], [0]>} : vector<4x8x8xbf16>, vector<4x8x8xbf16>, vector<4x8x8xf32> -> vector<4x8x8xf32>
    "tpu.trace_stop"() : () -> ()
    %cst_56 = arith.constant dense<0xFF800000> : vector<4x8xf32>
    %181 = vector.multi_reduction <maximumf>, %180, %cst_56 [2] : vector<4x8x8xf32> to vector<4x8xf32>
    %182 = vector.shape_cast %181 : vector<4x8xf32> to vector<4x8x1xf32>
    %183 = vector.broadcast %182 : vector<4x8x1xf32> to vector<4x8x8xf32>
    %184 = arith.subf %180, %183 : vector<4x8x8xf32>
    %185 = math.exp %184 : vector<4x8x8xf32>
    %cst_57 = arith.constant dense<0.000000e+00> : vector<4x8xf32>
    %186 = vector.multi_reduction <add>, %185, %cst_57 [2] : vector<4x8x8xf32> to vector<4x8xf32>
    %187 = vector.shape_cast %186 : vector<4x8xf32> to vector<4x8x1xf32>
    %188 = tpu.reciprocal %187 {approx = true} : vector<4x8x1xf32> -> vector<4x8x1xf32>
    %189 = vector.broadcast %188 : vector<4x8x1xf32> to vector<4x8x8xf32>
    %190 = arith.mulf %185, %189 : vector<4x8x8xf32>
    %191 = arith.truncf %190 : vector<4x8x8xf32> to vector<4x8x8xbf16>
    "tpu.trace_start"() <{level = 10 : i32, message = "bqk,bkd->bqd"}> : () -> ()
    %cst_58 = arith.constant dense<0.000000e+00> : vector<4x8x8xf32>
    %192 = tpu.matmul %191, %179, %cst_58 {dimension_numbers = #tpu.dot_dimension_numbers<[2], [1], [1], [2], [0, 0, 0, 1, 1, 2], [0], [0]>} : vector<4x8x8xbf16>, vector<4x8x8xbf16>, vector<4x8x8xf32> -> vector<4x8x8xf32>
    "tpu.trace_stop"() : () -> ()
    %193 = vector.extract_strided_slice %144 {offsets = [0, 0, 16], sizes = [4, 8, 8], strides = [1, 1, 1]} : vector<4x8x32xf32> to vector<4x8x8xf32>
    %194 = arith.truncf %193 : vector<4x8x8xf32> to vector<4x8x8xbf16>
    %195 = vector.extract_strided_slice %152 {offsets = [0, 0, 16], sizes = [4, 8, 8], strides = [1, 1, 1]} : vector<4x8x32xf32> to vector<4x8x8xf32>
    %196 = arith.truncf %195 : vector<4x8x8xf32> to vector<4x8x8xbf16>
    %197 = vector.extract_strided_slice %154 {offsets = [0, 0, 16], sizes = [4, 8, 8], strides = [1, 1, 1]} : vector<4x8x32xf32> to vector<4x8x8xf32>
    %198 = arith.truncf %197 : vector<4x8x8xf32> to vector<4x8x8xbf16>
    "tpu.trace_start"() <{level = 10 : i32, message = "bqd,bkd->bqk"}> : () -> ()
    %cst_59 = arith.constant dense<0.000000e+00> : vector<4x8x8xf32>
    %199 = tpu.matmul %194, %196, %cst_59 {dimension_numbers = #tpu.dot_dimension_numbers<[2], [2], [1], [1], [0, 0, 0, 1, 1, 1], [0], [0]>} : vector<4x8x8xbf16>, vector<4x8x8xbf16>, vector<4x8x8xf32> -> vector<4x8x8xf32>
    "tpu.trace_stop"() : () -> ()
    %cst_60 = arith.constant dense<0xFF800000> : vector<4x8xf32>
    %200 = vector.multi_reduction <maximumf>, %199, %cst_60 [2] : vector<4x8x8xf32> to vector<4x8xf32>
    %201 = vector.shape_cast %200 : vector<4x8xf32> to vector<4x8x1xf32>
    %202 = vector.broadcast %201 : vector<4x8x1xf32> to vector<4x8x8xf32>
    %203 = arith.subf %199, %202 : vector<4x8x8xf32>
    %204 = math.exp %203 : vector<4x8x8xf32>
    %cst_61 = arith.constant dense<0.000000e+00> : vector<4x8xf32>
    %205 = vector.multi_reduction <add>, %204, %cst_61 [2] : vector<4x8x8xf32> to vector<4x8xf32>
    %206 = vector.shape_cast %205 : vector<4x8xf32> to vector<4x8x1xf32>
    %207 = tpu.reciprocal %206 {approx = true} : vector<4x8x1xf32> -> vector<4x8x1xf32>
    %208 = vector.broadcast %207 : vector<4x8x1xf32> to vector<4x8x8xf32>
    %209 = arith.mulf %204, %208 : vector<4x8x8xf32>
    %210 = arith.truncf %209 : vector<4x8x8xf32> to vector<4x8x8xbf16>
    "tpu.trace_start"() <{level = 10 : i32, message = "bqk,bkd->bqd"}> : () -> ()
    %cst_62 = arith.constant dense<0.000000e+00> : vector<4x8x8xf32>
    %211 = tpu.matmul %210, %198, %cst_62 {dimension_numbers = #tpu.dot_dimension_numbers<[2], [1], [1], [2], [0, 0, 0, 1, 1, 2], [0], [0]>} : vector<4x8x8xbf16>, vector<4x8x8xbf16>, vector<4x8x8xf32> -> vector<4x8x8xf32>
    "tpu.trace_stop"() : () -> ()
    %212 = vector.extract_strided_slice %144 {offsets = [0, 0, 24], sizes = [4, 8, 8], strides = [1, 1, 1]} : vector<4x8x32xf32> to vector<4x8x8xf32>
    %213 = arith.truncf %212 : vector<4x8x8xf32> to vector<4x8x8xbf16>
    %214 = vector.extract_strided_slice %152 {offsets = [0, 0, 24], sizes = [4, 8, 8], strides = [1, 1, 1]} : vector<4x8x32xf32> to vector<4x8x8xf32>
    %215 = arith.truncf %214 : vector<4x8x8xf32> to vector<4x8x8xbf16>
    %216 = vector.extract_strided_slice %154 {offsets = [0, 0, 24], sizes = [4, 8, 8], strides = [1, 1, 1]} : vector<4x8x32xf32> to vector<4x8x8xf32>
    %217 = arith.truncf %216 : vector<4x8x8xf32> to vector<4x8x8xbf16>
    "tpu.trace_start"() <{level = 10 : i32, message = "bqd,bkd->bqk"}> : () -> ()
    %cst_63 = arith.constant dense<0.000000e+00> : vector<4x8x8xf32>
    %218 = tpu.matmul %213, %215, %cst_63 {dimension_numbers = #tpu.dot_dimension_numbers<[2], [2], [1], [1], [0, 0, 0, 1, 1, 1], [0], [0]>} : vector<4x8x8xbf16>, vector<4x8x8xbf16>, vector<4x8x8xf32> -> vector<4x8x8xf32>
    "tpu.trace_stop"() : () -> ()
    %cst_64 = arith.constant dense<0xFF800000> : vector<4x8xf32>
    %219 = vector.multi_reduction <maximumf>, %218, %cst_64 [2] : vector<4x8x8xf32> to vector<4x8xf32>
    %220 = vector.shape_cast %219 : vector<4x8xf32> to vector<4x8x1xf32>
    %221 = vector.broadcast %220 : vector<4x8x1xf32> to vector<4x8x8xf32>
    %222 = arith.subf %218, %221 : vector<4x8x8xf32>
    %223 = math.exp %222 : vector<4x8x8xf32>
    %cst_65 = arith.constant dense<0.000000e+00> : vector<4x8xf32>
    %224 = vector.multi_reduction <add>, %223, %cst_65 [2] : vector<4x8x8xf32> to vector<4x8xf32>
    %225 = vector.shape_cast %224 : vector<4x8xf32> to vector<4x8x1xf32>
    %226 = tpu.reciprocal %225 {approx = true} : vector<4x8x1xf32> -> vector<4x8x1xf32>
    %227 = vector.broadcast %226 : vector<4x8x1xf32> to vector<4x8x8xf32>
    %228 = arith.mulf %223, %227 : vector<4x8x8xf32>
    %229 = arith.truncf %228 : vector<4x8x8xf32> to vector<4x8x8xbf16>
    "tpu.trace_start"() <{level = 10 : i32, message = "bqk,bkd->bqd"}> : () -> ()
    %cst_66 = arith.constant dense<0.000000e+00> : vector<4x8x8xf32>
    %230 = tpu.matmul %229, %217, %cst_66 {dimension_numbers = #tpu.dot_dimension_numbers<[2], [1], [1], [2], [0, 0, 0, 1, 1, 2], [0], [0]>} : vector<4x8x8xbf16>, vector<4x8x8xbf16>, vector<4x8x8xf32> -> vector<4x8x8xf32>
    "tpu.trace_stop"() : () -> ()
    %231 = tpu.concatenate %173, %192, %211, %230 in 2 : vector<4x8x8xf32>, vector<4x8x8xf32>, vector<4x8x8xf32>, vector<4x8x8xf32> -> vector<4x8x32xf32>
    %232 = vector.shape_cast %231 : vector<4x8x32xf32> to vector<32x32xf32>
    %233 = arith.truncf %232 : vector<32x32xf32> to vector<32x32xbf16>
    %c0_67 = arith.constant 0 : index
    %c0_68 = arith.constant 0 : index
    %234 = vector.load %arg11[%c0_67, %c0_68] : memref<32x32xbf16, #tpu.memory_space<vmem>>, vector<32x32xbf16>
    %cst_69 = arith.constant dense<0.000000e+00> : vector<32x32xf32>
    %235 = tpu.matmul %233, %234, %cst_69 {dimension_numbers = #tpu.dot_dimension_numbers<[1], [0], [0], [1], [0, 0, 1, 1], [], []>} : vector<32x32xbf16>, vector<32x32xbf16>, vector<32x32xf32> -> vector<32x32xf32>
    %c0_70 = arith.constant 0 : index
    %c0_71 = arith.constant 0 : index
    %236 = vector.load %arg12[%c0_70, %c0_71] : memref<1x32xf32, #tpu.memory_space<vmem>>, vector<1x32xf32>
    %237 = vector.broadcast %236 : vector<1x32xf32> to vector<32x32xf32>
    %238 = arith.addf %235, %237 : vector<32x32xf32>
    %239 = arith.addf %137, %238 : vector<32x32xf32>
    %c0_72 = arith.constant 0 : index
    %c0_73 = arith.constant 0 : index
    %240 = vector.load %arg19[%c0_72, %c0_73] : memref<1x32xf32, #tpu.memory_space<vmem>>, vector<1x32xf32>
    %c0_74 = arith.constant 0 : index
    %c0_75 = arith.constant 0 : index
    %241 = vector.load %arg20[%c0_74, %c0_75] : memref<1x32xf32, #tpu.memory_space<vmem>>, vector<1x32xf32>
    %cst_76 = arith.constant dense<0.000000e+00> : vector<32xf32>
    %242 = vector.multi_reduction <add>, %239, %cst_76 [1] : vector<32x32xf32> to vector<32xf32>
    %243 = vector.shape_cast %242 : vector<32xf32> to vector<32x1xf32>
    %cst_77 = arith.constant 3.200000e+01 : f32
    %244 = vector.broadcast %cst_77 : f32 to vector<32x1xf32>
    %245 = arith.divf %243, %244 : vector<32x1xf32>
    %246 = vector.broadcast %245 : vector<32x1xf32> to vector<32x32xf32>
    %247 = arith.subf %239, %246 : vector<32x32xf32>
    %248 = arith.mulf %247, %247 : vector<32x32xf32>
    %cst_78 = arith.constant dense<0.000000e+00> : vector<32xf32>
    %249 = vector.multi_reduction <add>, %248, %cst_78 [1] : vector<32x32xf32> to vector<32xf32>
    %250 = vector.shape_cast %249 : vector<32xf32> to vector<32x1xf32>
    %cst_79 = arith.constant 3.200000e+01 : f32
    %251 = vector.broadcast %cst_79 : f32 to vector<32x1xf32>
    %252 = arith.divf %250, %251 : vector<32x1xf32>
    %253 = vector.broadcast %245 : vector<32x1xf32> to vector<32x32xf32>
    %254 = arith.subf %239, %253 : vector<32x32xf32>
    %cst_80 = arith.constant 9.99999974E-6 : f32
    %255 = vector.broadcast %cst_80 : f32 to vector<32x1xf32>
    %256 = arith.addf %252, %255 : vector<32x1xf32>
    %257 = math.rsqrt %256 : vector<32x1xf32>
    %258 = vector.broadcast %257 : vector<32x1xf32> to vector<32x32xf32>
    %259 = arith.mulf %254, %258 : vector<32x32xf32>
    %260 = vector.broadcast %240 : vector<1x32xf32> to vector<32x32xf32>
    %261 = arith.mulf %259, %260 : vector<32x32xf32>
    %262 = vector.broadcast %241 : vector<1x32xf32> to vector<32x32xf32>
    %263 = arith.addf %261, %262 : vector<32x32xf32>
    %264 = arith.truncf %263 : vector<32x32xf32> to vector<32x32xbf16>
    %c0_81 = arith.constant 0 : index
    %c0_82 = arith.constant 0 : index
    %265 = vector.load %arg13[%c0_81, %c0_82] : memref<32x64xbf16, #tpu.memory_space<vmem>>, vector<32x64xbf16>
    %cst_83 = arith.constant dense<0.000000e+00> : vector<32x64xf32>
    %266 = tpu.matmul %264, %265, %cst_83 {dimension_numbers = #tpu.dot_dimension_numbers<[1], [0], [0], [1], [0, 0, 1, 1], [], []>} : vector<32x32xbf16>, vector<32x64xbf16>, vector<32x64xf32> -> vector<32x64xf32>
    %c0_84 = arith.constant 0 : index
    %c0_85 = arith.constant 0 : index
    %267 = vector.load %arg14[%c0_84, %c0_85] : memref<1x64xf32, #tpu.memory_space<vmem>>, vector<1x64xf32>
    %268 = vector.broadcast %267 : vector<1x64xf32> to vector<32x64xf32>
    %269 = arith.addf %266, %268 : vector<32x64xf32>
    %cst_86 = arith.constant 0.000000e+00 : f32
    %270 = vector.broadcast %cst_86 : f32 to vector<32x64xf32>
    %271 = arith.maximumf %269, %270 : vector<32x64xf32>
    %272 = arith.truncf %271 : vector<32x64xf32> to vector<32x64xbf16>
    %c0_87 = arith.constant 0 : index
    %c0_88 = arith.constant 0 : index
    %273 = vector.load %arg15[%c0_87, %c0_88] : memref<64x32xbf16, #tpu.memory_space<vmem>>, vector<64x32xbf16>
    %cst_89 = arith.constant dense<0.000000e+00> : vector<32x32xf32>
    %274 = tpu.matmul %272, %273, %cst_89 {dimension_numbers = #tpu.dot_dimension_numbers<[1], [0], [0], [1], [0, 0, 1, 1], [], []>} : vector<32x64xbf16>, vector<64x32xbf16>, vector<32x32xf32> -> vector<32x32xf32>
    %c0_90 = arith.constant 0 : index
    %c0_91 = arith.constant 0 : index
    %275 = vector.load %arg16[%c0_90, %c0_91] : memref<1x32xf32, #tpu.memory_space<vmem>>, vector<1x32xf32>
    %276 = vector.broadcast %275 : vector<1x32xf32> to vector<32x32xf32>
    %277 = arith.addf %274, %276 : vector<32x32xf32>
    %278 = arith.addf %263, %277 : vector<32x32xf32>
    %c0_92 = arith.constant 0 : index
    %c0_93 = arith.constant 0 : index
    %279 = vector.load %arg21[%c0_92, %c0_93] : memref<1x32xf32, #tpu.memory_space<vmem>>, vector<1x32xf32>
    %c0_94 = arith.constant 0 : index
    %c0_95 = arith.constant 0 : index
    %280 = vector.load %arg22[%c0_94, %c0_95] : memref<1x32xf32, #tpu.memory_space<vmem>>, vector<1x32xf32>
    %cst_96 = arith.constant dense<0.000000e+00> : vector<32xf32>
    %281 = vector.multi_reduction <add>, %278, %cst_96 [1] : vector<32x32xf32> to vector<32xf32>
    %282 = vector.shape_cast %281 : vector<32xf32> to vector<32x1xf32>
    %cst_97 = arith.constant 3.200000e+01 : f32
    %283 = vector.broadcast %cst_97 : f32 to vector<32x1xf32>
    %284 = arith.divf %282, %283 : vector<32x1xf32>
    %285 = vector.broadcast %284 : vector<32x1xf32> to vector<32x32xf32>
    %286 = arith.subf %278, %285 : vector<32x32xf32>
    %287 = arith.mulf %286, %286 : vector<32x32xf32>
    %cst_98 = arith.constant dense<0.000000e+00> : vector<32xf32>
    %288 = vector.multi_reduction <add>, %287, %cst_98 [1] : vector<32x32xf32> to vector<32xf32>
    %289 = vector.shape_cast %288 : vector<32xf32> to vector<32x1xf32>
    %cst_99 = arith.constant 3.200000e+01 : f32
    %290 = vector.broadcast %cst_99 : f32 to vector<32x1xf32>
    %291 = arith.divf %289, %290 : vector<32x1xf32>
    %292 = vector.broadcast %284 : vector<32x1xf32> to vector<32x32xf32>
    %293 = arith.subf %278, %292 : vector<32x32xf32>
    %cst_100 = arith.constant 9.99999974E-6 : f32
    %294 = vector.broadcast %cst_100 : f32 to vector<32x1xf32>
    %295 = arith.addf %291, %294 : vector<32x1xf32>
    %296 = math.rsqrt %295 : vector<32x1xf32>
    %297 = vector.broadcast %296 : vector<32x1xf32> to vector<32x32xf32>
    %298 = arith.mulf %293, %297 : vector<32x32xf32>
    %299 = vector.broadcast %279 : vector<1x32xf32> to vector<32x32xf32>
    %300 = arith.mulf %298, %299 : vector<32x32xf32>
    %301 = vector.broadcast %280 : vector<1x32xf32> to vector<32x32xf32>
    %302 = arith.addf %300, %301 : vector<32x32xf32>
    %303 = arith.truncf %302 : vector<32x32xf32> to vector<32x32xbf16>
    %c0_101 = arith.constant 0 : index
    %c0_102 = arith.constant 0 : index
    %304 = vector.load %arg23[%c0_101, %c0_102] : memref<32x96xbf16, #tpu.memory_space<vmem>>, vector<32x96xbf16>
    %cst_103 = arith.constant dense<0.000000e+00> : vector<32x96xf32>
    %305 = tpu.matmul %303, %304, %cst_103 {dimension_numbers = #tpu.dot_dimension_numbers<[1], [0], [0], [1], [0, 0, 1, 1], [], []>} : vector<32x32xbf16>, vector<32x96xbf16>, vector<32x96xf32> -> vector<32x96xf32>
    %c0_104 = arith.constant 0 : index
    %c0_105 = arith.constant 0 : index
    %306 = vector.load %arg24[%c0_104, %c0_105] : memref<1x96xf32, #tpu.memory_space<vmem>>, vector<1x96xf32>
    %307 = vector.broadcast %306 : vector<1x96xf32> to vector<32x96xf32>
    %308 = arith.addf %305, %307 : vector<32x96xf32>
    %309 = vector.extract_strided_slice %308 {offsets = [0, 0], sizes = [32, 32], strides = [1, 1]} : vector<32x96xf32> to vector<32x32xf32>
    %310 = vector.shape_cast %309 : vector<32x32xf32> to vector<4x8x32xf32>
    %311 = vector.extract_strided_slice %308 {offsets = [0, 32], sizes = [32, 32], strides = [1, 1]} : vector<32x96xf32> to vector<32x32xf32>
    %312 = vector.shape_cast %311 : vector<32x32xf32> to vector<4x8x32xf32>
    %313 = vector.extract_strided_slice %308 {offsets = [0, 64], sizes = [32, 32], strides = [1, 1]} : vector<32x96xf32> to vector<32x32xf32>
    %314 = vector.shape_cast %313 : vector<32x32xf32> to vector<4x8x32xf32>
    %315 = vector.extract_strided_slice %310 {offsets = [0, 0, 0], sizes = [4, 8, 8], strides = [1, 1, 1]} : vector<4x8x32xf32> to vector<4x8x8xf32>
    %316 = arith.truncf %315 : vector<4x8x8xf32> to vector<4x8x8xbf16>
    %317 = vector.extract_strided_slice %312 {offsets = [0, 0, 0], sizes = [4, 8, 8], strides = [1, 1, 1]} : vector<4x8x32xf32> to vector<4x8x8xf32>
    %318 = arith.truncf %317 : vector<4x8x8xf32> to vector<4x8x8xbf16>
    %319 = vector.extract_strided_slice %314 {offsets = [0, 0, 0], sizes = [4, 8, 8], strides = [1, 1, 1]} : vector<4x8x32xf32> to vector<4x8x8xf32>
    %320 = arith.truncf %319 : vector<4x8x8xf32> to vector<4x8x8xbf16>
    "tpu.trace_start"() <{level = 10 : i32, message = "bqd,bkd->bqk"}> : () -> ()
    %cst_106 = arith.constant dense<0.000000e+00> : vector<4x8x8xf32>
    %321 = tpu.matmul %316, %318, %cst_106 {dimension_numbers = #tpu.dot_dimension_numbers<[2], [2], [1], [1], [0, 0, 0, 1, 1, 1], [0], [0]>} : vector<4x8x8xbf16>, vector<4x8x8xbf16>, vector<4x8x8xf32> -> vector<4x8x8xf32>
    "tpu.trace_stop"() : () -> ()
    %322 = arith.addf %321, %10 : vector<4x8x8xf32>
    %cst_107 = arith.constant dense<0xFF800000> : vector<4x8xf32>
    %323 = vector.multi_reduction <maximumf>, %322, %cst_107 [2] : vector<4x8x8xf32> to vector<4x8xf32>
    %324 = vector.shape_cast %323 : vector<4x8xf32> to vector<4x8x1xf32>
    %325 = vector.broadcast %324 : vector<4x8x1xf32> to vector<4x8x8xf32>
    %326 = arith.subf %322, %325 : vector<4x8x8xf32>
    %327 = math.exp %326 : vector<4x8x8xf32>
    %cst_108 = arith.constant dense<0.000000e+00> : vector<4x8xf32>
    %328 = vector.multi_reduction <add>, %327, %cst_108 [2] : vector<4x8x8xf32> to vector<4x8xf32>
    %329 = vector.shape_cast %328 : vector<4x8xf32> to vector<4x8x1xf32>
    %330 = tpu.reciprocal %329 {approx = true} : vector<4x8x1xf32> -> vector<4x8x1xf32>
    %331 = vector.broadcast %330 : vector<4x8x1xf32> to vector<4x8x8xf32>
    %332 = arith.mulf %327, %331 : vector<4x8x8xf32>
    %333 = arith.truncf %332 : vector<4x8x8xf32> to vector<4x8x8xbf16>
    "tpu.trace_start"() <{level = 10 : i32, message = "bqk,bkd->bqd"}> : () -> ()
    %cst_109 = arith.constant dense<0.000000e+00> : vector<4x8x8xf32>
    %334 = tpu.matmul %333, %320, %cst_109 {dimension_numbers = #tpu.dot_dimension_numbers<[2], [1], [1], [2], [0, 0, 0, 1, 1, 2], [0], [0]>} : vector<4x8x8xbf16>, vector<4x8x8xbf16>, vector<4x8x8xf32> -> vector<4x8x8xf32>
    "tpu.trace_stop"() : () -> ()
    %335 = vector.extract_strided_slice %310 {offsets = [0, 0, 8], sizes = [4, 8, 8], strides = [1, 1, 1]} : vector<4x8x32xf32> to vector<4x8x8xf32>
    %336 = arith.truncf %335 : vector<4x8x8xf32> to vector<4x8x8xbf16>
    %337 = vector.extract_strided_slice %312 {offsets = [0, 0, 8], sizes = [4, 8, 8], strides = [1, 1, 1]} : vector<4x8x32xf32> to vector<4x8x8xf32>
    %338 = arith.truncf %337 : vector<4x8x8xf32> to vector<4x8x8xbf16>
    %339 = vector.extract_strided_slice %314 {offsets = [0, 0, 8], sizes = [4, 8, 8], strides = [1, 1, 1]} : vector<4x8x32xf32> to vector<4x8x8xf32>
    %340 = arith.truncf %339 : vector<4x8x8xf32> to vector<4x8x8xbf16>
    "tpu.trace_start"() <{level = 10 : i32, message = "bqd,bkd->bqk"}> : () -> ()
    %cst_110 = arith.constant dense<0.000000e+00> : vector<4x8x8xf32>
    %341 = tpu.matmul %336, %338, %cst_110 {dimension_numbers = #tpu.dot_dimension_numbers<[2], [2], [1], [1], [0, 0, 0, 1, 1, 1], [0], [0]>} : vector<4x8x8xbf16>, vector<4x8x8xbf16>, vector<4x8x8xf32> -> vector<4x8x8xf32>
    "tpu.trace_stop"() : () -> ()
    %342 = arith.addf %341, %10 : vector<4x8x8xf32>
    %cst_111 = arith.constant dense<0xFF800000> : vector<4x8xf32>
    %343 = vector.multi_reduction <maximumf>, %342, %cst_111 [2] : vector<4x8x8xf32> to vector<4x8xf32>
    %344 = vector.shape_cast %343 : vector<4x8xf32> to vector<4x8x1xf32>
    %345 = vector.broadcast %344 : vector<4x8x1xf32> to vector<4x8x8xf32>
    %346 = arith.subf %342, %345 : vector<4x8x8xf32>
    %347 = math.exp %346 : vector<4x8x8xf32>
    %cst_112 = arith.constant dense<0.000000e+00> : vector<4x8xf32>
    %348 = vector.multi_reduction <add>, %347, %cst_112 [2] : vector<4x8x8xf32> to vector<4x8xf32>
    %349 = vector.shape_cast %348 : vector<4x8xf32> to vector<4x8x1xf32>
    %350 = tpu.reciprocal %349 {approx = true} : vector<4x8x1xf32> -> vector<4x8x1xf32>
    %351 = vector.broadcast %350 : vector<4x8x1xf32> to vector<4x8x8xf32>
    %352 = arith.mulf %347, %351 : vector<4x8x8xf32>
    %353 = arith.truncf %352 : vector<4x8x8xf32> to vector<4x8x8xbf16>
    "tpu.trace_start"() <{level = 10 : i32, message = "bqk,bkd->bqd"}> : () -> ()
    %cst_113 = arith.constant dense<0.000000e+00> : vector<4x8x8xf32>
    %354 = tpu.matmul %353, %340, %cst_113 {dimension_numbers = #tpu.dot_dimension_numbers<[2], [1], [1], [2], [0, 0, 0, 1, 1, 2], [0], [0]>} : vector<4x8x8xbf16>, vector<4x8x8xbf16>, vector<4x8x8xf32> -> vector<4x8x8xf32>
    "tpu.trace_stop"() : () -> ()
    %355 = vector.extract_strided_slice %310 {offsets = [0, 0, 16], sizes = [4, 8, 8], strides = [1, 1, 1]} : vector<4x8x32xf32> to vector<4x8x8xf32>
    %356 = arith.truncf %355 : vector<4x8x8xf32> to vector<4x8x8xbf16>
    %357 = vector.extract_strided_slice %312 {offsets = [0, 0, 16], sizes = [4, 8, 8], strides = [1, 1, 1]} : vector<4x8x32xf32> to vector<4x8x8xf32>
    %358 = arith.truncf %357 : vector<4x8x8xf32> to vector<4x8x8xbf16>
    %359 = vector.extract_strided_slice %314 {offsets = [0, 0, 16], sizes = [4, 8, 8], strides = [1, 1, 1]} : vector<4x8x32xf32> to vector<4x8x8xf32>
    %360 = arith.truncf %359 : vector<4x8x8xf32> to vector<4x8x8xbf16>
    "tpu.trace_start"() <{level = 10 : i32, message = "bqd,bkd->bqk"}> : () -> ()
    %cst_114 = arith.constant dense<0.000000e+00> : vector<4x8x8xf32>
    %361 = tpu.matmul %356, %358, %cst_114 {dimension_numbers = #tpu.dot_dimension_numbers<[2], [2], [1], [1], [0, 0, 0, 1, 1, 1], [0], [0]>} : vector<4x8x8xbf16>, vector<4x8x8xbf16>, vector<4x8x8xf32> -> vector<4x8x8xf32>
    "tpu.trace_stop"() : () -> ()
    %362 = arith.addf %361, %10 : vector<4x8x8xf32>
    %cst_115 = arith.constant dense<0xFF800000> : vector<4x8xf32>
    %363 = vector.multi_reduction <maximumf>, %362, %cst_115 [2] : vector<4x8x8xf32> to vector<4x8xf32>
    %364 = vector.shape_cast %363 : vector<4x8xf32> to vector<4x8x1xf32>
    %365 = vector.broadcast %364 : vector<4x8x1xf32> to vector<4x8x8xf32>
    %366 = arith.subf %362, %365 : vector<4x8x8xf32>
    %367 = math.exp %366 : vector<4x8x8xf32>
    %cst_116 = arith.constant dense<0.000000e+00> : vector<4x8xf32>
    %368 = vector.multi_reduction <add>, %367, %cst_116 [2] : vector<4x8x8xf32> to vector<4x8xf32>
    %369 = vector.shape_cast %368 : vector<4x8xf32> to vector<4x8x1xf32>
    %370 = tpu.reciprocal %369 {approx = true} : vector<4x8x1xf32> -> vector<4x8x1xf32>
    %371 = vector.broadcast %370 : vector<4x8x1xf32> to vector<4x8x8xf32>
    %372 = arith.mulf %367, %371 : vector<4x8x8xf32>
    %373 = arith.truncf %372 : vector<4x8x8xf32> to vector<4x8x8xbf16>
    "tpu.trace_start"() <{level = 10 : i32, message = "bqk,bkd->bqd"}> : () -> ()
    %cst_117 = arith.constant dense<0.000000e+00> : vector<4x8x8xf32>
    %374 = tpu.matmul %373, %360, %cst_117 {dimension_numbers = #tpu.dot_dimension_numbers<[2], [1], [1], [2], [0, 0, 0, 1, 1, 2], [0], [0]>} : vector<4x8x8xbf16>, vector<4x8x8xbf16>, vector<4x8x8xf32> -> vector<4x8x8xf32>
    "tpu.trace_stop"() : () -> ()
    %375 = vector.extract_strided_slice %310 {offsets = [0, 0, 24], sizes = [4, 8, 8], strides = [1, 1, 1]} : vector<4x8x32xf32> to vector<4x8x8xf32>
    %376 = arith.truncf %375 : vector<4x8x8xf32> to vector<4x8x8xbf16>
    %377 = vector.extract_strided_slice %312 {offsets = [0, 0, 24], sizes = [4, 8, 8], strides = [1, 1, 1]} : vector<4x8x32xf32> to vector<4x8x8xf32>
    %378 = arith.truncf %377 : vector<4x8x8xf32> to vector<4x8x8xbf16>
    %379 = vector.extract_strided_slice %314 {offsets = [0, 0, 24], sizes = [4, 8, 8], strides = [1, 1, 1]} : vector<4x8x32xf32> to vector<4x8x8xf32>
    %380 = arith.truncf %379 : vector<4x8x8xf32> to vector<4x8x8xbf16>
    "tpu.trace_start"() <{level = 10 : i32, message = "bqd,bkd->bqk"}> : () -> ()
    %cst_118 = arith.constant dense<0.000000e+00> : vector<4x8x8xf32>
    %381 = tpu.matmul %376, %378, %cst_118 {dimension_numbers = #tpu.dot_dimension_numbers<[2], [2], [1], [1], [0, 0, 0, 1, 1, 1], [0], [0]>} : vector<4x8x8xbf16>, vector<4x8x8xbf16>, vector<4x8x8xf32> -> vector<4x8x8xf32>
    "tpu.trace_stop"() : () -> ()
    %382 = arith.addf %381, %10 : vector<4x8x8xf32>
    %cst_119 = arith.constant dense<0xFF800000> : vector<4x8xf32>
    %383 = vector.multi_reduction <maximumf>, %382, %cst_119 [2] : vector<4x8x8xf32> to vector<4x8xf32>
    %384 = vector.shape_cast %383 : vector<4x8xf32> to vector<4x8x1xf32>
    %385 = vector.broadcast %384 : vector<4x8x1xf32> to vector<4x8x8xf32>
    %386 = arith.subf %382, %385 : vector<4x8x8xf32>
    %387 = math.exp %386 : vector<4x8x8xf32>
    %cst_120 = arith.constant dense<0.000000e+00> : vector<4x8xf32>
    %388 = vector.multi_reduction <add>, %387, %cst_120 [2] : vector<4x8x8xf32> to vector<4x8xf32>
    %389 = vector.shape_cast %388 : vector<4x8xf32> to vector<4x8x1xf32>
    %390 = tpu.reciprocal %389 {approx = true} : vector<4x8x1xf32> -> vector<4x8x1xf32>
    %391 = vector.broadcast %390 : vector<4x8x1xf32> to vector<4x8x8xf32>
    %392 = arith.mulf %387, %391 : vector<4x8x8xf32>
    %393 = arith.truncf %392 : vector<4x8x8xf32> to vector<4x8x8xbf16>
    "tpu.trace_start"() <{level = 10 : i32, message = "bqk,bkd->bqd"}> : () -> ()
    %cst_121 = arith.constant dense<0.000000e+00> : vector<4x8x8xf32>
    %394 = tpu.matmul %393, %380, %cst_121 {dimension_numbers = #tpu.dot_dimension_numbers<[2], [1], [1], [2], [0, 0, 0, 1, 1, 2], [0], [0]>} : vector<4x8x8xbf16>, vector<4x8x8xbf16>, vector<4x8x8xf32> -> vector<4x8x8xf32>
    "tpu.trace_stop"() : () -> ()
    %395 = tpu.concatenate %334, %354, %374, %394 in 2 : vector<4x8x8xf32>, vector<4x8x8xf32>, vector<4x8x8xf32>, vector<4x8x8xf32> -> vector<4x8x32xf32>
    %396 = vector.shape_cast %395 : vector<4x8x32xf32> to vector<32x32xf32>
    %397 = arith.truncf %396 : vector<32x32xf32> to vector<32x32xbf16>
    %c0_122 = arith.constant 0 : index
    %c0_123 = arith.constant 0 : index
    %398 = vector.load %arg25[%c0_122, %c0_123] : memref<32x32xbf16, #tpu.memory_space<vmem>>, vector<32x32xbf16>
    %cst_124 = arith.constant dense<0.000000e+00> : vector<32x32xf32>
    %399 = tpu.matmul %397, %398, %cst_124 {dimension_numbers = #tpu.dot_dimension_numbers<[1], [0], [0], [1], [0, 0, 1, 1], [], []>} : vector<32x32xbf16>, vector<32x32xbf16>, vector<32x32xf32> -> vector<32x32xf32>
    %c0_125 = arith.constant 0 : index
    %c0_126 = arith.constant 0 : index
    %400 = vector.load %arg26[%c0_125, %c0_126] : memref<1x32xf32, #tpu.memory_space<vmem>>, vector<1x32xf32>
    %401 = vector.broadcast %400 : vector<1x32xf32> to vector<32x32xf32>
    %402 = arith.addf %399, %401 : vector<32x32xf32>
    %403 = arith.addf %302, %402 : vector<32x32xf32>
    %c0_127 = arith.constant 0 : index
    %c0_128 = arith.constant 0 : index
    %404 = vector.load %arg37[%c0_127, %c0_128] : memref<1x32xf32, #tpu.memory_space<vmem>>, vector<1x32xf32>
    %c0_129 = arith.constant 0 : index
    %c0_130 = arith.constant 0 : index
    %405 = vector.load %arg38[%c0_129, %c0_130] : memref<1x32xf32, #tpu.memory_space<vmem>>, vector<1x32xf32>
    %cst_131 = arith.constant dense<0.000000e+00> : vector<32xf32>
    %406 = vector.multi_reduction <add>, %403, %cst_131 [1] : vector<32x32xf32> to vector<32xf32>
    %407 = vector.shape_cast %406 : vector<32xf32> to vector<32x1xf32>
    %cst_132 = arith.constant 3.200000e+01 : f32
    %408 = vector.broadcast %cst_132 : f32 to vector<32x1xf32>
    %409 = arith.divf %407, %408 : vector<32x1xf32>
    %410 = vector.broadcast %409 : vector<32x1xf32> to vector<32x32xf32>
    %411 = arith.subf %403, %410 : vector<32x32xf32>
    %412 = arith.mulf %411, %411 : vector<32x32xf32>
    %cst_133 = arith.constant dense<0.000000e+00> : vector<32xf32>
    %413 = vector.multi_reduction <add>, %412, %cst_133 [1] : vector<32x32xf32> to vector<32xf32>
    %414 = vector.shape_cast %413 : vector<32xf32> to vector<32x1xf32>
    %cst_134 = arith.constant 3.200000e+01 : f32
    %415 = vector.broadcast %cst_134 : f32 to vector<32x1xf32>
    %416 = arith.divf %414, %415 : vector<32x1xf32>
    %417 = vector.broadcast %409 : vector<32x1xf32> to vector<32x32xf32>
    %418 = arith.subf %403, %417 : vector<32x32xf32>
    %cst_135 = arith.constant 9.99999974E-6 : f32
    %419 = vector.broadcast %cst_135 : f32 to vector<32x1xf32>
    %420 = arith.addf %416, %419 : vector<32x1xf32>
    %421 = math.rsqrt %420 : vector<32x1xf32>
    %422 = vector.broadcast %421 : vector<32x1xf32> to vector<32x32xf32>
    %423 = arith.mulf %418, %422 : vector<32x32xf32>
    %424 = vector.broadcast %404 : vector<1x32xf32> to vector<32x32xf32>
    %425 = arith.mulf %423, %424 : vector<32x32xf32>
    %426 = vector.broadcast %405 : vector<1x32xf32> to vector<32x32xf32>
    %427 = arith.addf %425, %426 : vector<32x32xf32>
    %428 = arith.truncf %427 : vector<32x32xf32> to vector<32x32xbf16>
    %c0_136 = arith.constant 0 : index
    %c0_137 = arith.constant 0 : index
    %429 = vector.load %arg27[%c0_136, %c0_137] : memref<32x32xbf16, #tpu.memory_space<vmem>>, vector<32x32xbf16>
    %cst_138 = arith.constant dense<0.000000e+00> : vector<32x32xf32>
    %430 = tpu.matmul %428, %429, %cst_138 {dimension_numbers = #tpu.dot_dimension_numbers<[1], [0], [0], [1], [0, 0, 1, 1], [], []>} : vector<32x32xbf16>, vector<32x32xbf16>, vector<32x32xf32> -> vector<32x32xf32>
    %c0_139 = arith.constant 0 : index
    %c0_140 = arith.constant 0 : index
    %431 = vector.load %arg28[%c0_139, %c0_140] : memref<1x32xf32, #tpu.memory_space<vmem>>, vector<1x32xf32>
    %432 = vector.broadcast %431 : vector<1x32xf32> to vector<32x32xf32>
    %433 = arith.addf %430, %432 : vector<32x32xf32>
    %434 = vector.shape_cast %433 : vector<32x32xf32> to vector<4x8x32xf32>
    %435 = arith.truncf %12 : vector<32x32xf32> to vector<32x32xbf16>
    %c0_141 = arith.constant 0 : index
    %c0_142 = arith.constant 0 : index
    %436 = vector.load %arg29[%c0_141, %c0_142] : memref<32x64xbf16, #tpu.memory_space<vmem>>, vector<32x64xbf16>
    %cst_143 = arith.constant dense<0.000000e+00> : vector<32x64xf32>
    %437 = tpu.matmul %435, %436, %cst_143 {dimension_numbers = #tpu.dot_dimension_numbers<[1], [0], [0], [1], [0, 0, 1, 1], [], []>} : vector<32x32xbf16>, vector<32x64xbf16>, vector<32x64xf32> -> vector<32x64xf32>
    %c0_144 = arith.constant 0 : index
    %c0_145 = arith.constant 0 : index
    %438 = vector.load %arg30[%c0_144, %c0_145] : memref<1x64xf32, #tpu.memory_space<vmem>>, vector<1x64xf32>
    %439 = vector.broadcast %438 : vector<1x64xf32> to vector<32x64xf32>
    %440 = arith.addf %437, %439 : vector<32x64xf32>
    %441 = vector.extract_strided_slice %440 {offsets = [0, 0], sizes = [32, 32], strides = [1, 1]} : vector<32x64xf32> to vector<32x32xf32>
    %442 = vector.shape_cast %441 : vector<32x32xf32> to vector<4x8x32xf32>
    %443 = vector.extract_strided_slice %440 {offsets = [0, 32], sizes = [32, 32], strides = [1, 1]} : vector<32x64xf32> to vector<32x32xf32>
    %444 = vector.shape_cast %443 : vector<32x32xf32> to vector<4x8x32xf32>
    %445 = vector.extract_strided_slice %434 {offsets = [0, 0, 0], sizes = [4, 8, 8], strides = [1, 1, 1]} : vector<4x8x32xf32> to vector<4x8x8xf32>
    %446 = arith.truncf %445 : vector<4x8x8xf32> to vector<4x8x8xbf16>
    %447 = vector.extract_strided_slice %442 {offsets = [0, 0, 0], sizes = [4, 8, 8], strides = [1, 1, 1]} : vector<4x8x32xf32> to vector<4x8x8xf32>
    %448 = arith.truncf %447 : vector<4x8x8xf32> to vector<4x8x8xbf16>
    %449 = vector.extract_strided_slice %444 {offsets = [0, 0, 0], sizes = [4, 8, 8], strides = [1, 1, 1]} : vector<4x8x32xf32> to vector<4x8x8xf32>
    %450 = arith.truncf %449 : vector<4x8x8xf32> to vector<4x8x8xbf16>
    "tpu.trace_start"() <{level = 10 : i32, message = "bqd,bkd->bqk"}> : () -> ()
    %cst_146 = arith.constant dense<0.000000e+00> : vector<4x8x8xf32>
    %451 = tpu.matmul %446, %448, %cst_146 {dimension_numbers = #tpu.dot_dimension_numbers<[2], [2], [1], [1], [0, 0, 0, 1, 1, 1], [0], [0]>} : vector<4x8x8xbf16>, vector<4x8x8xbf16>, vector<4x8x8xf32> -> vector<4x8x8xf32>
    "tpu.trace_stop"() : () -> ()
    %cst_147 = arith.constant dense<0xFF800000> : vector<4x8xf32>
    %452 = vector.multi_reduction <maximumf>, %451, %cst_147 [2] : vector<4x8x8xf32> to vector<4x8xf32>
    %453 = vector.shape_cast %452 : vector<4x8xf32> to vector<4x8x1xf32>
    %454 = vector.broadcast %453 : vector<4x8x1xf32> to vector<4x8x8xf32>
    %455 = arith.subf %451, %454 : vector<4x8x8xf32>
    %456 = math.exp %455 : vector<4x8x8xf32>
    %cst_148 = arith.constant dense<0.000000e+00> : vector<4x8xf32>
    %457 = vector.multi_reduction <add>, %456, %cst_148 [2] : vector<4x8x8xf32> to vector<4x8xf32>
    %458 = vector.shape_cast %457 : vector<4x8xf32> to vector<4x8x1xf32>
    %459 = tpu.reciprocal %458 {approx = true} : vector<4x8x1xf32> -> vector<4x8x1xf32>
    %460 = vector.broadcast %459 : vector<4x8x1xf32> to vector<4x8x8xf32>
    %461 = arith.mulf %456, %460 : vector<4x8x8xf32>
    %462 = arith.truncf %461 : vector<4x8x8xf32> to vector<4x8x8xbf16>
    "tpu.trace_start"() <{level = 10 : i32, message = "bqk,bkd->bqd"}> : () -> ()
    %cst_149 = arith.constant dense<0.000000e+00> : vector<4x8x8xf32>
    %463 = tpu.matmul %462, %450, %cst_149 {dimension_numbers = #tpu.dot_dimension_numbers<[2], [1], [1], [2], [0, 0, 0, 1, 1, 2], [0], [0]>} : vector<4x8x8xbf16>, vector<4x8x8xbf16>, vector<4x8x8xf32> -> vector<4x8x8xf32>
    "tpu.trace_stop"() : () -> ()
    %464 = vector.extract_strided_slice %434 {offsets = [0, 0, 8], sizes = [4, 8, 8], strides = [1, 1, 1]} : vector<4x8x32xf32> to vector<4x8x8xf32>
    %465 = arith.truncf %464 : vector<4x8x8xf32> to vector<4x8x8xbf16>
    %466 = vector.extract_strided_slice %442 {offsets = [0, 0, 8], sizes = [4, 8, 8], strides = [1, 1, 1]} : vector<4x8x32xf32> to vector<4x8x8xf32>
    %467 = arith.truncf %466 : vector<4x8x8xf32> to vector<4x8x8xbf16>
    %468 = vector.extract_strided_slice %444 {offsets = [0, 0, 8], sizes = [4, 8, 8], strides = [1, 1, 1]} : vector<4x8x32xf32> to vector<4x8x8xf32>
    %469 = arith.truncf %468 : vector<4x8x8xf32> to vector<4x8x8xbf16>
    "tpu.trace_start"() <{level = 10 : i32, message = "bqd,bkd->bqk"}> : () -> ()
    %cst_150 = arith.constant dense<0.000000e+00> : vector<4x8x8xf32>
    %470 = tpu.matmul %465, %467, %cst_150 {dimension_numbers = #tpu.dot_dimension_numbers<[2], [2], [1], [1], [0, 0, 0, 1, 1, 1], [0], [0]>} : vector<4x8x8xbf16>, vector<4x8x8xbf16>, vector<4x8x8xf32> -> vector<4x8x8xf32>
    "tpu.trace_stop"() : () -> ()
    %cst_151 = arith.constant dense<0xFF800000> : vector<4x8xf32>
    %471 = vector.multi_reduction <maximumf>, %470, %cst_151 [2] : vector<4x8x8xf32> to vector<4x8xf32>
    %472 = vector.shape_cast %471 : vector<4x8xf32> to vector<4x8x1xf32>
    %473 = vector.broadcast %472 : vector<4x8x1xf32> to vector<4x8x8xf32>
    %474 = arith.subf %470, %473 : vector<4x8x8xf32>
    %475 = math.exp %474 : vector<4x8x8xf32>
    %cst_152 = arith.constant dense<0.000000e+00> : vector<4x8xf32>
    %476 = vector.multi_reduction <add>, %475, %cst_152 [2] : vector<4x8x8xf32> to vector<4x8xf32>
    %477 = vector.shape_cast %476 : vector<4x8xf32> to vector<4x8x1xf32>
    %478 = tpu.reciprocal %477 {approx = true} : vector<4x8x1xf32> -> vector<4x8x1xf32>
    %479 = vector.broadcast %478 : vector<4x8x1xf32> to vector<4x8x8xf32>
    %480 = arith.mulf %475, %479 : vector<4x8x8xf32>
    %481 = arith.truncf %480 : vector<4x8x8xf32> to vector<4x8x8xbf16>
    "tpu.trace_start"() <{level = 10 : i32, message = "bqk,bkd->bqd"}> : () -> ()
    %cst_153 = arith.constant dense<0.000000e+00> : vector<4x8x8xf32>
    %482 = tpu.matmul %481, %469, %cst_153 {dimension_numbers = #tpu.dot_dimension_numbers<[2], [1], [1], [2], [0, 0, 0, 1, 1, 2], [0], [0]>} : vector<4x8x8xbf16>, vector<4x8x8xbf16>, vector<4x8x8xf32> -> vector<4x8x8xf32>
    "tpu.trace_stop"() : () -> ()
    %483 = vector.extract_strided_slice %434 {offsets = [0, 0, 16], sizes = [4, 8, 8], strides = [1, 1, 1]} : vector<4x8x32xf32> to vector<4x8x8xf32>
    %484 = arith.truncf %483 : vector<4x8x8xf32> to vector<4x8x8xbf16>
    %485 = vector.extract_strided_slice %442 {offsets = [0, 0, 16], sizes = [4, 8, 8], strides = [1, 1, 1]} : vector<4x8x32xf32> to vector<4x8x8xf32>
    %486 = arith.truncf %485 : vector<4x8x8xf32> to vector<4x8x8xbf16>
    %487 = vector.extract_strided_slice %444 {offsets = [0, 0, 16], sizes = [4, 8, 8], strides = [1, 1, 1]} : vector<4x8x32xf32> to vector<4x8x8xf32>
    %488 = arith.truncf %487 : vector<4x8x8xf32> to vector<4x8x8xbf16>
    "tpu.trace_start"() <{level = 10 : i32, message = "bqd,bkd->bqk"}> : () -> ()
    %cst_154 = arith.constant dense<0.000000e+00> : vector<4x8x8xf32>
    %489 = tpu.matmul %484, %486, %cst_154 {dimension_numbers = #tpu.dot_dimension_numbers<[2], [2], [1], [1], [0, 0, 0, 1, 1, 1], [0], [0]>} : vector<4x8x8xbf16>, vector<4x8x8xbf16>, vector<4x8x8xf32> -> vector<4x8x8xf32>
    "tpu.trace_stop"() : () -> ()
    %cst_155 = arith.constant dense<0xFF800000> : vector<4x8xf32>
    %490 = vector.multi_reduction <maximumf>, %489, %cst_155 [2] : vector<4x8x8xf32> to vector<4x8xf32>
    %491 = vector.shape_cast %490 : vector<4x8xf32> to vector<4x8x1xf32>
    %492 = vector.broadcast %491 : vector<4x8x1xf32> to vector<4x8x8xf32>
    %493 = arith.subf %489, %492 : vector<4x8x8xf32>
    %494 = math.exp %493 : vector<4x8x8xf32>
    %cst_156 = arith.constant dense<0.000000e+00> : vector<4x8xf32>
    %495 = vector.multi_reduction <add>, %494, %cst_156 [2] : vector<4x8x8xf32> to vector<4x8xf32>
    %496 = vector.shape_cast %495 : vector<4x8xf32> to vector<4x8x1xf32>
    %497 = tpu.reciprocal %496 {approx = true} : vector<4x8x1xf32> -> vector<4x8x1xf32>
    %498 = vector.broadcast %497 : vector<4x8x1xf32> to vector<4x8x8xf32>
    %499 = arith.mulf %494, %498 : vector<4x8x8xf32>
    %500 = arith.truncf %499 : vector<4x8x8xf32> to vector<4x8x8xbf16>
    "tpu.trace_start"() <{level = 10 : i32, message = "bqk,bkd->bqd"}> : () -> ()
    %cst_157 = arith.constant dense<0.000000e+00> : vector<4x8x8xf32>
    %501 = tpu.matmul %500, %488, %cst_157 {dimension_numbers = #tpu.dot_dimension_numbers<[2], [1], [1], [2], [0, 0, 0, 1, 1, 2], [0], [0]>} : vector<4x8x8xbf16>, vector<4x8x8xbf16>, vector<4x8x8xf32> -> vector<4x8x8xf32>
    "tpu.trace_stop"() : () -> ()
    %502 = vector.extract_strided_slice %434 {offsets = [0, 0, 24], sizes = [4, 8, 8], strides = [1, 1, 1]} : vector<4x8x32xf32> to vector<4x8x8xf32>
    %503 = arith.truncf %502 : vector<4x8x8xf32> to vector<4x8x8xbf16>
    %504 = vector.extract_strided_slice %442 {offsets = [0, 0, 24], sizes = [4, 8, 8], strides = [1, 1, 1]} : vector<4x8x32xf32> to vector<4x8x8xf32>
    %505 = arith.truncf %504 : vector<4x8x8xf32> to vector<4x8x8xbf16>
    %506 = vector.extract_strided_slice %444 {offsets = [0, 0, 24], sizes = [4, 8, 8], strides = [1, 1, 1]} : vector<4x8x32xf32> to vector<4x8x8xf32>
    %507 = arith.truncf %506 : vector<4x8x8xf32> to vector<4x8x8xbf16>
    "tpu.trace_start"() <{level = 10 : i32, message = "bqd,bkd->bqk"}> : () -> ()
    %cst_158 = arith.constant dense<0.000000e+00> : vector<4x8x8xf32>
    %508 = tpu.matmul %503, %505, %cst_158 {dimension_numbers = #tpu.dot_dimension_numbers<[2], [2], [1], [1], [0, 0, 0, 1, 1, 1], [0], [0]>} : vector<4x8x8xbf16>, vector<4x8x8xbf16>, vector<4x8x8xf32> -> vector<4x8x8xf32>
    "tpu.trace_stop"() : () -> ()
    %cst_159 = arith.constant dense<0xFF800000> : vector<4x8xf32>
    %509 = vector.multi_reduction <maximumf>, %508, %cst_159 [2] : vector<4x8x8xf32> to vector<4x8xf32>
    %510 = vector.shape_cast %509 : vector<4x8xf32> to vector<4x8x1xf32>
    %511 = vector.broadcast %510 : vector<4x8x1xf32> to vector<4x8x8xf32>
    %512 = arith.subf %508, %511 : vector<4x8x8xf32>
    %513 = math.exp %512 : vector<4x8x8xf32>
    %cst_160 = arith.constant dense<0.000000e+00> : vector<4x8xf32>
    %514 = vector.multi_reduction <add>, %513, %cst_160 [2] : vector<4x8x8xf32> to vector<4x8xf32>
    %515 = vector.shape_cast %514 : vector<4x8xf32> to vector<4x8x1xf32>
    %516 = tpu.reciprocal %515 {approx = true} : vector<4x8x1xf32> -> vector<4x8x1xf32>
    %517 = vector.broadcast %516 : vector<4x8x1xf32> to vector<4x8x8xf32>
    %518 = arith.mulf %513, %517 : vector<4x8x8xf32>
    %519 = arith.truncf %518 : vector<4x8x8xf32> to vector<4x8x8xbf16>
    "tpu.trace_start"() <{level = 10 : i32, message = "bqk,bkd->bqd"}> : () -> ()
    %cst_161 = arith.constant dense<0.000000e+00> : vector<4x8x8xf32>
    %520 = tpu.matmul %519, %507, %cst_161 {dimension_numbers = #tpu.dot_dimension_numbers<[2], [1], [1], [2], [0, 0, 0, 1, 1, 2], [0], [0]>} : vector<4x8x8xbf16>, vector<4x8x8xbf16>, vector<4x8x8xf32> -> vector<4x8x8xf32>
    "tpu.trace_stop"() : () -> ()
    %521 = tpu.concatenate %463, %482, %501, %520 in 2 : vector<4x8x8xf32>, vector<4x8x8xf32>, vector<4x8x8xf32>, vector<4x8x8xf32> -> vector<4x8x32xf32>
    %522 = vector.shape_cast %521 : vector<4x8x32xf32> to vector<32x32xf32>
    %523 = arith.truncf %522 : vector<32x32xf32> to vector<32x32xbf16>
    %c0_162 = arith.constant 0 : index
    %c0_163 = arith.constant 0 : index
    %524 = vector.load %arg31[%c0_162, %c0_163] : memref<32x32xbf16, #tpu.memory_space<vmem>>, vector<32x32xbf16>
    %cst_164 = arith.constant dense<0.000000e+00> : vector<32x32xf32>
    %525 = tpu.matmul %523, %524, %cst_164 {dimension_numbers = #tpu.dot_dimension_numbers<[1], [0], [0], [1], [0, 0, 1, 1], [], []>} : vector<32x32xbf16>, vector<32x32xbf16>, vector<32x32xf32> -> vector<32x32xf32>
    %c0_165 = arith.constant 0 : index
    %c0_166 = arith.constant 0 : index
    %526 = vector.load %arg32[%c0_165, %c0_166] : memref<1x32xf32, #tpu.memory_space<vmem>>, vector<1x32xf32>
    %527 = vector.broadcast %526 : vector<1x32xf32> to vector<32x32xf32>
    %528 = arith.addf %525, %527 : vector<32x32xf32>
    %529 = arith.addf %427, %528 : vector<32x32xf32>
    %c0_167 = arith.constant 0 : index
    %c0_168 = arith.constant 0 : index
    %530 = vector.load %arg39[%c0_167, %c0_168] : memref<1x32xf32, #tpu.memory_space<vmem>>, vector<1x32xf32>
    %c0_169 = arith.constant 0 : index
    %c0_170 = arith.constant 0 : index
    %531 = vector.load %arg40[%c0_169, %c0_170] : memref<1x32xf32, #tpu.memory_space<vmem>>, vector<1x32xf32>
    %cst_171 = arith.constant dense<0.000000e+00> : vector<32xf32>
    %532 = vector.multi_reduction <add>, %529, %cst_171 [1] : vector<32x32xf32> to vector<32xf32>
    %533 = vector.shape_cast %532 : vector<32xf32> to vector<32x1xf32>
    %cst_172 = arith.constant 3.200000e+01 : f32
    %534 = vector.broadcast %cst_172 : f32 to vector<32x1xf32>
    %535 = arith.divf %533, %534 : vector<32x1xf32>
    %536 = vector.broadcast %535 : vector<32x1xf32> to vector<32x32xf32>
    %537 = arith.subf %529, %536 : vector<32x32xf32>
    %538 = arith.mulf %537, %537 : vector<32x32xf32>
    %cst_173 = arith.constant dense<0.000000e+00> : vector<32xf32>
    %539 = vector.multi_reduction <add>, %538, %cst_173 [1] : vector<32x32xf32> to vector<32xf32>
    %540 = vector.shape_cast %539 : vector<32xf32> to vector<32x1xf32>
    %cst_174 = arith.constant 3.200000e+01 : f32
    %541 = vector.broadcast %cst_174 : f32 to vector<32x1xf32>
    %542 = arith.divf %540, %541 : vector<32x1xf32>
    %543 = vector.broadcast %535 : vector<32x1xf32> to vector<32x32xf32>
    %544 = arith.subf %529, %543 : vector<32x32xf32>
    %cst_175 = arith.constant 9.99999974E-6 : f32
    %545 = vector.broadcast %cst_175 : f32 to vector<32x1xf32>
    %546 = arith.addf %542, %545 : vector<32x1xf32>
    %547 = math.rsqrt %546 : vector<32x1xf32>
    %548 = vector.broadcast %547 : vector<32x1xf32> to vector<32x32xf32>
    %549 = arith.mulf %544, %548 : vector<32x32xf32>
    %550 = vector.broadcast %530 : vector<1x32xf32> to vector<32x32xf32>
    %551 = arith.mulf %549, %550 : vector<32x32xf32>
    %552 = vector.broadcast %531 : vector<1x32xf32> to vector<32x32xf32>
    %553 = arith.addf %551, %552 : vector<32x32xf32>
    %554 = arith.truncf %553 : vector<32x32xf32> to vector<32x32xbf16>
    %c0_176 = arith.constant 0 : index
    %c0_177 = arith.constant 0 : index
    %555 = vector.load %arg33[%c0_176, %c0_177] : memref<32x64xbf16, #tpu.memory_space<vmem>>, vector<32x64xbf16>
    %cst_178 = arith.constant dense<0.000000e+00> : vector<32x64xf32>
    %556 = tpu.matmul %554, %555, %cst_178 {dimension_numbers = #tpu.dot_dimension_numbers<[1], [0], [0], [1], [0, 0, 1, 1], [], []>} : vector<32x32xbf16>, vector<32x64xbf16>, vector<32x64xf32> -> vector<32x64xf32>
    %c0_179 = arith.constant 0 : index
    %c0_180 = arith.constant 0 : index
    %557 = vector.load %arg34[%c0_179, %c0_180] : memref<1x64xf32, #tpu.memory_space<vmem>>, vector<1x64xf32>
    %558 = vector.broadcast %557 : vector<1x64xf32> to vector<32x64xf32>
    %559 = arith.addf %556, %558 : vector<32x64xf32>
    %cst_181 = arith.constant 0.000000e+00 : f32
    %560 = vector.broadcast %cst_181 : f32 to vector<32x64xf32>
    %561 = arith.maximumf %559, %560 : vector<32x64xf32>
    %562 = arith.truncf %561 : vector<32x64xf32> to vector<32x64xbf16>
    %c0_182 = arith.constant 0 : index
    %c0_183 = arith.constant 0 : index
    %563 = vector.load %arg35[%c0_182, %c0_183] : memref<64x32xbf16, #tpu.memory_space<vmem>>, vector<64x32xbf16>
    %cst_184 = arith.constant dense<0.000000e+00> : vector<32x32xf32>
    %564 = tpu.matmul %562, %563, %cst_184 {dimension_numbers = #tpu.dot_dimension_numbers<[1], [0], [0], [1], [0, 0, 1, 1], [], []>} : vector<32x64xbf16>, vector<64x32xbf16>, vector<32x32xf32> -> vector<32x32xf32>
    %c0_185 = arith.constant 0 : index
    %c0_186 = arith.constant 0 : index
    %565 = vector.load %arg36[%c0_185, %c0_186] : memref<1x32xf32, #tpu.memory_space<vmem>>, vector<1x32xf32>
    %566 = vector.broadcast %565 : vector<1x32xf32> to vector<32x32xf32>
    %567 = arith.addf %564, %566 : vector<32x32xf32>
    %568 = arith.addf %553, %567 : vector<32x32xf32>
    %c0_187 = arith.constant 0 : index
    %c0_188 = arith.constant 0 : index
    %569 = vector.load %arg41[%c0_187, %c0_188] : memref<1x32xf32, #tpu.memory_space<vmem>>, vector<1x32xf32>
    %c0_189 = arith.constant 0 : index
    %c0_190 = arith.constant 0 : index
    %570 = vector.load %arg42[%c0_189, %c0_190] : memref<1x32xf32, #tpu.memory_space<vmem>>, vector<1x32xf32>
    %cst_191 = arith.constant dense<0.000000e+00> : vector<32xf32>
    %571 = vector.multi_reduction <add>, %568, %cst_191 [1] : vector<32x32xf32> to vector<32xf32>
    %572 = vector.shape_cast %571 : vector<32xf32> to vector<32x1xf32>
    %cst_192 = arith.constant 3.200000e+01 : f32
    %573 = vector.broadcast %cst_192 : f32 to vector<32x1xf32>
    %574 = arith.divf %572, %573 : vector<32x1xf32>
    %575 = vector.broadcast %574 : vector<32x1xf32> to vector<32x32xf32>
    %576 = arith.subf %568, %575 : vector<32x32xf32>
    %577 = arith.mulf %576, %576 : vector<32x32xf32>
    %cst_193 = arith.constant dense<0.000000e+00> : vector<32xf32>
    %578 = vector.multi_reduction <add>, %577, %cst_193 [1] : vector<32x32xf32> to vector<32xf32>
    %579 = vector.shape_cast %578 : vector<32xf32> to vector<32x1xf32>
    %cst_194 = arith.constant 3.200000e+01 : f32
    %580 = vector.broadcast %cst_194 : f32 to vector<32x1xf32>
    %581 = arith.divf %579, %580 : vector<32x1xf32>
    %582 = vector.broadcast %574 : vector<32x1xf32> to vector<32x32xf32>
    %583 = arith.subf %568, %582 : vector<32x32xf32>
    %cst_195 = arith.constant 9.99999974E-6 : f32
    %584 = vector.broadcast %cst_195 : f32 to vector<32x1xf32>
    %585 = arith.addf %581, %584 : vector<32x1xf32>
    %586 = math.rsqrt %585 : vector<32x1xf32>
    %587 = vector.broadcast %586 : vector<32x1xf32> to vector<32x32xf32>
    %588 = arith.mulf %583, %587 : vector<32x32xf32>
    %589 = vector.broadcast %569 : vector<1x32xf32> to vector<32x32xf32>
    %590 = arith.mulf %588, %589 : vector<32x32xf32>
    %591 = vector.broadcast %570 : vector<1x32xf32> to vector<32x32xf32>
    %592 = arith.addf %590, %591 : vector<32x32xf32>
    %593 = vector.shape_cast %592 : vector<32x32xf32> to vector<4x8x32xf32>
    %c0_196 = arith.constant 0 : index
    %c0_197 = arith.constant 0 : index
    %c0_198 = arith.constant 0 : index
    %594 = vector.load %arg43[%c0_196, %c0_197, %c0_198] : memref<4x8x32xf32, #tpu.memory_space<vmem>>, vector<4x8x32xf32>
    tpu.vector_store %arg43[%c0_196, %c0_197, %c0_198], %593 {strides = array<i32>} : memref<4x8x32xf32, #tpu.memory_space<vmem>>, vector<4x8x32xf32>,
    return
  }
  func.func @transform_0(%arg0: i32) -> (i32, i32, i32) {
    %c0_i32 = arith.constant 0 : i32
    %c0_i32_0 = arith.constant 0 : i32
    %c0_i32_1 = arith.constant 0 : i32
    return %arg0, %c0_i32, %c0_i32_0 : i32, i32, i32
  }
  func.func @transform_1(%arg0: i32) -> (i32, i32, i32) {
    %c0_i32 = arith.constant 0 : i32
    %c0_i32_0 = arith.constant 0 : i32
    %c0_i32_1 = arith.constant 0 : i32
    return %arg0, %c0_i32, %c0_i32_0 : i32, i32, i32
  }
  func.func @transform_2(%arg0: i32) -> (i32, i32) {
    %c0_i32 = arith.constant 0 : i32
    %c0_i32_0 = arith.constant 0 : i32
    %c0_i32_1 = arith.constant 0 : i32
    return %c0_i32, %c0_i32_0 : i32, i32
  }
  func.func @transform_3(%arg0: i32) -> (i32, i32) {
    %c0_i32 = arith.constant 0 : i32
    %c0_i32_0 = arith.constant 0 : i32
    %c0_i32_1 = arith.constant 0 : i32
    return %c0_i32, %c0_i32_0 : i32, i32
  }
  func.func @transform_4(%arg0: i32) -> (i32, i32) {
    %c0_i32 = arith.constant 0 : i32
    %c0_i32_0 = arith.constant 0 : i32
    %c0_i32_1 = arith.constant 0 : i32
    return %c0_i32, %c0_i32_0 : i32, i32
  }
  func.func @transform_5(%arg0: i32) -> (i32, i32) {
    %c0_i32 = arith.constant 0 : i32
    %c0_i32_0 = arith.constant 0 : i32
    %c0_i32_1 = arith.constant 0 : i32
    return %c0_i32, %c0_i32_0 : i32, i32
  }
  func.func @transform_6(%arg0: i32) -> (i32, i32) {
    %c0_i32 = arith.constant 0 : i32
    %c0_i32_0 = arith.constant 0 : i32
    %c0_i32_1 = arith.constant 0 : i32
    return %c0_i32, %c0_i32_0 : i32, i32
  }
  func.func @transform_7(%arg0: i32) -> (i32, i32) {
    %c0_i32 = arith.constant 0 : i32
    %c0_i32_0 = arith.constant 0 : i32
    %c0_i32_1 = arith.constant 0 : i32
    return %c0_i32, %c0_i32_0 : i32, i32
  }
  func.func @transform_8(%arg0: i32) -> (i32, i32) {
    %c0_i32 = arith.constant 0 : i32
    %c0_i32_0 = arith.constant 0 : i32
    %c0_i32_1 = arith.constant 0 : i32
    return %c0_i32, %c0_i32_0 : i32, i32
  }
  func.func @transform_9(%arg0: i32) -> (i32, i32) {
    %c0_i32 = arith.constant 0 : i32
    %c0_i32_0 = arith.constant 0 : i32
    %c0_i32_1 = arith.constant 0 : i32
    return %c0_i32, %c0_i32_0 : i32, i32
  }
  func.func @transform_10(%arg0: i32) -> (i32, i32) {
    %c0_i32 = arith.constant 0 : i32
    %c0_i32_0 = arith.constant 0 : i32
    %c0_i32_1 = arith.constant 0 : i32
    return %c0_i32, %c0_i32_0 : i32, i32
  }
  func.func @transform_11(%arg0: i32) -> (i32, i32) {
    %c0_i32 = arith.constant 0 : i32
    %c0_i32_0 = arith.constant 0 : i32
    %c0_i32_1 = arith.constant 0 : i32
    return %c0_i32, %c0_i32_0 : i32, i32
  }
  func.func @transform_12(%arg0: i32) -> (i32, i32) {
    %c0_i32 = arith.constant 0 : i32
    %c0_i32_0 = arith.constant 0 : i32
    %c0_i32_1 = arith.constant 0 : i32
    return %c0_i32, %c0_i32_0 : i32, i32
  }
  func.func @transform_13(%arg0: i32) -> (i32, i32) {
    %c0_i32 = arith.constant 0 : i32
    %c0_i32_0 = arith.constant 0 : i32
    %c0_i32_1 = arith.constant 0 : i32
    return %c0_i32, %c0_i32_0 : i32, i32
  }
  func.func @transform_14(%arg0: i32) -> (i32, i32) {
    %c0_i32 = arith.constant 0 : i32
    %c0_i32_0 = arith.constant 0 : i32
    %c0_i32_1 = arith.constant 0 : i32
    return %c0_i32, %c0_i32_0 : i32, i32
  }
  func.func @transform_15(%arg0: i32) -> (i32, i32) {
    %c0_i32 = arith.constant 0 : i32
    %c0_i32_0 = arith.constant 0 : i32
    %c0_i32_1 = arith.constant 0 : i32
    return %c0_i32, %c0_i32_0 : i32, i32
  }
  func.func @transform_16(%arg0: i32) -> (i32, i32) {
    %c0_i32 = arith.constant 0 : i32
    %c0_i32_0 = arith.constant 0 : i32
    %c0_i32_1 = arith.constant 0 : i32
    return %c0_i32, %c0_i32_0 : i32, i32
  }
  func.func @transform_17(%arg0: i32) -> (i32, i32) {
    %c0_i32 = arith.constant 0 : i32
    %c0_i32_0 = arith.constant 0 : i32
    %c0_i32_1 = arith.constant 0 : i32
    return %c0_i32, %c0_i32_0 : i32, i32
  }
  func.func @transform_18(%arg0: i32) -> (i32, i32) {
    %c0_i32 = arith.constant 0 : i32
    %c0_i32_0 = arith.constant 0 : i32
    %c0_i32_1 = arith.constant 0 : i32
    return %c0_i32, %c0_i32_0 : i32, i32
  }
  func.func @transform_19(%arg0: i32) -> (i32, i32) {
    %c0_i32 = arith.constant 0 : i32
    %c0_i32_0 = arith.constant 0 : i32
    %c0_i32_1 = arith.constant 0 : i32
    return %c0_i32, %c0_i32_0 : i32, i32
  }
  func.func @transform_20(%arg0: i32) -> (i32, i32) {
    %c0_i32 = arith.constant 0 : i32
    %c0_i32_0 = arith.constant 0 : i32
    %c0_i32_1 = arith.constant 0 : i32
    return %c0_i32, %c0_i32_0 : i32, i32
  }
  func.func @transform_21(%arg0: i32) -> (i32, i32) {
    %c0_i32 = arith.constant 0 : i32
    %c0_i32_0 = arith.constant 0 : i32
    %c0_i32_1 = arith.constant 0 : i32
    return %c0_i32, %c0_i32_0 : i32, i32
  }
  func.func @transform_22(%arg0: i32) -> (i32, i32) {
    %c0_i32 = arith.constant 0 : i32
    %c0_i32_0 = arith.constant 0 : i32
    %c0_i32_1 = arith.constant 0 : i32
    return %c0_i32, %c0_i32_0 : i32, i32
  }
  func.func @transform_23(%arg0: i32) -> (i32, i32) {
    %c0_i32 = arith.constant 0 : i32
    %c0_i32_0 = arith.constant 0 : i32
    %c0_i32_1 = arith.constant 0 : i32
    return %c0_i32, %c0_i32_0 : i32, i32
  }
  func.func @transform_24(%arg0: i32) -> (i32, i32) {
    %c0_i32 = arith.constant 0 : i32
    %c0_i32_0 = arith.constant 0 : i32
    %c0_i32_1 = arith.constant 0 : i32
    return %c0_i32, %c0_i32_0 : i32, i32
  }
  func.func @transform_25(%arg0: i32) -> (i32, i32) {
    %c0_i32 = arith.constant 0 : i32
    %c0_i32_0 = arith.constant 0 : i32
    %c0_i32_1 = arith.constant 0 : i32
    return %c0_i32, %c0_i32_0 : i32, i32
  }
  func.func @transform_26(%arg0: i32) -> (i32, i32) {
    %c0_i32 = arith.constant 0 : i32
    %c0_i32_0 = arith.constant 0 : i32
    %c0_i32_1 = arith.constant 0 : i32
    return %c0_i32, %c0_i32_0 : i32, i32
  }
  func.func @transform_27(%arg0: i32) -> (i32, i32) {
    %c0_i32 = arith.constant 0 : i32
    %c0_i32_0 = arith.constant 0 : i32
    %c0_i32_1 = arith.constant 0 : i32
    return %c0_i32, %c0_i32_0 : i32, i32
  }
  func.func @transform_28(%arg0: i32) -> (i32, i32) {
    %c0_i32 = arith.constant 0 : i32
    %c0_i32_0 = arith.constant 0 : i32
    %c0_i32_1 = arith.constant 0 : i32
    return %c0_i32, %c0_i32_0 : i32, i32
  }
  func.func @transform_29(%arg0: i32) -> (i32, i32) {
    %c0_i32 = arith.constant 0 : i32
    %c0_i32_0 = arith.constant 0 : i32
    %c0_i32_1 = arith.constant 0 : i32
    return %c0_i32, %c0_i32_0 : i32, i32
  }
  func.func @transform_30(%arg0: i32) -> (i32, i32) {
    %c0_i32 = arith.constant 0 : i32
    %c0_i32_0 = arith.constant 0 : i32
    %c0_i32_1 = arith.constant 0 : i32
    return %c0_i32, %c0_i32_0 : i32, i32
  }
  func.func @transform_31(%arg0: i32) -> (i32, i32) {
    %c0_i32 = arith.constant 0 : i32
    %c0_i32_0 = arith.constant 0 : i32
    %c0_i32_1 = arith.constant 0 : i32
    return %c0_i32, %c0_i32_0 : i32, i32
  }
  func.func @transform_32(%arg0: i32) -> (i32, i32) {
    %c0_i32 = arith.constant 0 : i32
    %c0_i32_0 = arith.constant 0 : i32
    %c0_i32_1 = arith.constant 0 : i32
    return %c0_i32, %c0_i32_0 : i32, i32
  }
  func.func @transform_33(%arg0: i32) -> (i32, i32) {
    %c0_i32 = arith.constant 0 : i32
    %c0_i32_0 = arith.constant 0 : i32
    %c0_i32_1 = arith.constant 0 : i32
    return %c0_i32, %c0_i32_0 : i32, i32
  }
  func.func @transform_34(%arg0: i32) -> (i32, i32) {
    %c0_i32 = arith.constant 0 : i32
    %c0_i32_0 = arith.constant 0 : i32
    %c0_i32_1 = arith.constant 0 : i32
    return %c0_i32, %c0_i32_0 : i32, i32
  }
  func.func @transform_35(%arg0: i32) -> (i32, i32) {
    %c0_i32 = arith.constant 0 : i32
    %c0_i32_0 = arith.constant 0 : i32
    %c0_i32_1 = arith.constant 0 : i32
    return %c0_i32, %c0_i32_0 : i32, i32
  }
  func.func @transform_36(%arg0: i32) -> (i32, i32) {
    %c0_i32 = arith.constant 0 : i32
    %c0_i32_0 = arith.constant 0 : i32
    %c0_i32_1 = arith.constant 0 : i32
    return %c0_i32, %c0_i32_0 : i32, i32
  }
  func.func @transform_37(%arg0: i32) -> (i32, i32) {
    %c0_i32 = arith.constant 0 : i32
    %c0_i32_0 = arith.constant 0 : i32
    %c0_i32_1 = arith.constant 0 : i32
    return %c0_i32, %c0_i32_0 : i32, i32
  }
  func.func @transform_38(%arg0: i32) -> (i32, i32) {
    %c0_i32 = arith.constant 0 : i32
    %c0_i32_0 = arith.constant 0 : i32
    %c0_i32_1 = arith.constant 0 : i32
    return %c0_i32, %c0_i32_0 : i32, i32
  }
  func.func @transform_39(%arg0: i32) -> (i32, i32) {
    %c0_i32 = arith.constant 0 : i32
    %c0_i32_0 = arith.constant 0 : i32
    %c0_i32_1 = arith.constant 0 : i32
    return %c0_i32, %c0_i32_0 : i32, i32
  }
  func.func @transform_40(%arg0: i32) -> (i32, i32) {
    %c0_i32 = arith.constant 0 : i32
    %c0_i32_0 = arith.constant 0 : i32
    %c0_i32_1 = arith.constant 0 : i32
    return %c0_i32, %c0_i32_0 : i32, i32
  }
  func.func @transform_41(%arg0: i32) -> (i32, i32) {
    %c0_i32 = arith.constant 0 : i32
    %c0_i32_0 = arith.constant 0 : i32
    %c0_i32_1 = arith.constant 0 : i32
    return %c0_i32, %c0_i32_0 : i32, i32
  }
  func.func @transform_42(%arg0: i32) -> (i32, i32, i32) {
    %c0_i32 = arith.constant 0 : i32
    %c0_i32_0 = arith.constant 0 : i32
    %c0_i32_1 = arith.constant 0 : i32
    return %arg0, %c0_i32, %c0_i32_0 : i32, i32, i32
  }
}

</mosaic_0001>

<bundles_post_ra>
// kernel: tpu_custom_call.1
= control target key start
LH: loop header
LB: loop body
LE: loop exit
PB: predicated region body
PF: predicated region fallthrough
CT: control target
= control target key end

     0   :  { %s13838_s6 = smov 1   ;;  %s13839_s10 = smov 2   ;;  %s16323_s0 = inlined_call_operand.smem [shape: u32[43], index: -1, kind: input, shape index: {}] }
   0x1   :  { %s13933_s5 = sld [smem:[%s16323_s0]]   ;;  %s13840_s14 = smov 3  }
   0x2   :  { %s13938_s9 = sld [smem:[%s16323_s0 + %s13838_s6]]   ;;  %s13841_s18 = smov 4  }
   0x3   :  { %s13943_s13 = sld [smem:[%s16323_s0 + %s13839_s10]]   ;;  %s13842_s22 = smov 5  }
   0x4   :  { %s13948_s17 = sld [smem:[%s16323_s0 + %s13840_s14]]   ;;  %s13843_s26 = smov 6  }
   0x5   :  { %s13953_s21 = sld [smem:[%s16323_s0 + %s13841_s18]]   ;;  %s13844_s30 = smov 7  }
   0x6   :  { %s13958_s25 = sld [smem:[%s16323_s0 + %s13842_s22]]   ;;  %s13845_s4 = smov 8  }
   0x7   :  { %16398 = sst [smem:[#allocation51_spill]] %s13933_s5  ;;  %s13846_s10 = smov 9  }
   0x8   :  { %16399 = sst [smem:[#allocation52_spill]] %s13938_s9  ;;  %s13847_s15 = smov 10  }
   0x9   :  { %16400 = sst [smem:[#allocation53_spill]] %s13943_s13  ;;  %s13848_s20 = smov 11  }
   0xa   :  { %16401 = sst [smem:[#allocation54_spill]] %s13948_s17  ;;  %s13850_s1 = smov 13  }
   0xb   :  { %s13963_s29 = sld [smem:[%s16323_s0 + %s13843_s26]]   ;;  %s13849_s26 = smov 12  }
   0xc   :  { %s13968_s3 = sld [smem:[%s16323_s0 + %s13844_s30]]   ;;  %s13851_s7 = smov 14  }
   0xd   :  { %s13973_s8 = sld [smem:[%s16323_s0 + %s13845_s4]]   ;;  %s13853_s22 = smov 16  }
   0xe   :  { %s13978_s14 = sld [smem:[%s16323_s0 + %s13846_s10]]   ;;  %s13854_s28 = smov 17  }
   0xf   :  { %s13983_s19 = sld [smem:[%s16323_s0 + %s13847_s15]]   ;;  %s13852_s15 = smov 15  }
  0x10   :  { %s13988_s24 = sld [smem:[%s16323_s0 + %s13848_s20]]  }
  0x11   :  { %s13993_s30 = sld [smem:[%s16323_s0 + %s13849_s26]]  }
  0x12   :  { %16402 = sst [smem:[#allocation55_spill]] %s13968_s3 }
  0x13   :  { %16403 = sst [smem:[#allocation56_spill]] %s13973_s8 }
  0x14   :  { %16404 = sst [smem:[#allocation57_spill]] %s13978_s14 }
  0x15   :  { %16405 = sst [smem:[#allocation58_spill]] %s13983_s19 }
  0x16   :  { %s13998_s6 = sld [smem:[%s16323_s0 + %s13850_s1]]  }
  0x17   :  { %s14003_s12 = sld [smem:[%s16323_s0 + %s13851_s7]]   ;;  %s13855_s7 = smov 18  }
  0x18   :  { %s14008_s20 = sld [smem:[%s16323_s0 + %s13852_s15]]   ;;  %s13856_s15 = smov 19  }
  0x19   :  { %s14013_s27 = sld [smem:[%s16323_s0 + %s13853_s22]]   ;;  %s13857_s22 = smov 20  }
  0x1a   :  { %s14018_s4 = sld [smem:[%s16323_s0 + %s13854_s28]]   ;;  %s13858_s28 = smov 21  }
  0x1b   :  { %s14028_s19 = sld [smem:[%s16323_s0 + %s13856_s15]]   ;;  %s13860_s15 = smov 23  }
  0x1c   :  { %16406 = sst [smem:[#allocation59_spill]] %s13998_s6 }
  0x1d   :  { %16407 = sst [smem:[#allocation60_spill]] %s14003_s12 }
  0x1e   :  { %16408 = sst [smem:[#allocation61_spill]] %s14008_s20 }
  0x1f   :  { %16409 = sst [smem:[#allocation62_spill]] %s14013_s27 }
  0x20   :  { %16410 = sst [smem:[#allocation63_spill]] %s14018_s4 }
  0x21   :  { %s14023_s12 = sld [smem:[%s16323_s0 + %s13855_s7]]   ;;  %s13859_s7 = smov 22  }
  0x22   :  { %16412 = sst [smem:[#allocation65_spill]] %s14028_s19 }
  0x23   :  { %s14033_s13 = sld [smem:[%s16323_s0 + %s13857_s22]]   ;;  %s13861_s22 = smov 24  }
  0x24   :  { %s14038_s5 = sld [smem:[%s16323_s0 + %s13858_s28]]   ;;  %s13862_s28 = smov 25  }
  0x25   :  { %s14048_s9 = sld [smem:[%s16323_s0 + %s13860_s15]]   ;;  %s13864_s15 = smov 27  }
  0x26   :  { %s14053_s19 = sld [smem:[%s16323_s0 + %s13861_s22]]   ;;  %s13865_s22 = smov 28  }
  0x27   :  { %16411 = sst [smem:[#allocation64_spill]] %s14023_s12 }
  0x28   :  { %s14043_s12 = sld [smem:[%s16323_s0 + %s13859_s7]]   ;;  %s13863_s7 = smov 26  }
  0x29   :  { %16413 = sst [smem:[#allocation66_spill]] %s14033_s13 }
  0x2a   :  { %16414 = sst [smem:[#allocation67_spill]] %s14038_s5 }
  0x2b   :  { %16416 = sst [smem:[#allocation69_spill]] %s14048_s9 }
  0x2c   :  { %16417 = sst [smem:[#allocation70_spill]] %s14053_s19 }
  0x2d   :  { %s14058_s5 = sld [smem:[%s16323_s0 + %s13862_s28]]   ;;  %s13866_s28 = smov 29  }
  0x2e   :  { %16415 = sst [smem:[#allocation68_spill]] %s14043_s12 }
  0x2f   :  { %s14063_s12 = sld [smem:[%s16323_s0 + %s13863_s7]]   ;;  %s13867_s7 = smov 30  }
  0x30   :  { %s14068_s27 = sld [smem:[%s16323_s0 + %s13864_s15]]   ;;  %s13868_s15 = smov 31  }
  0x31   :  { %s14073_s19 = sld [smem:[%s16323_s0 + %s13865_s22]]   ;;  %s13869_s22 = smov 32  }
  0x32   :  { %s14088_s6 = sld [smem:[%s16323_s0 + %s13868_s15]]   ;;  %s13872_s15 = smov 35  }
  0x33   :  { %16418 = sst [smem:[#allocation71_spill]] %s14058_s5 }
  0x34   :  { %s14078_s5 = sld [smem:[%s16323_s0 + %s13866_s28]]   ;;  %s13870_s28 = smov 33  }
  0x35   :  { %16419 = sst [smem:[#allocation72_spill]] %s14063_s12 }
  0x36   :  { %s14083_s12 = sld [smem:[%s16323_s0 + %s13867_s7]]   ;;  %s13871_s7 = smov 34  }
  0x37   :  { %16420 = sst [smem:[#allocation73_spill]] %s14073_s19 }
  0x38   :  { %16423 = sst [smem:[#allocation76_spill]] %s14088_s6 }
  0x39   :  { %s14093_s19 = sld [smem:[%s16323_s0 + %s13869_s22]]   ;;  %s13873_s22 = smov 36  }
  0x3a   :  { %16421 = sst [smem:[#allocation74_spill]] %s14078_s5 }
  0x3b   :  { %s14098_s5 = sld [smem:[%s16323_s0 + %s13870_s28]]   ;;  %s13874_s28 = smov 37  }
  0x3c   :  { %16422 = sst [smem:[#allocation75_spill]] %s14083_s12 }
  0x3d   :  { %s14103_s12 = sld [smem:[%s16323_s0 + %s13871_s7]]   ;;  %s13875_s7 = smov 38  }
  0x3e   :  { %s14108_s6 = sld [smem:[%s16323_s0 + %s13872_s15]]   ;;  %s13876_s15 = smov 39  }
  0x3f   :  { %16424 = sst [smem:[#allocation77_spill]] %s14093_s19 }
  0x40   :  { %s14113_s19 = sld [smem:[%s16323_s0 + %s13873_s22]]   ;;  %s13877_s22 = smov 40  }
  0x41   :  { %16425 = sst [smem:[#allocation78_spill]] %s14098_s5 }
  0x42   :  { %s14118_s5 = sld [smem:[%s16323_s0 + %s13874_s28]]   ;;  %s13878_s28 = smov 41  }
  0x43   :  { %16426 = sst [smem:[#allocation79_spill]] %s14103_s12 }
  0x44   :  { %16427 = sst [smem:[#allocation80_spill]] %s14108_s6 }
  0x45   :  { %s14123_s12 = sld [smem:[%s16323_s0 + %s13875_s7]]   ;;  %s13879_s7 = smov 42  }
  0x46   :  { %16428 = sst [smem:[#allocation81_spill]] %s14113_s19 }
  0x47   :  { %s14128_s6 = sld [smem:[%s16323_s0 + %s13876_s15]]  }
  0x48   :  { %16429 = sst [smem:[#allocation82_spill]] %s14118_s5 }
  0x49   :  { %s14133_s19 = sld [smem:[%s16323_s0 + %s13877_s22]]  }
  0x4a   :  { %s14138_s5 = sld [smem:[%s16323_s0 + %s13878_s28]]  }
  0x4b   :  { %16430 = sst [smem:[#allocation83_spill]] %s14123_s12 }
  0x4c   :  { %s14143_s12 = sld [smem:[%s16323_s0 + %s13879_s7]]  }
  0x4d   :  { %16431 = sst [smem:[#allocation84_spill]] %s14128_s6 }
  0x50   :  { %16432 = sst [smem:[#allocation85_spill]] %s14138_s5 }
  0x52   :  { %16433 = sst [smem:[#allocation86_spill]] %s14143_s12 }
  0x53   :  { %90 = vsyncpa [#allocation3], 0 }
  0x54   :  { %92 = vsyncpa [#allocation3 + $0x1], 0 }
  0x55   :  { %93 = vsyncpa [#allocation6], 0 }
  0x56   :  { %94 = vsyncpa [#allocation9], 0 }
  0x57   :  { %95 = vsyncpa [#allocation12], 0 }
  0x58   :  { %96 = vsyncpa [#allocation15], 0 }
  0x59   :  { %97 = vsyncpa [#allocation18], 0 }
  0x5a   :  { %98 = vsyncpa [#allocation21], 0 }
  0x5b   :  { %99 = vsyncpa [#allocation24], 0 }
  0x5c   :  { %100 = vsyncpa [#allocation27], 0 }
  0x5d   :  { %101 = vsyncpa [#allocation30], 0 }
  0x5e   :  { %102 = vsyncpa [#allocation33], 0 }
  0x5f   :  { %103 = vsyncpa [#allocation36], 0 }
  0x60   :  { %104 = vsyncpa [#allocation4], 0 }
  0x61   :  { %106 = vsyncpa [#allocation4 + $0x1], 0  ;;  %s14145_s15 = smov 0   ;;  %s14147_s16 = smov 0  }
  0x62   :  { %s14149_s0 = smov 0   ;;  %s14151_s18 = smov 0  }
  0x63 LB: > { %s16434_s20 = sld [smem:[#allocation61_spill]]  ;;  %s16435_s17 = sld [smem:[#allocation54_spill]]  ;;  %s13836_s18 = sphi %s14151_s18, %s16525_s18   ;;  %s13832_s0 = sphi %s14149_s0, %s16524_s0   ;;  %s13828_s16 = sphi %s14147_s16, %s16523_s16   ;;  %s13824_s15 = sphi %s14145_s15, %s16522_s15  }
  0x64   : > { %s16436_s14 = sld [smem:[#allocation57_spill]]  ;;  %s16437_s13 = sld [smem:[#allocation66_spill]] }
  0x65   : > { %s16438_s9 = sld [smem:[#allocation69_spill]]  ;;  %s16439_s8 = sld [smem:[#allocation56_spill]] }
  0x66   : > { %s16440_s4 = sld [smem:[#allocation63_spill]]  ;;  %s13880_s22 = smov [#allocation5]  }
  0x67   : > { %s16441_s3 = sld [smem:[#allocation55_spill]]  ;;  %s1051_s23 = sshll.u32 %s13880_s22, 4  ;;  %s14171_s23 = int_to_ptr.vmem [resolvable:$true] %s1051_s23 }
  0x68   : > { %s14166_s26 = sadd.s32 4294967295, %s13836_s18   ;;  %p10850_p0 = scmp.ge.s32.totalorder %s13836_s18, 1 }
  0x69   : > { %p16342_p1 = scmp.eq.s32.totalorder %s14166_s26, 0  ;;  %p1035_p2 = scmp.lt.s32.totalorder %s13836_s18, 3 }
  0x6a   : > { %s13881_s1 = smov [#allocation8]   ;;  %s13882_s7 = smov [#allocation11]  }
  0x6b   : > { %p14173_p3 = pnand %p10850_p0, %p1035_p2  ;;  %s1075_s2 = sshll.u32 %s13881_s1, 4  ;;  %s14180_s2 = int_to_ptr.vmem [resolvable:$true] %s1075_s2 }
  0x6c   : > { %s1099_s10 = sshll.u32 %s13882_s7, 4  ;;  %s13883_s22 = smov [#allocation14]   ;;  %s14188_s10 = int_to_ptr.vmem [resolvable:$true] %s1099_s10 }
  0x6d   : > { %s16442_s28 = scalar_select %p14173_p3, 1, 0 }
  0x6e   : > { %p12415_p5 = pneg %p14173_p3  ;;  %s14190_s12 = sshll.u32 %s13883_s22, 4  ;;  %s1124_s12 = int_to_ptr.vmem [resolvable:$true] %s14190_s12 }
  0x6f   : > { %s13108_s5 = scalar_lea.hbm %s16435_s17, 16 }
  0x70   : > { %p14184_p6 = pnand %p12415_p5, %p16342_p1  ;;  %p13109_p7 = scmp.ne.s32.totalorder %s16435_s17, %s13108_s5 }
  0x71   : > { %p13115_p11 = scmp.lt.u32.totalorder %s13108_s5, %s16435_s17 }
  0x72   : > { %p14196_p8 = pneg %p14184_p6 }
  0x74   : > { %p13111_p9 = pnand %p14196_p8, %p13109_p7 }
  0x76   : > { %p13112_p10 = pneg %p13111_p9 }
  0x78   : > { %p13117_p12 = pnand %p13115_p11, %p13112_p10 }
  0x7a   : > { %13120 = shalt.err (!%p13117_p12)
}
  0x7b   : > { %s13121_s7 = scalar_lea.vmem %s14171_s23, 16  ;;  %s13128_s22 = scalar_lea.vmem %s14171_s23, 32 }
  0x7c   : > { %p13122_p13 = scmp.ne.s32.totalorder %s14171_s23, %s13121_s7  ;;  %p13129_p5 = scmp.lt.s32.totalorder %s14171_s23, %s14171_s23 }
  0x7d   : > { %p13130_p4 = scmp.lt.s32.totalorder %s13128_s22, %s13121_s7 }
  0x7e   : > { %p13124_p0 = pnand %p13122_p13, %p14196_p8 }
  0x7f   : > { %p13131_p1 = por %p13130_p4, %p13129_p5 }
  0x80   : > { %p13125_p2 = pneg %p13124_p0 }
  0x82   : > { %p13132_p7 = pnand %p13131_p1, %p13125_p2 }
  0x84   : > { %13135 = shalt.err (!%p13132_p7)
}
  0x85   : > { %12418 = dma.hbm_to_vmem [thread:$0]  (!%p14184_p6), %s16435_s17, 16, %s14171_s23, [#allocation6]  }
  0x86   : > { %s13136_s5 = scalar_lea.hbm %s13958_s25, 16 }
  0x87   : > { %p13137_p9 = scmp.ne.s32.totalorder %s13958_s25, %s13136_s5  ;;  %p13143_p12 = scmp.lt.u32.totalorder %s13136_s5, %s13958_s25 }
  0x89   : > { %p13139_p10 = pnand %p13137_p9, %p14196_p8 }
  0x8b   : > { %p13140_p11 = pneg %p13139_p10 }
  0x8d   : > { %p13145_p13 = pnand %p13143_p12, %p13140_p11 }
  0x8f   : > { %13148 = shalt.err (!%p13145_p13)
}
  0x90   : > { %s13149_s7 = scalar_lea.vmem %s14180_s2, 16  ;;  %s13156_s22 = scalar_lea.vmem %s14180_s2, 32 }
  0x91   : > { %p13150_p1 = scmp.ne.s32.totalorder %s14180_s2, %s13149_s7  ;;  %p13157_p2 = scmp.lt.s32.totalorder %s14180_s2, %s14180_s2 }
  0x92   : > { %p13158_p5 = scmp.lt.s32.totalorder %s13156_s22, %s13149_s7 }
  0x93   : > { %p13152_p4 = pnand %p13150_p1, %p14196_p8 }
  0x94   : > { %p13159_p7 = por %p13158_p5, %p13157_p2 }
  0x95   : > { %p13153_p0 = pneg %p13152_p4 }
  0x97   : > { %p13160_p9 = pnand %p13159_p7, %p13153_p0 }
  0x99   : > { %13163 = shalt.err (!%p13160_p9)
}
  0x9a   : > { %12424 = dma.hbm_to_vmem [thread:$0]  (!%p14184_p6), %s13958_s25, 16, %s14180_s2, [#allocation9]  }
  0x9b   : > { %s13164_s23 = scalar_lea.hbm %s16441_s3, 16 }
  0x9c   : > { %p13165_p10 = scmp.ne.s32.totalorder %s16441_s3, %s13164_s23  ;;  %p13171_p13 = scmp.lt.u32.totalorder %s13164_s23, %s16441_s3 }
  0x9e   : > { %p13167_p11 = pnand %p13165_p10, %p14196_p8 }
  0xa0   : > { %p13168_p12 = pneg %p13167_p11 }
  0xa2   : > { %p13173_p1 = pnand %p13171_p13, %p13168_p12 }
  0xa4   : > { %13176 = shalt.err (!%p13173_p1)
}
  0xa5   : > { %s13177_s5 = scalar_lea.vmem %s14188_s10, 16  ;;  %s13184_s7 = scalar_lea.vmem %s14188_s10, 32 }
  0xa6   : > { %p13178_p4 = scmp.ne.s32.totalorder %s14188_s10, %s13177_s5  ;;  %p13185_p5 = scmp.lt.s32.totalorder %s14188_s10, %s14188_s10 }
  0xa7   : > { %p13186_p7 = scmp.lt.s32.totalorder %s13184_s7, %s13177_s5 }
  0xa8   : > { %p13180_p0 = pnand %p13178_p4, %p14196_p8 }
  0xa9   : > { %p13187_p9 = por %p13186_p7, %p13185_p5 }
  0xaa   : > { %p13181_p2 = pneg %p13180_p0 }
  0xac   : > { %p13188_p10 = pnand %p13187_p9, %p13181_p2 }
  0xae   : > { %13191 = shalt.err (!%p13188_p10)
}
  0xaf   : > { %12430 = dma.hbm_to_vmem [thread:$0]  (!%p14184_p6), %s16441_s3, 16, %s14188_s10, [#allocation12]  }
  0xb0   : > { %s13192_s2 = scalar_lea.hbm %s16436_s14, 16 }
  0xb1   : > { %p13193_p11 = scmp.ne.s32.totalorder %s16436_s14, %s13192_s2  ;;  %p13199_p1 = scmp.lt.u32.totalorder %s13192_s2, %s16436_s14 }
  0xb3   : > { %p13195_p12 = pnand %p13193_p11, %p14196_p8 }
  0xb5   : > { %p13196_p13 = pneg %p13195_p12 }
  0xb7   : > { %p13201_p4 = pnand %p13199_p1, %p13196_p13 }
  0xb9   : > { %13204 = shalt.err (!%p13201_p4)
}
  0xba   : > { %s13205_s22 = scalar_lea.vmem %s1124_s12, 16  ;;  %s13212_s23 = scalar_lea.vmem %s1124_s12, 32 }
  0xbb   : > { %p13206_p0 = scmp.ne.s32.totalorder %s1124_s12, %s13205_s22  ;;  %p13213_p7 = scmp.lt.s32.totalorder %s1124_s12, %s1124_s12 }
  0xbc   : > { %p13214_p9 = scmp.lt.s32.totalorder %s13212_s23, %s13205_s22 }
  0xbd   : > { %p13208_p2 = pnand %p13206_p0, %p14196_p8 }
  0xbe   : > { %p13215_p10 = por %p13214_p9, %p13213_p7 }
  0xbf   : > { %p13209_p5 = pneg %p13208_p2 }
  0xc1   : > { %p13216_p3 = pnand %p13215_p10, %p13209_p5 }
  0xc3   : > { %13219 = shalt.err (!%p13216_p3)
}
  0xc4   : > { %12436 = dma.hbm_to_vmem [thread:$0]  (!%p14184_p6), %s16436_s14, 16, %s1124_s12, [#allocation15]  }
  0xc5   : > { %s13884_s10 = smov [#allocation17]   ;;  %s13885_s7 = smov [#allocation20]  }
  0xc6   : > { %s1147_s5 = sshll.u32 %s13884_s10, 4  ;;  %s1175_s2 = sshll.u32 %s13885_s7, 4  ;;  %s1148_s5 = int_to_ptr.vmem [resolvable:$true] %s1147_s5  ;;  %s14257_s2 = int_to_ptr.vmem [resolvable:$true] %s1175_s2 }
  0xc7   : > { %s13220_s3 = scalar_lea.hbm %s13993_s30, 256 }
  0xc8   : > { %p13221_p11 = scmp.ne.s32.totalorder %s13993_s30, %s13220_s3  ;;  %p13227_p13 = scmp.lt.u32.totalorder %s13220_s3, %s13993_s30 }
  0xca   : > { %p13223_p12 = pnand %p13221_p11, %p14196_p8 }
  0xcc   : > { %p13224_p3 = pneg %p13223_p12 }
  0xce   : > { %p13229_p1 = pnand %p13227_p13, %p13224_p3 }
  0xd0   : > { %13232 = shalt.err (!%p13229_p1)
}
  0xd1   : > { %s13233_s22 = scalar_lea.vmem %s1148_s5, 256  ;;  %p13241_p5 = scmp.lt.s32.totalorder %s1148_s5, %s1148_s5 }
  0xd2   : > { %p13234_p4 = scmp.ne.s32.totalorder %s1148_s5, %s13233_s22  ;;  %p13242_p7 = scmp.lt.s32.totalorder %s13233_s22, %s13233_s22 }
  0xd4   : > { %p13236_p0 = pnand %p13234_p4, %p14196_p8  ;;  %p13243_p9 = por %p13242_p7, %p13241_p5 }
  0xd6   : > { %p13237_p2 = pneg %p13236_p0 }
  0xd8   : > { %p13244_p10 = pnand %p13243_p9, %p13237_p2 }
  0xda   : > { %13247 = shalt.err (!%p13244_p10)
}
  0xdb   : > { %s16345_s12 = smov 64   ;;  %s16348_s3 = smov 4  }
  0xdc   : > { %12442 = dma.hbm_to_vmem [thread:$0]  (!%p14184_p6), %s13993_s30, 256, %s1148_s5, [#allocation18], %s16345_s12, %s16345_s12, %s16348_s3  }
  0xdd   : > { %s13248_s23 = scalar_lea.hbm %s16434_s20, 16 }
  0xde   : > { %p13249_p11 = scmp.ne.s32.totalorder %s16434_s20, %s13248_s23  ;;  %p13255_p13 = scmp.lt.u32.totalorder %s13248_s23, %s16434_s20 }
  0xe0   : > { %p13251_p12 = pnand %p13249_p11, %p14196_p8 }
  0xe2   : > { %p13252_p3 = pneg %p13251_p12 }
  0xe4   : > { %p13257_p1 = pnand %p13255_p13, %p13252_p3 }
  0xe6   : > { %13260 = shalt.err (!%p13257_p1)
}
  0xe7   : > { %s13261_s10 = scalar_lea.vmem %s14257_s2, 16  ;;  %s13268_s7 = scalar_lea.vmem %s14257_s2, 32 }
  0xe8   : > { %p13262_p4 = scmp.ne.s32.totalorder %s14257_s2, %s13261_s10  ;;  %p13269_p5 = scmp.lt.s32.totalorder %s14257_s2, %s14257_s2 }
  0xe9   : > { %p13270_p7 = scmp.lt.s32.totalorder %s13268_s7, %s13261_s10 }
  0xea   : > { %p13264_p0 = pnand %p13262_p4, %p14196_p8 }
  0xeb   : > { %p13271_p9 = por %p13270_p7, %p13269_p5 }
  0xec   : > { %p13265_p2 = pneg %p13264_p0 }
  0xee   : > { %p13272_p10 = pnand %p13271_p9, %p13265_p2 }
  0xf0   : > { %13275 = shalt.err (!%p13272_p10)
}
  0xf1   : > { %12448 = dma.hbm_to_vmem [thread:$0]  (!%p14184_p6), %s16434_s20, 16, %s14257_s2, [#allocation21]  }
  0xf2   : > { %s13888_s5 = smov [#allocation23]   ;;  %s13889_s23 = smov [#allocation26]  }
  0xf3   : > { %s1197_s22 = sshll.u32 %s13888_s5, 4  ;;  %s1222_s12 = sshll.u32 %s13889_s23, 4  ;;  %s1198_s22 = int_to_ptr.vmem [resolvable:$true] %s1197_s22  ;;  %s14288_s12 = int_to_ptr.vmem [resolvable:$true] %s1222_s12 }
  0xf4   : > { %s13276_s10 = scalar_lea.hbm %s16440_s4, 16 }
  0xf5   : > { %p13277_p11 = scmp.ne.s32.totalorder %s16440_s4, %s13276_s10  ;;  %p13283_p13 = scmp.lt.u32.totalorder %s13276_s10, %s16440_s4 }
  0xf7   : > { %p13279_p12 = pnand %p13277_p11, %p14196_p8 }
  0xf9   : > { %p13280_p3 = pneg %p13279_p12 }
  0xfb   : > { %p13285_p1 = pnand %p13283_p13, %p13280_p3 }
  0xfd   : > { %13288 = shalt.err (!%p13285_p1)
}
  0xfe   : > { %s13289_s7 = scalar_lea.vmem %s1198_s22, 16  ;;  %s13296_s2 = scalar_lea.vmem %s1198_s22, 32 }
  0xff   : > { %p13290_p4 = scmp.ne.s32.totalorder %s1198_s22, %s13289_s7  ;;  %p13297_p5 = scmp.lt.s32.totalorder %s1198_s22, %s1198_s22 }
 0x100   : > { %p13298_p7 = scmp.lt.s32.totalorder %s13296_s2, %s13289_s7 }
 0x101   : > { %p13292_p0 = pnand %p13290_p4, %p14196_p8 }
 0x102   : > { %p13299_p9 = por %p13298_p7, %p13297_p5 }
 0x103   : > { %p13293_p2 = pneg %p13292_p0 }
 0x105   : > { %p13300_p10 = pnand %p13299_p9, %p13293_p2 }
 0x107   : > { %13303 = shalt.err (!%p13300_p10)
}
 0x108   : > { %12454 = dma.hbm_to_vmem [thread:$0]  (!%p14184_p6), %s16440_s4, 16, %s1198_s22, [#allocation24]  }
 0x109   : > { %s13304_s5 = scalar_lea.hbm %s16437_s13, 16 }
 0x10a   : > { %p13305_p11 = scmp.ne.s32.totalorder %s16437_s13, %s13304_s5  ;;  %p13311_p13 = scmp.lt.u32.totalorder %s13304_s5, %s16437_s13 }
 0x10c   : > { %p13307_p12 = pnand %p13305_p11, %p14196_p8 }
 0x10e   : > { %p13308_p3 = pneg %p13307_p12 }
 0x110   : > { %p13313_p1 = pnand %p13311_p13, %p13308_p3 }
 0x112   : > { %13316 = shalt.err (!%p13313_p1)
}
 0x113   : > { %s13317_s23 = scalar_lea.vmem %s14288_s12, 16  ;;  %s13324_s10 = scalar_lea.vmem %s14288_s12, 32 }
 0x114   : > { %p13318_p4 = scmp.ne.s32.totalorder %s14288_s12, %s13317_s23  ;;  %p13325_p5 = scmp.lt.s32.totalorder %s14288_s12, %s14288_s12 }
 0x115   : > { %p13326_p7 = scmp.lt.s32.totalorder %s13324_s10, %s13317_s23 }
 0x116   : > { %p13320_p0 = pnand %p13318_p4, %p14196_p8 }
 0x117   : > { %p13327_p9 = por %p13326_p7, %p13325_p5 }
 0x118   : > { %p13321_p2 = pneg %p13320_p0 }
 0x11a   : > { %p13328_p10 = pnand %p13327_p9, %p13321_p2 }
 0x11c   : > { %13331 = shalt.err (!%p13328_p10)
}
 0x11d   : > { %12460 = dma.hbm_to_vmem [thread:$0]  (!%p14184_p6), %s16437_s13, 16, %s14288_s12, [#allocation27]  }
 0x11e   : > { %s13890_s22 = smov [#allocation29]   ;;  %s13891_s2 = smov [#allocation32]  }
 0x11f   : > { %s1247_s7 = sshll.u32 %s13890_s22, 4  ;;  %s1275_s5 = sshll.u32 %s13891_s2, 4  ;;  %s1248_s7 = int_to_ptr.vmem [resolvable:$true] %s1247_s7  ;;  %s14316_s5 = int_to_ptr.vmem [resolvable:$true] %s1275_s5 }
 0x120   : > { %s13332_s23 = scalar_lea.hbm %s16438_s9, 16 }
 0x121   : > { %p13333_p11 = scmp.ne.s32.totalorder %s16438_s9, %s13332_s23  ;;  %p13339_p13 = scmp.lt.u32.totalorder %s13332_s23, %s16438_s9 }
 0x123   : > { %p13335_p12 = pnand %p13333_p11, %p14196_p8 }
 0x125   : > { %p13336_p3 = pneg %p13335_p12 }
 0x127   : > { %p13341_p1 = pnand %p13339_p13, %p13336_p3 }
 0x129   : > { %13344 = shalt.err (!%p13341_p1)
}
 0x12a   : > { %s13345_s10 = scalar_lea.vmem %s1248_s7, 16  ;;  %s13352_s12 = scalar_lea.vmem %s1248_s7, 32 }
 0x12b   : > { %p13346_p4 = scmp.ne.s32.totalorder %s1248_s7, %s13345_s10  ;;  %p13353_p5 = scmp.lt.s32.totalorder %s1248_s7, %s1248_s7 }
 0x12c   : > { %p13354_p7 = scmp.lt.s32.totalorder %s13352_s12, %s13345_s10 }
 0x12d   : > { %p13348_p0 = pnand %p13346_p4, %p14196_p8 }
 0x12e   : > { %p13355_p9 = por %p13354_p7, %p13353_p5 }
 0x12f   : > { %p13349_p2 = pneg %p13348_p0 }
 0x131   : > { %p13356_p10 = pnand %p13355_p9, %p13349_p2 }
 0x133   : > { %13359 = shalt.err (!%p13356_p10)
}
 0x134   : > { %12466 = dma.hbm_to_vmem [thread:$0]  (!%p14184_p6), %s16438_s9, 16, %s1248_s7, [#allocation30]  }
 0x135   : > { %s13360_s22 = scalar_lea.hbm %s14068_s27, 16 }
 0x136   : > { %p13361_p11 = scmp.ne.s32.totalorder %s14068_s27, %s13360_s22  ;;  %p13367_p13 = scmp.lt.u32.totalorder %s13360_s22, %s14068_s27 }
 0x138   : > { %p13363_p12 = pnand %p13361_p11, %p14196_p8 }
 0x13a   : > { %p13364_p3 = pneg %p13363_p12 }
 0x13c   : > { %p13369_p1 = pnand %p13367_p13, %p13364_p3 }
 0x13e   : > { %13372 = shalt.err (!%p13369_p1)
}
 0x13f   : > { %s13373_s2 = scalar_lea.vmem %s14316_s5, 16  ;;  %s13380_s23 = scalar_lea.vmem %s14316_s5, 32 }
 0x140   : > { %p13374_p4 = scmp.ne.s32.totalorder %s14316_s5, %s13373_s2  ;;  %p13381_p5 = scmp.lt.s32.totalorder %s14316_s5, %s14316_s5 }
 0x141   : > { %p13382_p7 = scmp.lt.s32.totalorder %s13380_s23, %s13373_s2 }
 0x142   : > { %p13376_p0 = pnand %p13374_p4, %p14196_p8 }
 0x143   : > { %p13383_p9 = por %p13382_p7, %p13381_p5 }
 0x144   : > { %p13377_p2 = pneg %p13376_p0 }
 0x146   : > { %p13384_p10 = pnand %p13383_p9, %p13377_p2 }
 0x148   : > { %13387 = shalt.err (!%p13384_p10)
}
 0x149   : > { %12472 = dma.hbm_to_vmem [thread:$0]  (!%p14184_p6), %s14068_s27, 16, %s14316_s5, [#allocation33]  }
 0x14a   : > { %s13892_s7 = smov [#allocation7]   ;;  %s13893_s12 = smov [#allocation10]  }
 0x14b   : > { %s1061_s10 = sshll.u32 %s13892_s7, 4  ;;  %s1085_s22 = sshll.u32 %s13893_s12, 4  ;;  %s1062_s10 = int_to_ptr.vmem [resolvable:$true] %s1061_s10  ;;  %s14344_s22 = int_to_ptr.vmem [resolvable:$true] %s1085_s22 }
 0x14c   : > { %s13388_s2 = scalar_lea.hbm %s13953_s21, 256 }
 0x14d   : > { %p13389_p11 = scmp.ne.s32.totalorder %s13953_s21, %s13388_s2  ;;  %p13395_p13 = scmp.lt.u32.totalorder %s13388_s2, %s13953_s21 }
 0x14f   : > { %p13391_p12 = pnand %p13389_p11, %p14196_p8 }
 0x151   : > { %p13392_p3 = pneg %p13391_p12 }
 0x153   : > { %p13397_p1 = pnand %p13395_p13, %p13392_p3 }
 0x155   : > { %13400 = shalt.err (!%p13397_p1)
}
 0x156   : > { %s13401_s23 = scalar_lea.vmem %s1062_s10, 256  ;;  %p13409_p5 = scmp.lt.s32.totalorder %s1062_s10, %s1062_s10 }
 0x157   : > { %p13402_p4 = scmp.ne.s32.totalorder %s1062_s10, %s13401_s23  ;;  %p13410_p7 = scmp.lt.s32.totalorder %s13401_s23, %s13401_s23 }
 0x159   : > { %p13404_p0 = pnand %p13402_p4, %p14196_p8  ;;  %p13411_p9 = por %p13410_p7, %p13409_p5 }
 0x15b   : > { %p13405_p2 = pneg %p13404_p0 }
 0x15d   : > { %p13412_p10 = pnand %p13411_p9, %p13405_p2 }
 0x15f   : > { %13415 = shalt.err (!%p13412_p10)
}
 0x160   : > { %s16445_s5 = smov 64   ;;  %s13416_s7 = scalar_lea.hbm %s13963_s29, 256 }
 0x161   : > { %12421 = dma.hbm_to_vmem [thread:$0]  (!%p14184_p6), %s13953_s21, 256, %s1062_s10, [#allocation6], %s16445_s5, %s16445_s5, %s16348_s3  }
 0x162   : > { %p13417_p11 = scmp.ne.s32.totalorder %s13963_s29, %s13416_s7  ;;  %p13423_p13 = scmp.lt.u32.totalorder %s13416_s7, %s13963_s29 }
 0x164   : > { %p13419_p12 = pnand %p13417_p11, %p14196_p8 }
 0x166   : > { %p13420_p3 = pneg %p13419_p12 }
 0x168   : > { %p13425_p1 = pnand %p13423_p13, %p13420_p3 }
 0x16a   : > { %13428 = shalt.err (!%p13425_p1)
}
 0x16b   : > { %s13429_s12 = scalar_lea.vmem %s14344_s22, 256  ;;  %p13437_p5 = scmp.lt.s32.totalorder %s14344_s22, %s14344_s22 }
 0x16c   : > { %p13430_p4 = scmp.ne.s32.totalorder %s14344_s22, %s13429_s12  ;;  %p13438_p7 = scmp.lt.s32.totalorder %s13429_s12, %s13429_s12 }
 0x16e   : > { %p13432_p0 = pnand %p13430_p4, %p14196_p8  ;;  %p13439_p9 = por %p13438_p7, %p13437_p5 }
 0x170   : > { %p13433_p2 = pneg %p13432_p0 }
 0x172   : > { %p13440_p10 = pnand %p13439_p9, %p13433_p2 }
 0x174   : > { %13443 = shalt.err (!%p13440_p10)
}
 0x175   : > { %12427 = dma.hbm_to_vmem [thread:$0]  (!%p14184_p6), %s13963_s29, 256, %s14344_s22, [#allocation9], %s16445_s5, %s16445_s5, %s16348_s3  }
 0x176   : > { %s13894_s10 = smov [#allocation13]   ;;  %s13895_s23 = smov [#allocation16]  }
 0x177   : > { %s1109_s2 = sshll.u32 %s13894_s10, 4  ;;  %s1137_s7 = sshll.u32 %s13895_s23, 4  ;;  %s1110_s2 = int_to_ptr.vmem [resolvable:$true] %s1109_s2  ;;  %s14377_s7 = int_to_ptr.vmem [resolvable:$true] %s1137_s7 }
 0x178   : > { %s13444_s12 = scalar_lea.hbm %s16439_s8, 256 }
 0x179   : > { %p13445_p11 = scmp.ne.s32.totalorder %s16439_s8, %s13444_s12  ;;  %p13451_p13 = scmp.lt.u32.totalorder %s13444_s12, %s16439_s8 }
 0x17b   : > { %p13447_p12 = pnand %p13445_p11, %p14196_p8 }
 0x17d   : > { %p13448_p3 = pneg %p13447_p12 }
 0x17f   : > { %p13453_p1 = pnand %p13451_p13, %p13448_p3 }
 0x181   : > { %13456 = shalt.err (!%p13453_p1)
}
 0x182   : > { %s13457_s4 = scalar_lea.vmem %s1110_s2, 256  ;;  %p13465_p5 = scmp.lt.s32.totalorder %s1110_s2, %s1110_s2 }
 0x183   : > { %p13458_p4 = scmp.ne.s32.totalorder %s1110_s2, %s13457_s4  ;;  %p13466_p7 = scmp.lt.s32.totalorder %s13457_s4, %s13457_s4 }
 0x185   : > { %p13460_p0 = pnand %p13458_p4, %p14196_p8  ;;  %p13467_p9 = por %p13466_p7, %p13465_p5 }
 0x187   : > { %p13461_p2 = pneg %p13460_p0 }
 0x189   : > { %p13468_p10 = pnand %p13467_p9, %p13461_p2 }
 0x18b   : > { %13471 = shalt.err (!%p13468_p10)
}
 0x18c   : > { %12433 = dma.hbm_to_vmem [thread:$0]  (!%p14184_p6), %s16439_s8, 256, %s1110_s2, [#allocation12], %s16445_s5, %s16445_s5, %s16348_s3  }
 0x18d   : > { %s13472_s22 = scalar_lea.hbm %s13988_s24, 16 }
 0x18e   : > { %p13473_p11 = scmp.ne.s32.totalorder %s13988_s24, %s13472_s22  ;;  %p13479_p13 = scmp.lt.u32.totalorder %s13472_s22, %s13988_s24 }
 0x190   : > { %p13475_p12 = pnand %p13473_p11, %p14196_p8 }
 0x192   : > { %p13476_p3 = pneg %p13475_p12 }
 0x194   : > { %p13481_p1 = pnand %p13479_p13, %p13476_p3 }
 0x196   : > { %13484 = shalt.err (!%p13481_p1)
}
 0x197   : > { %s13485_s4 = scalar_lea.vmem %s14377_s7, 16  ;;  %s13492_s10 = scalar_lea.vmem %s14377_s7, 32 }
 0x198   : > { %p13486_p4 = scmp.ne.s32.totalorder %s14377_s7, %s13485_s4  ;;  %p13493_p5 = scmp.lt.s32.totalorder %s14377_s7, %s14377_s7 }
 0x199   : > { %p13494_p7 = scmp.lt.s32.totalorder %s13492_s10, %s13485_s4 }
 0x19a   : > { %p13488_p0 = pnand %p13486_p4, %p14196_p8 }
 0x19b   : > { %p13495_p9 = por %p13494_p7, %p13493_p5 }
 0x19c   : > { %p13489_p2 = pneg %p13488_p0 }
 0x19e   : > { %p13496_p10 = pnand %p13495_p9, %p13489_p2 }
 0x1a0   : > { %13499 = shalt.err (!%p13496_p10)
}
 0x1a1   : > { %s16446_s2 = sld [smem:[#allocation59_spill]]  ;;  %s13896_s23 = smov [#allocation19]  }
 0x1a2   : > { %12439 = dma.hbm_to_vmem [thread:$0]  (!%p14184_p6), %s13988_s24, 16, %s14377_s7, [#allocation15]  }
 0x1a3   : > { %s1161_s12 = sshll.u32 %s13896_s23, 4  ;;  %s13897_s22 = smov [#allocation22]   ;;  %s1162_s12 = int_to_ptr.vmem [resolvable:$true] %s1161_s12 }
 0x1a4   : > { %s1186_s3 = sshll.u32 %s13897_s22, 4  ;;  %s14408_s3 = int_to_ptr.vmem [resolvable:$true] %s1186_s3 }
 0x1a7   : > { %s13500_s4 = scalar_lea.hbm %s16446_s2, 16 }
 0x1a8   : > { %p13501_p11 = scmp.ne.s32.totalorder %s16446_s2, %s13500_s4  ;;  %p13507_p13 = scmp.lt.u32.totalorder %s13500_s4, %s16446_s2 }
 0x1aa   : > { %p13503_p12 = pnand %p13501_p11, %p14196_p8 }
 0x1ac   : > { %p13504_p3 = pneg %p13503_p12 }
 0x1ae   : > { %p13509_p1 = pnand %p13507_p13, %p13504_p3 }
 0x1b0   : > { %13512 = shalt.err (!%p13509_p1)
}
 0x1b1   : > { %s13513_s10 = scalar_lea.vmem %s1162_s12, 16  ;;  %s13520_s7 = scalar_lea.vmem %s1162_s12, 32 }
 0x1b2   : > { %p13514_p4 = scmp.ne.s32.totalorder %s1162_s12, %s13513_s10  ;;  %p13521_p5 = scmp.lt.s32.totalorder %s1162_s12, %s1162_s12 }
 0x1b3   : > { %p13522_p7 = scmp.lt.s32.totalorder %s13520_s7, %s13513_s10 }
 0x1b4   : > { %p13516_p0 = pnand %p13514_p4, %p14196_p8 }
 0x1b5   : > { %p13523_p9 = por %p13522_p7, %p13521_p5 }
 0x1b6   : > { %p13517_p2 = pneg %p13516_p0 }
 0x1b8   : > { %p13524_p10 = pnand %p13523_p9, %p13517_p2 }
 0x1ba   : > { %13527 = shalt.err (!%p13524_p10)
}
 0x1bb   : > { %s16447_s23 = sld [smem:[#allocation62_spill]] }
 0x1bc   : > { %12445 = dma.hbm_to_vmem [thread:$0]  (!%p14184_p6), %s16446_s2, 16, %s1162_s12, [#allocation18]  }
 0x1c1   : > { %s13528_s22 = scalar_lea.hbm %s16447_s23, 16 }
 0x1c2   : > { %p13529_p11 = scmp.ne.s32.totalorder %s16447_s23, %s13528_s22  ;;  %p13535_p13 = scmp.lt.u32.totalorder %s13528_s22, %s16447_s23 }
 0x1c4   : > { %p13531_p12 = pnand %p13529_p11, %p14196_p8 }
 0x1c6   : > { %p13532_p3 = pneg %p13531_p12 }
 0x1c8   : > { %p13537_p1 = pnand %p13535_p13, %p13532_p3 }
 0x1ca   : > { %13540 = shalt.err (!%p13537_p1)
}
 0x1cb   : > { %s13541_s4 = scalar_lea.vmem %s14408_s3, 16  ;;  %s13548_s10 = scalar_lea.vmem %s14408_s3, 32 }
 0x1cc   : > { %p13542_p4 = scmp.ne.s32.totalorder %s14408_s3, %s13541_s4  ;;  %p13549_p5 = scmp.lt.s32.totalorder %s14408_s3, %s14408_s3 }
 0x1cd   : > { %p13550_p7 = scmp.lt.s32.totalorder %s13548_s10, %s13541_s4 }
 0x1ce   : > { %p13544_p0 = pnand %p13542_p4, %p14196_p8 }
 0x1cf   : > { %p13551_p9 = por %p13550_p7, %p13549_p5 }
 0x1d0   : > { %p13545_p2 = pneg %p13544_p0 }
 0x1d2   : > { %p13552_p10 = pnand %p13551_p9, %p13545_p2 }
 0x1d4   : > { %13555 = shalt.err (!%p13552_p10)
}
 0x1d5   : > { %s16448_s12 = sld [smem:[#allocation65_spill]]  ;;  %s13898_s7 = smov [#allocation25]  }
 0x1d6   : > { %12451 = dma.hbm_to_vmem [thread:$0]  (!%p14184_p6), %s16447_s23, 16, %s14408_s3, [#allocation21]  }
 0x1d7   : > { %s1211_s22 = sshll.u32 %s13898_s7, 4  ;;  %s13899_s2 = smov [#allocation28]   ;;  %s1212_s22 = int_to_ptr.vmem [resolvable:$true] %s1211_s22 }
 0x1d8   : > { %s1233_s8 = sshll.u32 %s13899_s2, 4  ;;  %s14436_s8 = int_to_ptr.vmem [resolvable:$true] %s1233_s8 }
 0x1db   : > { %s13556_s4 = scalar_lea.hbm %s16448_s12, 16 }
 0x1dc   : > { %p13557_p11 = scmp.ne.s32.totalorder %s16448_s12, %s13556_s4  ;;  %p13563_p13 = scmp.lt.u32.totalorder %s13556_s4, %s16448_s12 }
 0x1de   : > { %p13559_p12 = pnand %p13557_p11, %p14196_p8 }
 0x1e0   : > { %p13560_p3 = pneg %p13559_p12 }
 0x1e2   : > { %p13565_p1 = pnand %p13563_p13, %p13560_p3 }
 0x1e4   : > { %13568 = shalt.err (!%p13565_p1)
}
 0x1e5   : > { %s13569_s10 = scalar_lea.vmem %s1212_s22, 16  ;;  %s13576_s3 = scalar_lea.vmem %s1212_s22, 32 }
 0x1e6   : > { %p13570_p4 = scmp.ne.s32.totalorder %s1212_s22, %s13569_s10  ;;  %p13577_p5 = scmp.lt.s32.totalorder %s1212_s22, %s1212_s22 }
 0x1e7   : > { %p13578_p7 = scmp.lt.s32.totalorder %s13576_s3, %s13569_s10 }
 0x1e8   : > { %p13572_p0 = pnand %p13570_p4, %p14196_p8 }
 0x1e9   : > { %p13579_p9 = por %p13578_p7, %p13577_p5 }
 0x1ea   : > { %p13573_p2 = pneg %p13572_p0 }
 0x1ec   : > { %p13580_p10 = pnand %p13579_p9, %p13573_p2 }
 0x1ee   : > { %13583 = shalt.err (!%p13580_p10)
}
 0x1ef   : > { %s16449_s2 = sld [smem:[#allocation67_spill]] }
 0x1f0   : > { %12457 = dma.hbm_to_vmem [thread:$0]  (!%p14184_p6), %s16448_s12, 16, %s1212_s22, [#allocation24]  }
 0x1f5   : > { %s13584_s7 = scalar_lea.hbm %s16449_s2, 16 }
 0x1f6   : > { %p13585_p11 = scmp.ne.s32.totalorder %s16449_s2, %s13584_s7  ;;  %p13591_p13 = scmp.lt.u32.totalorder %s13584_s7, %s16449_s2 }
 0x1f8   : > { %p13587_p12 = pnand %p13585_p11, %p14196_p8 }
 0x1fa   : > { %p13588_p3 = pneg %p13587_p12 }
 0x1fc   : > { %p13593_p1 = pnand %p13591_p13, %p13588_p3 }
 0x1fe   : > { %13596 = shalt.err (!%p13593_p1)
}
 0x1ff   : > { %s13597_s4 = scalar_lea.vmem %s14436_s8, 16  ;;  %s13604_s10 = scalar_lea.vmem %s14436_s8, 32 }
 0x200   : > { %p13598_p4 = scmp.ne.s32.totalorder %s14436_s8, %s13597_s4  ;;  %p13605_p5 = scmp.lt.s32.totalorder %s14436_s8, %s14436_s8 }
 0x201   : > { %p13606_p7 = scmp.lt.s32.totalorder %s13604_s10, %s13597_s4 }
 0x202   : > { %p13600_p0 = pnand %p13598_p4, %p14196_p8 }
 0x203   : > { %p13607_p9 = por %p13606_p7, %p13605_p5 }
 0x204   : > { %p13601_p2 = pneg %p13600_p0 }
 0x206   : > { %p13608_p10 = pnand %p13607_p9, %p13601_p2 }
 0x208   : > { %13611 = shalt.err (!%p13608_p10)
}
 0x209   : > { %s16450_s22 = sld [smem:[#allocation71_spill]]  ;;  %s13900_s3 = smov [#allocation31]  }
 0x20a   : > { %12463 = dma.hbm_to_vmem [thread:$0]  (!%p14184_p6), %s16449_s2, 16, %s14436_s8, [#allocation27]  }
 0x20b   : > { %s1261_s7 = sshll.u32 %s13900_s3, 4  ;;  %s13901_s9 = smov [#allocation34]   ;;  %s1262_s7 = int_to_ptr.vmem [resolvable:$true] %s1261_s7 }
 0x20c   : > { %s1289_s12 = sshll.u32 %s13901_s9, 4  ;;  %s14464_s12 = int_to_ptr.vmem [resolvable:$true] %s1289_s12 }
 0x20f   : > { %s13612_s4 = scalar_lea.hbm %s16450_s22, 16 }
 0x210   : > { %p13613_p11 = scmp.ne.s32.totalorder %s16450_s22, %s13612_s4  ;;  %p13619_p13 = scmp.lt.u32.totalorder %s13612_s4, %s16450_s22 }
 0x212   : > { %p13615_p12 = pnand %p13613_p11, %p14196_p8 }
 0x214   : > { %p13616_p3 = pneg %p13615_p12 }
 0x216   : > { %p13621_p1 = pnand %p13619_p13, %p13616_p3 }
 0x218   : > { %13624 = shalt.err (!%p13621_p1)
}
 0x219   : > { %s13625_s10 = scalar_lea.vmem %s1262_s7, 16  ;;  %s13632_s8 = scalar_lea.vmem %s1262_s7, 32 }
 0x21a   : > { %p13626_p4 = scmp.ne.s32.totalorder %s1262_s7, %s13625_s10  ;;  %p13633_p5 = scmp.lt.s32.totalorder %s1262_s7, %s1262_s7 }
 0x21b   : > { %p13634_p7 = scmp.lt.s32.totalorder %s13632_s8, %s13625_s10 }
 0x21c   : > { %p13628_p0 = pnand %p13626_p4, %p14196_p8 }
 0x21d   : > { %p13635_p9 = por %p13634_p7, %p13633_p5 }
 0x21e   : > { %p13629_p2 = pneg %p13628_p0 }
 0x220   : > { %p13636_p10 = pnand %p13635_p9, %p13629_p2 }
 0x222   : > { %13639 = shalt.err (!%p13636_p10)
}
 0x223   : > { %s16451_s9 = sld [smem:[#allocation74_spill]] }
 0x224   : > { %12469 = dma.hbm_to_vmem [thread:$0]  (!%p14184_p6), %s16450_s22, 16, %s1262_s7, [#allocation30]  }
 0x229   : > { %s13640_s3 = scalar_lea.hbm %s16451_s9, 16 }
 0x22a   : > { %p13641_p11 = scmp.ne.s32.totalorder %s16451_s9, %s13640_s3  ;;  %p13647_p13 = scmp.lt.u32.totalorder %s13640_s3, %s16451_s9 }
 0x22c   : > { %p13643_p12 = pnand %p13641_p11, %p14196_p8 }
 0x22e   : > { %p13644_p3 = pneg %p13643_p12 }
 0x230   : > { %p13649_p1 = pnand %p13647_p13, %p13644_p3 }
 0x232   : > { %13652 = shalt.err (!%p13649_p1)
}
 0x233   : > { %s13653_s4 = scalar_lea.vmem %s14464_s12, 16  ;;  %s13660_s10 = scalar_lea.vmem %s14464_s12, 32 }
 0x234   : > { %p13654_p4 = scmp.ne.s32.totalorder %s14464_s12, %s13653_s4  ;;  %p13661_p5 = scmp.lt.s32.totalorder %s14464_s12, %s14464_s12 }
 0x235   : > { %p13662_p7 = scmp.lt.s32.totalorder %s13660_s10, %s13653_s4 }
 0x236   : > { %p13656_p0 = pnand %p13654_p4, %p14196_p8 }
 0x237   : > { %p13663_p9 = por %p13662_p7, %p13661_p5 }
 0x238   : > { %p13657_p2 = pneg %p13656_p0 }
 0x23a   : > { %p13664_p10 = pnand %p13663_p9, %p13657_p2 }
 0x23c   : > { %13667 = shalt.err (!%p13664_p10)
}
 0x23d   : > { %s16452_s7 = sld [smem:[#allocation77_spill]]  ;;  %s13902_s8 = smov [#allocation35]  }
 0x23e   : > { %12475 = dma.hbm_to_vmem [thread:$0]  (!%p14184_p6), %s16451_s9, 16, %s14464_s12, [#allocation33]  }
 0x23f   : > { %s1305_s3 = sshll.u32 %s13902_s8, 4  ;;  %s1306_s3 = int_to_ptr.vmem [resolvable:$true] %s1305_s3 }
 0x243   : > { %s13668_s2 = scalar_lea.hbm %s16452_s7, 256 }
 0x244   : > { %p13669_p11 = scmp.ne.s32.totalorder %s16452_s7, %s13668_s2  ;;  %p13675_p13 = scmp.lt.u32.totalorder %s13668_s2, %s16452_s7 }
 0x246   : > { %p13671_p12 = pnand %p13669_p11, %p14196_p8 }
 0x248   : > { %p13672_p3 = pneg %p13671_p12 }
 0x24a   : > { %p13677_p1 = pnand %p13675_p13, %p13672_p3 }
 0x24c   : > { %13680 = shalt.err (!%p13677_p1)
}
 0x24d   : > { %s13681_s4 = scalar_lea.vmem %s1306_s3, 256  ;;  %p13689_p5 = scmp.lt.s32.totalorder %s1306_s3, %s1306_s3 }
 0x24e   : > { %p13682_p4 = scmp.ne.s32.totalorder %s1306_s3, %s13681_s4  ;;  %p13690_p7 = scmp.lt.s32.totalorder %s13681_s4, %s13681_s4 }
 0x250   : > { %p13684_p0 = pnand %p13682_p4, %p14196_p8  ;;  %p13691_p9 = por %p13690_p7, %p13689_p5 }
 0x252   : > { %p13685_p2 = pneg %p13684_p0 }
 0x254   : > { %p13692_p10 = pnand %p13691_p9, %p13685_p2 }
 0x256   : > { %13695 = shalt.err (!%p13692_p10)
}
 0x257   : > { %s16453_s12 = smov 4   ;;  %s10849_s11 = sadd.s32 4294967294, %s13836_s18  }
 0x258   : > { %12478 = dma.hbm_to_vmem [thread:$0]  (!%p14184_p6), %s16452_s7, 256, %s1306_s3, [#allocation36], %s16445_s5, %s16445_s5, %s16453_s12  }
 0x259   : > { %s14507_s1 = sadd.s32 1, %s13836_s18   ;;  %s145_s2 = sadd.s32 1, %s13832_s0 }
 0x25a   : > { %s142_s10 = ssub.s32 %s13836_s18, %s14507_s1  ;;  %s16454_s8 = sld [smem:[#allocation52_spill]] }
 0x25b   : > { %p152_p8 = scmp.ne.s32.totalorder %s13832_s0, %s13828_s16  ;;  %p143_p11 = scmp.eq.s32.totalorder %s142_s10, 0 }
 0x25c   : > { %p153_p12 = scmp.eq.s32.totalorder %s13836_s18, 0  ;;  %p158_p3 = scmp.ne.s32.totalorder %s13828_s16, %s13824_s15 }
 0x25d   : > { %p1022_p13 = scmp.eq.s32.totalorder %s14166_s26, 1  ;;  %p16455_p4 = scmp.eq.s32.totalorder %s14166_s26, 0 }
 0x25e   : > { %s14519_s4 = scalar_select %p143_p11, %s13832_s0, %s145_s2  }
 0x25f   : > { %p154_p1 = por %p153_p12, %p152_p8  ;;  %p14523_p0 = por %p16455_p4, %p158_p3 }
 0x260   : > { %p14527_p6 = por %p1022_p13, %p152_p8  ;;  %p1028_p2 = scmp.eq.s32.totalorder %s10849_s11, 1 }
 0x261   : > { %s16456_s5 = scalar_select %p14523_p0, 1, 0 }
 0x262   : > { %s16457_s3 = scalar_select %p14527_p6, 1, 0 }
 0x263   : > { %p12508_p5 = scmp.lt.s32.totalorder %s13836_s18, 2  ;;  %s1355_s12 = sand.u32 1, %s13832_s0  }
 0x264   : > { %p14533_p7 = por %p1028_p2, %p158_p3  ;;  %s10873_s2 = sshll.u32 %s1355_s12, 5 }
 0x265   : > { %s11121_s7 = sshll.u32 %s13836_s18, 9  ;;  %s1359_s13 = scalar_lea.vmem [#allocation2], %s10873_s2 }
 0x266   : > { %s16458_s10 = scalar_select %p14533_p7, 1, 0 }
 0x267   : > { %s14539_s9 = scalar_lea.hbm %s16454_s8, %s11121_s7  ;;  %s1366_s14 = sshll.u32 %s1359_s13, 4  ;;  %s14545_s14 = int_to_ptr.vmem [resolvable:$true] %s1366_s14 }
 0x268   : > { %p14541_p9 = pnand %p12508_p5, %p154_p1  ;;  %s14547_s17 = scalar_lea.sflag [#allocation3], %s1355_s12 }
 0x269   : > { %s13696_s20 = scalar_lea.hbm %s14539_s9, 512  ;;  %s13701_s7 = scalar_lea.hbm %s16454_s8, 1024 }
 0x26a   : > { %p13697_p10 = scmp.ne.s32.totalorder %s14539_s9, %s13696_s20  ;;  %p13698_p8 = pneg %p14541_p9 }
 0x26b   : > { %p13702_p3 = scmp.lt.u32.totalorder %s14539_s9, %s16454_s8  ;;  %p13703_p13 = scmp.lt.u32.totalorder %s13701_s7, %s13696_s20 }
 0x26c   : > { %p13699_p11 = pnand %p13698_p8, %p13697_p10  ;;  %p13705_p4 = scmp.lt.u32.totalorder %s13696_s20, %s14539_s9 }
 0x26d   : > { %p13704_p1 = por %p13703_p13, %p13702_p3 }
 0x26e   : > { %p13700_p12 = pneg %p13699_p11 }
 0x26f   : > { %p13706_p2 = por %p13705_p4, %p13704_p1 }
 0x271   : > { %p13707_p5 = pnand %p13706_p2, %p13700_p12 }
 0x273   : > { %13710 = shalt.err (!%p13707_p5)
}
 0x274   : > { %s13711_s13 = scalar_lea.vmem %s14545_s14, 512  ;;  %s13903_s12 = smov [#allocation2]  }
 0x275   : > { %p13712_p7 = scmp.ne.s32.totalorder %s14545_s14, %s13711_s13  ;;  %s13716_s2 = sshll.u32 %s13903_s12, 4  ;;  %s13717_s2 = int_to_ptr.vmem [resolvable:$false] %s13716_s2 }
 0x276   : > { %s13718_s8 = scalar_lea.vmem %s13717_s2, 1024  ;;  %p13719_p10 = scmp.lt.s32.totalorder %s14545_s14, %s13717_s2 }
 0x277   : > { %p13714_p6 = pnand %p13712_p7, %p13698_p8  ;;  %p13720_p11 = scmp.lt.s32.totalorder %s13718_s8, %s13711_s13 }
 0x279   : > { %p13715_p0 = pneg %p13714_p6  ;;  %p13721_p3 = por %p13720_p11, %p13719_p10 }
 0x27b   : > { %p13722_p13 = pnand %p13721_p3, %p13715_p0 }
 0x27d   : > { %13725 = shalt.err (!%p13722_p13)
}
 0x27e   : > { %s13904_s20 = smov 128   ;;  %s13905_s7 = smov 8  }
 0x27f   : > { %12482 = dma.hbm_to_vmem [thread:$0]  (!%p14541_p9), %s14539_s9, 512, %s14545_s14, %s14547_s17, %s13904_s20, %s13904_s20, %s13905_s7  }
 0x280   : > { %p16460_p7 = scmp.ne.s32.totalorder %s16442_s28, 0 }
 0x281   : > { %s14574_s12 = sand.u32 (!%p16460_p7), 1, %s13828_s16   ;;  %p16461_p0 = scmp.ne.s32.totalorder (!%p16460_p7), %s16456_s5, 0 }
 0x282   : > { %1378 = sbr.rel (%p16460_p7) target bundleno = 16141 (0x3f0d), region = 188  ;;  %s16363_s8 = sshll.u32 (!%p16460_p7), %s14574_s12, 5 }
 0x283   : > { %s1381_s13 = scalar_lea.sflag (!%p16460_p7), [#allocation3], %s14574_s12  ;;  %s14580_s2 = scalar_lea.vmem (!%p16460_p7), [#allocation2], %s16363_s8 }
 0x289   : > { %13771 = dma.done.wait (%p16461_p0), %s1381_s13, 512  }
 0x28a   : > { %13773 = vsyncadd (%p16461_p0), %s1381_s13, 4294966784  ;;  %p16462_p6 = scmp.eq.s32.totalorder %s14166_s26, 0 }
 0x28c   : > { %13775 = dma.done.wait (%p16462_p6), [#allocation6], 272   ;;  %p16463_p9 = pmov %p16462_p6 }
 0x28d   : > { %p16464_p8 = pmov %p16462_p6 }
 0x28e   : > { %13777 = vsyncadd (%p16463_p9), [#allocation6], 4294967024 }
 0x28f   : > { %13779 = dma.done.wait (%p16464_p8), [#allocation9], 272   ;;  %p16465_p12 = pmov %p16462_p6 }
 0x290   : > { %p16466_p1 = pmov %p16462_p6 }
 0x291   : > { %13781 = vsyncadd (%p16465_p12), [#allocation9], 4294967024 }
 0x292   : > { %13783 = dma.done.wait (%p16466_p1), [#allocation12], 272   ;;  %p16467_p4 = pmov %p16466_p1 }
 0x293   : > { %p16468_p2 = pmov %p16466_p1 }
 0x294   : > { %13785 = vsyncadd (%p16467_p4), [#allocation12], 4294967024 }
 0x295   : > { %13787 = dma.done.wait (%p16468_p2), [#allocation15], 32   ;;  %p16469_p5 = pmov %p16466_p1 }
 0x296   : > { %p16470_p10 = pmov %p16466_p1 }
 0x297   : > { %13789 = vsyncadd (%p16469_p5), [#allocation15], 4294967264 }
 0x298   : > { %13791 = dma.done.wait (%p16470_p10), [#allocation18], 272   ;;  %p16471_p11 = pmov %p16466_p1 }
 0x299   : > { %p16472_p3 = pmov %p16466_p1 }
 0x29a   : > { %13793 = vsyncadd (%p16471_p11), [#allocation18], 4294967024 }
 0x29b   : > { %13795 = dma.done.wait (%p16472_p3), [#allocation21], 32   ;;  %p16473_p13 = pmov %p16466_p1 }
 0x29c   : > { %p16474_p7 = pmov %p16466_p1 }
 0x29d   : > { %13797 = vsyncadd (%p16473_p13), [#allocation21], 4294967264 }
 0x29e   : > { %13799 = dma.done.wait (%p16474_p7), [#allocation24], 32   ;;  %p16475_p0 = pmov %p16466_p1 }
 0x2a0   : > { %13801 = vsyncadd (%p16475_p0), [#allocation24], 4294967264  ;;  %p16476_p6 = pmov %p16475_p0 }
 0x2a1   : > { %p16477_p9 = pmov %p16475_p0 }
 0x2a2   : > { %13803 = dma.done.wait (%p16476_p6), [#allocation27], 32  }
 0x2a3   : > { %13805 = vsyncadd (%p16477_p9), [#allocation27], 4294967264  ;;  %p16478_p8 = pmov %p16475_p0 }
 0x2a4   : > { %p16479_p12 = pmov %p16475_p0 }
 0x2a5   : > { %13807 = dma.done.wait (%p16478_p8), [#allocation30], 32  }
 0x2a6   : > { %13809 = vsyncadd (%p16479_p12), [#allocation30], 4294967264  ;;  %p16480_p1 = pmov %p16475_p0 }
 0x2a7   : > { %p16481_p4 = pmov %p16475_p0 }
 0x2a8   : > { %13811 = dma.done.wait (%p16480_p1), [#allocation33], 32  }
 0x2a9   : > { %13813 = vsyncadd (%p16481_p4), [#allocation33], 4294967264  ;;  %p16482_p2 = pmov %p16475_p0 }
 0x2aa   : > { %p16483_p5 = pmov %p16475_p0 }
 0x2ab   : > { %13815 = dma.done.wait (%p16482_p2), [#allocation36], 256  }
 0x2ac   : > { %13817 = vsyncadd (%p16483_p5), [#allocation36], 4294967040  ;;  %s16484_s17 = sld [smem:[#allocation51_spill]]  ;;  %s16485_s14 = sld [smem:[#allocation53_spill]]  ;;  %vm1622_vm0 = vcmask 261120   ;;  %v13906_v8 = vmov 0.0   ;;  %v1591_v30 = vlaneseq }
 0x2ad   : > { %s10900_s28 = sshll.u32 %s14166_s26, 2  ;;  %11453 = vmatprep.subr.bf16.mxu0 %v13906_v8  ;;  %v10902_v9 = vld [vmem:[#allocation5] ss:$0 sm:$0xff]  ;;  %vm13907_vm1 = vmmov 0   ;;  %s16382_s11 = smov 96   ;;  %vm1685_vm2 = vcmask 64512  }
 0x2ae   : > { %p1575_p10 = scmp.lt.s32.totalorder %s10900_s28, 7  ;;  %11455 = vmatprep.mubr.msk.bf16.mxu0 %vm13907_vm1, %v13906_v8  ;;  %v1592_v31 = vshrl.u32 %v1591_v30, 7  ;;  %v1594_v32 = vand.u32 127, %v1591_v30  ;;  %v13909_v33 = vmov -1e+30   ;;  %s16368_s20 = smov 64  }
 0x2af   : > { %vm1932_vm4 = vcmask 1043456   ;;  %s16388_s7 = smov 88   ;;  %s16390_s13 = smov 120   ;;  %vm3492_vm5 = vcmask 130048   ;;  %vm3497_vm6 = vcmask 195584   ;;  %vm5924_vm7 = vcmask 523264  }
 0x2b0   : > { %s16527_s28 = smov (!%p1575_p10, %s10900_s28), 7  ;;  %vm1595_vm3 = vcmp.le.s32.totalorder %v1594_v32, %v1592_v31  ;;  %s16366_s8 = smov 48  }
 0x2b1   : > { %s10901_s9 = sshll.u32 %s16527_s28, 3  ;;  %v14688_v34 = vsel %vm1595_vm3, 0.0, %v13909_v33  ;;  %s16384_s28 = smov 80  }
 0x2b2   : > { %s14632_s5 = scalar_lea.vmem %s16484_s17, %s10901_s9  ;;  %v12768_v0 = vld [vmem:[%s16485_s14] sm:$0xff]   ;;  %v12769_v1 = vld [vmem:[%s16485_s14 + $0x8] sm:$0xff]   ;;  %s16364_s17 = smov 56  }
 0x2b3   : > { %11439 = vmatprep.subr.bf16.mxu1 %v12768_v0  ;;  %v1583_v2 = vld [vmem:[%s14632_s5] sm:$0xff]  ;;  %v1584_v3 = vld [vmem:[%s14632_s5 + $0x8] sm:$0xff]  ;;  %v1585_v4 = vld [vmem:[%s14632_s5 + $0x10] sm:$0xff]  ;;  %s16386_s9 = smov 112   ;;  %s16513_s6 = sld [smem:[#allocation84_spill]] }
 0x2b4   : > { %11440 = vmatpush3.bf16.msra.mxu1 %v12768_v0  ;;  %v1597_v5 = vpack.c.bf16 %v1584_v3, %v1583_v2  ;;  %v1586_v6 = vld [vmem:[%s14632_s5 + $0x18] sm:$0xff]  ;;  %p16519_p3 = scmp.ne.s32.totalorder %s16457_s3, 0 }
 0x2b5   : > { %11441 = vmatprep.subr.bf16.mxu1 %v12769_v1  ;;  %v1598_v7 = vpack.c.bf16 %v1586_v6, %v1585_v4 }
 0x2b6   : > { %11443 = vmatprep.mubr.msk.bf16.mxu1 %vm1622_vm0, %v1597_v5 }
 0x2b8   : > { %11442 = vmatpush3.bf16.msra.mxu1 %v12769_v1 }
 0x2b9   : > { %11447 = vmatprep.subr.bf16.mxu1 %v13906_v8 }
 0x2bb   : > { %11444 = vmatmul.mubr.msk.bf16.vlgmr.msra.gmra.mrb[0].mxu1 %vm1622_vm0, %v1598_v7 }
 0x2bc   : > { %11449 = vmatprep.mubr.msk.bf16.mxu1 %vm13907_vm1, %v13906_v8 }
 0x38e   : > { %v11445_v10 = vpop.f32.mrb[0].mxu1 }
 0x38f   : > { %v1672_v11 = vadd.f32 %v11445_v10, %v10902_v9  ;;  %v1663_v12 = vpop.f32.mrb[1].mxu1 }
 0x390   : > { %v1664_v13 = vadd.f32 %v10902_v9, %v1663_v12  ;;  %v11446_v14 = vpop.f32.mrb[2].mxu1 }
 0x391   : > { %v14648_v15 = vpack.c.bf16 %v1672_v11, %v1672_v11  ;;  %v1675_v16 = vadd.f32 %v11446_v14, %v10902_v9  ;;  %v1666_v17 = vpop.f32.mrb[3].mxu1 }
 0x392   : > { %v14650_v18 = vpack.c.bf16 %v1664_v13, %v1664_v13  ;;  %v1667_v19 = vadd.f32 %v10902_v9, %v1666_v17 }
 0x393   : > { %1782 = vrot.lane.b32.xlu1 %v14648_v15, %s16382_s11  ;;  %v14656_v20 = vpack.c.bf16 %v1675_v16, %v1675_v16 }
 0x394   : > { %1683 = vrot.lane.b32.xlu0 %v14650_v18, %s16382_s11  ;;  %v14658_v21 = vpack.c.bf16 %v1667_v19, %v1667_v19 }
 0x397   : > { %1831 = vrot.lane.b32.xlu1 %v14656_v20, %s16382_s11 }
 0x398   : > { %1733 = vrot.lane.b32.xlu0 %v14658_v21, %s16382_s11 }
 0x405   : > { %v1783_v24 = vpop.permute.xlu1 %1782 }
 0x406   : > { %v1684_v22 = vpop.permute.xlu0 %1683  ;;  %v1788_v27 = vsel %vm1685_vm2, %v1783_v24, 0 }
 0x407   : > { %v1690_v23 = vsel %vm1685_vm2, %v1684_v22, 0 }
 0x408   : > { %11448 = vmatpush3.bf16.xpose.msra.mxu1 %v1690_v23 }
 0x409   : > { %11459 = vmatprep.subr.bf16.mxu1 %v13906_v8  ;;  %v1832_v28 = vpop.permute.xlu1 %1831 }
 0x40a   : > { %v1734_v25 = vpop.permute.xlu0 %1733  ;;  %v1837_v29 = vsel %vm1685_vm2, %v1832_v28, 0 }
 0x40b   : > { %v1739_v26 = vsel %vm1685_vm2, %v1734_v25, 0 }
 0x40c   : > { %11454 = vmatpush3.bf16.xpose.msra.mxu0 %v1739_v26 }
 0x40d   : > { %11465 = vmatprep.subr.bf16.mxu0 %v13906_v8 }
 0x40f   : > { %11450 = vmatmul.mubr.msk.bf16.vlgmr.msra.gmra.mrb[4].mxu1 %vm1685_vm2, %v14650_v18 }
 0x410   : > { %11460 = vmatpush3.bf16.xpose.msra.mxu1 %v1788_v27  ;;  %11461 = vmatprep.mubr.msk.bf16.mxu1 %vm13907_vm1, %v13906_v8 }
 0x411   : > { %11471 = vmatprep.subr.bf16.mxu1 %v13906_v8 }
 0x413   : > { %11456 = vmatmul.mubr.msk.bf16.vlgmr.msra.gmra.mrb[0].mxu0 %vm1685_vm2, %v14658_v21 }
 0x414   : > { %11466 = vmatpush3.bf16.xpose.msra.mxu0 %v1837_v29  ;;  %11467 = vmatprep.mubr.msk.bf16.mxu0 %vm13907_vm1, %v13906_v8 }
 0x415   : > { %11477 = vmatprep.subr.bf16.mxu0 %v13906_v8 }
 0x417   : > { %11462 = vmatmul.mubr.msk.bf16.vlgmr.msra.gmra.mrb[8].mxu1 %vm1685_vm2, %v14648_v15 }
 0x418   : > { %11473 = vmatprep.mubr.msk.bf16.mxu1 %vm13907_vm1, %v13906_v8 }
 0x41b   : > { %11468 = vmatmul.mubr.msk.bf16.vlgmr.msra.gmra.mrb[4].mxu0 %vm1685_vm2, %v14656_v20 }
 0x41c   : > { %11479 = vmatprep.mubr.msk.bf16.mxu0 %vm13907_vm1, %v13906_v8 }
 0x4e2   : > { %v1726_v35 = vpop.f32.mrb[4].mxu1 }
 0x4e3   : > { %v11451_v36 = vpop.f32.mrb[5].mxu1  ;;  %v1727_v37 = vadd.f32 %v1726_v35, %v14688_v34 }
 0x4e4   : > { %v1729_v38 = vpop.f32.mrb[6].mxu1 }
 0x4e5   : > { %v11452_v39 = vpop.f32.mrb[7].mxu1  ;;  %v1879_v40 = vsel %vm1685_vm2, %v1727_v37, -inf }
 0x4e6   : > { %1880 = vmax.xlane.f32.xlu0 %v1879_v40  ;;  %v1775_v41 = vpop.f32.mrb[0].mxu0 }
 0x4e7   : > { %v11457_v42 = vpop.f32.mrb[1].mxu0  ;;  %v1776_v43 = vadd.f32 %v1775_v41, %v14688_v34 }
 0x4e8   : > { %v1778_v44 = vpop.f32.mrb[2].mxu0 }
 0x4e9   : > { %v11458_v45 = vpop.f32.mrb[3].mxu0  ;;  %v1882_v46 = vsel %vm1685_vm2, %v1776_v43, -inf }
 0x4ea   : > { %v1824_v47 = vpop.f32.mrb[8].mxu1  ;;  %1883 = vmax.xlane.f32.xlu1 %v1882_v46 }
 0x4eb   : > { %v11463_v48 = vpop.f32.mrb[9].mxu1  ;;  %v1825_v49 = vadd.f32 %v1824_v47, %v14688_v34 }
 0x4ec   : > { %v1827_v50 = vpop.f32.mrb[10].mxu1 }
 0x4ed   : > { %v11464_v51 = vpop.f32.mrb[11].mxu1  ;;  %v1885_v52 = vsel %vm1685_vm2, %v1825_v49, -inf }
 0x4ee   : > { %1886 = vmax.xlane.f32.xlu0 %v1885_v52  ;;  %v1873_v53 = vpop.f32.mrb[4].mxu0 }
 0x4ef   : > { %v11469_v54 = vpop.f32.mrb[5].mxu0  ;;  %v1874_v55 = vadd.f32 %v1873_v53, %v14688_v34 }
 0x4f0   : > { %v1876_v56 = vpop.f32.mrb[6].mxu0 }
 0x4f1   : > { %v11470_v57 = vpop.f32.mrb[7].mxu0  ;;  %v1888_v58 = vsel %vm1685_vm2, %v1874_v55, -inf }
 0x4f2   : > { %1889 = vmax.xlane.f32.xlu0 %v1888_v58 }
 0x4fb   : > { %1927 = vrot.lane.b32.xlu1 %v14650_v18, %s16368_s20 }
 0x573   : > { %v1881_v59 = vpop.xlane.xlu0 %1880 }
 0x574   : > { %v1891_v60 = vsub.f32 %v1727_v37, %v1881_v59 }
 0x576   : > { %v1895_v61 = vmul.f32 1.442695, %v1891_v60 }
 0x577   : > { %v1884_v62 = vpop.xlane.xlu1 %1883 }
 0x578   : > { %12800 = vpow2.f32 %v1895_v61  ;;  %v1892_v63 = vsub.f32 %v1776_v43, %v1884_v62 }
 0x57a   : > { %v1897_v0 = vmul.f32 1.442695, %v1892_v63 }
 0x57b   : > { %v1928_v1 = vpop.permute.xlu1 %1927  ;;  %v1887_v7 = vpop.xlane.xlu0 %1886 }
 0x57c   : > { %12802 = vpow2.f32 %v1897_v0  ;;  %v1934_v2 = vsel %vm1932_vm4, %v1928_v1, 0  ;;  %v1893_v10 = vsub.f32 %v1825_v49, %v1887_v7 }
 0x57d   : > { %11472 = vmatpush3.bf16.msra.mxu1 %v1934_v2 }
 0x57e   : > { %11483 = vmatprep.subr.bf16.mxu1 %v13906_v8  ;;  %v1899_v12 = vmul.f32 1.442695, %v1893_v10 }
 0x57f   : > { %v1890_v9 = vpop.xlane.xlu0 %1889 }
 0x580   : > { %v1894_v11 = vsub.f32 %v1874_v55, %v1890_v9  ;;  %12804 = vpow2.f32 %v1899_v12 }
 0x582   : > { %v12801_v3 = vpop.eup %12800  ;;  %v1901_v13 = vmul.f32 1.442695, %v1894_v11 }
 0x583   : > { %v1903_v4 = vsel %vm1685_vm2, %v12801_v3, 0.0 }
 0x584   : > { %1904 = vadd.xlane.f32.xlu1 %v1903_v4  ;;  %12806 = vpow2.f32 %v1901_v13 }
 0x586   : > { %v12803_v5 = vpop.eup %12802 }
 0x587   : > { %v1906_v6 = vsel %vm1685_vm2, %v12803_v5, 0.0 }
 0x588   : > { %1907 = vadd.xlane.f32.xlu0 %v1906_v6 }
 0x58a   : > { %v12805_v14 = vpop.eup %12804 }
 0x58b   : > { %v1909_v17 = vsel %vm1685_vm2, %v12805_v14, 0.0 }
 0x58e   : > { %v12807_v16 = vpop.eup %12806 }
 0x58f   : > { %v1912_v19 = vsel %vm1685_vm2, %v12807_v16, 0.0 }
 0x595   : > { %2024 = vrot.lane.b32.xlu1 %v14648_v15, %s16368_s20 }
 0x599   : > { %2072 = vrot.lane.b32.xlu1 %v14656_v20, %s16368_s20 }
 0x59e   : > { %1976 = vrot.lane.b32.xlu0 %v14658_v21, %s16368_s20  ;;  %s16374_s20 = smov 40  }
 0x5bd   : > { %1910 = vadd.xlane.f32.xlu1 %v1909_v17  ;;  %1913 = vadd.xlane.f32.xlu0 %v1912_v19 }
 0x5ce   : > { %2172 = vrot.lane.b32.xlu1 %v14658_v21, %s16388_s7 }
 0x5d2   : > { %2170 = vrot.lane.b32.xlu1 %v14658_v21, %s16390_s13 }
 0x5d3   : > { %2122 = vrot.lane.b32.xlu0 %v14650_v18, %s16388_s7 }
 0x5d6   : > { %2272 = vrot.lane.b32.xlu1 %v14656_v20, %s16388_s7 }
 0x5d7   : > { %2120 = vrot.lane.b32.xlu0 %v14650_v18, %s16390_s13 }
 0x5da   : > { %2270 = vrot.lane.b32.xlu1 %v14656_v20, %s16390_s13 }
 0x5db   : > { %2222 = vrot.lane.b32.xlu0 %v14648_v15, %s16388_s7 }
 0x5df   : > { %2220 = vrot.lane.b32.xlu0 %v14648_v15, %s16390_s13 }
 0x611   : > { %v1905_v22 = vpop.xlane.xlu1 %1904 }
 0x612   : > { %12808 = vrcp.f32 %v1905_v22 }
 0x615   : > { %v1908_v23 = vpop.xlane.xlu0 %1907  ;;  %v2025_v27 = vpop.permute.xlu1 %2024 }
 0x616   : > { %12810 = vrcp.f32 %v1908_v23  ;;  %v2030_v31 = vsel %vm1932_vm4, %v2025_v27, 0 }
 0x619   : > { %v1977_v24 = vpop.permute.xlu0 %1976  ;;  %v2073_v33 = vpop.permute.xlu1 %2072 }
 0x61a   : > { %v1982_v25 = vsel %vm1932_vm4, %v1977_v24, 0  ;;  %v2078_v36 = vsel %vm1932_vm4, %v2073_v33, 0 }
 0x61b   : > { %11478 = vmatpush3.bf16.msra.mxu0 %v1982_v25 }
 0x61c   : > { %v12809_v26 = vpop.eup %12808  ;;  %11489 = vmatprep.subr.bf16.mxu0 %v13906_v8 }
 0x61d   : > { %v1919_v28 = vmul.f32 %v12809_v26, %v12801_v3 }
 0x61f   : > { %v1923_v29 = vpack.c.bf16 %v1919_v28, %v1919_v28 }
 0x620   : > { %v12811_v30 = vpop.eup %12810 }
 0x621   : > { %11474 = vmatmul.mubr.msk.bf16.vlgmr.msra.gmra.mrb[12].mxu1 %vm1685_vm2, %v1923_v29  ;;  %v1920_v32 = vmul.f32 %v12811_v30, %v12803_v5 }
 0x622   : > { %11484 = vmatpush3.bf16.msra.mxu1 %v2030_v31  ;;  %11485 = vmatprep.mubr.msk.bf16.mxu1 %vm13907_vm1, %v13906_v8 }
 0x623   : > { %v1924_v35 = vpack.c.bf16 %v1920_v32, %v1920_v32  ;;  %11495 = vmatprep.subr.bf16.mxu1 %v13906_v8 }
 0x625   : > { %11480 = vmatmul.mubr.msk.bf16.vlgmr.msra.gmra.mrb[8].mxu0 %vm1685_vm2, %v1924_v35 }
 0x626   : > { %11490 = vmatpush3.bf16.msra.mxu0 %v2078_v36  ;;  %11491 = vmatprep.mubr.msk.bf16.mxu0 %vm13907_vm1, %v13906_v8 }
 0x627   : > { %11501 = vmatprep.subr.bf16.mxu0 %v13906_v8 }
 0x64a   : > { %v1911_v37 = vpop.xlane.xlu1 %1910  ;;  %v1914_v38 = vpop.xlane.xlu0 %1913 }
 0x64b   : > { %12812 = vrcp.f32 %v1911_v37 }
 0x64c   : > { %12814 = vrcp.f32 %v1914_v38 }
 0x64e   : > { %v2123_v39 = vpop.permute.xlu0 %2122  ;;  %v2173_v40 = vpop.permute.xlu1 %2172 }
 0x64f   : > { %v2128_v48 = vsel %vm1685_vm2, %v2123_v39, 0  ;;  %v2178_v50 = vsel %vm1685_vm2, %v2173_v40, 0 }
 0x652   : > { %v2121_v46 = vpop.permute.xlu0 %2120  ;;  %v2171_v49 = vpop.permute.xlu1 %2170 }
 0x655   : > { %v12813_v41 = vpop.eup %12812 }
 0x656   : > { %v12815_v42 = vpop.eup %12814  ;;  %v1921_v43 = vmul.f32 %v12813_v41, %v12805_v14  ;;  %v2223_v51 = vpop.permute.xlu0 %2222 }
 0x657   : > { %v1922_v44 = vmul.f32 %v12815_v42, %v12807_v16  ;;  %v2273_v52 = vpop.permute.xlu1 %2272  ;;  %v2228_v53 = vsel %vm1685_vm2, %v2223_v51, 0 }
 0x658   : > { %v1925_v45 = vpack.c.bf16 %v1921_v43, %v1921_v43  ;;  %v2278_v54 = vsel %vm1685_vm2, %v2273_v52, 0 }
 0x659   : > { %v1926_v47 = vpack.c.bf16 %v1922_v44, %v1922_v44 }
 0x65a   : > { %11486 = vmatmul.mubr.msk.bf16.vlgmr.msra.gmra.mrb[16].mxu1 %vm1685_vm2, %v1925_v45  ;;  %v2221_v55 = vpop.permute.xlu0 %2220 }
 0x65b   : > { %11492 = vmatmul.mubr.msk.bf16.vlgmr.msra.gmra.mrb[12].mxu0 %vm1685_vm2, %v1926_v47  ;;  %11496 = vmatpush3.bf16.xpose.msra.mxu1 %v2128_v48  ;;  %v2271_v56 = vpop.permute.xlu1 %2270 }
 0x65c   : > { %11502 = vmatpush3.bf16.xpose.msra.mxu0 %v2178_v50  ;;  %11497 = vmatprep.mubr.msk.bf16.mxu1 %vm13907_vm1, %v13906_v8 }
 0x65d   : > { %11503 = vmatprep.mubr.msk.bf16.mxu0 %vm13907_vm1, %v13906_v8  ;;  %11507 = vmatprep.subr.bf16.mxu1 %v13906_v8 }
 0x65e   : > { %11513 = vmatprep.subr.bf16.mxu0 %v13906_v8 }
 0x662   : > { %11498 = vmatmul.mubr.msk.bf16.vlgmr.msra.gmra.mrb[20].mxu1 %vm1685_vm2, %v2121_v46 }
 0x663   : > { %11504 = vmatmul.mubr.msk.bf16.vlgmr.msra.gmra.mrb[16].mxu0 %vm1685_vm2, %v2171_v49  ;;  %11508 = vmatpush3.bf16.xpose.msra.mxu1 %v2228_v53 }
 0x664   : > { %11514 = vmatpush3.bf16.xpose.msra.mxu0 %v2278_v54  ;;  %11509 = vmatprep.mubr.msk.bf16.mxu1 %vm13907_vm1, %v13906_v8 }
 0x665   : > { %11515 = vmatprep.mubr.msk.bf16.mxu0 %vm13907_vm1, %v13906_v8  ;;  %11519 = vmatprep.subr.bf16.mxu1 %v13906_v8 }
 0x666   : > { %11525 = vmatprep.subr.bf16.mxu0 %v13906_v8 }
 0x66a   : > { %11510 = vmatmul.mubr.msk.bf16.vlgmr.msra.gmra.mrb[24].mxu1 %vm1685_vm2, %v2221_v55 }
 0x66b   : > { %11516 = vmatmul.mubr.msk.bf16.vlgmr.msra.gmra.mrb[20].mxu0 %vm1685_vm2, %v2271_v56  ;;  %11521 = vmatprep.mubr.msk.bf16.mxu1 %vm13907_vm1, %v13906_v8 }
 0x66c   : > { %11527 = vmatprep.mubr.msk.bf16.mxu0 %vm13907_vm1, %v13906_v8 }
 0x6f4   : > { %v14766_v57 = vpop.f32.mrb[12].mxu1 }
 0x6f5   : > { %v11475_v58 = vpop.f32.mrb[13].mxu1 }
 0x6f6   : > { %v1973_v59 = vpop.f32.mrb[14].mxu1 }
 0x6f7   : > { %v11476_v60 = vpop.f32.mrb[15].mxu1 }
 0x6f8   : > { %v14768_v61 = vpop.f32.mrb[8].mxu0 }
 0x6f9   : > { %v11481_v62 = vpop.f32.mrb[9].mxu0 }
 0x6fa   : > { %v2021_v63 = vpop.f32.mrb[10].mxu0 }
 0x6fb   : > { %v11482_v0 = vpop.f32.mrb[11].mxu0 }
 0x72d   : > { %v14770_v1 = vpop.f32.mrb[16].mxu1 }
 0x72e   : > { %v14772_v2 = vpop.f32.mrb[12].mxu0  ;;  %v11487_v3 = vpop.f32.mrb[17].mxu1 }
 0x72f   : > { %v11493_v4 = vpop.f32.mrb[13].mxu0  ;;  %v2069_v5 = vpop.f32.mrb[18].mxu1 }
 0x730   : > { %v2117_v6 = vpop.f32.mrb[14].mxu0  ;;  %v11488_v7 = vpop.f32.mrb[19].mxu1 }
 0x731   : > { %v11494_v9 = vpop.f32.mrb[15].mxu0 }
 0x735   : > { %v2164_v10 = vpop.f32.mrb[20].mxu1 }
 0x736   : > { %v2214_v11 = vpop.f32.mrb[16].mxu0  ;;  %v11499_v12 = vpop.f32.mrb[21].mxu1  ;;  %v2165_v13 = vadd.f32 %v2164_v10, %v14688_v34 }
 0x737   : > { %v11505_v14 = vpop.f32.mrb[17].mxu0  ;;  %v2167_v16 = vpop.f32.mrb[22].mxu1  ;;  %v2215_v17 = vadd.f32 %v2214_v11, %v14688_v34 }
 0x738   : > { %v2217_v19 = vpop.f32.mrb[18].mxu0  ;;  %v11500_v22 = vpop.f32.mrb[23].mxu1  ;;  %v2320_v23 = vsel %vm1685_vm2, %v2165_v13, -inf }
 0x739   : > { %v11506_v24 = vpop.f32.mrb[19].mxu0  ;;  %v2323_v25 = vsel %vm1685_vm2, %v2215_v17, -inf  ;;  %2321 = vmax.xlane.f32.xlu0 %v2320_v23 }
 0x73a   : > { %2324 = vmax.xlane.f32.xlu1 %v2323_v25 }
 0x73d   : > { %v2264_v26 = vpop.f32.mrb[24].mxu1 }
 0x73e   : > { %v2314_v27 = vpop.f32.mrb[20].mxu0  ;;  %v11511_v28 = vpop.f32.mrb[25].mxu1  ;;  %v2265_v29 = vadd.f32 %v2264_v26, %v14688_v34 }
 0x73f   : > { %v11517_v30 = vpop.f32.mrb[21].mxu0  ;;  %v2267_v31 = vpop.f32.mrb[26].mxu1  ;;  %v2315_v36 = vadd.f32 %v2314_v27, %v14688_v34 }
 0x740   : > { %v2317_v32 = vpop.f32.mrb[22].mxu0  ;;  %v11512_v33 = vpop.f32.mrb[27].mxu1  ;;  %v2326_v35 = vsel %vm1685_vm2, %v2265_v29, -inf }
 0x741   : > { %v11518_v37 = vpop.f32.mrb[23].mxu0  ;;  %2327 = vmax.xlane.f32.xlu0 %v2326_v35  ;;  %v2329_v38 = vsel %vm1685_vm2, %v2315_v36, -inf }
 0x745   : > { %2330 = vmax.xlane.f32.xlu0 %v2329_v38 }
 0x74b   : > { %2368 = vrot.lane.b32.xlu1 %v14650_v18, %s16364_s17 }
 0x7c6   : > { %v2322_v39 = vpop.xlane.xlu0 %2321 }
 0x7c7   : > { %v2325_v40 = vpop.xlane.xlu1 %2324  ;;  %v2332_v41 = vsub.f32 %v2165_v13, %v2322_v39 }
 0x7c8   : > { %v2333_v42 = vsub.f32 %v2215_v17, %v2325_v40 }
 0x7c9   : > { %v2336_v43 = vmul.f32 1.442695, %v2332_v41 }
 0x7ca   : > { %v2338_v44 = vmul.f32 1.442695, %v2333_v42 }
 0x7cb   : > { %12816 = vpow2.f32 %v2336_v43  ;;  %v2369_v45 = vpop.permute.xlu1 %2368 }
 0x7cc   : > { %12818 = vpow2.f32 %v2338_v44  ;;  %v2374_v46 = vsel %vm1932_vm4, %v2369_v45, 0 }
 0x7cd   : > { %11520 = vmatpush3.bf16.msra.mxu1 %v2374_v46 }
 0x7ce   : > { %11531 = vmatprep.subr.bf16.mxu1 %v13906_v8  ;;  %v2328_v51 = vpop.xlane.xlu0 %2327 }
 0x7cf   : > { %v2334_v54 = vsub.f32 %v2265_v29, %v2328_v51 }
 0x7d1   : > { %v2340_v56 = vmul.f32 1.442695, %v2334_v54 }
 0x7d2   : > { %v2331_v52 = vpop.xlane.xlu0 %2330 }
 0x7d3   : > { %v2335_v53 = vsub.f32 %v2315_v36, %v2331_v52 }
 0x7d5   : > { %v12817_v47 = vpop.eup %12816  ;;  %v2342_v55 = vmul.f32 1.442695, %v2335_v53 }
 0x7d6   : > { %v12819_v48 = vpop.eup %12818  ;;  %v2344_v49 = vsel %vm1685_vm2, %v12817_v47, 0.0 }
 0x7d7   : > { %v2347_v50 = vsel %vm1685_vm2, %v12819_v48, 0.0  ;;  %2345 = vadd.xlane.f32.xlu1 %v2344_v49  ;;  %12820 = vpow2.f32 %v2342_v55 }
 0x7d8   : > { %2348 = vadd.xlane.f32.xlu0 %v2347_v50  ;;  %12822 = vpow2.f32 %v2340_v56 }
 0x7e1   : > { %v12821_v58 = vpop.eup %12820 }
 0x7e2   : > { %v12823_v59 = vpop.eup %12822  ;;  %v2353_v60 = vsel %vm1685_vm2, %v12821_v58, 0.0 }
 0x7e3   : > { %v2350_v62 = vsel %vm1685_vm2, %v12823_v59, 0.0 }
 0x7e8   : > { %2464 = vrot.lane.b32.xlu1 %v14648_v15, %s16364_s17 }
 0x7ec   : > { %2512 = vrot.lane.b32.xlu1 %v14656_v20, %s16364_s17 }
 0x7ee   : > { %2416 = vrot.lane.b32.xlu0 %v14658_v21, %s16364_s17  ;;  %s16370_s17 = smov 72  }
 0x80d   : > { %2354 = vadd.xlane.f32.xlu0 %v2353_v60 }
 0x810   : > { %2351 = vadd.xlane.f32.xlu1 %v2350_v62 }
 0x821   : > { %2612 = vrot.lane.b32.xlu1 %v14658_v21, %s16384_s28 }
 0x823   : > { %2562 = vrot.lane.b32.xlu0 %v14650_v18, %s16384_s28 }
 0x825   : > { %2610 = vrot.lane.b32.xlu1 %v14658_v21, %s16386_s9 }
 0x827   : > { %2560 = vrot.lane.b32.xlu0 %v14650_v18, %s16386_s9 }
 0x829   : > { %2712 = vrot.lane.b32.xlu1 %v14656_v20, %s16384_s28 }
 0x82b   : > { %2662 = vrot.lane.b32.xlu0 %v14648_v15, %s16384_s28 }
 0x82d   : > { %2710 = vrot.lane.b32.xlu1 %v14656_v20, %s16386_s9 }
 0x82f   : > { %2660 = vrot.lane.b32.xlu0 %v14648_v15, %s16386_s9 }
 0x864   : > { %v2346_v63 = vpop.xlane.xlu1 %2345 }
 0x865   : > { %12824 = vrcp.f32 %v2346_v63  ;;  %v2349_v0 = vpop.xlane.xlu0 %2348 }
 0x866   : > { %12826 = vrcp.f32 %v2349_v0 }
 0x868   : > { %v2465_v5 = vpop.permute.xlu1 %2464 }
 0x869   : > { %v2417_v3 = vpop.permute.xlu0 %2416  ;;  %v2470_v14 = vsel %vm1932_vm4, %v2465_v5, 0 }
 0x86a   : > { %v2422_v4 = vsel %vm1932_vm4, %v2417_v3, 0 }
 0x86b   : > { %11526 = vmatpush3.bf16.msra.mxu0 %v2422_v4 }
 0x86c   : > { %11537 = vmatprep.subr.bf16.mxu0 %v13906_v8  ;;  %v2513_v11 = vpop.permute.xlu1 %2512 }
 0x86d   : > { %v2518_v16 = vsel %vm1932_vm4, %v2513_v11, 0 }
 0x86f   : > { %v12825_v6 = vpop.eup %12824 }
 0x870   : > { %v12827_v7 = vpop.eup %12826  ;;  %v2360_v9 = vmul.f32 %v12825_v6, %v12817_v47 }
 0x871   : > { %v2361_v10 = vmul.f32 %v12827_v7, %v12819_v48 }
 0x872   : > { %v2364_v12 = vpack.c.bf16 %v2360_v9, %v2360_v9 }
 0x873   : > { %v2365_v13 = vpack.c.bf16 %v2361_v10, %v2361_v10 }
 0x874   : > { %11522 = vmatmul.mubr.msk.bf16.vlgmr.msra.gmra.mrb[28].mxu1 %vm1685_vm2, %v2364_v12 }
 0x875   : > { %11528 = vmatmul.mubr.msk.bf16.vlgmr.msra.gmra.mrb[24].mxu0 %vm1685_vm2, %v2365_v13  ;;  %11532 = vmatpush3.bf16.msra.mxu1 %v2470_v14 }
 0x876   : > { %11538 = vmatpush3.bf16.msra.mxu0 %v2518_v16  ;;  %11539 = vmatprep.mubr.msk.bf16.mxu0 %vm13907_vm1, %v13906_v8 }
 0x877   : > { %11549 = vmatprep.subr.bf16.mxu0 %v13906_v8  ;;  %11533 = vmatprep.mubr.msk.bf16.mxu1 %vm13907_vm1, %v13906_v8 }
 0x878   : > { %11543 = vmatprep.subr.bf16.mxu1 %v13906_v8 }
 0x89a   : > { %v2355_v17 = vpop.xlane.xlu0 %2354 }
 0x89b   : > { %12828 = vrcp.f32 %v2355_v17 }
 0x89d   : > { %v2352_v19 = vpop.xlane.xlu1 %2351 }
 0x89e   : > { %12830 = vrcp.f32 %v2352_v19  ;;  %v2563_v24 = vpop.permute.xlu0 %2562 }
 0x89f   : > { %v2568_v33 = vsel %vm1685_vm2, %v2563_v24, 0 }
 0x8a1   : > { %v2613_v22 = vpop.permute.xlu1 %2612 }
 0x8a2   : > { %v2618_v30 = vsel %vm1685_vm2, %v2613_v22, 0  ;;  %v2561_v32 = vpop.permute.xlu0 %2560 }
 0x8a5   : > { %v12829_v23 = vpop.eup %12828  ;;  %v2611_v28 = vpop.permute.xlu1 %2610 }
 0x8a6   : > { %v2363_v25 = vmul.f32 %v12829_v23, %v12821_v58  ;;  %v2663_v36 = vpop.permute.xlu0 %2662 }
 0x8a7   : > { %v2668_v38 = vsel %vm1685_vm2, %v2663_v36, 0 }
 0x8a8   : > { %v12831_v26 = vpop.eup %12830  ;;  %v2367_v27 = vpack.c.bf16 %v2363_v25, %v2363_v25 }
 0x8a9   : > { %v2362_v29 = vmul.f32 %v12831_v26, %v12823_v59  ;;  %v2713_v35 = vpop.permute.xlu1 %2712 }
 0x8aa   : > { %11540 = vmatmul.mubr.msk.bf16.vlgmr.msra.gmra.mrb[28].mxu0 %vm1685_vm2, %v2367_v27  ;;  %v2718_v37 = vsel %vm1685_vm2, %v2713_v35, 0  ;;  %v2661_v40 = vpop.permute.xlu0 %2660 }
 0x8ab   : > { %11550 = vmatpush3.bf16.xpose.msra.mxu0 %v2618_v30  ;;  %v2366_v31 = vpack.c.bf16 %v2362_v29, %v2362_v29  ;;  %11551 = vmatprep.mubr.msk.bf16.mxu0 %vm13907_vm1, %v13906_v8 }
 0x8ac   : > { %11561 = vmatprep.subr.bf16.mxu0 %v13906_v8 }
 0x8ad   : > { %11534 = vmatmul.mubr.msk.bf16.vlgmr.msra.gmra.mrb[32].mxu1 %vm1685_vm2, %v2366_v31  ;;  %v2711_v39 = vpop.permute.xlu1 %2710 }
 0x8ae   : > { %11544 = vmatpush3.bf16.xpose.msra.mxu1 %v2568_v33  ;;  %11545 = vmatprep.mubr.msk.bf16.mxu1 %vm13907_vm1, %v13906_v8 }
 0x8af   : > { %11555 = vmatprep.subr.bf16.mxu1 %v13906_v8 }
 0x8b2   : > { %11552 = vmatmul.mubr.msk.bf16.vlgmr.msra.gmra.mrb[32].mxu0 %vm1685_vm2, %v2611_v28 }
 0x8b3   : > { %11562 = vmatpush3.bf16.xpose.msra.mxu0 %v2718_v37  ;;  %11563 = vmatprep.mubr.msk.bf16.mxu0 %vm13907_vm1, %v13906_v8 }
 0x8b4   : > { %11573 = vmatprep.subr.bf16.mxu0 %v13906_v8 }
 0x8b5   : > { %11546 = vmatmul.mubr.msk.bf16.vlgmr.msra.gmra.mrb[36].mxu1 %vm1685_vm2, %v2561_v32 }
 0x8b6   : > { %11556 = vmatpush3.bf16.xpose.msra.mxu1 %v2668_v38  ;;  %11557 = vmatprep.mubr.msk.bf16.mxu1 %vm13907_vm1, %v13906_v8 }
 0x8b7   : > { %11567 = vmatprep.subr.bf16.mxu1 %v13906_v8 }
 0x8ba   : > { %11564 = vmatmul.mubr.msk.bf16.vlgmr.msra.gmra.mrb[36].mxu0 %vm1685_vm2, %v2711_v39 }
 0x8bb   : > { %11575 = vmatprep.mubr.msk.bf16.mxu0 %vm13907_vm1, %v13906_v8 }
 0x8bd   : > { %11558 = vmatmul.mubr.msk.bf16.vlgmr.msra.gmra.mrb[40].mxu1 %vm1685_vm2, %v2661_v40 }
 0x8be   : > { %11569 = vmatprep.mubr.msk.bf16.mxu1 %vm13907_vm1, %v13906_v8 }
 0x947   : > { %v14850_v41 = vpop.f32.mrb[28].mxu1 }
 0x948   : > { %v14852_v42 = vpop.f32.mrb[24].mxu0  ;;  %v11523_v43 = vpop.f32.mrb[29].mxu1 }
 0x949   : > { %v12648_v44 = vpack.i.bf16 %v14852_v42, %v14850_v41  ;;  %v11529_v45 = vpop.f32.mrb[25].mxu0  ;;  %v2413_v46 = vpop.f32.mrb[30].mxu1 }
 0x94a   : > { %v2461_v47 = vpop.f32.mrb[26].mxu0  ;;  %v11524_v48 = vpop.f32.mrb[31].mxu1 }
 0x94b   : > { %v11530_v49 = vpop.f32.mrb[27].mxu0 }
 0x97d   : > { %v14856_v50 = vpop.f32.mrb[28].mxu0 }
 0x97e   : > { %v11541_v51 = vpop.f32.mrb[29].mxu0 }
 0x97f   : > { %v2557_v52 = vpop.f32.mrb[30].mxu0 }
 0x980   : > { %v11542_v53 = vpop.f32.mrb[31].mxu0  ;;  %v14858_v54 = vpop.f32.mrb[32].mxu1 }
 0x981   : > { %v12653_v55 = vpack.i.bf16 %v14856_v50, %v14858_v54  ;;  %v11535_v56 = vpop.f32.mrb[33].mxu1 }
 0x982   : > { %v2509_v58 = vpop.f32.mrb[34].mxu1 }
 0x983   : > { %v11536_v59 = vpop.f32.mrb[35].mxu1 }
 0x985   : > { %v2654_v60 = vpop.f32.mrb[32].mxu0 }
 0x986   : > { %v2655_v62 = vadd.f32 %v2654_v60, %v14688_v34  ;;  %v11553_v63 = vpop.f32.mrb[33].mxu0 }
 0x987   : > { %v2657_v0 = vpop.f32.mrb[34].mxu0 }
 0x988   : > { %v11554_v3 = vpop.f32.mrb[35].mxu0  ;;  %v2763_v4 = vsel %vm1685_vm2, %v2655_v62, -inf  ;;  %v2604_v5 = vpop.f32.mrb[36].mxu1 }
 0x989   : > { %2764 = vmax.xlane.f32.xlu1 %v2763_v4  ;;  %v2605_v6 = vadd.f32 %v2604_v5, %v14688_v34  ;;  %v11547_v7 = vpop.f32.mrb[37].mxu1 }
 0x98a   : > { %v2607_v9 = vpop.f32.mrb[38].mxu1 }
 0x98b   : > { %v11548_v10 = vpop.f32.mrb[39].mxu1  ;;  %v2760_v11 = vsel %vm1685_vm2, %v2605_v6, -inf }
 0x98c   : > { %2761 = vmax.xlane.f32.xlu0 %v2760_v11 }
 0x98d   : > { %v2754_v12 = vpop.f32.mrb[36].mxu0 }
 0x98e   : > { %v11565_v13 = vpop.f32.mrb[37].mxu0  ;;  %v2755_v24 = vadd.f32 %v2754_v12, %v14688_v34 }
 0x98f   : > { %v2757_v14 = vpop.f32.mrb[38].mxu0 }
 0x990   : > { %v11566_v16 = vpop.f32.mrb[39].mxu0  ;;  %v2704_v17 = vpop.f32.mrb[40].mxu1  ;;  %v2769_v27 = vsel %vm1685_vm2, %v2755_v24, -inf }
 0x991   : > { %v2705_v19 = vadd.f32 %v2704_v17, %v14688_v34  ;;  %v11559_v22 = vpop.f32.mrb[41].mxu1 }
 0x992   : > { %v2707_v23 = vpop.f32.mrb[42].mxu1 }
 0x993   : > { %v11560_v25 = vpop.f32.mrb[43].mxu1  ;;  %v2766_v26 = vsel %vm1685_vm2, %v2705_v19, -inf }
 0x994   : > { %2767 = vmax.xlane.f32.xlu0 %v2766_v26 }
 0x998   : > { %2770 = vmax.xlane.f32.xlu0 %v2769_v27 }
 0x99a   : > { %2808 = vrot.lane.b32.xlu1 %v14650_v18, %s16366_s8 }
 0xa16   : > { %v2765_v28 = vpop.xlane.xlu1 %2764 }
 0xa17   : > { %v2773_v29 = vsub.f32 %v2655_v62, %v2765_v28 }
 0xa19   : > { %v2778_v30 = vmul.f32 1.442695, %v2773_v29  ;;  %v2762_v31 = vpop.xlane.xlu0 %2761 }
 0xa1a   : > { %v2809_v32 = vpop.permute.xlu1 %2808  ;;  %v2772_v33 = vsub.f32 %v2605_v6, %v2762_v31 }
 0xa1b   : > { %12832 = vpow2.f32 %v2778_v30  ;;  %v2814_v35 = vsel %vm1932_vm4, %v2809_v32, 0 }
 0xa1c   : > { %v2776_v36 = vmul.f32 1.442695, %v2772_v33  ;;  %11568 = vmatpush3.bf16.msra.mxu1 %v2814_v35 }
 0xa1d   : > { %11579 = vmatprep.subr.bf16.mxu1 %v13906_v8 }
 0xa1e   : > { %12834 = vpow2.f32 %v2776_v36 }
 0xa21   : > { %v2768_v43 = vpop.xlane.xlu0 %2767 }
 0xa22   : > { %v2774_v48 = vsub.f32 %v2705_v19, %v2768_v43 }
 0xa24   : > { %v2780_v49 = vmul.f32 1.442695, %v2774_v48 }
 0xa25   : > { %v12833_v37 = vpop.eup %12832  ;;  %v2771_v45 = vpop.xlane.xlu0 %2770 }
 0xa26   : > { %v2787_v38 = vsel %vm1685_vm2, %v12833_v37, 0.0  ;;  %v2775_v46 = vsub.f32 %v2755_v24, %v2771_v45 }
 0xa27   : > { %2788 = vadd.xlane.f32.xlu0 %v2787_v38 }
 0xa28   : > { %v12835_v39 = vpop.eup %12834  ;;  %v2782_v47 = vmul.f32 1.442695, %v2775_v46 }
 0xa29   : > { %v2784_v40 = vsel %vm1685_vm2, %v12835_v39, 0.0 }
 0xa2a   : > { %2785 = vadd.xlane.f32.xlu1 %v2784_v40  ;;  %12836 = vpow2.f32 %v2782_v47 }
 0xa2b   : > { %12838 = vpow2.f32 %v2780_v49 }
 0xa34   : > { %v12837_v51 = vpop.eup %12836 }
 0xa35   : > { %v2793_v52 = vsel %vm1685_vm2, %v12837_v51, 0.0  ;;  %v12839_v53 = vpop.eup %12838 }
 0xa36   : > { %v2790_v56 = vsel %vm1685_vm2, %v12839_v53, 0.0 }
 0xa3b   : > { %2904 = vrot.lane.b32.xlu1 %v14648_v15, %s16366_s8 }
 0xa3d   : > { %2856 = vrot.lane.b32.xlu0 %v14658_v21, %s16366_s8 }
 0xa3f   : > { %2952 = vrot.lane.b32.xlu1 %v14656_v20, %s16366_s8  ;;  %s16372_s8 = smov 104  }
 0xa5c   : > { %2794 = vadd.xlane.f32.xlu0 %v2793_v52 }
 0xa63   : > { %2791 = vadd.xlane.f32.xlu1 %v2790_v56 }
 0xa72   : > { %3002 = vrot.lane.b32.xlu0 %v14650_v18, %s16370_s17 }
 0xa74   : > { %3052 = vrot.lane.b32.xlu1 %v14658_v21, %s16370_s17 }
 0xa76   : > { %3000 = vrot.lane.b32.xlu0 %v14650_v18, %s16372_s8 }
 0xa78   : > { %3050 = vrot.lane.b32.xlu1 %v14658_v21, %s16372_s8 }
 0xa7a   : > { %3102 = vrot.lane.b32.xlu0 %v14648_v15, %s16370_s17 }
 0xa7c   : > { %3152 = vrot.lane.b32.xlu1 %v14656_v20, %s16370_s17  ;;  %s16380_s17 = smov 8  }
 0xa7e   : > { %3100 = vrot.lane.b32.xlu0 %v14648_v15, %s16372_s8 }
 0xa80   : > { %3150 = vrot.lane.b32.xlu1 %v14656_v20, %s16372_s8  ;;  %s16376_s8 = smov 16  }
 0xab4   : > { %v2789_v58 = vpop.xlane.xlu0 %2788 }
 0xab5   : > { %12840 = vrcp.f32 %v2789_v58 }
 0xab7   : > { %v2786_v59 = vpop.xlane.xlu1 %2785 }
 0xab8   : > { %12842 = vrcp.f32 %v2786_v59  ;;  %v2857_v60 = vpop.permute.xlu0 %2856 }
 0xab9   : > { %v2862_v62 = vsel %vm1932_vm4, %v2857_v60, 0 }
 0xaba   : > { %11574 = vmatpush3.bf16.msra.mxu0 %v2862_v62 }
 0xabb   : > { %v2905_v63 = vpop.permute.xlu1 %2904  ;;  %11585 = vmatprep.subr.bf16.mxu0 %v13906_v8 }
 0xabc   : > { %v2910_v11 = vsel %vm1932_vm4, %v2905_v63, 0 }
 0xabf   : > { %v12841_v0 = vpop.eup %12840  ;;  %v2953_v4 = vpop.permute.xlu1 %2952 }
 0xac0   : > { %v2801_v3 = vmul.f32 %v12841_v0, %v12833_v37  ;;  %v2958_v9 = vsel %vm1932_vm4, %v2953_v4, 0 }
 0xac2   : > { %v12843_v5 = vpop.eup %12842  ;;  %v2805_v6 = vpack.c.bf16 %v2801_v3, %v2801_v3 }
 0xac3   : > { %v2800_v7 = vmul.f32 %v12843_v5, %v12835_v39 }
 0xac4   : > { %11576 = vmatmul.mubr.msk.bf16.vlgmr.msra.gmra.mrb[40].mxu0 %vm1685_vm2, %v2805_v6 }
 0xac5   : > { %11586 = vmatpush3.bf16.msra.mxu0 %v2958_v9  ;;  %v2804_v10 = vpack.c.bf16 %v2800_v7, %v2800_v7  ;;  %11587 = vmatprep.mubr.msk.bf16.mxu0 %vm13907_vm1, %v13906_v8 }
 0xac6   : > { %11597 = vmatprep.subr.bf16.mxu0 %v13906_v8 }
 0xac7   : > { %11570 = vmatmul.mubr.msk.bf16.vlgmr.msra.gmra.mrb[44].mxu1 %vm1685_vm2, %v2804_v10 }
 0xac8   : > { %11580 = vmatpush3.bf16.msra.mxu1 %v2910_v11  ;;  %11581 = vmatprep.mubr.msk.bf16.mxu1 %vm13907_vm1, %v13906_v8 }
 0xac9   : > { %11591 = vmatprep.subr.bf16.mxu1 %v13906_v8 }
 0xae9   : > { %v2795_v12 = vpop.xlane.xlu0 %2794 }
 0xaea   : > { %12844 = vrcp.f32 %v2795_v12 }
 0xaed   : > { %v3003_v23 = vpop.permute.xlu0 %3002 }
 0xaee   : > { %v3008_v30 = vsel %vm1685_vm2, %v3003_v23, 0 }
 0xaf0   : > { %v2792_v13 = vpop.xlane.xlu1 %2791 }
 0xaf1   : > { %12846 = vrcp.f32 %v2792_v13  ;;  %v3001_v29 = vpop.permute.xlu0 %3000 }
 0xaf4   : > { %v12845_v14 = vpop.eup %12844  ;;  %v3053_v16 = vpop.permute.xlu1 %3052 }
 0xaf5   : > { %v2803_v17 = vmul.f32 %v12845_v14, %v12837_v51  ;;  %v3058_v24 = vsel %vm1685_vm2, %v3053_v16, 0  ;;  %v3103_v32 = vpop.permute.xlu0 %3102 }
 0xaf6   : > { %v3108_v33 = vsel %vm1685_vm2, %v3103_v32, 0 }
 0xaf7   : > { %v2807_v19 = vpack.c.bf16 %v2803_v17, %v2803_v17 }
 0xaf8   : > { %v3051_v22 = vpop.permute.xlu1 %3050 }
 0xaf9   : > { %11588 = vmatmul.mubr.msk.bf16.vlgmr.msra.gmra.mrb[44].mxu0 %vm1685_vm2, %v2807_v19  ;;  %v3101_v36 = vpop.permute.xlu0 %3100 }
 0xafa   : > { %11598 = vmatpush3.bf16.xpose.msra.mxu0 %v3058_v24  ;;  %11599 = vmatprep.mubr.msk.bf16.mxu0 %vm13907_vm1, %v13906_v8 }
 0xafb   : > { %v12847_v25 = vpop.eup %12846  ;;  %11609 = vmatprep.subr.bf16.mxu0 %v13906_v8 }
 0xafc   : > { %v2802_v26 = vmul.f32 %v12847_v25, %v12839_v53  ;;  %v3153_v27 = vpop.permute.xlu1 %3152 }
 0xafd   : > { %v3158_v31 = vsel %vm1685_vm2, %v3153_v27, 0 }
 0xafe   : > { %v2806_v28 = vpack.c.bf16 %v2802_v26, %v2802_v26 }
 0xb00   : > { %11582 = vmatmul.mubr.msk.bf16.vlgmr.msra.gmra.mrb[48].mxu1 %vm1685_vm2, %v2806_v28  ;;  %v3151_v35 = vpop.permute.xlu1 %3150 }
 0xb01   : > { %11592 = vmatpush3.bf16.xpose.msra.mxu1 %v3008_v30  ;;  %11600 = vmatmul.mubr.msk.bf16.vlgmr.msra.gmra.mrb[48].mxu0 %vm1685_vm2, %v3051_v22 }
 0xb02   : > { %11610 = vmatpush3.bf16.xpose.msra.mxu0 %v3158_v31  ;;  %11593 = vmatprep.mubr.msk.bf16.mxu1 %vm13907_vm1, %v13906_v8 }
 0xb03   : > { %11603 = vmatprep.subr.bf16.mxu1 %v13906_v8  ;;  %11611 = vmatprep.mubr.msk.bf16.mxu0 %vm13907_vm1, %v13906_v8 }
 0xb04   : > { %11621 = vmatprep.subr.bf16.mxu0 %v13906_v8 }
 0xb08   : > { %11594 = vmatmul.mubr.msk.bf16.vlgmr.msra.gmra.mrb[52].mxu1 %vm1685_vm2, %v3001_v29 }
 0xb09   : > { %11604 = vmatpush3.bf16.xpose.msra.mxu1 %v3108_v33  ;;  %11612 = vmatmul.mubr.msk.bf16.vlgmr.msra.gmra.mrb[52].mxu0 %vm1685_vm2, %v3151_v35 }
 0xb0a   : > { %11605 = vmatprep.mubr.msk.bf16.mxu1 %vm13907_vm1, %v13906_v8  ;;  %11615 = vmatprep.subr.bf16.mxu1 %v13906_v8 }
 0xb0b   : > { %11623 = vmatprep.mubr.msk.bf16.mxu0 %vm13907_vm1, %v13906_v8 }
 0xb10   : > { %11606 = vmatmul.mubr.msk.bf16.vlgmr.msra.gmra.mrb[56].mxu1 %vm1685_vm2, %v3101_v36 }
 0xb11   : > { %11617 = vmatprep.mubr.msk.bf16.mxu1 %vm13907_vm1, %v13906_v8 }
 0xb97   : > { %v14938_v37 = vpop.f32.mrb[40].mxu0 }
 0xb98   : > { %v11577_v38 = vpop.f32.mrb[41].mxu0 }
 0xb99   : > { %v2901_v39 = vpop.f32.mrb[42].mxu0 }
 0xb9a   : > { %v11578_v40 = vpop.f32.mrb[43].mxu0  ;;  %v14940_v43 = vpop.f32.mrb[44].mxu1 }
 0xb9b   : > { %v12658_v45 = vpack.i.bf16 %v14938_v37, %v14940_v43  ;;  %v11571_v46 = vpop.f32.mrb[45].mxu1 }
 0xb9c   : > { %v2853_v47 = vpop.f32.mrb[46].mxu1 }
 0xb9d   : > { %v11572_v48 = vpop.f32.mrb[47].mxu1 }
 0xbcc   : > { %v14944_v49 = vpop.f32.mrb[44].mxu0 }
 0xbcd   : > { %v11589_v51 = vpop.f32.mrb[45].mxu0 }
 0xbce   : > { %v2997_v52 = vpop.f32.mrb[46].mxu0 }
 0xbcf   : > { %v11590_v53 = vpop.f32.mrb[47].mxu0 }
 0xbd3   : > { %v14946_v56 = vpop.f32.mrb[48].mxu1 }
 0xbd4   : > { %v12663_v58 = vpack.i.bf16 %v14944_v49, %v14946_v56  ;;  %v3094_v59 = vpop.f32.mrb[48].mxu0  ;;  %v11583_v60 = vpop.f32.mrb[49].mxu1 }
 0xbd5   : > { %v3095_v62 = vadd.f32 %v3094_v59, %v14688_v34  ;;  %v11601_v63 = vpop.f32.mrb[49].mxu0  ;;  %v2949_v0 = vpop.f32.mrb[50].mxu1 }
 0xbd6   : > { %v3097_v3 = vpop.f32.mrb[50].mxu0  ;;  %v11584_v4 = vpop.f32.mrb[51].mxu1 }
 0xbd7   : > { %v11602_v5 = vpop.f32.mrb[51].mxu0  ;;  %v3203_v6 = vsel %vm1685_vm2, %v3095_v62, -inf }
 0xbd8   : > { %3204 = vmax.xlane.f32.xlu1 %v3203_v6 }
 0xbdb   : > { %v3044_v7 = vpop.f32.mrb[52].mxu1 }
 0xbdc   : > { %v3045_v9 = vadd.f32 %v3044_v7, %v14688_v34  ;;  %v3194_v10 = vpop.f32.mrb[52].mxu0  ;;  %v11595_v11 = vpop.f32.mrb[53].mxu1 }
 0xbdd   : > { %v11613_v12 = vpop.f32.mrb[53].mxu0  ;;  %v3047_v13 = vpop.f32.mrb[54].mxu1  ;;  %v3195_v26 = vadd.f32 %v3194_v10, %v14688_v34 }
 0xbde   : > { %v3197_v14 = vpop.f32.mrb[54].mxu0  ;;  %v11596_v16 = vpop.f32.mrb[55].mxu1  ;;  %v3200_v17 = vsel %vm1685_vm2, %v3045_v9, -inf  ;;  %v12770_v12 = vld [vmem:[#allocation7] sm:$0xff]  }
 0xbdf   : > { %v11614_v19 = vpop.f32.mrb[55].mxu0  ;;  %3201 = vmax.xlane.f32.xlu0 %v3200_v17  ;;  %v3209_v29 = vsel %vm1685_vm2, %v3195_v26, -inf }
 0xbe0   : > { %v12771_v19 = vld [vmem:[#allocation7 + $0x8] sm:$0xff]  }
 0xbe3   : > { %v3144_v22 = vpop.f32.mrb[56].mxu1 }
 0xbe4   : > { %v3145_v23 = vadd.f32 %v3144_v22, %v14688_v34  ;;  %v11607_v24 = vpop.f32.mrb[57].mxu1 }
 0xbe5   : > { %v3147_v25 = vpop.f32.mrb[58].mxu1 }
 0xbe6   : > { %v11608_v27 = vpop.f32.mrb[59].mxu1  ;;  %v3206_v28 = vsel %vm1685_vm2, %v3145_v23, -inf }
 0xbe7   : > { %3207 = vmax.xlane.f32.xlu0 %v3206_v28 }
 0xbe9   : > { %3248 = vrot.lane.b32.xlu1 %v14650_v18, %s16374_s20 }
 0xbeb   : > { %3210 = vmax.xlane.f32.xlu0 %v3209_v29 }
 0xc65   : > { %v3205_v30 = vpop.xlane.xlu1 %3204 }
 0xc66   : > { %v3213_v31 = vsub.f32 %v3095_v62, %v3205_v30 }
 0xc68   : > { %v3218_v32 = vmul.f32 1.442695, %v3213_v31 }
 0xc69   : > { %v3249_v33 = vpop.permute.xlu1 %3248 }
 0xc6a   : > { %12848 = vpow2.f32 %v3218_v32  ;;  %v3254_v35 = vsel %vm1932_vm4, %v3249_v33, 0 }
 0xc6b   : > { %11616 = vmatpush3.bf16.msra.mxu1 %v3254_v35 }
 0xc6c   : > { %v3202_v36 = vpop.xlane.xlu0 %3201  ;;  %11627 = vmatprep.subr.bf16.mxu1 %v13906_v8 }
 0xc6d   : > { %v3212_v38 = vsub.f32 %v3045_v9, %v3202_v36 }
 0xc6f   : > { %v3216_v39 = vmul.f32 1.442695, %v3212_v38 }
 0xc71   : > { %12850 = vpow2.f32 %v3216_v39 }
 0xc74   : > { %v12849_v40 = vpop.eup %12848  ;;  %v3208_v46 = vpop.xlane.xlu0 %3207 }
 0xc75   : > { %v3214_v18 = vsub.f32 %v3145_v23, %v3208_v46  ;;  %v3227_v47 = vsel %vm1685_vm2, %v12849_v40, 0.0 }
 0xc76   : > { %3228 = vadd.xlane.f32.xlu0 %v3227_v47 }
 0xc77   : > { %v3220_v48 = vmul.f32 1.442695, %v3214_v18 }
 0xc78   : > { %v3211_v51 = vpop.xlane.xlu0 %3210 }
 0xc79   : > { %12852 = vpow2.f32 %v3220_v48  ;;  %v3215_v52 = vsub.f32 %v3195_v26, %v3211_v51 }
 0xc7b   : > { %v12851_v53 = vpop.eup %12850  ;;  %v3222_v59 = vmul.f32 1.442695, %v3215_v52 }
 0xc7c   : > { %v3224_v60 = vsel %vm1685_vm2, %v12851_v53, 0.0 }
 0xc7d   : > { %12854 = vpow2.f32 %v3222_v59  ;;  %3225 = vadd.xlane.f32.xlu1 %v3224_v60 }
 0xc83   : > { %v12853_v62 = vpop.eup %12852 }
 0xc84   : > { %v3230_v63 = vsel %vm1685_vm2, %v12853_v62, 0.0 }
 0xc85   : > { %3231 = vadd.xlane.f32.xlu1 %v3230_v63 }
 0xc87   : > { %v12855_v0 = vpop.eup %12854 }
 0xc88   : > { %v3233_v3 = vsel %vm1685_vm2, %v12855_v0, 0.0 }
 0xc89   : > { %3234 = vadd.xlane.f32.xlu0 %v3233_v3 }
 0xc96   : > { %3344 = vrot.lane.b32.xlu1 %v14648_v15, %s16374_s20 }
 0xc9a   : > { %3392 = vrot.lane.b32.xlu1 %v14656_v20, %s16374_s20 }
 0xc9e   : > { %12654 = vrot.lane.b32.xlu1 %v12653_v55, %s16380_s17 }
 0xc9f   : > { %3296 = vrot.lane.b32.xlu0 %v14658_v21, %s16374_s20  ;;  %s16378_s20 = smov 24  }
 0xca2   : > { %12664 = vrot.lane.b32.xlu1 %v12663_v58, %s16376_s8 }
 0xca3   : > { %12649 = vrot.lane.b32.xlu0 %v12648_v44, %s16380_s17 }
 0xca7   : > { %12659 = vrot.lane.b32.xlu0 %v12658_v45, %s16376_s8 }
 0xd03   : > { %v3229_v15 = vpop.xlane.xlu0 %3228 }
 0xd0a   : > { %v3226_v20 = vpop.xlane.xlu1 %3225 }
 0xd0b   : > { %12856 = vrcp.f32 %v3226_v20 }
 0xd0c   : > { %12858 = vrcp.f32 %v3229_v15 }
 0xd12   : > { %v3232_v21 = vpop.xlane.xlu1 %3231 }
 0xd13   : > { %12860 = vrcp.f32 %v3232_v21 }
 0xd15   : > { %v12857_v50 = vpop.eup %12856 }
 0xd16   : > { %v12859_v54 = vpop.eup %12858  ;;  %v3345_v55 = vpop.permute.xlu1 %3344  ;;  %v3240_v56 = vmul.f32 %v12857_v50, %v12851_v53 }
 0xd17   : > { %v3235_v49 = vpop.xlane.xlu0 %3234  ;;  %v3241_v41 = vmul.f32 %v12859_v54, %v12849_v40  ;;  %v3350_v42 = vsel %vm1932_vm4, %v3345_v55, 0 }
 0xd18   : > { %12862 = vrcp.f32 %v3235_v49  ;;  %v3244_v58 = vpack.c.bf16 %v3240_v56, %v3240_v56 }
 0xd19   : > { %v3245_v4 = vpack.c.bf16 %v3241_v41, %v3241_v41 }
 0xd1a   : > { %11618 = vmatmul.mubr.msk.bf16.vlgmr.msra.gmra.mrb[60].mxu1 %vm1685_vm2, %v3244_v58  ;;  %v3393_v43 = vpop.permute.xlu1 %3392 }
 0xd1b   : > { %v3297_v44 = vpop.permute.xlu0 %3296  ;;  %11628 = vmatpush3.bf16.msra.mxu1 %v3350_v42  ;;  %11629 = vmatprep.mubr.msk.bf16.mxu1 %vm13907_vm1, %v13906_v8  ;;  %v3398_v6 = vsel %vm1932_vm4, %v3393_v43, 0 }
 0xd1c   : > { %v3302_v37 = vsel %vm1932_vm4, %v3297_v44, 0  ;;  %11639 = vmatprep.subr.bf16.mxu1 %v12770_v12 }
 0xd1d   : > { %11622 = vmatpush3.bf16.msra.mxu0 %v3302_v37  ;;  %v12861_v45 = vpop.eup %12860 }
 0xd1e   : > { %11633 = vmatprep.subr.bf16.mxu0 %v13906_v8  ;;  %v3242_v5 = vmul.f32 %v12861_v45, %v12853_v62  ;;  %v12655_v40 = vpop.permute.xlu1 %12654 }
 0xd1f   : > { %v12650_v38 = vpop.permute.xlu0 %12649  ;;  %v12657_v21 = vunpack.i.h.bf16 %v12655_v40  ;;  %v12656_v50 = vunpack.i.l.bf16 %v12655_v40 }
 0xd20   : > { %11624 = vmatmul.mubr.msk.bf16.vlgmr.msra.gmra.mrb[56].mxu0 %vm1685_vm2, %v3245_v4  ;;  %v3246_v7 = vpack.c.bf16 %v3242_v5, %v3242_v5  ;;  %v12652_v46 = vunpack.i.h.bf16 %v12650_v38  ;;  %v12651_v18 = vunpack.i.l.bf16 %v12650_v38 }
 0xd21   : > { %11634 = vmatpush3.bf16.msra.mxu0 %v3398_v6  ;;  %11635 = vmatprep.mubr.msk.bf16.mxu0 %vm13907_vm1, %v13906_v8  ;;  %v3490_v49 = vsel %vm1685_vm2, %v14770_v1, %v12656_v50  ;;  %v12774_v50 = vld [vmem:[#allocation10] sm:$0xff]  }
 0xd22   : > { %v12863_v9 = vpop.eup %12862  ;;  %11630 = vmatmul.mubr.msk.bf16.vlgmr.msra.gmra.mrb[64].mxu1 %vm1685_vm2, %v3246_v7  ;;  %v3489_v52 = vsel %vm1685_vm2, %v14768_v61, %v12652_v46  ;;  %v3488_v53 = vsel %vm1685_vm2, %v14766_v57, %v12651_v18  ;;  %v3491_v57 = vsel %vm1685_vm2, %v14772_v2, %v12657_v21  ;;  %v10939_v2 = vld [vmem:[#allocation8] ss:$0 sm:$0xff]  ;;  %11647 = vmatprep.subr.bf16.mxu0 %v12774_v50 }
 0xd23   : > { %v3243_v10 = vmul.f32 %v12863_v9, %v12855_v0  ;;  %11640 = vmatpush3.bf16.msra.mxu1 %v12770_v12  ;;  %v12660_v39 = vpop.permute.xlu0 %12659  ;;  %v12665_v0 = vpop.permute.xlu1 %12664 }
 0xd24   : > { %11641 = vmatprep.subr.bf16.mxu1 %v12771_v19  ;;  %v12662_v47 = vunpack.i.h.bf16 %v12660_v39  ;;  %v12661_v48 = vunpack.i.l.bf16 %v12660_v39  ;;  %v12667_v54 = vunpack.i.h.bf16 %v12665_v0  ;;  %v12666_v55 = vunpack.i.l.bf16 %v12665_v0  ;;  %v1588_v0 = vld [vmem:[%s14580_s2 + $0x8] sm:$0xff] }
 0xd25   : > { %v3247_v11 = vpack.c.bf16 %v3243_v10, %v3243_v10  ;;  %v13104_v10 = vld [vmem:[%s14632_s5] sm:$0xff] }
 0xd26   : > { %v3493_v62 = vsel %vm3492_vm5, %v3488_v53, %v12661_v48  ;;  %v3494_v63 = vsel %vm3492_vm5, %v3489_v52, %v12662_v47  ;;  %v3495_v41 = vsel %vm3492_vm5, %v3490_v49, %v12666_v55  ;;  %v3496_v42 = vsel %vm3492_vm5, %v3491_v57, %v12667_v54  ;;  %v12775_v54 = vld [vmem:[#allocation10 + $0x8] sm:$0xff]  }
 0xd27   : > { %11642 = vmatpush3.bf16.msra.mxu1 %v12771_v19 }
 0xd28   : > { %11636 = vmatmul.mubr.msk.bf16.vlgmr.msra.gmra.mrb[60].mxu0 %vm1685_vm2, %v3247_v11 }
 0xd29   : > { %11648 = vmatpush3.bf16.msra.mxu0 %v12774_v50 }
 0xd2a   : > { %11649 = vmatprep.subr.bf16.mxu0 %v12775_v54 }
 0xd2d   : > { %11650 = vmatpush3.bf16.msra.mxu0 %v12775_v54 }
 0xd2e   : > { %11663 = vmatprep.subr.bf16.mxu0 %v13906_v8 }
 0xded   : > { %v3290_v13 = vpop.f32.mrb[60].mxu1 }
 0xdee   : > { %v11619_v14 = vpop.f32.mrb[61].mxu1 }
 0xdef   : > { %v3293_v16 = vpop.f32.mrb[62].mxu1  ;;  %v13105_v14 = vld [vmem:[%s14632_s5 + $0x8] sm:$0xff] }
 0xdf0   : > { %v11620_v17 = vpop.f32.mrb[63].mxu1 }
 0xdf1   : > { %v13106_v17 = vld [vmem:[%s14632_s5 + $0x10] sm:$0xff] }
 0xdf3   : > { %v3338_v22 = vpop.f32.mrb[56].mxu0 }
 0xdf4   : > { %v12668_v23 = vpack.i.bf16 %v3338_v22, %v3290_v13  ;;  %v11625_v24 = vpop.f32.mrb[57].mxu0 }
 0xdf5   : > { %v3341_v25 = vpop.f32.mrb[58].mxu0  ;;  %v3386_v26 = vpop.f32.mrb[64].mxu1  ;;  %v13107_v24 = vld [vmem:[%s14632_s5 + $0x18] sm:$0xff]  ;;  %s16487_s5 = smov 72  }
 0xdf6   : > { %12669 = vrot.lane.b32.xlu0 %v12668_v23, %s16378_s20  ;;  %v11626_v27 = vpop.f32.mrb[59].mxu0  ;;  %v11631_v28 = vpop.f32.mrb[65].mxu1 }
 0xdf7   : > { %v3389_v29 = vpop.f32.mrb[66].mxu1 }
 0xdf8   : > { %v11632_v30 = vpop.f32.mrb[67].mxu1 }
 0xdfb   : > { %v3434_v31 = vpop.f32.mrb[60].mxu0 }
 0xdfc   : > { %v12673_v32 = vpack.i.bf16 %v3434_v31, %v3386_v26  ;;  %v11637_v33 = vpop.f32.mrb[61].mxu0 }
 0xdfd   : > { %v3437_v35 = vpop.f32.mrb[62].mxu0 }
 0xdfe   : > { %12674 = vrot.lane.b32.xlu1 %v12673_v32, %s16378_s20  ;;  %v11638_v36 = vpop.f32.mrb[63].mxu0 }
 0xe68   : > { %v12670_v51 = vpop.permute.xlu0 %12669 }
 0xe69   : > { %v12672_v59 = vunpack.i.h.bf16 %v12670_v51  ;;  %v12671_v60 = vunpack.i.l.bf16 %v12670_v51 }
 0xe6b   : > { %v3498_v3 = vsel %vm3497_vm6, %v3493_v62, %v12671_v60  ;;  %v3499_v15 = vsel %vm3497_vm6, %v3494_v63, %v12672_v59  ;;  %v12772_v60 = vld [vmem:[#allocation13] sm:$0xff]   ;;  %v12773_v62 = vld [vmem:[#allocation13 + $0x8] sm:$0xff]  }
 0xe6c   : > { %v3502_v20 = vpack.c.bf16 %v3499_v15, %v3498_v3  ;;  %11655 = vmatprep.subr.bf16.mxu1 %v12772_v60  ;;  %v1587_v63 = vld [vmem:[%s14580_s2] sm:$0xff]  ;;  %v1589_v15 = vld [vmem:[%s14580_s2 + $0x10] sm:$0xff] }
 0xe6d   : > { %v15034_v3 = vpack.c.bf16 %v1588_v0, %v1587_v63 }
 0xe6e   : > { %11643 = vmatprep.mubr.msk.bf16.mxu1 %vm1622_vm0, %v3502_v20  ;;  %v1590_v20 = vld [vmem:[%s14580_s2 + $0x18] sm:$0xff]  ;;  %s16486_s2 = smov 104  }
 0xe6f   : > { %v15038_v21 = vpack.c.bf16 %v1590_v20, %v1589_v15 }
 0xe70   : > { %v12675_v61 = vpop.permute.xlu1 %12674 }
 0xe71   : > { %v12677_v56 = vunpack.i.h.bf16 %v12675_v61  ;;  %v12676_v58 = vunpack.i.l.bf16 %v12675_v61 }
 0xe73   : > { %v3501_v44 = vsel %vm3497_vm6, %v3496_v42, %v12677_v56  ;;  %v3500_v37 = vsel %vm3497_vm6, %v3495_v41, %v12676_v58 }
 0xe74   : > { %v3503_v43 = vpack.c.bf16 %v3501_v44, %v3500_v37 }
 0xe76   : > { %11644 = vmatmul.mubr.msk.bf16.vlgmr.msra.gmra.mrb[68].mxu1 %vm1622_vm0, %v3503_v43 }
 0xe77   : > { %11656 = vmatpush3.bf16.msra.mxu1 %v12772_v60  ;;  %11659 = vmatprep.mubr.msk.bf16.mxu1 %vm1622_vm0, %v15034_v3 }
 0xe78   : > { %11657 = vmatprep.subr.bf16.mxu1 %v12773_v62 }
 0xe7b   : > { %11658 = vmatpush3.bf16.msra.mxu1 %v12773_v62 }
 0xe7c   : > { %11669 = vmatprep.subr.bf16.mxu1 %v13906_v8 }
 0xe7e   : > { %11660 = vmatmul.mubr.msk.bf16.vlgmr.msra.gmra.mrb[72].mxu1 %vm1622_vm0, %v15038_v21 }
 0xe7f   : > { %11671 = vmatprep.mubr.msk.bf16.mxu1 %vm13907_vm1, %v13906_v8 }
 0xf49   : > { %v11645_v45 = vpop.f32.mrb[68].mxu1 }
 0xf4a   : > { %v3567_v4 = vpop.f32.mrb[69].mxu1  ;;  %v3576_v1 = vadd.f32 %v11645_v45, %v10939_v2 }
 0xf4b   : > { %v3568_v5 = vadd.f32 %v10939_v2, %v3567_v4  ;;  %v11646_v6 = vpop.f32.mrb[70].mxu1  ;;  %v10944_v4 = vld [vmem:[#allocation22] ss:$0 sm:$0xff] }
 0xf4c   : > { %v3570_v7 = vpop.f32.mrb[71].mxu1  ;;  %v3579_v12 = vadd.f32 %v11646_v6, %v10939_v2  ;;  %v3584_v19 = vadd.f32 %v13106_v17, %v3576_v1 }
 0xf4d   : > { %v3571_v9 = vadd.f32 %v10939_v2, %v3570_v7  ;;  %v3582_v11 = vadd.f32 %v13104_v10, %v3568_v5  ;;  %v10945_v10 = vld [vmem:[#allocation23] ss:$0 sm:$0xff] }
 0xf4e   : > { %v3594_v23 = vsel %vm1622_vm0, %v3584_v19, 0.0  ;;  %v3585_v25 = vadd.f32 %v13107_v24, %v3579_v12 }
 0xf4f   : > { %v3588_v13 = vsel %vm1622_vm0, %v3582_v11, 0.0  ;;  %v3583_v16 = vadd.f32 %v13105_v14, %v3571_v9 }
 0xf50   : > { %3589 = vadd.xlane.f32.xlu0 %v3588_v13  ;;  %v3597_v26 = vsel %vm1622_vm0, %v3585_v25, 0.0 }
 0xf51   : > { %v3591_v22 = vsel %vm1622_vm0, %v3583_v16, 0.0 }
 0xf52   : > { %3592 = vadd.xlane.f32.xlu1 %v3591_v22 }
 0xf54   : > { %3595 = vadd.xlane.f32.xlu0 %v3594_v23 }
 0xf58   : > { %3598 = vadd.xlane.f32.xlu0 %v3597_v26 }
 0xfdd   : > { %v3590_v27 = vpop.xlane.xlu0 %3589 }
 0xfde   : > { %v3601_v28 = vmul.f32 0.03125, %v3590_v27  ;;  %v10951_v27 = vld [vmem:[#allocation14] ss:$0 sm:$0xff] }
 0xfdf   : > { %v3593_v29 = vpop.xlane.xlu1 %3592 }
 0xfe0   : > { %v3605_v30 = vsub.f32 %v3582_v11, %v3601_v28  ;;  %v3602_v31 = vmul.f32 0.03125, %v3593_v29  ;;  %v11661_v28 = vpop.f32.mrb[72].mxu1 }
 0xfe1   : > { %v3596_v32 = vpop.xlane.xlu0 %3595  ;;  %v3815_v29 = vadd.f32 %v11661_v28, %v10951_v27 }
 0xfe2   : > { %v3606_v33 = vsub.f32 %v3583_v16, %v3602_v31  ;;  %v3603_v35 = vmul.f32 0.03125, %v3596_v32  ;;  %v3609_v36 = vmul.f32 %v3605_v30, %v3605_v30 }
 0xfe4   : > { %v3607_v38 = vsub.f32 %v3584_v19, %v3603_v35  ;;  %v3613_v39 = vsel %vm1622_vm0, %v3609_v36, 0.0  ;;  %v3610_v40 = vmul.f32 %v3606_v33, %v3606_v33 }
 0xfe5   : > { %3614 = vadd.xlane.f32.xlu1 %v3613_v39  ;;  %v3599_v46 = vpop.xlane.xlu0 %3598 }
 0xfe6   : > { %v3604_v18 = vmul.f32 0.03125, %v3599_v46  ;;  %v3616_v47 = vsel %vm1622_vm0, %v3610_v40, 0.0  ;;  %v3611_v48 = vmul.f32 %v3607_v38, %v3607_v38 }
 0xfe7   : > { %3617 = vadd.xlane.f32.xlu0 %v3616_v47 }
 0xfe8   : > { %v3608_v51 = vsub.f32 %v3585_v25, %v3604_v18  ;;  %v3619_v52 = vsel %vm1622_vm0, %v3611_v48, 0.0  ;;  %v10946_v18 = vld [vmem:[#allocation11] ss:$0 sm:$0xff] }
 0xfe9   : > { %3620 = vadd.xlane.f32.xlu1 %v3619_v52 }
 0xfea   : > { %v3612_v53 = vmul.f32 %v3608_v51, %v3608_v51 }
 0xfec   : > { %v3622_v59 = vsel %vm1622_vm0, %v3612_v53, 0.0 }
 0xfed   : > { %3623 = vadd.xlane.f32.xlu0 %v3622_v59 }
0x1072   : > { %v3615_v55 = vpop.xlane.xlu1 %3614 }
0x1073   : > { %v3625_v61 = vmul.f32 0.03125, %v3615_v55 }
0x1074   : > { %v3618_v57 = vpop.xlane.xlu0 %3617 }
0x1075   : > { %v3629_v49 = vadd.f32 1e-05, %v3625_v61  ;;  %v3626_v56 = vmul.f32 0.03125, %v3618_v57 }
0x1076   : > { %v3621_v58 = vpop.xlane.xlu1 %3620 }
0x1077   : > { %12864 = vrsqrt.f32 %v3629_v49  ;;  %v3630_v41 = vadd.f32 1e-05, %v3626_v56  ;;  %v3627_v42 = vmul.f32 0.03125, %v3621_v58 }
0x1079   : > { %12866 = vrsqrt.f32 %v3630_v41  ;;  %v3631_v44 = vadd.f32 1e-05, %v3627_v42 }
0x107a   : > { %v3624_v37 = vpop.xlane.xlu0 %3623 }
0x107b   : > { %12868 = vrsqrt.f32 %v3631_v44  ;;  %v3628_v43 = vmul.f32 0.03125, %v3624_v37 }
0x107d   : > { %v3632_v2 = vadd.f32 1e-05, %v3628_v43 }
0x107f   : > { %12870 = vrsqrt.f32 %v3632_v2 }
0x1081   : > { %v12865_v45 = vpop.eup %12864 }
0x1082   : > { %v3637_v1 = vmul.f32 %v12865_v45, %v3605_v30  ;;  %v3806_v30 = vpop.f32.mrb[73].mxu1 }
0x1083   : > { %v12867_v5 = vpop.eup %12866  ;;  %v3807_v31 = vadd.f32 %v10951_v27, %v3806_v30  ;;  %v11662_v32 = vpop.f32.mrb[74].mxu1 }
0x1084   : > { %v3638_v6 = vmul.f32 %v12867_v5, %v3606_v33  ;;  %v3647_v7 = vmul.f32 %v10944_v4, %v3637_v1  ;;  %v3818_v33 = vadd.f32 %v11662_v32, %v10951_v27  ;;  %v3809_v35 = vpop.f32.mrb[75].mxu1 }
0x1085   : > { %v12869_v9 = vpop.eup %12868  ;;  %v15064_v36 = vpack.c.bf16 %v3807_v31, %v3807_v31 }
0x1086   : > { %v3639_v11 = vmul.f32 %v12869_v9, %v3607_v38  ;;  %v3648_v12 = vmul.f32 %v10944_v4, %v3638_v6  ;;  %v15048_v13 = vadd.f32 %v10945_v10, %v3647_v7  ;;  %v3810_v38 = vadd.f32 %v10951_v27, %v3809_v35 }
0x1087   : > { %v3833_v40 = vsel %vm1685_vm2, %v15064_v36, 0  ;;  %v15076_v60 = vpack.c.bf16 %v3818_v33, %v3818_v33 }
0x1088   : > { %v15050_v14 = vadd.f32 %v10945_v10, %v3648_v12  ;;  %v3649_v22 = vmul.f32 %v10944_v4, %v3639_v11  ;;  %v15066_v39 = vpack.c.bf16 %v3810_v38, %v3810_v38 }
0x1089   : > { %v12871_v16 = vpop.eup %12870  ;;  %v3971_v50 = vsel %vm1685_vm2, %v15076_v60, 0 }
0x108a   : > { %v3640_v17 = vmul.f32 %v12871_v16, %v3608_v51  ;;  %v3661_v19 = vpack.c.bf16 %v15050_v14, %v15048_v13  ;;  %v15055_v24 = vadd.f32 %v10945_v10, %v3649_v22  ;;  %v3879_v46 = vsel %vm1685_vm2, %v15066_v39, 0 }
0x108b   : > { %11670 = vmatpush3.bf16.xpose.msra.mxu1 %v3879_v46  ;;  %v15074_v51 = vpack.c.bf16 %v3815_v29, %v3815_v29 }
0x108c   : > { %11651 = vmatprep.mubr.msk.bf16.mxu0 %vm1622_vm0, %v3661_v19  ;;  %v3650_v23 = vmul.f32 %v10944_v4, %v3640_v17  ;;  %11681 = vmatprep.subr.bf16.mxu1 %v13906_v8 }
0x108d   : > { %v3925_v15 = vsel %vm1685_vm2, %v15074_v51, 0 }
0x108e   : > { %v15057_v25 = vadd.f32 %v10945_v10, %v3650_v23 }
0x1090   : > { %v3662_v26 = vpack.c.bf16 %v15057_v25, %v15055_v24 }
0x1092   : > { %11652 = vmatmul.mubr.msk.bf16.vlgmr.msra.gmra.mrb[64].mxu0 %vm1622_vm0, %v3662_v26 }
0x1093   : > { %11665 = vmatprep.mubr.msk.bf16.mxu0 %vm13907_vm1, %v13906_v8  ;;  %11664 = vmatpush3.bf16.xpose.msra.mxu0 %v3833_v40 }
0x1094   : > { %11675 = vmatprep.subr.bf16.mxu0 %v13906_v8 }
0x1165   : > { %v11653_v47 = vpop.f32.mrb[64].mxu0 }
0x1166   : > { %v3726_v48 = vpop.f32.mrb[65].mxu0  ;;  %v3735_v20 = vadd.f32 %v11653_v47, %v10946_v18 }
0x1167   : > { %v3727_v52 = vadd.f32 %v10946_v18, %v3726_v48  ;;  %v11654_v53 = vpop.f32.mrb[66].mxu0 }
0x1168   : > { %v3729_v59 = vpop.f32.mrb[67].mxu0  ;;  %v3738_v54 = vadd.f32 %v11654_v53, %v10946_v18  ;;  %v15096_v55 = vpack.c.bf16 %v3735_v20, %v3735_v20 }
0x1169   : > { %v15078_v62 = vpack.c.bf16 %v3727_v52, %v3727_v52  ;;  %v3730_v63 = vadd.f32 %v10946_v18, %v3729_v59 }
0x116a   : > { %v15098_v61 = vpack.c.bf16 %v3738_v54, %v3738_v54 }
0x116b   : > { %v15080_v0 = vpack.c.bf16 %v3730_v63, %v3730_v63  ;;  %11666 = vmatmul.mubr.msk.bf16.vlgmr.msra.gmra.mrb[68].mxu0 %vm1685_vm2, %v15078_v62 }
0x116c   : > { %11676 = vmatpush3.bf16.xpose.msra.mxu0 %v3925_v15  ;;  %11677 = vmatprep.mubr.msk.bf16.mxu0 %vm13907_vm1, %v13906_v8 }
0x116d   : > { %11672 = vmatmul.mubr.msk.bf16.vlgmr.msra.gmra.mrb[76].mxu1 %vm1685_vm2, %v15080_v0  ;;  %11687 = vmatprep.subr.bf16.mxu0 %v13906_v8 }
0x116e   : > { %11682 = vmatpush3.bf16.xpose.msra.mxu1 %v3971_v50  ;;  %11683 = vmatprep.mubr.msk.bf16.mxu1 %vm13907_vm1, %v13906_v8 }
0x116f   : > { %11693 = vmatprep.subr.bf16.mxu1 %v13906_v8 }
0x1173   : > { %11678 = vmatmul.mubr.msk.bf16.vlgmr.msra.gmra.mrb[72].mxu0 %vm1685_vm2, %v15096_v55 }
0x1174   : > { %11689 = vmatprep.mubr.msk.bf16.mxu0 %vm13907_vm1, %v13906_v8 }
0x1175   : > { %11684 = vmatmul.mubr.msk.bf16.vlgmr.msra.gmra.mrb[80].mxu1 %vm1685_vm2, %v15098_v61 }
0x1176   : > { %11695 = vmatprep.mubr.msk.bf16.mxu1 %vm13907_vm1, %v13906_v8 }
0x123e   : > { %v3869_v57 = vpop.f32.mrb[68].mxu0 }
0x123f   : > { %v11667_v49 = vpop.f32.mrb[69].mxu0  ;;  %v4013_v56 = vsel %vm1685_vm2, %v3869_v57, -inf }
0x1240   : > { %v3915_v58 = vpop.f32.mrb[76].mxu1  ;;  %4014 = vmax.xlane.f32.xlu1 %v4013_v56  ;;  %v3872_v41 = vpop.f32.mrb[70].mxu0 }
0x1241   : > { %v11668_v42 = vpop.f32.mrb[71].mxu0  ;;  %v11673_v44 = vpop.f32.mrb[77].mxu1  ;;  %v4016_v37 = vsel %vm1685_vm2, %v3915_v58, -inf }
0x1242   : > { %4017 = vmax.xlane.f32.xlu0 %v4016_v37  ;;  %v3918_v43 = vpop.f32.mrb[78].mxu1 }
0x1243   : > { %v11674_v2 = vpop.f32.mrb[79].mxu1 }
0x1246   : > { %v3961_v45 = vpop.f32.mrb[72].mxu0 }
0x1247   : > { %v11679_v4 = vpop.f32.mrb[73].mxu0  ;;  %v4019_v1 = vsel %vm1685_vm2, %v3961_v45, -inf }
0x1248   : > { %v4007_v5 = vpop.f32.mrb[80].mxu1  ;;  %4020 = vmax.xlane.f32.xlu1 %v4019_v1  ;;  %v3964_v6 = vpop.f32.mrb[74].mxu0 }
0x1249   : > { %v11680_v7 = vpop.f32.mrb[75].mxu0  ;;  %v11685_v9 = vpop.f32.mrb[81].mxu1  ;;  %v4022_v10 = vsel %vm1685_vm2, %v4007_v5, -inf }
0x124a   : > { %4023 = vmax.xlane.f32.xlu0 %v4022_v10  ;;  %v4010_v11 = vpop.f32.mrb[82].mxu1 }
0x124b   : > { %v11686_v12 = vpop.f32.mrb[83].mxu1 }
0x1259   : > { %4062 = vrot.lane.b32.xlu1 %v15064_v36, %s16382_s11 }
0x12cd   : > { %v4015_v16 = vpop.xlane.xlu1 %4014 }
0x12ce   : > { %v4025_v17 = vsub.f32 %v3869_v57, %v4015_v16 }
0x12cf   : > { %v4018_v19 = vpop.xlane.xlu0 %4017 }
0x12d0   : > { %v4029_v22 = vmul.f32 1.442695, %v4025_v17  ;;  %v4026_v23 = vsub.f32 %v3915_v58, %v4018_v19 }
0x12d2   : > { %12872 = vpow2.f32 %v4029_v22  ;;  %v4031_v26 = vmul.f32 1.442695, %v4026_v23 }
0x12d4   : > { %12874 = vpow2.f32 %v4031_v26 }
0x12d5   : > { %v4021_v27 = vpop.xlane.xlu1 %4020 }
0x12d6   : > { %v4027_v40 = vsub.f32 %v3961_v45, %v4021_v27 }
0x12d7   : > { %v4024_v35 = vpop.xlane.xlu0 %4023 }
0x12d8   : > { %v4028_v38 = vsub.f32 %v4007_v5, %v4024_v35  ;;  %v4033_v18 = vmul.f32 1.442695, %v4027_v40 }
0x12d9   : > { %v4063_v28 = vpop.permute.xlu1 %4062 }
0x12da   : > { %v4068_v29 = vsel %vm1932_vm4, %v4063_v28, 0  ;;  %v4035_v46 = vmul.f32 1.442695, %v4028_v38 }
0x12db   : > { %11688 = vmatpush3.bf16.msra.mxu0 %v4068_v29 }
0x12dc   : > { %v12873_v30 = vpop.eup %12872  ;;  %11699 = vmatprep.subr.bf16.mxu0 %v13906_v8  ;;  %12876 = vpow2.f32 %v4035_v46 }
0x12dd   : > { %v4037_v31 = vsel %vm1685_vm2, %v12873_v30, 0.0  ;;  %12878 = vpow2.f32 %v4033_v18 }
0x12de   : > { %v12875_v32 = vpop.eup %12874  ;;  %4038 = vadd.xlane.f32.xlu1 %v4037_v31 }
0x12df   : > { %v4040_v33 = vsel %vm1685_vm2, %v12875_v32, 0.0 }
0x12e0   : > { %4041 = vadd.xlane.f32.xlu0 %v4040_v33 }
0x12e6   : > { %v12877_v47 = vpop.eup %12876 }
0x12e7   : > { %v12879_v48 = vpop.eup %12878  ;;  %v4046_v52 = vsel %vm1685_vm2, %v12877_v47, 0.0 }
0x12e8   : > { %v4043_v53 = vsel %vm1685_vm2, %v12879_v48, 0.0 }
0x12ef   : > { %4160 = vrot.lane.b32.xlu1 %v15074_v51, %s16382_s11 }
0x12f3   : > { %4209 = vrot.lane.b32.xlu1 %v15076_v60, %s16382_s11 }
0x12f6   : > { %4111 = vrot.lane.b32.xlu0 %v15066_v39, %s16382_s11 }
0x1315   : > { %4047 = vadd.xlane.f32.xlu0 %v4046_v52 }
0x1317   : > { %4044 = vadd.xlane.f32.xlu1 %v4043_v53 }
0x1328   : > { %4311 = vrot.lane.b32.xlu1 %v15066_v39, %s16390_s13 }
0x132b   : > { %4260 = vrot.lane.b32.xlu0 %v15064_v36, %s16390_s13 }
0x132c   : > { %4309 = vrot.lane.b32.xlu1 %v15080_v0, %s16390_s13 }
0x132f   : > { %4258 = vrot.lane.b32.xlu0 %v15078_v62, %s16390_s13 }
0x1330   : > { %4413 = vrot.lane.b32.xlu1 %v15076_v60, %s16390_s13 }
0x1333   : > { %4362 = vrot.lane.b32.xlu0 %v15074_v51, %s16390_s13 }
0x1334   : > { %4411 = vrot.lane.b32.xlu1 %v15098_v61, %s16390_s13 }
0x1337   : > { %4360 = vrot.lane.b32.xlu0 %v15096_v55, %s16390_s13 }
0x136b   : > { %v4039_v59 = vpop.xlane.xlu1 %4038 }
0x136c   : > { %12880 = vrcp.f32 %v4039_v59 }
0x136d   : > { %v4042_v63 = vpop.xlane.xlu0 %4041 }
0x136e   : > { %12882 = vrcp.f32 %v4042_v63 }
0x136f   : > { %v4161_v50 = vpop.permute.xlu1 %4160 }
0x1370   : > { %v4166_v42 = vsel %vm1932_vm4, %v4161_v50, 0 }
0x1371   : > { %v4112_v15 = vpop.permute.xlu0 %4111 }
0x1372   : > { %v4117_v20 = vsel %vm1932_vm4, %v4112_v15, 0 }
0x1373   : > { %11694 = vmatpush3.bf16.msra.mxu1 %v4117_v20  ;;  %v4210_v41 = vpop.permute.xlu1 %4209 }
0x1374   : > { %11705 = vmatprep.subr.bf16.mxu1 %v13906_v8  ;;  %v4215_v37 = vsel %vm1932_vm4, %v4210_v41, 0 }
0x1376   : > { %v12881_v54 = vpop.eup %12880 }
0x1377   : > { %v4053_v57 = vmul.f32 %v12881_v54, %v12873_v30 }
0x1378   : > { %v12883_v49 = vpop.eup %12882 }
0x1379   : > { %v4057_v56 = vpack.c.bf16 %v4053_v57, %v4053_v57  ;;  %v4054_v58 = vmul.f32 %v12883_v49, %v12875_v32 }
0x137b   : > { %11690 = vmatmul.mubr.msk.bf16.vlgmr.msra.gmra.mrb[76].mxu0 %vm1685_vm2, %v4057_v56  ;;  %v4058_v44 = vpack.c.bf16 %v4054_v58, %v4054_v58 }
0x137c   : > { %11700 = vmatpush3.bf16.msra.mxu0 %v4166_v42  ;;  %11701 = vmatprep.mubr.msk.bf16.mxu0 %vm13907_vm1, %v13906_v8 }
0x137d   : > { %11696 = vmatmul.mubr.msk.bf16.vlgmr.msra.gmra.mrb[84].mxu1 %vm1685_vm2, %v4058_v44  ;;  %11711 = vmatprep.subr.bf16.mxu0 %v13906_v8 }
0x137e   : > { %11706 = vmatpush3.bf16.msra.mxu1 %v4215_v37  ;;  %11707 = vmatprep.mubr.msk.bf16.mxu1 %vm13907_vm1, %v13906_v8 }
0x137f   : > { %11717 = vmatprep.subr.bf16.mxu1 %v13906_v8 }
0x13a2   : > { %v4048_v43 = vpop.xlane.xlu0 %4047 }
0x13a3   : > { %12884 = vrcp.f32 %v4048_v43 }
0x13a4   : > { %v4045_v2 = vpop.xlane.xlu1 %4044 }
0x13a5   : > { %12886 = vrcp.f32 %v4045_v2 }
0x13a6   : > { %v4261_v1 = vpop.permute.xlu0 %4260 }
0x13a7   : > { %v4266_v17 = vsel %vm1685_vm2, %v4261_v1, 0 }
0x13a8   : > { %v4312_v45 = vpop.permute.xlu1 %4311 }
0x13a9   : > { %v4317_v11 = vsel %vm1685_vm2, %v4312_v45, 0 }
0x13aa   : > { %v4259_v16 = vpop.permute.xlu0 %4258 }
0x13ac   : > { %v4310_v10 = vpop.permute.xlu1 %4309 }
0x13ad   : > { %v12885_v4 = vpop.eup %12884 }
0x13ae   : > { %v4056_v5 = vmul.f32 %v12885_v4, %v12877_v47  ;;  %v4363_v22 = vpop.permute.xlu0 %4362 }
0x13af   : > { %v12887_v6 = vpop.eup %12886  ;;  %v4368_v26 = vsel %vm1685_vm2, %v4363_v22, 0 }
0x13b0   : > { %v4060_v7 = vpack.c.bf16 %v4056_v5, %v4056_v5  ;;  %v4055_v9 = vmul.f32 %v12887_v6, %v12879_v48  ;;  %v4414_v19 = vpop.permute.xlu1 %4413 }
0x13b1   : > { %v4419_v23 = vsel %vm1685_vm2, %v4414_v19, 0 }
0x13b2   : > { %11708 = vmatmul.mubr.msk.bf16.vlgmr.msra.gmra.mrb[88].mxu1 %vm1685_vm2, %v4060_v7  ;;  %v4059_v12 = vpack.c.bf16 %v4055_v9, %v4055_v9  ;;  %v4361_v28 = vpop.permute.xlu0 %4360 }
0x13b3   : > { %11718 = vmatpush3.bf16.xpose.msra.mxu1 %v4317_v11  ;;  %11719 = vmatprep.mubr.msk.bf16.mxu1 %vm13907_vm1, %v13906_v8 }
0x13b4   : > { %11702 = vmatmul.mubr.msk.bf16.vlgmr.msra.gmra.mrb[80].mxu0 %vm1685_vm2, %v4059_v12  ;;  %11729 = vmatprep.subr.bf16.mxu1 %v13906_v8  ;;  %v4412_v27 = vpop.permute.xlu1 %4411 }
0x13b5   : > { %11712 = vmatpush3.bf16.xpose.msra.mxu0 %v4266_v17  ;;  %11713 = vmatprep.mubr.msk.bf16.mxu0 %vm13907_vm1, %v13906_v8 }
0x13b6   : > { %11723 = vmatprep.subr.bf16.mxu0 %v13906_v8 }
0x13ba   : > { %11720 = vmatmul.mubr.msk.bf16.vlgmr.msra.gmra.mrb[92].mxu1 %vm1685_vm2, %v4310_v10 }
0x13bb   : > { %11730 = vmatpush3.bf16.xpose.msra.mxu1 %v4419_v23  ;;  %11731 = vmatprep.mubr.msk.bf16.mxu1 %vm13907_vm1, %v13906_v8 }
0x13bc   : > { %11714 = vmatmul.mubr.msk.bf16.vlgmr.msra.gmra.mrb[84].mxu0 %vm1685_vm2, %v4259_v16  ;;  %11741 = vmatprep.subr.bf16.mxu1 %v13906_v8 }
0x13bd   : > { %11724 = vmatpush3.bf16.xpose.msra.mxu0 %v4368_v26  ;;  %11725 = vmatprep.mubr.msk.bf16.mxu0 %vm13907_vm1, %v13906_v8 }
0x13be   : > { %11735 = vmatprep.subr.bf16.mxu0 %v13906_v8 }
0x13c2   : > { %11732 = vmatmul.mubr.msk.bf16.vlgmr.msra.gmra.mrb[96].mxu1 %vm1685_vm2, %v4412_v27 }
0x13c3   : > { %11743 = vmatprep.mubr.msk.bf16.mxu1 %vm13907_vm1, %v13906_v8 }
0x13c4   : > { %11726 = vmatmul.mubr.msk.bf16.vlgmr.msra.gmra.mrb[88].mxu0 %vm1685_vm2, %v4361_v28 }
0x13c5   : > { %11737 = vmatprep.mubr.msk.bf16.mxu0 %vm13907_vm1, %v13906_v8 }
0x144e   : > { %v15180_v29 = vpop.f32.mrb[76].mxu0 }
0x144f   : > { %v11691_v30 = vpop.f32.mrb[77].mxu0 }
0x1450   : > { %v4107_v31 = vpop.f32.mrb[78].mxu0  ;;  %v15182_v32 = vpop.f32.mrb[84].mxu1 }
0x1451   : > { %v11692_v33 = vpop.f32.mrb[79].mxu0  ;;  %v11697_v35 = vpop.f32.mrb[85].mxu1 }
0x1452   : > { %v4156_v38 = vpop.f32.mrb[86].mxu1 }
0x1453   : > { %v11698_v40 = vpop.f32.mrb[87].mxu1 }
0x1485   : > { %v15184_v46 = vpop.f32.mrb[88].mxu1 }
0x1486   : > { %v11709_v18 = vpop.f32.mrb[89].mxu1 }
0x1487   : > { %v15186_v47 = vpop.f32.mrb[80].mxu0  ;;  %v4254_v48 = vpop.f32.mrb[90].mxu1 }
0x1488   : > { %v11703_v52 = vpop.f32.mrb[81].mxu0  ;;  %v11710_v53 = vpop.f32.mrb[91].mxu1 }
0x1489   : > { %v4205_v59 = vpop.f32.mrb[82].mxu0 }
0x148a   : > { %v11704_v63 = vpop.f32.mrb[83].mxu0 }
0x148d   : > { %v4353_v15 = vpop.f32.mrb[92].mxu1 }
0x148e   : > { %v11721_v20 = vpop.f32.mrb[93].mxu1  ;;  %v4464_v50 = vsel %vm1685_vm2, %v4353_v15, -inf }
0x148f   : > { %4465 = vmax.xlane.f32.xlu1 %v4464_v50  ;;  %v4302_v54 = vpop.f32.mrb[84].mxu0  ;;  %v4356_v57 = vpop.f32.mrb[94].mxu1 }
0x1490   : > { %v11715_v49 = vpop.f32.mrb[85].mxu0  ;;  %v11722_v56 = vpop.f32.mrb[95].mxu1  ;;  %v4461_v58 = vsel %vm1685_vm2, %v4302_v54, -inf }
0x1491   : > { %4462 = vmax.xlane.f32.xlu0 %v4461_v58  ;;  %v4305_v41 = vpop.f32.mrb[86].mxu0 }
0x1492   : > { %v11716_v42 = vpop.f32.mrb[87].mxu0 }
0x1495   : > { %v4455_v44 = vpop.f32.mrb[96].mxu1 }
0x1496   : > { %v11733_v37 = vpop.f32.mrb[97].mxu1  ;;  %v4470_v7 = vsel %vm1685_vm2, %v4455_v44, -inf }
0x1497   : > { %v4404_v43 = vpop.f32.mrb[88].mxu0  ;;  %v4458_v2 = vpop.f32.mrb[98].mxu1 }
0x1498   : > { %v11727_v45 = vpop.f32.mrb[89].mxu0  ;;  %v11734_v4 = vpop.f32.mrb[99].mxu1  ;;  %v4467_v1 = vsel %vm1685_vm2, %v4404_v43, -inf }
0x1499   : > { %4468 = vmax.xlane.f32.xlu0 %v4467_v1  ;;  %v4407_v5 = vpop.f32.mrb[90].mxu0 }
0x149a   : > { %v11728_v6 = vpop.f32.mrb[91].mxu0 }
0x149d   : > { %4471 = vmax.xlane.f32.xlu0 %v4470_v7 }
0x14a0   : > { %4509 = vrot.lane.b32.xlu1 %v15064_v36, %s16388_s7 }
0x151c   : > { %v4466_v9 = vpop.xlane.xlu1 %4465 }
0x151d   : > { %v4474_v10 = vsub.f32 %v4353_v15, %v4466_v9 }
0x151e   : > { %v4463_v11 = vpop.xlane.xlu0 %4462 }
0x151f   : > { %v4479_v12 = vmul.f32 1.442695, %v4474_v10  ;;  %v4473_v16 = vsub.f32 %v4302_v54, %v4463_v11 }
0x1520   : > { %v4510_v17 = vpop.permute.xlu1 %4509 }
0x1521   : > { %12888 = vpow2.f32 %v4479_v12  ;;  %v4477_v19 = vmul.f32 1.442695, %v4473_v16  ;;  %v4515_v22 = vsel %vm1932_vm4, %v4510_v17, 0 }
0x1522   : > { %11736 = vmatpush3.bf16.msra.mxu0 %v4515_v22 }
0x1523   : > { %12890 = vpow2.f32 %v4477_v19  ;;  %11747 = vmatprep.subr.bf16.mxu0 %v13906_v8 }
0x1526   : > { %v4469_v30 = vpop.xlane.xlu0 %4468 }
0x1527   : > { %v4475_v38 = vsub.f32 %v4404_v43, %v4469_v30 }
0x1529   : > { %v4481_v40 = vmul.f32 1.442695, %v4475_v38 }
0x152a   : > { %v4472_v31 = vpop.xlane.xlu0 %4471 }
0x152b   : > { %v12889_v23 = vpop.eup %12888  ;;  %v4476_v33 = vsub.f32 %v4455_v44, %v4472_v31 }
0x152c   : > { %v4488_v26 = vsel %vm1685_vm2, %v12889_v23, 0.0 }
0x152d   : > { %v12891_v27 = vpop.eup %12890  ;;  %4489 = vadd.xlane.f32.xlu0 %v4488_v26  ;;  %v4483_v35 = vmul.f32 1.442695, %v4476_v33 }
0x152e   : > { %v4485_v28 = vsel %vm1685_vm2, %v12891_v27, 0.0 }
0x152f   : > { %4486 = vadd.xlane.f32.xlu1 %v4485_v28  ;;  %12892 = vpow2.f32 %v4483_v35 }
0x1530   : > { %12894 = vpow2.f32 %v4481_v40 }
0x1539   : > { %v12893_v18 = vpop.eup %12892 }
0x153a   : > { %v4494_v48 = vsel %vm1685_vm2, %v12893_v18, 0.0  ;;  %v12895_v52 = vpop.eup %12894 }
0x153b   : > { %v4491_v53 = vsel %vm1685_vm2, %v12895_v52, 0.0 }
0x1540   : > { %4605 = vrot.lane.b32.xlu1 %v15074_v51, %s16388_s7 }
0x1543   : > { %4557 = vrot.lane.b32.xlu0 %v15066_v39, %s16388_s7 }
0x1544   : > { %4653 = vrot.lane.b32.xlu1 %v15076_v60, %s16388_s7 }
0x1562   : > { %4495 = vadd.xlane.f32.xlu0 %v4494_v48 }
0x1568   : > { %4492 = vadd.xlane.f32.xlu1 %v4491_v53 }
0x1578   : > { %4703 = vrot.lane.b32.xlu0 %v15064_v36, %s16386_s9 }
0x1579   : > { %4753 = vrot.lane.b32.xlu1 %v15066_v39, %s16386_s9 }
0x157c   : > { %4701 = vrot.lane.b32.xlu0 %v15078_v62, %s16386_s9 }
0x157d   : > { %4751 = vrot.lane.b32.xlu1 %v15080_v0, %s16386_s9 }
0x1580   : > { %4803 = vrot.lane.b32.xlu0 %v15074_v51, %s16386_s9 }
0x1581   : > { %4853 = vrot.lane.b32.xlu1 %v15076_v60, %s16386_s9 }
0x1584   : > { %4801 = vrot.lane.b32.xlu0 %v15096_v55, %s16386_s9 }
0x1585   : > { %4851 = vrot.lane.b32.xlu1 %v15098_v61, %s16386_s9 }
0x15ba   : > { %v4490_v59 = vpop.xlane.xlu0 %4489 }
0x15bb   : > { %12896 = vrcp.f32 %v4490_v59 }
0x15bc   : > { %v4487_v63 = vpop.xlane.xlu1 %4486 }
0x15bd   : > { %12898 = vrcp.f32 %v4487_v63 }
0x15be   : > { %v4558_v15 = vpop.permute.xlu0 %4557 }
0x15bf   : > { %v4563_v20 = vsel %vm1932_vm4, %v4558_v15, 0 }
0x15c0   : > { %11742 = vmatpush3.bf16.msra.mxu1 %v4563_v20  ;;  %v4606_v50 = vpop.permute.xlu1 %4605 }
0x15c1   : > { %11753 = vmatprep.subr.bf16.mxu1 %v13906_v8  ;;  %v4611_v37 = vsel %vm1932_vm4, %v4606_v50, 0 }
0x15c4   : > { %v4654_v56 = vpop.permute.xlu1 %4653 }
0x15c5   : > { %v12897_v54 = vpop.eup %12896  ;;  %v4659_v42 = vsel %vm1932_vm4, %v4654_v56, 0 }
0x15c6   : > { %v4502_v57 = vmul.f32 %v12897_v54, %v12889_v23 }
0x15c7   : > { %v12899_v49 = vpop.eup %12898 }
0x15c8   : > { %v4506_v58 = vpack.c.bf16 %v4502_v57, %v4502_v57  ;;  %v4501_v41 = vmul.f32 %v12899_v49, %v12891_v27 }
0x15ca   : > { %11744 = vmatmul.mubr.msk.bf16.vlgmr.msra.gmra.mrb[100].mxu1 %vm1685_vm2, %v4506_v58  ;;  %v4505_v44 = vpack.c.bf16 %v4501_v41, %v4501_v41 }
0x15cb   : > { %11754 = vmatpush3.bf16.msra.mxu1 %v4659_v42  ;;  %11755 = vmatprep.mubr.msk.bf16.mxu1 %vm13907_vm1, %v13906_v8 }
0x15cc   : > { %11738 = vmatmul.mubr.msk.bf16.vlgmr.msra.gmra.mrb[92].mxu0 %vm1685_vm2, %v4505_v44  ;;  %11765 = vmatprep.subr.bf16.mxu1 %v13906_v8 }
0x15cd   : > { %11748 = vmatpush3.bf16.msra.mxu0 %v4611_v37  ;;  %11749 = vmatprep.mubr.msk.bf16.mxu0 %vm13907_vm1, %v13906_v8 }
0x15ce   : > { %11759 = vmatprep.subr.bf16.mxu0 %v13906_v8 }
0x15ef   : > { %v4496_v43 = vpop.xlane.xlu0 %4495 }
0x15f0   : > { %12900 = vrcp.f32 %v4496_v43 }
0x15f3   : > { %v4704_v6 = vpop.permute.xlu0 %4703 }
0x15f4   : > { %v4709_v19 = vsel %vm1685_vm2, %v4704_v6, 0 }
0x15f5   : > { %v4493_v2 = vpop.xlane.xlu1 %4492 }
0x15f6   : > { %12902 = vrcp.f32 %v4493_v2 }
0x15f7   : > { %v4702_v16 = vpop.permute.xlu0 %4701 }
0x15f9   : > { %v4754_v45 = vpop.permute.xlu1 %4753 }
0x15fa   : > { %v12901_v4 = vpop.eup %12900  ;;  %v4759_v9 = vsel %vm1685_vm2, %v4754_v45, 0 }
0x15fb   : > { %v4504_v1 = vmul.f32 %v12901_v4, %v12893_v18  ;;  %v4804_v23 = vpop.permute.xlu0 %4803 }
0x15fc   : > { %v4809_v26 = vsel %vm1685_vm2, %v4804_v23, 0 }
0x15fd   : > { %v4508_v5 = vpack.c.bf16 %v4504_v1, %v4504_v1  ;;  %v4752_v7 = vpop.permute.xlu1 %4751 }
0x15ff   : > { %11756 = vmatmul.mubr.msk.bf16.vlgmr.msra.gmra.mrb[104].mxu1 %vm1685_vm2, %v4508_v5  ;;  %v4802_v28 = vpop.permute.xlu0 %4801 }
0x1600   : > { %v12903_v10 = vpop.eup %12902  ;;  %11766 = vmatpush3.bf16.xpose.msra.mxu1 %v4759_v9  ;;  %11767 = vmatprep.mubr.msk.bf16.mxu1 %vm13907_vm1, %v13906_v8 }
0x1601   : > { %v4503_v11 = vmul.f32 %v12903_v10, %v12895_v52  ;;  %11777 = vmatprep.subr.bf16.mxu1 %v13906_v8  ;;  %v4854_v17 = vpop.permute.xlu1 %4853 }
0x1602   : > { %v4859_v22 = vsel %vm1685_vm2, %v4854_v17, 0 }
0x1603   : > { %v4507_v12 = vpack.c.bf16 %v4503_v11, %v4503_v11 }
0x1605   : > { %11750 = vmatmul.mubr.msk.bf16.vlgmr.msra.gmra.mrb[96].mxu0 %vm1685_vm2, %v4507_v12  ;;  %v4852_v27 = vpop.permute.xlu1 %4851 }
0x1606   : > { %11760 = vmatpush3.bf16.xpose.msra.mxu0 %v4709_v19  ;;  %11761 = vmatprep.mubr.msk.bf16.mxu0 %vm13907_vm1, %v13906_v8 }
0x1607   : > { %11768 = vmatmul.mubr.msk.bf16.vlgmr.msra.gmra.mrb[108].mxu1 %vm1685_vm2, %v4752_v7  ;;  %11771 = vmatprep.subr.bf16.mxu0 %v13906_v8 }
0x1608   : > { %11778 = vmatpush3.bf16.xpose.msra.mxu1 %v4859_v22  ;;  %11779 = vmatprep.mubr.msk.bf16.mxu1 %vm13907_vm1, %v13906_v8 }
0x1609   : > { %11789 = vmatprep.subr.bf16.mxu1 %v13906_v8 }
0x160d   : > { %11762 = vmatmul.mubr.msk.bf16.vlgmr.msra.gmra.mrb[100].mxu0 %vm1685_vm2, %v4702_v16 }
0x160e   : > { %11772 = vmatpush3.bf16.xpose.msra.mxu0 %v4809_v26  ;;  %11773 = vmatprep.mubr.msk.bf16.mxu0 %vm13907_vm1, %v13906_v8 }
0x160f   : > { %11780 = vmatmul.mubr.msk.bf16.vlgmr.msra.gmra.mrb[112].mxu1 %vm1685_vm2, %v4852_v27  ;;  %11783 = vmatprep.subr.bf16.mxu0 %v13906_v8 }
0x1610   : > { %11791 = vmatprep.mubr.msk.bf16.mxu1 %vm13907_vm1, %v13906_v8 }
0x1615   : > { %11774 = vmatmul.mubr.msk.bf16.vlgmr.msra.gmra.mrb[104].mxu0 %vm1685_vm2, %v4802_v28 }
0x1616   : > { %11785 = vmatprep.mubr.msk.bf16.mxu0 %vm13907_vm1, %v13906_v8 }
0x169d   : > { %v15260_v30 = vpop.f32.mrb[100].mxu1 }
0x169e   : > { %v11745_v31 = vpop.f32.mrb[101].mxu1 }
0x169f   : > { %v15262_v33 = vpop.f32.mrb[92].mxu0  ;;  %v4602_v35 = vpop.f32.mrb[102].mxu1 }
0x16a0   : > { %v12678_v38 = vpack.i.bf16 %v15260_v30, %v15262_v33  ;;  %v11739_v40 = vpop.f32.mrb[93].mxu0  ;;  %v11746_v18 = vpop.f32.mrb[103].mxu1 }
0x16a1   : > { %v4554_v48 = vpop.f32.mrb[94].mxu0 }
0x16a2   : > { %v11740_v52 = vpop.f32.mrb[95].mxu0 }
0x16d2   : > { %v15266_v53 = vpop.f32.mrb[104].mxu1 }
0x16d3   : > { %v11757_v59 = vpop.f32.mrb[105].mxu1 }
0x16d4   : > { %v4698_v63 = vpop.f32.mrb[106].mxu1 }
0x16d5   : > { %v11758_v15 = vpop.f32.mrb[107].mxu1 }
0x16d8   : > { %v15268_v20 = vpop.f32.mrb[96].mxu0 }
0x16d9   : > { %v12683_v50 = vpack.i.bf16 %v15266_v53, %v15268_v20  ;;  %v11751_v54 = vpop.f32.mrb[97].mxu0 }
0x16da   : > { %v4650_v57 = vpop.f32.mrb[98].mxu0  ;;  %v4795_v49 = vpop.f32.mrb[108].mxu1 }
0x16db   : > { %v11752_v56 = vpop.f32.mrb[99].mxu0  ;;  %v11769_v58 = vpop.f32.mrb[109].mxu1  ;;  %v4904_v41 = vsel %vm1685_vm2, %v4795_v49, -inf }
0x16dc   : > { %4905 = vmax.xlane.f32.xlu1 %v4904_v41  ;;  %v4798_v42 = vpop.f32.mrb[110].mxu1 }
0x16dd   : > { %v11770_v44 = vpop.f32.mrb[111].mxu1 }
0x16e0   : > { %v4745_v37 = vpop.f32.mrb[100].mxu0 }
0x16e1   : > { %v11763_v43 = vpop.f32.mrb[101].mxu0  ;;  %v4901_v2 = vsel %vm1685_vm2, %v4745_v37, -inf }
0x16e2   : > { %v4895_v45 = vpop.f32.mrb[112].mxu1  ;;  %4902 = vmax.xlane.f32.xlu0 %v4901_v2  ;;  %v4748_v4 = vpop.f32.mrb[102].mxu0 }
0x16e3   : > { %v11764_v1 = vpop.f32.mrb[103].mxu0  ;;  %v11781_v5 = vpop.f32.mrb[113].mxu1  ;;  %v4910_v17 = vsel %vm1685_vm2, %v4895_v45, -inf }
0x16e4   : > { %v4898_v6 = vpop.f32.mrb[114].mxu1 }
0x16e5   : > { %v11782_v7 = vpop.f32.mrb[115].mxu1 }
0x16e8   : > { %v4845_v9 = vpop.f32.mrb[104].mxu0 }
0x16e9   : > { %v11775_v10 = vpop.f32.mrb[105].mxu0  ;;  %v4907_v11 = vsel %vm1685_vm2, %v4845_v9, -inf }
0x16ea   : > { %4908 = vmax.xlane.f32.xlu0 %v4907_v11  ;;  %v4848_v12 = vpop.f32.mrb[106].mxu0 }
0x16eb   : > { %v11776_v16 = vpop.f32.mrb[107].mxu0 }
0x16ed   : > { %4949 = vrot.lane.b32.xlu1 %v15064_v36, %s16384_s28 }
0x16ee   : > { %4911 = vmax.xlane.f32.xlu0 %v4910_v17 }
0x1769   : > { %v4906_v19 = vpop.xlane.xlu1 %4905 }
0x176a   : > { %v4914_v22 = vsub.f32 %v4795_v49, %v4906_v19 }
0x176c   : > { %v4919_v23 = vmul.f32 1.442695, %v4914_v22 }
0x176d   : > { %v4950_v26 = vpop.permute.xlu1 %4949 }
0x176e   : > { %12904 = vpow2.f32 %v4919_v23  ;;  %v4955_v27 = vsel %vm1932_vm4, %v4950_v26, 0 }
0x176f   : > { %11784 = vmatpush3.bf16.msra.mxu0 %v4955_v27  ;;  %v4903_v28 = vpop.xlane.xlu0 %4902 }
0x1770   : > { %v4913_v31 = vsub.f32 %v4745_v37, %v4903_v28  ;;  %11795 = vmatprep.subr.bf16.mxu0 %v13906_v8 }
0x1772   : > { %v4917_v35 = vmul.f32 1.442695, %v4913_v31 }
0x1774   : > { %12906 = vpow2.f32 %v4917_v35 }
0x1777   : > { %v4909_v59 = vpop.xlane.xlu0 %4908 }
0x1778   : > { %v12905_v40 = vpop.eup %12904  ;;  %v4915_v57 = vsub.f32 %v4845_v9, %v4909_v59 }
0x1779   : > { %v4928_v18 = vsel %vm1685_vm2, %v12905_v40, 0.0 }
0x177a   : > { %4929 = vadd.xlane.f32.xlu0 %v4928_v18  ;;  %v4921_v49 = vmul.f32 1.442695, %v4915_v57 }
0x177b   : > { %v4912_v63 = vpop.xlane.xlu0 %4911 }
0x177c   : > { %v4916_v15 = vsub.f32 %v4895_v45, %v4912_v63 }
0x177e   : > { %v12907_v48 = vpop.eup %12906  ;;  %v4923_v54 = vmul.f32 1.442695, %v4916_v15 }
0x177f   : > { %v4925_v52 = vsel %vm1685_vm2, %v12907_v48, 0.0 }
0x1780   : > { %4926 = vadd.xlane.f32.xlu1 %v4925_v52  ;;  %12908 = vpow2.f32 %v4923_v54 }
0x1781   : > { %12910 = vpow2.f32 %v4921_v49 }
0x178a   : > { %v12909_v56 = vpop.eup %12908 }
0x178b   : > { %v4934_v58 = vsel %vm1685_vm2, %v12909_v56, 0.0  ;;  %v12911_v41 = vpop.eup %12910 }
0x178c   : > { %v4931_v42 = vsel %vm1685_vm2, %v12911_v41, 0.0 }
0x1790   : > { %4997 = vrot.lane.b32.xlu0 %v15066_v39, %s16384_s28 }
0x1791   : > { %5045 = vrot.lane.b32.xlu1 %v15074_v51, %s16384_s28 }
0x1795   : > { %5093 = vrot.lane.b32.xlu1 %v15076_v60, %s16384_s28 }
0x17af   : > { %4935 = vadd.xlane.f32.xlu0 %v4934_v58 }
0x17b9   : > { %4932 = vadd.xlane.f32.xlu1 %v4931_v42 }
0x17c5   : > { %5143 = vrot.lane.b32.xlu0 %v15064_v36, %s16486_s2 }
0x17c9   : > { %5141 = vrot.lane.b32.xlu0 %v15078_v62, %s16486_s2 }
0x17ca   : > { %5193 = vrot.lane.b32.xlu1 %v15066_v39, %s16486_s2 }
0x17cd   : > { %5243 = vrot.lane.b32.xlu0 %v15074_v51, %s16486_s2 }
0x17ce   : > { %5191 = vrot.lane.b32.xlu1 %v15080_v0, %s16486_s2 }
0x17d1   : > { %5241 = vrot.lane.b32.xlu0 %v15096_v55, %s16486_s2 }
0x17d2   : > { %5293 = vrot.lane.b32.xlu1 %v15076_v60, %s16486_s2 }
0x17d6   : > { %5291 = vrot.lane.b32.xlu1 %v15098_v61, %s16486_s2 }
0x1807   : > { %v4930_v44 = vpop.xlane.xlu0 %4929 }
0x1808   : > { %12912 = vrcp.f32 %v4930_v44 }
0x180b   : > { %v4998_v62 = vpop.permute.xlu0 %4997 }
0x180c   : > { %v5003_v37 = vsel %vm1932_vm4, %v4998_v62, 0 }
0x180d   : > { %v4927_v43 = vpop.xlane.xlu1 %4926  ;;  %11790 = vmatpush3.bf16.msra.mxu1 %v5003_v37 }
0x180e   : > { %12914 = vrcp.f32 %v4927_v43  ;;  %11801 = vmatprep.subr.bf16.mxu1 %v13906_v8 }
0x1811   : > { %v5046_v0 = vpop.permute.xlu1 %5045 }
0x1812   : > { %v12913_v2 = vpop.eup %12912  ;;  %v5051_v7 = vsel %vm1932_vm4, %v5046_v0, 0 }
0x1813   : > { %v4942_v45 = vmul.f32 %v12913_v2, %v12905_v40 }
0x1815   : > { %v5094_v55 = vpop.permute.xlu1 %5093  ;;  %v4946_v4 = vpack.c.bf16 %v4942_v45, %v4942_v45 }
0x1816   : > { %v5099_v1 = vsel %vm1932_vm4, %v5094_v55, 0 }
0x1817   : > { %11792 = vmatmul.mubr.msk.bf16.vlgmr.msra.gmra.mrb[116].mxu1 %vm1685_vm2, %v4946_v4 }
0x1818   : > { %v12915_v61 = vpop.eup %12914  ;;  %11802 = vmatpush3.bf16.msra.mxu1 %v5099_v1  ;;  %11803 = vmatprep.mubr.msk.bf16.mxu1 %vm13907_vm1, %v13906_v8 }
0x1819   : > { %v4941_v5 = vmul.f32 %v12915_v61, %v12907_v48  ;;  %11813 = vmatprep.subr.bf16.mxu1 %v13906_v8 }
0x181b   : > { %v4945_v6 = vpack.c.bf16 %v4941_v5, %v4941_v5 }
0x181d   : > { %11786 = vmatmul.mubr.msk.bf16.vlgmr.msra.gmra.mrb[108].mxu0 %vm1685_vm2, %v4945_v6 }
0x181e   : > { %11796 = vmatpush3.bf16.msra.mxu0 %v5051_v7  ;;  %11797 = vmatprep.mubr.msk.bf16.mxu0 %vm13907_vm1, %v13906_v8 }
0x181f   : > { %11807 = vmatprep.subr.bf16.mxu0 %v13906_v8 }
0x183c   : > { %v4936_v9 = vpop.xlane.xlu0 %4935 }
0x183d   : > { %12916 = vrcp.f32 %v4936_v9 }
0x1840   : > { %v5144_v23 = vpop.permute.xlu0 %5143 }
0x1841   : > { %v5149_v18 = vsel %vm1685_vm2, %v5144_v23, 0 }
0x1844   : > { %v5142_v40 = vpop.permute.xlu0 %5141 }
0x1846   : > { %v4933_v10 = vpop.xlane.xlu1 %4932 }
0x1847   : > { %v12917_v11 = vpop.eup %12916  ;;  %12918 = vrcp.f32 %v4933_v10 }
0x1848   : > { %v4944_v12 = vmul.f32 %v12917_v11, %v12909_v56  ;;  %v5244_v48 = vpop.permute.xlu0 %5243 }
0x1849   : > { %v5249_v59 = vsel %vm1685_vm2, %v5244_v48, 0 }
0x184a   : > { %v5194_v16 = vpop.permute.xlu1 %5193  ;;  %v4948_v17 = vpack.c.bf16 %v4944_v12, %v4944_v12 }
0x184b   : > { %v5199_v19 = vsel %vm1685_vm2, %v5194_v16, 0 }
0x184c   : > { %11804 = vmatmul.mubr.msk.bf16.vlgmr.msra.gmra.mrb[120].mxu1 %vm1685_vm2, %v4948_v17  ;;  %v5242_v63 = vpop.permute.xlu0 %5241 }
0x184d   : > { %11814 = vmatpush3.bf16.xpose.msra.mxu1 %v5199_v19  ;;  %11815 = vmatprep.mubr.msk.bf16.mxu1 %vm13907_vm1, %v13906_v8 }
0x184e   : > { %v5192_v22 = vpop.permute.xlu1 %5191  ;;  %11825 = vmatprep.subr.bf16.mxu1 %v13906_v8 }
0x1851   : > { %v12919_v26 = vpop.eup %12918 }
0x1852   : > { %v5294_v27 = vpop.permute.xlu1 %5293  ;;  %v4943_v28 = vmul.f32 %v12919_v26, %v12911_v41 }
0x1853   : > { %v5299_v31 = vsel %vm1685_vm2, %v5294_v27, 0 }
0x1854   : > { %11816 = vmatmul.mubr.msk.bf16.vlgmr.msra.gmra.mrb[124].mxu1 %vm1685_vm2, %v5192_v22  ;;  %v4947_v35 = vpack.c.bf16 %v4943_v28, %v4943_v28 }
0x1855   : > { %11826 = vmatpush3.bf16.xpose.msra.mxu1 %v5299_v31  ;;  %11827 = vmatprep.mubr.msk.bf16.mxu1 %vm13907_vm1, %v13906_v8 }
0x1856   : > { %11798 = vmatmul.mubr.msk.bf16.vlgmr.msra.gmra.mrb[112].mxu0 %vm1685_vm2, %v4947_v35  ;;  %11837 = vmatprep.subr.bf16.mxu1 %v13906_v8  ;;  %v5292_v52 = vpop.permute.xlu1 %5291 }
0x1857   : > { %11808 = vmatpush3.bf16.xpose.msra.mxu0 %v5149_v18  ;;  %11809 = vmatprep.mubr.msk.bf16.mxu0 %vm13907_vm1, %v13906_v8 }
0x1858   : > { %11819 = vmatprep.subr.bf16.mxu0 %v13906_v8 }
0x185c   : > { %11828 = vmatmul.mubr.msk.bf16.vlgmr.msra.gmra.mrb[128].mxu1 %vm1685_vm2, %v5292_v52 }
0x185d   : > { %11839 = vmatprep.mubr.msk.bf16.mxu1 %vm13907_vm1, %v13906_v8 }
0x185e   : > { %11810 = vmatmul.mubr.msk.bf16.vlgmr.msra.gmra.mrb[116].mxu0 %vm1685_vm2, %v5142_v40 }
0x185f   : > { %11820 = vmatpush3.bf16.xpose.msra.mxu0 %v5249_v59  ;;  %11821 = vmatprep.mubr.msk.bf16.mxu0 %vm13907_vm1, %v13906_v8 }
0x1860   : > { %11831 = vmatprep.subr.bf16.mxu0 %v13906_v8 }
0x1866   : > { %11822 = vmatmul.mubr.msk.bf16.vlgmr.msra.gmra.mrb[120].mxu0 %vm1685_vm2, %v5242_v63 }
0x1867   : > { %11833 = vmatprep.mubr.msk.bf16.mxu0 %vm13907_vm1, %v13906_v8 }
0x18ea   : > { %v15344_v15 = vpop.f32.mrb[116].mxu1 }
0x18eb   : > { %v11793_v54 = vpop.f32.mrb[117].mxu1 }
0x18ec   : > { %v5042_v57 = vpop.f32.mrb[118].mxu1 }
0x18ed   : > { %v11794_v49 = vpop.f32.mrb[119].mxu1 }
0x18f0   : > { %v15346_v56 = vpop.f32.mrb[108].mxu0 }
0x18f1   : > { %v12688_v58 = vpack.i.bf16 %v15344_v15, %v15346_v56  ;;  %v11787_v41 = vpop.f32.mrb[109].mxu0 }
0x18f2   : > { %v4994_v42 = vpop.f32.mrb[110].mxu0 }
0x18f3   : > { %v11788_v44 = vpop.f32.mrb[111].mxu0 }
0x191f   : > { %v15350_v62 = vpop.f32.mrb[120].mxu1 }
0x1920   : > { %v11805_v37 = vpop.f32.mrb[121].mxu1 }
0x1921   : > { %v5138_v43 = vpop.f32.mrb[122].mxu1 }
0x1922   : > { %v11806_v0 = vpop.f32.mrb[123].mxu1 }
0x1927   : > { %v5235_v2 = vpop.f32.mrb[124].mxu1 }
0x1928   : > { %v11817_v45 = vpop.f32.mrb[125].mxu1  ;;  %v5344_v55 = vsel %vm1685_vm2, %v5235_v2, -inf }
0x1929   : > { %5345 = vmax.xlane.f32.xlu1 %v5344_v55  ;;  %v5087_v4 = vpop.f32.mrb[112].mxu0  ;;  %v5238_v1 = vpop.f32.mrb[126].mxu1 }
0x192a   : > { %v12693_v61 = vpack.i.bf16 %v15350_v62, %v5087_v4  ;;  %v11799_v5 = vpop.f32.mrb[113].mxu0  ;;  %v11818_v6 = vpop.f32.mrb[127].mxu1 }
0x192b   : > { %v5090_v7 = vpop.f32.mrb[114].mxu0 }
0x192c   : > { %v11800_v9 = vpop.f32.mrb[115].mxu0 }
0x192f   : > { %v5335_v10 = vpop.f32.mrb[128].mxu1 }
0x1930   : > { %v11829_v11 = vpop.f32.mrb[129].mxu1  ;;  %v5350_v18 = vsel %vm1685_vm2, %v5335_v10, -inf }
0x1931   : > { %v5185_v12 = vpop.f32.mrb[116].mxu0  ;;  %v5338_v16 = vpop.f32.mrb[130].mxu1 }
0x1932   : > { %v11811_v17 = vpop.f32.mrb[117].mxu0  ;;  %v11830_v19 = vpop.f32.mrb[131].mxu1  ;;  %v5341_v22 = vsel %vm1685_vm2, %v5185_v12, -inf }
0x1933   : > { %5342 = vmax.xlane.f32.xlu0 %v5341_v22  ;;  %v5188_v23 = vpop.f32.mrb[118].mxu0 }
0x1934   : > { %v11812_v26 = vpop.f32.mrb[119].mxu0 }
0x1939   : > { %v5285_v27 = vpop.f32.mrb[120].mxu0 }
0x193a   : > { %5389 = vrot.lane.b32.xlu1 %v15064_v36, %s16487_s5  ;;  %v11823_v28 = vpop.f32.mrb[121].mxu0  ;;  %v5347_v31 = vsel %vm1685_vm2, %v5285_v27, -inf }
0x193b   : > { %5348 = vmax.xlane.f32.xlu0 %v5347_v31  ;;  %v5288_v35 = vpop.f32.mrb[122].mxu0 }
0x193c   : > { %v11824_v40 = vpop.f32.mrb[123].mxu0 }
0x193f   : > { %5351 = vmax.xlane.f32.xlu0 %v5350_v18 }
0x19b6   : > { %v5346_v48 = vpop.xlane.xlu1 %5345 }
0x19b7   : > { %v5354_v52 = vsub.f32 %v5235_v2, %v5346_v48 }
0x19b9   : > { %v5359_v59 = vmul.f32 1.442695, %v5354_v52 }
0x19ba   : > { %v5390_v63 = vpop.permute.xlu1 %5389 }
0x19bb   : > { %12920 = vpow2.f32 %v5359_v59  ;;  %v5395_v54 = vsel %vm1932_vm4, %v5390_v63, 0 }
0x19bc   : > { %11832 = vmatpush3.bf16.msra.mxu0 %v5395_v54 }
0x19bd   : > { %11843 = vmatprep.subr.bf16.mxu0 %v13906_v8 }
0x19c0   : > { %v5343_v36 = vpop.xlane.xlu0 %5342 }
0x19c1   : > { %v5353_v57 = vsub.f32 %v5185_v12, %v5343_v36 }
0x19c3   : > { %v5357_v49 = vmul.f32 1.442695, %v5353_v57 }
0x19c5   : > { %v12921_v41 = vpop.eup %12920  ;;  %12922 = vpow2.f32 %v5357_v49 }
0x19c6   : > { %v5368_v42 = vsel %vm1685_vm2, %v12921_v41, 0.0 }
0x19c7   : > { %5369 = vadd.xlane.f32.xlu0 %v5368_v42 }
0x19c8   : > { %v5349_v44 = vpop.xlane.xlu0 %5348 }
0x19c9   : > { %v5355_v62 = vsub.f32 %v5285_v27, %v5349_v44 }
0x19cb   : > { %v5361_v37 = vmul.f32 1.442695, %v5355_v62 }
0x19cc   : > { %v5352_v43 = vpop.xlane.xlu0 %5351 }
0x19cd   : > { %12924 = vpow2.f32 %v5361_v37  ;;  %v5356_v0 = vsub.f32 %v5335_v10, %v5352_v43 }
0x19cf   : > { %v12923_v2 = vpop.eup %12922  ;;  %v5363_v45 = vmul.f32 1.442695, %v5356_v0 }
0x19d0   : > { %v5365_v55 = vsel %vm1685_vm2, %v12923_v2, 0.0 }
0x19d1   : > { %12926 = vpow2.f32 %v5363_v45  ;;  %5366 = vadd.xlane.f32.xlu1 %v5365_v55 }
0x19d7   : > { %v12925_v4 = vpop.eup %12924 }
0x19d8   : > { %v5371_v1 = vsel %vm1685_vm2, %v12925_v4, 0.0 }
0x19d9   : > { %5372 = vadd.xlane.f32.xlu1 %v5371_v1 }
0x19db   : > { %v12927_v5 = vpop.eup %12926 }
0x19dc   : > { %v5374_v6 = vsel %vm1685_vm2, %v12927_v5, 0.0 }
0x19dd   : > { %5375 = vadd.xlane.f32.xlu0 %v5374_v6 }
0x19ea   : > { %5485 = vrot.lane.b32.xlu1 %v15074_v51, %s16487_s5 }
0x19ee   : > { %5533 = vrot.lane.b32.xlu1 %v15076_v60, %s16487_s5 }
0x19f2   : > { %12684 = vrot.lane.b32.xlu1 %v12683_v50, %s16380_s17 }
0x19f3   : > { %5437 = vrot.lane.b32.xlu0 %v15066_v39, %s16487_s5 }
0x19f6   : > { %12694 = vrot.lane.b32.xlu1 %v12693_v61, %s16376_s8 }
0x19f7   : > { %12679 = vrot.lane.b32.xlu0 %v12678_v38, %s16380_s17  ;;  %s16490_s17 = sld [smem:[#allocation64_spill]] }
0x19fb   : > { %12689 = vrot.lane.b32.xlu0 %v12688_v58, %s16376_s8  ;;  %s16488_s8 = sld [smem:[#allocation58_spill]] }
0x1a01   : > { %v12776_v23 = vld [vmem:[%s16488_s8] sm:$0xff]   ;;  %v12777_v35 = vld [vmem:[%s16488_s8 + $0x8] sm:$0xff]   ;;  %s16501_s8 = sld [smem:[#allocation72_spill]] }
0x1a54   : > { %v5370_v51 = vpop.xlane.xlu0 %5369 }
0x1a5e   : > { %v5367_v60 = vpop.xlane.xlu1 %5366 }
0x1a5f   : > { %12928 = vrcp.f32 %v5367_v60 }
0x1a60   : > { %12930 = vrcp.f32 %v5370_v51 }
0x1a66   : > { %v5373_v53 = vpop.xlane.xlu1 %5372 }
0x1a67   : > { %12932 = vrcp.f32 %v5373_v53 }
0x1a69   : > { %v12929_v20 = vpop.eup %12928 }
0x1a6a   : > { %v12931_v39 = vpop.eup %12930  ;;  %v5486_v50 = vpop.permute.xlu1 %5485  ;;  %v5381_v7 = vmul.f32 %v12929_v20, %v12923_v2 }
0x1a6b   : > { %v5376_v61 = vpop.xlane.xlu0 %5375  ;;  %v5382_v30 = vmul.f32 %v12931_v39, %v12921_v41  ;;  %v5491_v33 = vsel %vm1932_vm4, %v5486_v50, 0 }
0x1a6c   : > { %12934 = vrcp.f32 %v5376_v61  ;;  %v5385_v9 = vpack.c.bf16 %v5381_v7, %v5381_v7 }
0x1a6d   : > { %v5386_v10 = vpack.c.bf16 %v5382_v30, %v5382_v30 }
0x1a6e   : > { %11834 = vmatmul.mubr.msk.bf16.vlgmr.msra.gmra.mrb[124].mxu0 %vm1685_vm2, %v5385_v9  ;;  %v5534_v56 = vpop.permute.xlu1 %5533 }
0x1a6f   : > { %v5438_v38 = vpop.permute.xlu0 %5437  ;;  %11844 = vmatpush3.bf16.msra.mxu0 %v5491_v33  ;;  %11845 = vmatprep.mubr.msk.bf16.mxu0 %vm13907_vm1, %v13906_v8  ;;  %v5539_v12 = vsel %vm1932_vm4, %v5534_v56, 0 }
0x1a70   : > { %v5443_v15 = vsel %vm1932_vm4, %v5438_v38, 0  ;;  %11855 = vmatprep.subr.bf16.mxu0 %v12776_v23 }
0x1a71   : > { %11838 = vmatpush3.bf16.msra.mxu1 %v5443_v15  ;;  %v12933_v58 = vpop.eup %12932 }
0x1a72   : > { %11849 = vmatprep.subr.bf16.mxu1 %v13906_v8  ;;  %v5383_v11 = vmul.f32 %v12933_v58, %v12925_v4  ;;  %v12685_v0 = vpop.permute.xlu1 %12684 }
0x1a73   : > { %v12680_v37 = vpop.permute.xlu0 %12679  ;;  %v12687_v9 = vunpack.i.h.bf16 %v12685_v0  ;;  %v12686_v30 = vunpack.i.l.bf16 %v12685_v0 }
0x1a74   : > { %11840 = vmatmul.mubr.msk.bf16.vlgmr.msra.gmra.mrb[132].mxu1 %vm1685_vm2, %v5386_v10  ;;  %v5387_v16 = vpack.c.bf16 %v5383_v11, %v5383_v11  ;;  %v12682_v2 = vunpack.i.h.bf16 %v12680_v37  ;;  %v12681_v45 = vunpack.i.l.bf16 %v12680_v37 }
0x1a75   : > { %11850 = vmatpush3.bf16.msra.mxu1 %v5539_v12  ;;  %11851 = vmatprep.mubr.msk.bf16.mxu1 %vm13907_vm1, %v13906_v8  ;;  %v5631_v15 = vsel %vm1685_vm2, %v15186_v47, %v12686_v30 }
0x1a76   : > { %v12935_v17 = vpop.eup %12934  ;;  %11846 = vmatmul.mubr.msk.bf16.vlgmr.msra.gmra.mrb[128].mxu0 %vm1685_vm2, %v5387_v16  ;;  %v5629_v6 = vsel %vm1685_vm2, %v15180_v29, %v12681_v45  ;;  %v12695_v39 = vpop.permute.xlu1 %12694  ;;  %v5632_v29 = vsel %vm1685_vm2, %v15184_v46, %v12687_v9 }
0x1a77   : > { %v5384_v19 = vmul.f32 %v12935_v17, %v12927_v5  ;;  %11856 = vmatpush3.bf16.msra.mxu0 %v12776_v23  ;;  %v12690_v43 = vpop.permute.xlu0 %12689  ;;  %v5630_v5 = vsel %vm1685_vm2, %v15182_v32, %v12682_v2  ;;  %v12697_v33 = vunpack.i.h.bf16 %v12695_v39  ;;  %v12696_v38 = vunpack.i.l.bf16 %v12695_v39 }
0x1a78   : > { %11857 = vmatprep.subr.bf16.mxu0 %v12777_v35  ;;  %v12692_v55 = vunpack.i.h.bf16 %v12690_v43  ;;  %v12691_v4 = vunpack.i.l.bf16 %v12690_v43 }
0x1a79   : > { %v5388_v22 = vpack.c.bf16 %v5384_v19, %v5384_v19  ;;  %v5635_v10 = vsel %vm3492_vm5, %v5631_v15, %v12696_v38  ;;  %v5636_v11 = vsel %vm3492_vm5, %v5632_v29, %v12697_v33  ;;  %v10988_v19 = vld [vmem:[#allocation16] ss:$0 sm:$0xff] }
0x1a7a   : > { %v5633_v53 = vsel %vm3492_vm5, %v5629_v6, %v12691_v4  ;;  %v5634_v20 = vsel %vm3492_vm5, %v5630_v5, %v12692_v55  ;;  %v12778_v6 = vld [vmem:[#allocation17] sm:$0xff]  }
0x1a7b   : > { %11858 = vmatpush3.bf16.msra.mxu0 %v12777_v35  ;;  %11863 = vmatprep.subr.bf16.mxu1 %v12778_v6 }
0x1a7c   : > { %11852 = vmatmul.mubr.msk.bf16.vlgmr.msra.gmra.mrb[136].mxu1 %vm1685_vm2, %v5388_v22 }
0x1a7d   : > { %11864 = vmatpush3.bf16.msra.mxu1 %v12778_v6 }
0x1b41   : > { %v5431_v26 = vpop.f32.mrb[124].mxu0 }
0x1b42   : > { %v11835_v27 = vpop.f32.mrb[125].mxu0 }
0x1b43   : > { %v5434_v28 = vpop.f32.mrb[126].mxu0 }
0x1b44   : > { %v11836_v31 = vpop.f32.mrb[127].mxu0 }
0x1b47   : > { %v5479_v40 = vpop.f32.mrb[132].mxu1 }
0x1b48   : > { %v12698_v18 = vpack.i.bf16 %v5479_v40, %v5431_v26  ;;  %v11841_v48 = vpop.f32.mrb[133].mxu1 }
0x1b49   : > { %v5482_v52 = vpop.f32.mrb[134].mxu1  ;;  %v5527_v63 = vpop.f32.mrb[128].mxu0 }
0x1b4a   : > { %v11842_v59 = vpop.f32.mrb[135].mxu1  ;;  %12699 = vrot.lane.b32.xlu0 %v12698_v18, %s16378_s20  ;;  %v11847_v54 = vpop.f32.mrb[129].mxu0 }
0x1b4b   : > { %v5530_v36 = vpop.f32.mrb[130].mxu0 }
0x1b4c   : > { %v11848_v57 = vpop.f32.mrb[131].mxu0 }
0x1b4f   : > { %v5575_v49 = vpop.f32.mrb[136].mxu1 }
0x1b50   : > { %v12703_v41 = vpack.i.bf16 %v5575_v49, %v5527_v63  ;;  %v11853_v42 = vpop.f32.mrb[137].mxu1 }
0x1b51   : > { %v5578_v44 = vpop.f32.mrb[138].mxu1 }
0x1b52   : > { %v11854_v62 = vpop.f32.mrb[139].mxu1  ;;  %12704 = vrot.lane.b32.xlu1 %v12703_v41, %s16378_s20  ;;  %s16489_s20 = sld [smem:[#allocation60_spill]] }
0x1bbc   : > { %v12700_v1 = vpop.permute.xlu0 %12699 }
0x1bbd   : > { %v12702_v51 = vunpack.i.h.bf16 %v12700_v1  ;;  %v12701_v60 = vunpack.i.l.bf16 %v12700_v1 }
0x1bbf   : > { %v5638_v50 = vsel %vm3497_vm6, %v5634_v20, %v12702_v51  ;;  %v5637_v61 = vsel %vm3497_vm6, %v5633_v53, %v12701_v60  ;;  %v12779_v51 = vld [vmem:[#allocation17 + $0x8] sm:$0xff]  }
0x1bc0   : > { %v5641_v7 = vpack.c.bf16 %v5638_v50, %v5637_v61  ;;  %11865 = vmatprep.subr.bf16.mxu1 %v12779_v51  ;;  %v12780_v60 = vld [vmem:[%s16489_s20] sm:$0xff]   ;;  %v12781_v53 = vld [vmem:[%s16489_s20 + $0x8] sm:$0xff]  }
0x1bc1   : > { %11866 = vmatpush3.bf16.msra.mxu1 %v12779_v51  ;;  %11871 = vmatprep.subr.bf16.mxu0 %v12780_v60 }
0x1bc2   : > { %11859 = vmatprep.mubr.msk.bf16.mxu0 %vm1622_vm0, %v5641_v7 }
0x1bc4   : > { %v12705_v32 = vpop.permute.xlu1 %12704 }
0x1bc5   : > { %v12707_v56 = vunpack.i.h.bf16 %v12705_v32  ;;  %v12706_v58 = vunpack.i.l.bf16 %v12705_v32 }
0x1bc7   : > { %v5640_v12 = vsel %vm3497_vm6, %v5636_v11, %v12707_v56  ;;  %v5639_v16 = vsel %vm3497_vm6, %v5635_v10, %v12706_v58  ;;  %v10993_v58 = vld [vmem:[%s16490_s17] ss:$0 sm:$0xff]  ;;  %s16491_s17 = sld [smem:[#allocation68_spill]] }
0x1bc8   : > { %v5642_v17 = vpack.c.bf16 %v5640_v12, %v5639_v16 }
0x1bca   : > { %11860 = vmatmul.mubr.msk.bf16.vlgmr.msra.gmra.mrb[132].mxu0 %vm1622_vm0, %v5642_v17 }
0x1bcb   : > { %11872 = vmatpush3.bf16.msra.mxu0 %v12780_v60 }
0x1bcc   : > { %11873 = vmatprep.subr.bf16.mxu0 %v12781_v53 }
0x1bcf   : > { %11874 = vmatpush3.bf16.msra.mxu0 %v12781_v53 }
0x1c9d   : > { %v11861_v22 = vpop.f32.mrb[132].mxu0 }
0x1c9e   : > { %v5706_v23 = vpop.f32.mrb[133].mxu0  ;;  %v5715_v46 = vadd.f32 %v11861_v22, %v10988_v19 }
0x1c9f   : > { %v5707_v26 = vadd.f32 %v10988_v19, %v5706_v23  ;;  %v11862_v27 = vpop.f32.mrb[134].mxu0 }
0x1ca0   : > { %v5709_v47 = vpop.f32.mrb[135].mxu0  ;;  %v5723_v35 = vadd.f32 %v5715_v46, %v15055_v24  ;;  %v5718_v40 = vadd.f32 %v11862_v27, %v10988_v19 }
0x1ca1   : > { %v5721_v28 = vadd.f32 %v5707_v26, %v15048_v13  ;;  %v5710_v31 = vadd.f32 %v10988_v19, %v5709_v47  ;;  %v10994_v19 = vld [vmem:[#allocation25] ss:$0 sm:$0xff] }
0x1ca2   : > { %v5724_v59 = vadd.f32 %v5718_v40, %v15057_v25  ;;  %v5733_v63 = vsel %vm1622_vm0, %v5723_v35, 0.0 }
0x1ca3   : > { %v5722_v18 = vadd.f32 %v5710_v31, %v15050_v14  ;;  %v5727_v48 = vsel %vm1622_vm0, %v5721_v28, 0.0 }
0x1ca4   : > { %5728 = vadd.xlane.f32.xlu0 %v5727_v48  ;;  %v5736_v54 = vsel %vm1622_vm0, %v5724_v59, 0.0 }
0x1ca5   : > { %v5730_v52 = vsel %vm1622_vm0, %v5722_v18, 0.0 }
0x1ca6   : > { %5731 = vadd.xlane.f32.xlu1 %v5730_v52  ;;  %v12782_v52 = vld [vmem:[%s16489_s20 + $0x10] sm:$0xff]  }
0x1ca7   : > { %11875 = vmatprep.subr.bf16.mxu0 %v12782_v52 }
0x1ca8   : > { %5734 = vadd.xlane.f32.xlu0 %v5733_v63  ;;  %11876 = vmatpush3.bf16.msra.mxu0 %v12782_v52  ;;  %v10995_v63 = vld [vmem:[#allocation19] ss:$0 sm:$0xff] }
0x1cac   : > { %5737 = vadd.xlane.f32.xlu0 %v5736_v54 }
0x1d31   : > { %v5729_v13 = vpop.xlane.xlu0 %5728 }
0x1d32   : > { %v5739_v36 = vmul.f32 0.03125, %v5729_v13 }
0x1d33   : > { %v5732_v24 = vpop.xlane.xlu1 %5731 }
0x1d34   : > { %v5743_v57 = vsub.f32 %v5721_v28, %v5739_v36  ;;  %v5740_v49 = vmul.f32 0.03125, %v5732_v24 }
0x1d35   : > { %v5735_v14 = vpop.xlane.xlu0 %5734 }
0x1d36   : > { %v5744_v41 = vsub.f32 %v5722_v18, %v5740_v49  ;;  %v5741_v42 = vmul.f32 0.03125, %v5735_v14  ;;  %v5747_v44 = vmul.f32 %v5743_v57, %v5743_v57 }
0x1d38   : > { %v5745_v62 = vsub.f32 %v5723_v35, %v5741_v42  ;;  %v5751_v37 = vsel %vm1622_vm0, %v5747_v44, 0.0  ;;  %v5748_v43 = vmul.f32 %v5744_v41, %v5744_v41 }
0x1d39   : > { %5752 = vadd.xlane.f32.xlu1 %v5751_v37  ;;  %v5738_v25 = vpop.xlane.xlu0 %5737 }
0x1d3a   : > { %v5742_v0 = vmul.f32 0.03125, %v5738_v25  ;;  %v5754_v2 = vsel %vm1622_vm0, %v5748_v43, 0.0  ;;  %v5749_v45 = vmul.f32 %v5745_v62, %v5745_v62 }
0x1d3b   : > { %5755 = vadd.xlane.f32.xlu0 %v5754_v2 }
0x1d3c   : > { %v5746_v55 = vsub.f32 %v5724_v59, %v5742_v0  ;;  %v5757_v4 = vsel %vm1622_vm0, %v5749_v45, 0.0  ;;  %v12783_v59 = vld [vmem:[%s16489_s20 + $0x18] sm:$0xff]   ;;  %v11000_v0 = vld [vmem:[#allocation20] ss:$0 sm:$0xff] }
0x1d3d   : > { %5758 = vadd.xlane.f32.xlu1 %v5757_v4  ;;  %11877 = vmatprep.subr.bf16.mxu0 %v12783_v59 }
0x1d3e   : > { %v5750_v1 = vmul.f32 %v5746_v55, %v5746_v55  ;;  %11878 = vmatpush3.bf16.msra.mxu0 %v12783_v59 }
0x1d3f   : > { %11897 = vmatprep.subr.bf16.mxu0 %v13906_v8 }
0x1d40   : > { %v5760_v5 = vsel %vm1622_vm0, %v5750_v1, 0.0 }
0x1d41   : > { %5761 = vadd.xlane.f32.xlu0 %v5760_v5 }
0x1dc6   : > { %v5753_v20 = vpop.xlane.xlu1 %5752 }
0x1dc7   : > { %v5763_v39 = vmul.f32 0.03125, %v5753_v20 }
0x1dc8   : > { %v5756_v50 = vpop.xlane.xlu0 %5755 }
0x1dc9   : > { %v5767_v61 = vadd.f32 1e-05, %v5763_v39  ;;  %v5764_v7 = vmul.f32 0.03125, %v5756_v50 }
0x1dca   : > { %v5759_v9 = vpop.xlane.xlu1 %5758 }
0x1dcb   : > { %12936 = vrsqrt.f32 %v5767_v61  ;;  %v5768_v30 = vadd.f32 1e-05, %v5764_v7  ;;  %v5765_v33 = vmul.f32 0.03125, %v5759_v9 }
0x1dcd   : > { %12938 = vrsqrt.f32 %v5768_v30  ;;  %v5769_v38 = vadd.f32 1e-05, %v5765_v33 }
0x1dce   : > { %v5762_v32 = vpop.xlane.xlu0 %5761 }
0x1dcf   : > { %12940 = vrsqrt.f32 %v5769_v38  ;;  %v5766_v29 = vmul.f32 0.03125, %v5762_v32 }
0x1dd1   : > { %v5770_v15 = vadd.f32 1e-05, %v5766_v29 }
0x1dd3   : > { %12942 = vrsqrt.f32 %v5770_v15 }
0x1dd5   : > { %v12937_v56 = vpop.eup %12936 }
0x1dd6   : > { %v5775_v10 = vmul.f32 %v12937_v56, %v5743_v57 }
0x1dd7   : > { %v12939_v11 = vpop.eup %12938 }
0x1dd8   : > { %v5776_v12 = vmul.f32 %v12939_v11, %v5744_v41  ;;  %v5785_v16 = vmul.f32 %v10993_v58, %v5775_v10 }
0x1dd9   : > { %v12941_v17 = vpop.eup %12940 }
0x1dda   : > { %v5777_v22 = vmul.f32 %v12941_v17, %v5745_v62  ;;  %v5786_v23 = vmul.f32 %v10993_v58, %v5776_v12  ;;  %v5795_v46 = vadd.f32 %v10994_v19, %v5785_v16 }
0x1ddc   : > { %v5796_v26 = vadd.f32 %v10994_v19, %v5786_v23  ;;  %v5787_v31 = vmul.f32 %v10993_v58, %v5777_v22 }
0x1ddd   : > { %v12943_v27 = vpop.eup %12942 }
0x1dde   : > { %v5778_v47 = vmul.f32 %v12943_v27, %v5746_v55  ;;  %v5799_v28 = vpack.c.bf16 %v5796_v26, %v5795_v46  ;;  %v5797_v40 = vadd.f32 %v10994_v19, %v5787_v31  ;;  %v12785_v31 = vld [vmem:[%s16491_s17 + $0x8] sm:$0xff]  }
0x1de0   : > { %11867 = vmatprep.mubr.msk.bf16.mxu1 %vm1622_vm0, %v5799_v28  ;;  %v5788_v35 = vmul.f32 %v10993_v58, %v5778_v47  ;;  %v12784_v28 = vld [vmem:[%s16491_s17] sm:$0xff]  }
0x1de1   : > { %11883 = vmatprep.subr.bf16.mxu1 %v12784_v28 }
0x1de2   : > { %v5798_v18 = vadd.f32 %v10994_v19, %v5788_v35 }
0x1de4   : > { %v5800_v48 = vpack.c.bf16 %v5798_v18, %v5797_v40 }
0x1de6   : > { %11868 = vmatmul.mubr.msk.bf16.vlgmr.msra.gmra.mrb[140].mxu1 %vm1622_vm0, %v5800_v48 }
0x1de7   : > { %11884 = vmatpush3.bf16.msra.mxu1 %v12784_v28 }
0x1de8   : > { %11885 = vmatprep.subr.bf16.mxu1 %v12785_v31 }
0x1deb   : > { %11886 = vmatpush3.bf16.msra.mxu1 %v12785_v31 }
0x1dec   : > { %11891 = vmatprep.subr.bf16.mxu1 %v13906_v8 }
0x1eb9   : > { %v11869_v54 = vpop.f32.mrb[140].mxu1 }
0x1eba   : > { %v5873_v13 = vadd.f32 %v11869_v54, %v10995_v63  ;;  %v5864_v36 = vpop.f32.mrb[141].mxu1 }
0x1ebb   : > { %v5865_v24 = vadd.f32 %v10995_v63, %v5864_v36  ;;  %v11870_v57 = vpop.f32.mrb[142].mxu1 }
0x1ebc   : > { %v5876_v49 = vadd.f32 %v11870_v57, %v10995_v63  ;;  %v5867_v14 = vpop.f32.mrb[143].mxu1  ;;  %v5881_v42 = vmax.f32 %v5873_v13, 0.0 }
0x1ebd   : > { %v5868_v41 = vadd.f32 %v10995_v63, %v5867_v14  ;;  %v5879_v62 = vmax.f32 %v5865_v24, 0.0  ;;  %v11007_v14 = vld [vmem:[#allocation26] ss:$0 sm:$0xff] }
0x1ebe   : > { %v5882_v44 = vmax.f32 %v5876_v49, 0.0 }
0x1ebf   : > { %v5880_v37 = vmax.f32 %v5868_v41, 0.0 }
0x1ec0   : > { %v5884_v43 = vpack.c.bf16 %v5882_v44, %v5881_v42 }
0x1ec1   : > { %v5883_v25 = vpack.c.bf16 %v5880_v37, %v5879_v62 }
0x1ec3   : > { %11879 = vmatprep.mubr.msk.bf16.mxu0 %vm5924_vm7, %v5883_v25 }
0x1ec4   : > { %11880 = vmatmul.mubr.msk.bf16.vlgmr.msra.gmra.mrb[136].mxu0 %vm5924_vm7, %v5884_v43  ;;  %v11008_v43 = vld [vmem:[#allocation28] ss:$0 sm:$0xff] }
0x1ec5   : > { %11899 = vmatprep.mubr.msk.bf16.mxu0 %vm13907_vm1, %v13906_v8 }
0x1f97   : > { %v11881_v2 = vpop.f32.mrb[136].mxu0 }
0x1f98   : > { %v5965_v45 = vpop.f32.mrb[137].mxu0  ;;  %v5974_v55 = vadd.f32 %v11881_v2, %v11000_v0 }
0x1f99   : > { %v5966_v4 = vadd.f32 %v11000_v0, %v5965_v45  ;;  %v11882_v1 = vpop.f32.mrb[138].mxu0 }
0x1f9a   : > { %v5968_v5 = vpop.f32.mrb[139].mxu0  ;;  %v5977_v51 = vadd.f32 %v11882_v1, %v11000_v0  ;;  %v5982_v53 = vadd.f32 %v5974_v55, %v5797_v40 }
0x1f9b   : > { %v5980_v6 = vadd.f32 %v5966_v4, %v5795_v46  ;;  %v5969_v60 = vadd.f32 %v11000_v0, %v5968_v5 }
0x1f9c   : > { %v5983_v50 = vadd.f32 %v5977_v51, %v5798_v18  ;;  %v5992_v7 = vsel %vm1622_vm0, %v5982_v53, 0.0 }
0x1f9d   : > { %v5981_v20 = vadd.f32 %v5969_v60, %v5796_v26  ;;  %v5986_v39 = vsel %vm1622_vm0, %v5980_v6, 0.0 }
0x1f9e   : > { %5987 = vadd.xlane.f32.xlu1 %v5986_v39  ;;  %v5995_v9 = vsel %vm1622_vm0, %v5983_v50, 0.0 }
0x1f9f   : > { %v5989_v61 = vsel %vm1622_vm0, %v5981_v20, 0.0 }
0x1fa0   : > { %5990 = vadd.xlane.f32.xlu0 %v5989_v61 }
0x1fa2   : > { %5993 = vadd.xlane.f32.xlu1 %v5992_v7 }
0x1fa4   : > { %5996 = vadd.xlane.f32.xlu0 %v5995_v9 }
0x202b   : > { %v5988_v30 = vpop.xlane.xlu1 %5987 }
0x202c   : > { %v5998_v33 = vmul.f32 0.03125, %v5988_v30 }
0x202d   : > { %v5991_v38 = vpop.xlane.xlu0 %5990 }
0x202e   : > { %v6002_v32 = vsub.f32 %v5980_v6, %v5998_v33  ;;  %v5999_v29 = vmul.f32 0.03125, %v5991_v38 }
0x202f   : > { %v5994_v15 = vpop.xlane.xlu1 %5993 }
0x2030   : > { %v6003_v56 = vsub.f32 %v5981_v20, %v5999_v29  ;;  %v6000_v58 = vmul.f32 0.03125, %v5994_v15  ;;  %v6006_v10 = vmul.f32 %v6002_v32, %v6002_v32  ;;  %v11009_v20 = vld [vmem:[#allocation29] ss:$0 sm:$0xff] }
0x2031   : > { %v5997_v11 = vpop.xlane.xlu0 %5996 }
0x2032   : > { %v6004_v12 = vsub.f32 %v5982_v53, %v6000_v58  ;;  %v6001_v16 = vmul.f32 0.03125, %v5997_v11  ;;  %v6010_v17 = vsel %vm1622_vm0, %v6006_v10, 0.0  ;;  %v6007_v19 = vmul.f32 %v6003_v56, %v6003_v56 }
0x2033   : > { %6011 = vadd.xlane.f32.xlu1 %v6010_v17 }
0x2034   : > { %v6005_v22 = vsub.f32 %v5983_v50, %v6001_v16  ;;  %v6013_v23 = vsel %vm1622_vm0, %v6007_v19, 0.0  ;;  %v6008_v46 = vmul.f32 %v6004_v12, %v6004_v12 }
0x2035   : > { %6014 = vadd.xlane.f32.xlu0 %v6013_v23 }
0x2036   : > { %v6016_v26 = vsel %vm1622_vm0, %v6008_v46, 0.0  ;;  %v6009_v27 = vmul.f32 %v6005_v22, %v6005_v22 }
0x2037   : > { %6017 = vadd.xlane.f32.xlu1 %v6016_v26 }
0x2038   : > { %v6019_v47 = vsel %vm1622_vm0, %v6009_v27, 0.0 }
0x2039   : > { %6020 = vadd.xlane.f32.xlu0 %v6019_v47 }
0x20c0   : > { %v6012_v35 = vpop.xlane.xlu1 %6011 }
0x20c1   : > { %v6022_v40 = vmul.f32 0.03125, %v6012_v35 }
0x20c2   : > { %v6015_v18 = vpop.xlane.xlu0 %6014 }
0x20c3   : > { %v6026_v48 = vadd.f32 1e-05, %v6022_v40  ;;  %v6023_v52 = vmul.f32 0.03125, %v6015_v18 }
0x20c4   : > { %v6018_v59 = vpop.xlane.xlu1 %6017 }
0x20c5   : > { %12944 = vrsqrt.f32 %v6026_v48  ;;  %v6027_v63 = vadd.f32 1e-05, %v6023_v52  ;;  %v6024_v54 = vmul.f32 0.03125, %v6018_v59 }
0x20c6   : > { %v6021_v13 = vpop.xlane.xlu0 %6020 }
0x20c7   : > { %12946 = vrsqrt.f32 %v6027_v63  ;;  %v6028_v36 = vadd.f32 1e-05, %v6024_v54  ;;  %v6025_v24 = vmul.f32 0.03125, %v6021_v13 }
0x20c9   : > { %12948 = vrsqrt.f32 %v6028_v36  ;;  %v6029_v57 = vadd.f32 1e-05, %v6025_v24 }
0x20cb   : > { %12950 = vrsqrt.f32 %v6029_v57 }
0x20cf   : > { %v12945_v49 = vpop.eup %12944 }
0x20d0   : > { %v6034_v41 = vmul.f32 %v12945_v49, %v6002_v32 }
0x20d1   : > { %v12947_v42 = vpop.eup %12946 }
0x20d2   : > { %v6035_v44 = vmul.f32 %v12947_v42, %v6003_v56  ;;  %v6044_v62 = vmul.f32 %v11007_v14, %v6034_v41 }
0x20d3   : > { %v12949_v37 = vpop.eup %12948 }
0x20d4   : > { %v6036_v25 = vmul.f32 %v12949_v37, %v6004_v12  ;;  %v6045_v0 = vmul.f32 %v11007_v14, %v6035_v44  ;;  %v15453_v55 = vadd.f32 %v11008_v43, %v6044_v62 }
0x20d5   : > { %v12951_v2 = vpop.eup %12950 }
0x20d6   : > { %v6037_v45 = vmul.f32 %v12951_v2, %v6005_v22  ;;  %v15455_v4 = vadd.f32 %v11008_v43, %v6045_v0  ;;  %v6046_v1 = vmul.f32 %v11007_v14, %v6036_v25 }
0x20d8   : > { %v6058_v5 = vpack.c.bf16 %v15455_v4, %v15453_v55  ;;  %v6047_v6 = vmul.f32 %v11007_v14, %v6037_v45  ;;  %v15460_v51 = vadd.f32 %v11008_v43, %v6046_v1 }
0x20da   : > { %11887 = vmatprep.mubr.msk.bf16.mxu1 %vm1622_vm0, %v6058_v5  ;;  %v15462_v60 = vadd.f32 %v11008_v43, %v6047_v6 }
0x20dc   : > { %v6059_v53 = vpack.c.bf16 %v15462_v60, %v15460_v51 }
0x20de   : > { %11888 = vmatmul.mubr.msk.bf16.vlgmr.msra.gmra.mrb[144].mxu1 %vm1622_vm0, %v6059_v53 }
0x20df   : > { %11893 = vmatprep.mubr.msk.bf16.mxu1 %vm13907_vm1, %v13906_v8 }
0x21b1   : > { %v11889_v39 = vpop.f32.mrb[144].mxu1 }
0x21b2   : > { %v6123_v50 = vpop.f32.mrb[145].mxu1  ;;  %v6132_v30 = vadd.f32 %v11889_v39, %v11009_v20 }
0x21b3   : > { %v6124_v61 = vadd.f32 %v11009_v20, %v6123_v50  ;;  %v11890_v7 = vpop.f32.mrb[146].mxu1 }
0x21b4   : > { %v6126_v9 = vpop.f32.mrb[147].mxu1  ;;  %v15475_v29 = vpack.c.bf16 %v6132_v30, %v6132_v30  ;;  %v6135_v15 = vadd.f32 %v11890_v7, %v11009_v20 }
0x21b5   : > { %v15469_v33 = vpack.c.bf16 %v6124_v61, %v6124_v61  ;;  %v6127_v38 = vadd.f32 %v11009_v20, %v6126_v9 }
0x21b6   : > { %v15481_v56 = vpack.c.bf16 %v6135_v15, %v6135_v15 }
0x21b7   : > { %v15471_v32 = vpack.c.bf16 %v6127_v38, %v6127_v38  ;;  %6143 = vrot.lane.b32.xlu1 %v15469_v33, %s16382_s11 }
0x21b9   : > { %6192 = vrot.lane.b32.xlu0 %v15471_v32, %s16382_s11 }
0x21bb   : > { %6241 = vrot.lane.b32.xlu1 %v15475_v29, %s16382_s11 }
0x21bf   : > { %6290 = vrot.lane.b32.xlu1 %v15481_v56, %s16382_s11  ;;  %s16492_s11 = smov 64  }
0x2229   : > { %v6144_v58 = vpop.permute.xlu1 %6143 }
0x222a   : > { %v6149_v10 = vsel %vm1685_vm2, %v6144_v58, 0 }
0x222b   : > { %v6193_v11 = vpop.permute.xlu0 %6192  ;;  %11892 = vmatpush3.bf16.xpose.msra.mxu1 %v6149_v10 }
0x222c   : > { %v6198_v12 = vsel %vm1685_vm2, %v6193_v11, 0  ;;  %11903 = vmatprep.subr.bf16.mxu1 %v13906_v8 }
0x222d   : > { %11898 = vmatpush3.bf16.xpose.msra.mxu0 %v6198_v12  ;;  %v6242_v16 = vpop.permute.xlu1 %6241 }
0x222e   : > { %11909 = vmatprep.subr.bf16.mxu0 %v13906_v8  ;;  %v6247_v19 = vsel %vm1685_vm2, %v6242_v16, 0 }
0x2231   : > { %v6291_v17 = vpop.permute.xlu1 %6290 }
0x2232   : > { %11894 = vmatmul.mubr.msk.bf16.vlgmr.msra.gmra.mrb[148].mxu1 %vm1685_vm2, %v15469_v33  ;;  %v6296_v22 = vsel %vm1685_vm2, %v6291_v17, 0 }
0x2233   : > { %11904 = vmatpush3.bf16.xpose.msra.mxu1 %v6247_v19  ;;  %11905 = vmatprep.mubr.msk.bf16.mxu1 %vm13907_vm1, %v13906_v8 }
0x2234   : > { %11900 = vmatmul.mubr.msk.bf16.vlgmr.msra.gmra.mrb[140].mxu0 %vm1685_vm2, %v15471_v32  ;;  %11915 = vmatprep.subr.bf16.mxu1 %v13906_v8 }
0x2235   : > { %11910 = vmatpush3.bf16.xpose.msra.mxu0 %v6296_v22  ;;  %11911 = vmatprep.mubr.msk.bf16.mxu0 %vm13907_vm1, %v13906_v8 }
0x2236   : > { %11921 = vmatprep.subr.bf16.mxu0 %v13906_v8 }
0x223a   : > { %11906 = vmatmul.mubr.msk.bf16.vlgmr.msra.gmra.mrb[152].mxu1 %vm1685_vm2, %v15475_v29 }
0x223b   : > { %11917 = vmatprep.mubr.msk.bf16.mxu1 %vm13907_vm1, %v13906_v8 }
0x223c   : > { %11912 = vmatmul.mubr.msk.bf16.vlgmr.msra.gmra.mrb[144].mxu0 %vm1685_vm2, %v15481_v56 }
0x223d   : > { %11923 = vmatprep.mubr.msk.bf16.mxu0 %vm13907_vm1, %v13906_v8 }
0x2305   : > { %v6185_v23 = vpop.f32.mrb[148].mxu1 }
0x2306   : > { %v6186_v46 = vadd.f32 %v6185_v23, %v14688_v34  ;;  %v11895_v26 = vpop.f32.mrb[149].mxu1 }
0x2307   : > { %v6188_v27 = vpop.f32.mrb[150].mxu1  ;;  %v6234_v47 = vpop.f32.mrb[140].mxu0 }
0x2308   : > { %v6235_v28 = vadd.f32 %v6234_v47, %v14688_v34  ;;  %v11896_v31 = vpop.f32.mrb[151].mxu1  ;;  %v11901_v35 = vpop.f32.mrb[141].mxu0  ;;  %v6338_v40 = vsel %vm1685_vm2, %v6186_v46, -inf }
0x2309   : > { %v6237_v18 = vpop.f32.mrb[142].mxu0  ;;  %6339 = vmax.xlane.f32.xlu0 %v6338_v40 }
0x230a   : > { %v11902_v48 = vpop.f32.mrb[143].mxu0  ;;  %v6341_v52 = vsel %vm1685_vm2, %v6235_v28, -inf }
0x230b   : > { %6342 = vmax.xlane.f32.xlu1 %v6341_v52 }
0x230d   : > { %v6283_v59 = vpop.f32.mrb[152].mxu1 }
0x230e   : > { %v6284_v63 = vadd.f32 %v6283_v59, %v14688_v34  ;;  %v11907_v54 = vpop.f32.mrb[153].mxu1 }
0x230f   : > { %v6286_v13 = vpop.f32.mrb[154].mxu1  ;;  %v6332_v36 = vpop.f32.mrb[144].mxu0 }
0x2310   : > { %v6333_v24 = vadd.f32 %v6332_v36, %v14688_v34  ;;  %v11908_v57 = vpop.f32.mrb[155].mxu1  ;;  %v11913_v49 = vpop.f32.mrb[145].mxu0  ;;  %v6344_v14 = vsel %vm1685_vm2, %v6284_v63, -inf }
0x2311   : > { %6345 = vmax.xlane.f32.xlu0 %v6344_v14  ;;  %v6335_v41 = vpop.f32.mrb[146].mxu0 }
0x2312   : > { %v11914_v42 = vpop.f32.mrb[147].mxu0  ;;  %v6347_v44 = vsel %vm1685_vm2, %v6333_v24, -inf }
0x2315   : > { %6348 = vmax.xlane.f32.xlu0 %v6347_v44 }
0x231c   : > { %6386 = vrot.lane.b32.xlu1 %v15469_v33, %s16492_s11 }
0x2396   : > { %v6340_v62 = vpop.xlane.xlu0 %6339 }
0x2397   : > { %v6350_v37 = vsub.f32 %v6186_v46, %v6340_v62 }
0x2398   : > { %v6343_v43 = vpop.xlane.xlu1 %6342 }
0x2399   : > { %v6354_v25 = vmul.f32 1.442695, %v6350_v37  ;;  %v6351_v0 = vsub.f32 %v6235_v28, %v6343_v43 }
0x239b   : > { %12952 = vpow2.f32 %v6354_v25  ;;  %v6356_v2 = vmul.f32 1.442695, %v6351_v0 }
0x239c   : > { %v6387_v45 = vpop.permute.xlu1 %6386 }
0x239d   : > { %12954 = vpow2.f32 %v6356_v2  ;;  %v6392_v1 = vsel %vm1932_vm4, %v6387_v45, 0 }
0x239e   : > { %11916 = vmatpush3.bf16.msra.mxu1 %v6392_v1  ;;  %v6346_v39 = vpop.xlane.xlu0 %6345 }
0x239f   : > { %11927 = vmatprep.subr.bf16.mxu1 %v13906_v8  ;;  %v6352_v7 = vsub.f32 %v6284_v63, %v6346_v39 }
0x23a1   : > { %v6358_v30 = vmul.f32 1.442695, %v6352_v7 }
0x23a2   : > { %v6349_v50 = vpop.xlane.xlu0 %6348 }
0x23a3   : > { %v6353_v61 = vsub.f32 %v6333_v24, %v6349_v50 }
0x23a5   : > { %v12953_v5 = vpop.eup %12952  ;;  %v6360_v9 = vmul.f32 1.442695, %v6353_v61 }
0x23a6   : > { %v6362_v6 = vsel %vm1685_vm2, %v12953_v5, 0.0 }
0x23a7   : > { %v12955_v53 = vpop.eup %12954  ;;  %6363 = vadd.xlane.f32.xlu1 %v6362_v6  ;;  %12956 = vpow2.f32 %v6360_v9 }
0x23a8   : > { %v6365_v20 = vsel %vm1685_vm2, %v12955_v53, 0.0  ;;  %12958 = vpow2.f32 %v6358_v30 }
0x23a9   : > { %6366 = vadd.xlane.f32.xlu0 %v6365_v20 }
0x23b1   : > { %v12957_v38 = vpop.eup %12956 }
0x23b2   : > { %v12959_v15 = vpop.eup %12958  ;;  %v6371_v58 = vsel %vm1685_vm2, %v12957_v38, 0.0 }
0x23b3   : > { %v6368_v10 = vsel %vm1685_vm2, %v12959_v15, 0.0 }
0x23b8   : > { %6482 = vrot.lane.b32.xlu1 %v15475_v29, %s16492_s11 }
0x23bc   : > { %6530 = vrot.lane.b32.xlu1 %v15481_v56, %s16492_s11 }
0x23bf   : > { %6434 = vrot.lane.b32.xlu0 %v15471_v32, %s16492_s11  ;;  %s16493_s11 = smov 56  }
0x23de   : > { %6372 = vadd.xlane.f32.xlu0 %v6371_v58 }
0x23e0   : > { %6369 = vadd.xlane.f32.xlu1 %v6368_v10 }
0x23f1   : > { %6630 = vrot.lane.b32.xlu1 %v15471_v32, %s16388_s7 }
0x23f4   : > { %6580 = vrot.lane.b32.xlu0 %v15469_v33, %s16388_s7 }
0x23f5   : > { %6628 = vrot.lane.b32.xlu1 %v15471_v32, %s16390_s13 }
0x23f8   : > { %6578 = vrot.lane.b32.xlu0 %v15469_v33, %s16390_s13 }
0x23f9   : > { %6730 = vrot.lane.b32.xlu1 %v15481_v56, %s16388_s7 }
0x23fc   : > { %6680 = vrot.lane.b32.xlu0 %v15475_v29, %s16388_s7  ;;  %s16499_s7 = smov 24  }
0x23fd   : > { %6728 = vrot.lane.b32.xlu1 %v15481_v56, %s16390_s13 }
0x2400   : > { %6678 = vrot.lane.b32.xlu0 %v15475_v29, %s16390_s13  ;;  %s16500_s13 = sld [smem:[#allocation73_spill]] }
0x2434   : > { %v6364_v11 = vpop.xlane.xlu1 %6363 }
0x2435   : > { %12960 = vrcp.f32 %v6364_v11 }
0x2436   : > { %v6367_v12 = vpop.xlane.xlu0 %6366 }
0x2437   : > { %12962 = vrcp.f32 %v6367_v12 }
0x2438   : > { %v6483_v19 = vpop.permute.xlu1 %6482 }
0x2439   : > { %v6488_v28 = vsel %vm1932_vm4, %v6483_v19, 0 }
0x243a   : > { %v6435_v16 = vpop.permute.xlu0 %6434 }
0x243b   : > { %v6440_v17 = vsel %vm1932_vm4, %v6435_v16, 0 }
0x243c   : > { %11922 = vmatpush3.bf16.msra.mxu0 %v6440_v17  ;;  %v6531_v47 = vpop.permute.xlu1 %6530 }
0x243d   : > { %11933 = vmatprep.subr.bf16.mxu0 %v13906_v8  ;;  %v6536_v35 = vsel %vm1932_vm4, %v6531_v47, 0 }
0x243f   : > { %v12961_v22 = vpop.eup %12960 }
0x2440   : > { %v6378_v23 = vmul.f32 %v12961_v22, %v12953_v5 }
0x2441   : > { %v12963_v46 = vpop.eup %12962 }
0x2442   : > { %v6382_v26 = vpack.c.bf16 %v6378_v23, %v6378_v23  ;;  %v6379_v27 = vmul.f32 %v12963_v46, %v12955_v53 }
0x2444   : > { %11918 = vmatmul.mubr.msk.bf16.vlgmr.msra.gmra.mrb[156].mxu1 %vm1685_vm2, %v6382_v26  ;;  %v6383_v31 = vpack.c.bf16 %v6379_v27, %v6379_v27 }
0x2445   : > { %11928 = vmatpush3.bf16.msra.mxu1 %v6488_v28  ;;  %11929 = vmatprep.mubr.msk.bf16.mxu1 %vm13907_vm1, %v13906_v8 }
0x2446   : > { %11924 = vmatmul.mubr.msk.bf16.vlgmr.msra.gmra.mrb[148].mxu0 %vm1685_vm2, %v6383_v31  ;;  %11939 = vmatprep.subr.bf16.mxu1 %v13906_v8 }
0x2447   : > { %11934 = vmatpush3.bf16.msra.mxu0 %v6536_v35  ;;  %11935 = vmatprep.mubr.msk.bf16.mxu0 %vm13907_vm1, %v13906_v8 }
0x2448   : > { %11945 = vmatprep.subr.bf16.mxu0 %v13906_v8 }
0x246b   : > { %v6373_v40 = vpop.xlane.xlu0 %6372 }
0x246c   : > { %12964 = vrcp.f32 %v6373_v40 }
0x246d   : > { %v6370_v18 = vpop.xlane.xlu1 %6369 }
0x246e   : > { %12966 = vrcp.f32 %v6370_v18 }
0x246f   : > { %v6581_v59 = vpop.permute.xlu0 %6580 }
0x2470   : > { %v6586_v41 = vsel %vm1685_vm2, %v6581_v59, 0 }
0x2471   : > { %v6631_v48 = vpop.permute.xlu1 %6630 }
0x2472   : > { %v6636_v57 = vsel %vm1685_vm2, %v6631_v48, 0 }
0x2473   : > { %v6579_v14 = vpop.permute.xlu0 %6578 }
0x2475   : > { %v6629_v24 = vpop.permute.xlu1 %6628 }
0x2476   : > { %v12965_v52 = vpop.eup %12964 }
0x2477   : > { %v6381_v63 = vmul.f32 %v12965_v52, %v12957_v38  ;;  %v6681_v44 = vpop.permute.xlu0 %6680 }
0x2478   : > { %v12967_v54 = vpop.eup %12966  ;;  %v6686_v37 = vsel %vm1685_vm2, %v6681_v44, 0 }
0x2479   : > { %v6385_v13 = vpack.c.bf16 %v6381_v63, %v6381_v63  ;;  %v6380_v36 = vmul.f32 %v12967_v54, %v12959_v15  ;;  %v6731_v42 = vpop.permute.xlu1 %6730 }
0x247a   : > { %v6736_v62 = vsel %vm1685_vm2, %v6731_v42, 0 }
0x247b   : > { %11936 = vmatmul.mubr.msk.bf16.vlgmr.msra.gmra.mrb[152].mxu0 %vm1685_vm2, %v6385_v13  ;;  %v6384_v49 = vpack.c.bf16 %v6380_v36, %v6380_v36  ;;  %v6679_v25 = vpop.permute.xlu0 %6678 }
0x247c   : > { %11946 = vmatpush3.bf16.xpose.msra.mxu0 %v6636_v57  ;;  %11947 = vmatprep.mubr.msk.bf16.mxu0 %vm13907_vm1, %v13906_v8 }
0x247d   : > { %11930 = vmatmul.mubr.msk.bf16.vlgmr.msra.gmra.mrb[160].mxu1 %vm1685_vm2, %v6384_v49  ;;  %11957 = vmatprep.subr.bf16.mxu0 %v13906_v8  ;;  %v6729_v43 = vpop.permute.xlu1 %6728 }
0x247e   : > { %11940 = vmatpush3.bf16.xpose.msra.mxu1 %v6586_v41  ;;  %11941 = vmatprep.mubr.msk.bf16.mxu1 %vm13907_vm1, %v13906_v8 }
0x247f   : > { %11951 = vmatprep.subr.bf16.mxu1 %v13906_v8 }
0x2483   : > { %11948 = vmatmul.mubr.msk.bf16.vlgmr.msra.gmra.mrb[156].mxu0 %vm1685_vm2, %v6629_v24 }
0x2484   : > { %11958 = vmatpush3.bf16.xpose.msra.mxu0 %v6736_v62  ;;  %11959 = vmatprep.mubr.msk.bf16.mxu0 %vm13907_vm1, %v13906_v8 }
0x2485   : > { %11942 = vmatmul.mubr.msk.bf16.vlgmr.msra.gmra.mrb[164].mxu1 %vm1685_vm2, %v6579_v14  ;;  %11969 = vmatprep.subr.bf16.mxu0 %v13906_v8 }
0x2486   : > { %11952 = vmatpush3.bf16.xpose.msra.mxu1 %v6686_v37  ;;  %11953 = vmatprep.mubr.msk.bf16.mxu1 %vm13907_vm1, %v13906_v8 }
0x2487   : > { %11963 = vmatprep.subr.bf16.mxu1 %v13906_v8 }
0x248b   : > { %11960 = vmatmul.mubr.msk.bf16.vlgmr.msra.gmra.mrb[160].mxu0 %vm1685_vm2, %v6729_v43 }
0x248c   : > { %11971 = vmatprep.mubr.msk.bf16.mxu0 %vm13907_vm1, %v13906_v8 }
0x248d   : > { %11954 = vmatmul.mubr.msk.bf16.vlgmr.msra.gmra.mrb[168].mxu1 %vm1685_vm2, %v6679_v25 }
0x248e   : > { %11965 = vmatprep.mubr.msk.bf16.mxu1 %vm13907_vm1, %v13906_v8 }
0x2517   : > { %v15585_v0 = vpop.f32.mrb[156].mxu1 }
0x2518   : > { %v11919_v2 = vpop.f32.mrb[157].mxu1 }
0x2519   : > { %v6431_v45 = vpop.f32.mrb[158].mxu1  ;;  %v15587_v1 = vpop.f32.mrb[148].mxu0 }
0x251a   : > { %v11920_v5 = vpop.f32.mrb[159].mxu1  ;;  %v11925_v6 = vpop.f32.mrb[149].mxu0 }
0x251b   : > { %v6479_v53 = vpop.f32.mrb[150].mxu0 }
0x251c   : > { %v11926_v20 = vpop.f32.mrb[151].mxu0 }
0x254e   : > { %v15589_v39 = vpop.f32.mrb[152].mxu0 }
0x254f   : > { %v11937_v50 = vpop.f32.mrb[153].mxu0 }
0x2550   : > { %v15591_v61 = vpop.f32.mrb[160].mxu1  ;;  %v6575_v7 = vpop.f32.mrb[154].mxu0 }
0x2551   : > { %v11931_v9 = vpop.f32.mrb[161].mxu1  ;;  %v11938_v30 = vpop.f32.mrb[155].mxu0 }
0x2552   : > { %v6527_v38 = vpop.f32.mrb[162].mxu1 }
0x2553   : > { %v11932_v15 = vpop.f32.mrb[163].mxu1 }
0x2556   : > { %v6672_v58 = vpop.f32.mrb[156].mxu0 }
0x2557   : > { %v6673_v10 = vadd.f32 %v6672_v58, %v14688_v34  ;;  %v11949_v11 = vpop.f32.mrb[157].mxu0 }
0x2558   : > { %v6622_v12 = vpop.f32.mrb[164].mxu1  ;;  %v6675_v16 = vpop.f32.mrb[158].mxu0 }
0x2559   : > { %v6623_v17 = vadd.f32 %v6622_v12, %v14688_v34  ;;  %v11943_v19 = vpop.f32.mrb[165].mxu1  ;;  %v11950_v22 = vpop.f32.mrb[159].mxu0  ;;  %v6781_v23 = vsel %vm1685_vm2, %v6673_v10, -inf }
0x255a   : > { %v6625_v46 = vpop.f32.mrb[166].mxu1  ;;  %6782 = vmax.xlane.f32.xlu1 %v6781_v23 }
0x255b   : > { %v11944_v26 = vpop.f32.mrb[167].mxu1  ;;  %v6778_v27 = vsel %vm1685_vm2, %v6623_v17, -inf }
0x255c   : > { %6779 = vmax.xlane.f32.xlu0 %v6778_v27 }
0x255e   : > { %v6772_v47 = vpop.f32.mrb[160].mxu0 }
0x255f   : > { %v11961_v28 = vpop.f32.mrb[161].mxu0  ;;  %v6773_v59 = vadd.f32 %v6772_v47, %v14688_v34 }
0x2560   : > { %v6722_v31 = vpop.f32.mrb[168].mxu1  ;;  %v6775_v35 = vpop.f32.mrb[162].mxu0 }
0x2561   : > { %v6723_v40 = vadd.f32 %v6722_v31, %v14688_v34  ;;  %v11955_v18 = vpop.f32.mrb[169].mxu1  ;;  %v11962_v48 = vpop.f32.mrb[163].mxu0  ;;  %v6787_v13 = vsel %vm1685_vm2, %v6773_v59, -inf }
0x2562   : > { %v6725_v52 = vpop.f32.mrb[170].mxu1 }
0x2563   : > { %v11956_v63 = vpop.f32.mrb[171].mxu1  ;;  %v6784_v54 = vsel %vm1685_vm2, %v6723_v40, -inf }
0x2564   : > { %6785 = vmax.xlane.f32.xlu0 %v6784_v54 }
0x2568   : > { %6788 = vmax.xlane.f32.xlu0 %v6787_v13 }
0x256b   : > { %6826 = vrot.lane.b32.xlu1 %v15469_v33, %s16493_s11 }
0x25e7   : > { %v6783_v36 = vpop.xlane.xlu1 %6782 }
0x25e8   : > { %v6791_v24 = vsub.f32 %v6673_v10, %v6783_v36 }
0x25e9   : > { %v6780_v57 = vpop.xlane.xlu0 %6779 }
0x25ea   : > { %v6796_v49 = vmul.f32 1.442695, %v6791_v24  ;;  %v6790_v14 = vsub.f32 %v6623_v17, %v6780_v57 }
0x25eb   : > { %v6827_v41 = vpop.permute.xlu1 %6826 }
0x25ec   : > { %12968 = vpow2.f32 %v6796_v49  ;;  %v6794_v42 = vmul.f32 1.442695, %v6790_v14  ;;  %v6832_v44 = vsel %vm1932_vm4, %v6827_v41, 0 }
0x25ed   : > { %11964 = vmatpush3.bf16.msra.mxu1 %v6832_v44 }
0x25ee   : > { %12970 = vpow2.f32 %v6794_v42  ;;  %11975 = vmatprep.subr.bf16.mxu1 %v13906_v8 }
0x25f1   : > { %v6786_v2 = vpop.xlane.xlu0 %6785 }
0x25f2   : > { %v6792_v53 = vsub.f32 %v6723_v40, %v6786_v2 }
0x25f4   : > { %v6798_v20 = vmul.f32 1.442695, %v6792_v53 }
0x25f5   : > { %v6789_v45 = vpop.xlane.xlu0 %6788 }
0x25f6   : > { %v12969_v62 = vpop.eup %12968  ;;  %v6793_v5 = vsub.f32 %v6773_v59, %v6789_v45 }
0x25f7   : > { %v6805_v37 = vsel %vm1685_vm2, %v12969_v62, 0.0 }
0x25f8   : > { %v12971_v43 = vpop.eup %12970  ;;  %6806 = vadd.xlane.f32.xlu0 %v6805_v37  ;;  %v6800_v6 = vmul.f32 1.442695, %v6793_v5 }
0x25f9   : > { %v6802_v25 = vsel %vm1685_vm2, %v12971_v43, 0.0 }
0x25fa   : > { %6803 = vadd.xlane.f32.xlu1 %v6802_v25  ;;  %12972 = vpow2.f32 %v6800_v6 }
0x25fb   : > { %12974 = vpow2.f32 %v6798_v20 }
0x2604   : > { %v12973_v50 = vpop.eup %12972 }
0x2605   : > { %v6811_v7 = vsel %vm1685_vm2, %v12973_v50, 0.0  ;;  %v12975_v9 = vpop.eup %12974 }
0x2606   : > { %v6808_v30 = vsel %vm1685_vm2, %v12975_v9, 0.0 }
0x260b   : > { %6922 = vrot.lane.b32.xlu1 %v15475_v29, %s16493_s11 }
0x260e   : > { %6874 = vrot.lane.b32.xlu0 %v15471_v32, %s16493_s11 }
0x260f   : > { %6970 = vrot.lane.b32.xlu1 %v15481_v56, %s16493_s11  ;;  %s16494_s11 = smov 48  }
0x262d   : > { %6812 = vadd.xlane.f32.xlu0 %v6811_v7 }
0x2633   : > { %6809 = vadd.xlane.f32.xlu1 %v6808_v30 }
0x2643   : > { %7020 = vrot.lane.b32.xlu0 %v15469_v33, %s16384_s28 }
0x2644   : > { %7070 = vrot.lane.b32.xlu1 %v15471_v32, %s16384_s28 }
0x2647   : > { %7018 = vrot.lane.b32.xlu0 %v15469_v33, %s16386_s9 }
0x2648   : > { %7068 = vrot.lane.b32.xlu1 %v15471_v32, %s16386_s9 }
0x264b   : > { %7120 = vrot.lane.b32.xlu0 %v15475_v29, %s16384_s28 }
0x264c   : > { %7170 = vrot.lane.b32.xlu1 %v15481_v56, %s16384_s28  ;;  %s16496_s28 = smov 8  }
0x264f   : > { %7118 = vrot.lane.b32.xlu0 %v15475_v29, %s16386_s9 }
0x2650   : > { %7168 = vrot.lane.b32.xlu1 %v15481_v56, %s16386_s9  ;;  %s16497_s9 = smov 16  }
0x2685   : > { %v6807_v38 = vpop.xlane.xlu0 %6806 }
0x2686   : > { %12976 = vrcp.f32 %v6807_v38 }
0x2687   : > { %v6804_v15 = vpop.xlane.xlu1 %6803 }
0x2688   : > { %12978 = vrcp.f32 %v6804_v15 }
0x2689   : > { %v6875_v58 = vpop.permute.xlu0 %6874 }
0x268a   : > { %v6880_v10 = vsel %vm1932_vm4, %v6875_v58, 0 }
0x268b   : > { %11970 = vmatpush3.bf16.msra.mxu0 %v6880_v10  ;;  %v6923_v11 = vpop.permute.xlu1 %6922 }
0x268c   : > { %11981 = vmatprep.subr.bf16.mxu0 %v13906_v8  ;;  %v6928_v27 = vsel %vm1932_vm4, %v6923_v11, 0 }
0x268f   : > { %v6971_v19 = vpop.permute.xlu1 %6970 }
0x2690   : > { %v12977_v12 = vpop.eup %12976  ;;  %v6976_v46 = vsel %vm1932_vm4, %v6971_v19, 0 }
0x2691   : > { %v6819_v16 = vmul.f32 %v12977_v12, %v12969_v62 }
0x2692   : > { %v12979_v17 = vpop.eup %12978 }
0x2693   : > { %v6823_v22 = vpack.c.bf16 %v6819_v16, %v6819_v16  ;;  %v6818_v23 = vmul.f32 %v12979_v17, %v12971_v43 }
0x2695   : > { %11972 = vmatmul.mubr.msk.bf16.vlgmr.msra.gmra.mrb[164].mxu0 %vm1685_vm2, %v6823_v22  ;;  %v6822_v26 = vpack.c.bf16 %v6818_v23, %v6818_v23 }
0x2696   : > { %11982 = vmatpush3.bf16.msra.mxu0 %v6976_v46  ;;  %11983 = vmatprep.mubr.msk.bf16.mxu0 %vm13907_vm1, %v13906_v8 }
0x2697   : > { %11966 = vmatmul.mubr.msk.bf16.vlgmr.msra.gmra.mrb[172].mxu1 %vm1685_vm2, %v6822_v26  ;;  %11993 = vmatprep.subr.bf16.mxu0 %v13906_v8 }
0x2698   : > { %11976 = vmatpush3.bf16.msra.mxu1 %v6928_v27  ;;  %11977 = vmatprep.mubr.msk.bf16.mxu1 %vm13907_vm1, %v13906_v8 }
0x2699   : > { %11987 = vmatprep.subr.bf16.mxu1 %v13906_v8 }
0x26ba   : > { %v6813_v47 = vpop.xlane.xlu0 %6812 }
0x26bb   : > { %12980 = vrcp.f32 %v6813_v47 }
0x26be   : > { %v7021_v48 = vpop.permute.xlu0 %7020 }
0x26bf   : > { %v7026_v57 = vsel %vm1685_vm2, %v7021_v48, 0 }
0x26c0   : > { %v6810_v28 = vpop.xlane.xlu1 %6809 }
0x26c1   : > { %12982 = vrcp.f32 %v6810_v28 }
0x26c2   : > { %v7019_v36 = vpop.permute.xlu0 %7018 }
0x26c4   : > { %v7071_v31 = vpop.permute.xlu1 %7070 }
0x26c5   : > { %v12981_v35 = vpop.eup %12980  ;;  %v7076_v59 = vsel %vm1685_vm2, %v7071_v31, 0 }
0x26c6   : > { %v6821_v40 = vmul.f32 %v12981_v35, %v12973_v50  ;;  %v7121_v14 = vpop.permute.xlu0 %7120 }
0x26c7   : > { %v7126_v41 = vsel %vm1685_vm2, %v7121_v14, 0 }
0x26c8   : > { %v6825_v18 = vpack.c.bf16 %v6821_v40, %v6821_v40  ;;  %v7069_v52 = vpop.permute.xlu1 %7068 }
0x26ca   : > { %11984 = vmatmul.mubr.msk.bf16.vlgmr.msra.gmra.mrb[168].mxu0 %vm1685_vm2, %v6825_v18  ;;  %v7119_v44 = vpop.permute.xlu0 %7118 }
0x26cb   : > { %v12983_v63 = vpop.eup %12982  ;;  %11994 = vmatpush3.bf16.xpose.msra.mxu0 %v7076_v59  ;;  %11995 = vmatprep.mubr.msk.bf16.mxu0 %vm13907_vm1, %v13906_v8 }
0x26cc   : > { %v6820_v54 = vmul.f32 %v12983_v63, %v12975_v9  ;;  %12005 = vmatprep.subr.bf16.mxu0 %v13906_v8  ;;  %v7171_v24 = vpop.permute.xlu1 %7170 }
0x26cd   : > { %v7176_v49 = vsel %vm1685_vm2, %v7171_v24, 0 }
0x26ce   : > { %v6824_v13 = vpack.c.bf16 %v6820_v54, %v6820_v54 }
0x26d0   : > { %11978 = vmatmul.mubr.msk.bf16.vlgmr.msra.gmra.mrb[176].mxu1 %vm1685_vm2, %v6824_v13  ;;  %v7169_v42 = vpop.permute.xlu1 %7168 }
0x26d1   : > { %11988 = vmatpush3.bf16.xpose.msra.mxu1 %v7026_v57  ;;  %11989 = vmatprep.mubr.msk.bf16.mxu1 %vm13907_vm1, %v13906_v8 }
0x26d2   : > { %11996 = vmatmul.mubr.msk.bf16.vlgmr.msra.gmra.mrb[172].mxu0 %vm1685_vm2, %v7069_v52  ;;  %11999 = vmatprep.subr.bf16.mxu1 %v13906_v8 }
0x26d3   : > { %12006 = vmatpush3.bf16.xpose.msra.mxu0 %v7176_v49  ;;  %12007 = vmatprep.mubr.msk.bf16.mxu0 %vm13907_vm1, %v13906_v8 }
0x26d4   : > { %12017 = vmatprep.subr.bf16.mxu0 %v13906_v8 }
0x26d8   : > { %11990 = vmatmul.mubr.msk.bf16.vlgmr.msra.gmra.mrb[180].mxu1 %vm1685_vm2, %v7019_v36 }
0x26d9   : > { %12000 = vmatpush3.bf16.xpose.msra.mxu1 %v7126_v41  ;;  %12001 = vmatprep.mubr.msk.bf16.mxu1 %vm13907_vm1, %v13906_v8 }
0x26da   : > { %12008 = vmatmul.mubr.msk.bf16.vlgmr.msra.gmra.mrb[176].mxu0 %vm1685_vm2, %v7169_v42  ;;  %12011 = vmatprep.subr.bf16.mxu1 %v13906_v8 }
0x26db   : > { %12019 = vmatprep.mubr.msk.bf16.mxu0 %vm13907_vm1, %v13906_v8 }
0x26e0   : > { %12002 = vmatmul.mubr.msk.bf16.vlgmr.msra.gmra.mrb[184].mxu1 %vm1685_vm2, %v7119_v44 }
0x26e1   : > { %12013 = vmatprep.mubr.msk.bf16.mxu1 %vm13907_vm1, %v13906_v8 }
0x2768   : > { %v15669_v62 = vpop.f32.mrb[164].mxu0 }
0x2769   : > { %v11973_v37 = vpop.f32.mrb[165].mxu0 }
0x276a   : > { %v15671_v43 = vpop.f32.mrb[172].mxu1  ;;  %v6919_v25 = vpop.f32.mrb[166].mxu0 }
0x276b   : > { %v12708_v2 = vpack.i.bf16 %v15669_v62, %v15671_v43  ;;  %v11967_v45 = vpop.f32.mrb[173].mxu1  ;;  %v11974_v5 = vpop.f32.mrb[167].mxu0 }
0x276c   : > { %v6871_v6 = vpop.f32.mrb[174].mxu1 }
0x276d   : > { %v11968_v53 = vpop.f32.mrb[175].mxu1 }
0x279d   : > { %v15675_v20 = vpop.f32.mrb[168].mxu0 }
0x279e   : > { %v11985_v50 = vpop.f32.mrb[169].mxu0 }
0x279f   : > { %v7015_v7 = vpop.f32.mrb[170].mxu0 }
0x27a0   : > { %v11986_v9 = vpop.f32.mrb[171].mxu0 }
0x27a3   : > { %v15677_v30 = vpop.f32.mrb[176].mxu1 }
0x27a4   : > { %v12713_v38 = vpack.i.bf16 %v15675_v20, %v15677_v30  ;;  %v11979_v15 = vpop.f32.mrb[177].mxu1 }
0x27a5   : > { %v6967_v58 = vpop.f32.mrb[178].mxu1  ;;  %v7112_v10 = vpop.f32.mrb[172].mxu0 }
0x27a6   : > { %v7113_v11 = vadd.f32 %v7112_v10, %v14688_v34  ;;  %v11980_v12 = vpop.f32.mrb[179].mxu1  ;;  %v11997_v16 = vpop.f32.mrb[173].mxu0 }
0x27a7   : > { %v7115_v17 = vpop.f32.mrb[174].mxu0 }
0x27a8   : > { %v11998_v19 = vpop.f32.mrb[175].mxu0  ;;  %v7221_v22 = vsel %vm1685_vm2, %v7113_v11, -inf }
0x27a9   : > { %7222 = vmax.xlane.f32.xlu1 %v7221_v22 }
0x27ab   : > { %v7062_v23 = vpop.f32.mrb[180].mxu1 }
0x27ac   : > { %v7063_v46 = vadd.f32 %v7062_v23, %v14688_v34  ;;  %v11991_v26 = vpop.f32.mrb[181].mxu1 }
0x27ad   : > { %v7065_v27 = vpop.f32.mrb[182].mxu1  ;;  %v7212_v47 = vpop.f32.mrb[176].mxu0 }
0x27ae   : > { %v11992_v28 = vpop.f32.mrb[183].mxu1  ;;  %v12009_v31 = vpop.f32.mrb[177].mxu0  ;;  %v7218_v35 = vsel %vm1685_vm2, %v7063_v46, -inf  ;;  %v7213_v54 = vadd.f32 %v7212_v47, %v14688_v34 }
0x27af   : > { %7219 = vmax.xlane.f32.xlu0 %v7218_v35  ;;  %v7215_v40 = vpop.f32.mrb[178].mxu0 }
0x27b0   : > { %v12010_v18 = vpop.f32.mrb[179].mxu0  ;;  %v7227_v24 = vsel %vm1685_vm2, %v7213_v54, -inf }
0x27b3   : > { %v7162_v48 = vpop.f32.mrb[184].mxu1 }
0x27b4   : > { %v7163_v52 = vadd.f32 %v7162_v48, %v14688_v34  ;;  %v12003_v59 = vpop.f32.mrb[185].mxu1 }
0x27b5   : > { %v7165_v63 = vpop.f32.mrb[186].mxu1 }
0x27b6   : > { %v12004_v13 = vpop.f32.mrb[187].mxu1  ;;  %v7224_v36 = vsel %vm1685_vm2, %v7163_v52, -inf }
0x27b7   : > { %7225 = vmax.xlane.f32.xlu0 %v7224_v36 }
0x27ba   : > { %7266 = vrot.lane.b32.xlu1 %v15469_v33, %s16494_s11 }
0x27bb   : > { %7228 = vmax.xlane.f32.xlu0 %v7227_v24 }
0x2836   : > { %v7223_v57 = vpop.xlane.xlu1 %7222 }
0x2837   : > { %v7231_v49 = vsub.f32 %v7113_v11, %v7223_v57 }
0x2839   : > { %v7236_v14 = vmul.f32 1.442695, %v7231_v49 }
0x283a   : > { %v7267_v41 = vpop.permute.xlu1 %7266 }
0x283b   : > { %12984 = vpow2.f32 %v7236_v14  ;;  %v7272_v42 = vsel %vm1932_vm4, %v7267_v41, 0 }
0x283c   : > { %v7220_v44 = vpop.xlane.xlu0 %7219  ;;  %12012 = vmatpush3.bf16.msra.mxu1 %v7272_v42 }
0x283d   : > { %v7230_v37 = vsub.f32 %v7063_v46, %v7220_v44  ;;  %12023 = vmatprep.subr.bf16.mxu1 %v13906_v8 }
0x283f   : > { %v7234_v25 = vmul.f32 1.442695, %v7230_v37 }
0x2841   : > { %12986 = vpow2.f32 %v7234_v25 }
0x2844   : > { %v7226_v50 = vpop.xlane.xlu0 %7225 }
0x2845   : > { %v12985_v45 = vpop.eup %12984  ;;  %v7232_v58 = vsub.f32 %v7163_v52, %v7226_v50 }
0x2846   : > { %v7245_v5 = vsel %vm1685_vm2, %v12985_v45, 0.0 }
0x2847   : > { %7246 = vadd.xlane.f32.xlu0 %v7245_v5  ;;  %v7238_v10 = vmul.f32 1.442695, %v7232_v58 }
0x2848   : > { %v7229_v7 = vpop.xlane.xlu0 %7228 }
0x2849   : > { %v7233_v9 = vsub.f32 %v7213_v54, %v7229_v7 }
0x284b   : > { %v12987_v6 = vpop.eup %12986  ;;  %v7240_v15 = vmul.f32 1.442695, %v7233_v9 }
0x284c   : > { %v7242_v53 = vsel %vm1685_vm2, %v12987_v6, 0.0 }
0x284d   : > { %7243 = vadd.xlane.f32.xlu1 %v7242_v53  ;;  %12988 = vpow2.f32 %v7240_v15 }
0x284e   : > { %12990 = vpow2.f32 %v7238_v10 }
0x2857   : > { %v12989_v11 = vpop.eup %12988 }
0x2858   : > { %v7251_v12 = vsel %vm1685_vm2, %v12989_v11, 0.0  ;;  %v12991_v16 = vpop.eup %12990 }
0x2859   : > { %v7248_v17 = vsel %vm1685_vm2, %v12991_v16, 0.0 }
0x285d   : > { %7314 = vrot.lane.b32.xlu0 %v15471_v32, %s16494_s11 }
0x285e   : > { %7362 = vrot.lane.b32.xlu1 %v15475_v29, %s16494_s11 }
0x2862   : > { %7410 = vrot.lane.b32.xlu1 %v15481_v56, %s16494_s11  ;;  %s16495_s11 = smov 40  }
0x287c   : > { %7252 = vadd.xlane.f32.xlu0 %v7251_v12 }
0x2886   : > { %7249 = vadd.xlane.f32.xlu1 %v7248_v17 }
0x2892   : > { %7460 = vrot.lane.b32.xlu0 %v15469_v33, %s16487_s5 }
0x2896   : > { %7458 = vrot.lane.b32.xlu0 %v15469_v33, %s16486_s2 }
0x2897   : > { %7510 = vrot.lane.b32.xlu1 %v15471_v32, %s16487_s5 }
0x289a   : > { %7560 = vrot.lane.b32.xlu0 %v15475_v29, %s16487_s5 }
0x289b   : > { %7508 = vrot.lane.b32.xlu1 %v15471_v32, %s16486_s2 }
0x289e   : > { %7558 = vrot.lane.b32.xlu0 %v15475_v29, %s16486_s2 }
0x289f   : > { %7610 = vrot.lane.b32.xlu1 %v15481_v56, %s16487_s5 }
0x28a3   : > { %7608 = vrot.lane.b32.xlu1 %v15481_v56, %s16486_s2 }
0x28d4   : > { %v7247_v19 = vpop.xlane.xlu0 %7246 }
0x28d5   : > { %12992 = vrcp.f32 %v7247_v19 }
0x28d8   : > { %v7315_v22 = vpop.permute.xlu0 %7314 }
0x28d9   : > { %v7320_v23 = vsel %vm1932_vm4, %v7315_v22, 0 }
0x28da   : > { %12018 = vmatpush3.bf16.msra.mxu0 %v7320_v23  ;;  %v7244_v46 = vpop.xlane.xlu1 %7243 }
0x28db   : > { %12994 = vrcp.f32 %v7244_v46  ;;  %12029 = vmatprep.subr.bf16.mxu0 %v13906_v8 }
0x28de   : > { %v7363_v26 = vpop.permute.xlu1 %7362 }
0x28df   : > { %v12993_v27 = vpop.eup %12992  ;;  %v7368_v52 = vsel %vm1932_vm4, %v7363_v26, 0 }
0x28e0   : > { %v7259_v47 = vmul.f32 %v12993_v27, %v12985_v45 }
0x28e2   : > { %v7411_v28 = vpop.permute.xlu1 %7410  ;;  %v7263_v31 = vpack.c.bf16 %v7259_v47, %v7259_v47 }
0x28e3   : > { %v7416_v35 = vsel %vm1932_vm4, %v7411_v28, 0 }
0x28e4   : > { %12020 = vmatmul.mubr.msk.bf16.vlgmr.msra.gmra.mrb[180].mxu0 %vm1685_vm2, %v7263_v31 }
0x28e5   : > { %v12995_v40 = vpop.eup %12994  ;;  %12030 = vmatpush3.bf16.msra.mxu0 %v7416_v35  ;;  %12031 = vmatprep.mubr.msk.bf16.mxu0 %vm13907_vm1, %v13906_v8 }
0x28e6   : > { %v7258_v18 = vmul.f32 %v12995_v40, %v12987_v6  ;;  %12041 = vmatprep.subr.bf16.mxu0 %v13906_v8 }
0x28e8   : > { %v7262_v48 = vpack.c.bf16 %v7258_v18, %v7258_v18 }
0x28ea   : > { %12014 = vmatmul.mubr.msk.bf16.vlgmr.msra.gmra.mrb[188].mxu1 %vm1685_vm2, %v7262_v48 }
0x28eb   : > { %12024 = vmatpush3.bf16.msra.mxu1 %v7368_v52  ;;  %12025 = vmatprep.mubr.msk.bf16.mxu1 %vm13907_vm1, %v13906_v8 }
0x28ec   : > { %12035 = vmatprep.subr.bf16.mxu1 %v13906_v8 }
0x2909   : > { %v7253_v59 = vpop.xlane.xlu0 %7252 }
0x290a   : > { %12996 = vrcp.f32 %v7253_v59 }
0x290d   : > { %v7461_v14 = vpop.permute.xlu0 %7460 }
0x290e   : > { %v7466_v5 = vsel %vm1685_vm2, %v7461_v14, 0 }
0x2911   : > { %v7459_v45 = vpop.permute.xlu0 %7458 }
0x2913   : > { %v7250_v63 = vpop.xlane.xlu1 %7249 }
0x2914   : > { %v12997_v54 = vpop.eup %12996  ;;  %12998 = vrcp.f32 %v7250_v63 }
0x2915   : > { %v7261_v13 = vmul.f32 %v12997_v54, %v12989_v11  ;;  %v7561_v6 = vpop.permute.xlu0 %7560 }
0x2916   : > { %v7566_v50 = vsel %vm1685_vm2, %v7561_v6, 0 }
0x2917   : > { %v7511_v36 = vpop.permute.xlu1 %7510  ;;  %v7265_v24 = vpack.c.bf16 %v7261_v13, %v7261_v13 }
0x2918   : > { %v7516_v57 = vsel %vm1685_vm2, %v7511_v36, 0 }
0x2919   : > { %12032 = vmatmul.mubr.msk.bf16.vlgmr.msra.gmra.mrb[184].mxu0 %vm1685_vm2, %v7265_v24  ;;  %v7559_v7 = vpop.permute.xlu0 %7558 }
0x291a   : > { %12042 = vmatpush3.bf16.xpose.msra.mxu0 %v7516_v57  ;;  %12043 = vmatprep.mubr.msk.bf16.mxu0 %vm13907_vm1, %v13906_v8 }
0x291b   : > { %v7509_v49 = vpop.permute.xlu1 %7508  ;;  %12053 = vmatprep.subr.bf16.mxu0 %v13906_v8 }
0x291e   : > { %v12999_v41 = vpop.eup %12998 }
0x291f   : > { %v7611_v42 = vpop.permute.xlu1 %7610  ;;  %v7260_v44 = vmul.f32 %v12999_v41, %v12991_v16 }
0x2920   : > { %v7616_v37 = vsel %vm1685_vm2, %v7611_v42, 0 }
0x2921   : > { %12044 = vmatmul.mubr.msk.bf16.vlgmr.msra.gmra.mrb[188].mxu0 %vm1685_vm2, %v7509_v49  ;;  %v7264_v25 = vpack.c.bf16 %v7260_v44, %v7260_v44 }
0x2922   : > { %12054 = vmatpush3.bf16.xpose.msra.mxu0 %v7616_v37  ;;  %12055 = vmatprep.mubr.msk.bf16.mxu0 %vm13907_vm1, %v13906_v8 }
0x2923   : > { %12026 = vmatmul.mubr.msk.bf16.vlgmr.msra.gmra.mrb[192].mxu1 %vm1685_vm2, %v7264_v25  ;;  %12065 = vmatprep.subr.bf16.mxu0 %v13906_v8  ;;  %v7609_v53 = vpop.permute.xlu1 %7608 }
0x2924   : > { %12036 = vmatpush3.bf16.xpose.msra.mxu1 %v7466_v5  ;;  %12037 = vmatprep.mubr.msk.bf16.mxu1 %vm13907_vm1, %v13906_v8 }
0x2925   : > { %12047 = vmatprep.subr.bf16.mxu1 %v13906_v8 }
0x2929   : > { %12056 = vmatmul.mubr.msk.bf16.vlgmr.msra.gmra.mrb[192].mxu0 %vm1685_vm2, %v7609_v53 }
0x292a   : > { %12067 = vmatprep.mubr.msk.bf16.mxu0 %vm13907_vm1, %v13906_v8 }
0x292b   : > { %12038 = vmatmul.mubr.msk.bf16.vlgmr.msra.gmra.mrb[196].mxu1 %vm1685_vm2, %v7459_v45 }
0x292c   : > { %12048 = vmatpush3.bf16.xpose.msra.mxu1 %v7566_v50  ;;  %12049 = vmatprep.mubr.msk.bf16.mxu1 %vm13907_vm1, %v13906_v8 }
0x292d   : > { %12059 = vmatprep.subr.bf16.mxu1 %v13906_v8 }
0x2933   : > { %12050 = vmatmul.mubr.msk.bf16.vlgmr.msra.gmra.mrb[200].mxu1 %vm1685_vm2, %v7559_v7 }
0x2934   : > { %12061 = vmatprep.mubr.msk.bf16.mxu1 %vm13907_vm1, %v13906_v8 }
0x29b7   : > { %v15757_v9 = vpop.f32.mrb[180].mxu0 }
0x29b8   : > { %v12021_v15 = vpop.f32.mrb[181].mxu0 }
0x29b9   : > { %v7359_v58 = vpop.f32.mrb[182].mxu0 }
0x29ba   : > { %v12022_v10 = vpop.f32.mrb[183].mxu0 }
0x29bd   : > { %v15759_v11 = vpop.f32.mrb[188].mxu1 }
0x29be   : > { %v12718_v12 = vpack.i.bf16 %v15757_v9, %v15759_v11  ;;  %v12015_v16 = vpop.f32.mrb[189].mxu1 }
0x29bf   : > { %v7311_v17 = vpop.f32.mrb[190].mxu1 }
0x29c0   : > { %v12016_v19 = vpop.f32.mrb[191].mxu1 }
0x29ec   : > { %v15763_v22 = vpop.f32.mrb[184].mxu0 }
0x29ed   : > { %v12033_v23 = vpop.f32.mrb[185].mxu0 }
0x29ee   : > { %v7455_v46 = vpop.f32.mrb[186].mxu0 }
0x29ef   : > { %v12034_v26 = vpop.f32.mrb[187].mxu0 }
0x29f4   : > { %v7552_v27 = vpop.f32.mrb[188].mxu0 }
0x29f5   : > { %v7553_v47 = vadd.f32 %v7552_v27, %v14688_v34  ;;  %v12045_v28 = vpop.f32.mrb[189].mxu0 }
0x29f6   : > { %v15766_v31 = vpop.f32.mrb[192].mxu1  ;;  %v7555_v35 = vpop.f32.mrb[190].mxu0 }
0x29f7   : > { %v12723_v40 = vpack.i.bf16 %v15763_v22, %v15766_v31  ;;  %v12027_v18 = vpop.f32.mrb[193].mxu1  ;;  %v12046_v48 = vpop.f32.mrb[191].mxu0  ;;  %v7661_v52 = vsel %vm1685_vm2, %v7553_v47, -inf }
0x29f8   : > { %v7407_v59 = vpop.f32.mrb[194].mxu1  ;;  %7662 = vmax.xlane.f32.xlu1 %v7661_v52 }
0x29f9   : > { %v12028_v63 = vpop.f32.mrb[195].mxu1 }
0x29fc   : > { %v7652_v54 = vpop.f32.mrb[192].mxu0 }
0x29fd   : > { %v12057_v13 = vpop.f32.mrb[193].mxu0  ;;  %v7653_v6 = vadd.f32 %v7652_v54, %v14688_v34 }
0x29fe   : > { %v7502_v36 = vpop.f32.mrb[196].mxu1  ;;  %v7655_v24 = vpop.f32.mrb[194].mxu0 }
0x29ff   : > { %v7503_v57 = vadd.f32 %v7502_v36, %v14688_v34  ;;  %v12039_v49 = vpop.f32.mrb[197].mxu1  ;;  %v12058_v14 = vpop.f32.mrb[195].mxu0  ;;  %v7667_v7 = vsel %vm1685_vm2, %v7653_v6, -inf }
0x2a00   : > { %v7505_v41 = vpop.f32.mrb[198].mxu1 }
0x2a01   : > { %v12040_v42 = vpop.f32.mrb[199].mxu1  ;;  %v7658_v44 = vsel %vm1685_vm2, %v7503_v57, -inf }
0x2a02   : > { %7659 = vmax.xlane.f32.xlu0 %v7658_v44 }
0x2a06   : > { %v7602_v37 = vpop.f32.mrb[200].mxu1 }
0x2a07   : > { %v7603_v25 = vadd.f32 %v7602_v37, %v14688_v34  ;;  %v12051_v45 = vpop.f32.mrb[201].mxu1 }
0x2a08   : > { %v7605_v5 = vpop.f32.mrb[202].mxu1 }
0x2a09   : > { %v12052_v53 = vpop.f32.mrb[203].mxu1  ;;  %7706 = vrot.lane.b32.xlu1 %v15469_v33, %s16495_s11  ;;  %v7664_v50 = vsel %vm1685_vm2, %v7603_v25, -inf }
0x2a0a   : > { %7665 = vmax.xlane.f32.xlu0 %v7664_v50 }
0x2a0e   : > { %7668 = vmax.xlane.f32.xlu0 %v7667_v7 }
0x2a85   : > { %v7663_v15 = vpop.xlane.xlu1 %7662 }
0x2a86   : > { %v7671_v58 = vsub.f32 %v7553_v47, %v7663_v15 }
0x2a88   : > { %v7676_v10 = vmul.f32 1.442695, %v7671_v58 }
0x2a89   : > { %v7707_v16 = vpop.permute.xlu1 %7706 }
0x2a8a   : > { %13000 = vpow2.f32 %v7676_v10  ;;  %v7712_v17 = vsel %vm1932_vm4, %v7707_v16, 0 }
0x2a8b   : > { %12060 = vmatpush3.bf16.msra.mxu1 %v7712_v17 }
0x2a8c   : > { %12071 = vmatprep.subr.bf16.mxu1 %v13906_v8 }
0x2a8f   : > { %v7660_v34 = vpop.xlane.xlu0 %7659 }
0x2a90   : > { %v7670_v19 = vsub.f32 %v7503_v57, %v7660_v34 }
0x2a92   : > { %v7674_v23 = vmul.f32 1.442695, %v7670_v19 }
0x2a94   : > { %v13001_v33 = vpop.eup %13000  ;;  %13002 = vpow2.f32 %v7674_v23 }
0x2a95   : > { %v7685_v46 = vsel %vm1685_vm2, %v13001_v33, 0.0 }
0x2a96   : > { %7686 = vadd.xlane.f32.xlu0 %v7685_v46 }
0x2a97   : > { %v7666_v26 = vpop.xlane.xlu0 %7665 }
0x2a98   : > { %v7672_v27 = vsub.f32 %v7603_v25, %v7666_v26 }
0x2a9a   : > { %v7678_v28 = vmul.f32 1.442695, %v7672_v27 }
0x2a9b   : > { %v7669_v47 = vpop.xlane.xlu0 %7668 }
0x2a9c   : > { %13004 = vpow2.f32 %v7678_v28  ;;  %v7673_v35 = vsub.f32 %v7653_v6, %v7669_v47 }
0x2a9e   : > { %v13003_v18 = vpop.eup %13002  ;;  %v7680_v48 = vmul.f32 1.442695, %v7673_v35 }
0x2a9f   : > { %v7682_v52 = vsel %vm1685_vm2, %v13003_v18, 0.0 }
0x2aa0   : > { %13006 = vpow2.f32 %v7680_v48  ;;  %7683 = vadd.xlane.f32.xlu1 %v7682_v52 }
0x2aa6   : > { %v13005_v59 = vpop.eup %13004 }
0x2aa7   : > { %v7688_v63 = vsel %vm1685_vm2, %v13005_v59, 0.0 }
0x2aa8   : > { %7689 = vadd.xlane.f32.xlu1 %v7688_v63 }
0x2aaa   : > { %v13007_v54 = vpop.eup %13006 }
0x2aab   : > { %v7691_v13 = vsel %vm1685_vm2, %v13007_v54, 0.0 }
0x2aac   : > { %7692 = vadd.xlane.f32.xlu0 %v7691_v13 }
0x2ab9   : > { %7802 = vrot.lane.b32.xlu1 %v15475_v29, %s16495_s11 }
0x2abd   : > { %7850 = vrot.lane.b32.xlu1 %v15481_v56, %s16495_s11 }
0x2ac1   : > { %12714 = vrot.lane.b32.xlu1 %v12713_v38, %s16496_s28 }
0x2ac2   : > { %7754 = vrot.lane.b32.xlu0 %v15471_v32, %s16495_s11  ;;  %s16498_s11 = sld [smem:[#allocation70_spill]] }
0x2ac5   : > { %12724 = vrot.lane.b32.xlu1 %v12723_v40, %s16497_s9 }
0x2ac6   : > { %12709 = vrot.lane.b32.xlu0 %v12708_v2, %s16496_s28 }
0x2ac8   : > { %v12786_v44 = vld [vmem:[%s16498_s11] sm:$0xff]   ;;  %v12787_v6 = vld [vmem:[%s16498_s11 + $0x8] sm:$0xff]   ;;  %s16502_s11 = sld [smem:[#allocation81_spill]] }
0x2aca   : > { %12719 = vrot.lane.b32.xlu0 %v12718_v12, %s16497_s9 }
0x2b23   : > { %v7687_v29 = vpop.xlane.xlu0 %7686 }
0x2b2d   : > { %v7684_v56 = vpop.xlane.xlu1 %7683 }
0x2b2e   : > { %13008 = vrcp.f32 %v7684_v56 }
0x2b2f   : > { %13010 = vrcp.f32 %v7687_v29 }
0x2b35   : > { %v7690_v32 = vpop.xlane.xlu1 %7689 }
0x2b36   : > { %13012 = vrcp.f32 %v7690_v32 }
0x2b38   : > { %v13009_v20 = vpop.eup %13008 }
0x2b39   : > { %v13011_v30 = vpop.eup %13010  ;;  %v7693_v38 = vpop.xlane.xlu0 %7692  ;;  %v7698_v31 = vmul.f32 %v13009_v20, %v13003_v18 }
0x2b3a   : > { %v7803_v22 = vpop.permute.xlu1 %7802  ;;  %13014 = vrcp.f32 %v7693_v38  ;;  %v7699_v62 = vmul.f32 %v13011_v30, %v13001_v33 }
0x2b3b   : > { %v7702_v40 = vpack.c.bf16 %v7698_v31, %v7698_v31  ;;  %v7808_v43 = vsel %vm1932_vm4, %v7803_v22, 0 }
0x2b3c   : > { %v7703_v36 = vpack.c.bf16 %v7699_v62, %v7699_v62 }
0x2b3d   : > { %v7755_v2 = vpop.permute.xlu0 %7754  ;;  %12062 = vmatmul.mubr.msk.bf16.vlgmr.msra.gmra.mrb[204].mxu1 %vm1685_vm2, %v7702_v40 }
0x2b3e   : > { %v7760_v9 = vsel %vm1932_vm4, %v7755_v2, 0  ;;  %12072 = vmatpush3.bf16.msra.mxu1 %v7808_v43  ;;  %12073 = vmatprep.mubr.msk.bf16.mxu1 %vm13907_vm1, %v13906_v8  ;;  %v7851_v11 = vpop.permute.xlu1 %7850 }
0x2b3f   : > { %12066 = vmatpush3.bf16.msra.mxu0 %v7760_v9  ;;  %v7856_v57 = vsel %vm1932_vm4, %v7851_v11, 0  ;;  %12083 = vmatprep.subr.bf16.mxu1 %v12786_v44 }
0x2b40   : > { %v13013_v12 = vpop.eup %13012  ;;  %12077 = vmatprep.subr.bf16.mxu0 %v13906_v8 }
0x2b41   : > { %v7700_v24 = vmul.f32 %v13013_v12, %v13005_v59  ;;  %v12710_v27 = vpop.permute.xlu0 %12709 }
0x2b42   : > { %12068 = vmatmul.mubr.msk.bf16.vlgmr.msra.gmra.mrb[196].mxu0 %vm1685_vm2, %v7703_v36  ;;  %v12712_v47 = vunpack.i.h.bf16 %v12710_v27  ;;  %v12711_v35 = vunpack.i.l.bf16 %v12710_v27  ;;  %v12715_v18 = vpop.permute.xlu1 %12714 }
0x2b43   : > { %12078 = vmatpush3.bf16.msra.mxu0 %v7856_v57  ;;  %v7704_v49 = vpack.c.bf16 %v7700_v24, %v7700_v24  ;;  %12079 = vmatprep.mubr.msk.bf16.mxu0 %vm13907_vm1, %v13906_v8  ;;  %v12717_v31 = vunpack.i.h.bf16 %v12715_v18  ;;  %v12716_v40 = vunpack.i.l.bf16 %v12715_v18 }
0x2b44   : > { %v13015_v14 = vpop.eup %13014  ;;  %v7947_v63 = vsel %vm1685_vm2, %v15587_v1, %v12712_v47 }
0x2b45   : > { %12074 = vmatmul.mubr.msk.bf16.vlgmr.msra.gmra.mrb[208].mxu1 %vm1685_vm2, %v7704_v49  ;;  %v7701_v41 = vmul.f32 %v13015_v14, %v13007_v54  ;;  %v12720_v28 = vpop.permute.xlu0 %12719  ;;  %v7946_v54 = vsel %vm1685_vm2, %v15585_v0, %v12711_v35  ;;  %v7949_v0 = vsel %vm1685_vm2, %v15589_v39, %v12717_v31  ;;  %v7948_v2 = vsel %vm1685_vm2, %v15591_v61, %v12716_v40  ;;  %v11046_v39 = vld [vmem:[#allocation31] ss:$0 sm:$0xff] }
0x2b46   : > { %12084 = vmatpush3.bf16.msra.mxu1 %v12786_v44  ;;  %v12722_v48 = vunpack.i.h.bf16 %v12720_v28  ;;  %v12721_v52 = vunpack.i.l.bf16 %v12720_v28  ;;  %v12725_v20 = vpop.permute.xlu1 %12724 }
0x2b47   : > { %v7705_v42 = vpack.c.bf16 %v7701_v41, %v7701_v41  ;;  %12085 = vmatprep.subr.bf16.mxu1 %v12787_v6  ;;  %v12727_v62 = vunpack.i.h.bf16 %v12725_v20  ;;  %v12726_v43 = vunpack.i.l.bf16 %v12725_v20 }
0x2b48   : > { %v7950_v56 = vsel %vm3492_vm5, %v7946_v54, %v12721_v52  ;;  %v7951_v32 = vsel %vm3492_vm5, %v7947_v63, %v12722_v48  ;;  %v12789_v63 = vld [vmem:[%s16500_s13 + $0x8] sm:$0xff]   ;;  %v12790_v54 = vld [vmem:[%s16501_s8] sm:$0xff]  }
0x2b49   : > { %v7952_v12 = vsel %vm3492_vm5, %v7948_v2, %v12726_v43  ;;  %v7953_v36 = vsel %vm3492_vm5, %v7949_v0, %v12727_v62  ;;  %12091 = vmatprep.subr.bf16.mxu0 %v12790_v54  ;;  %v11051_v0 = vld [vmem:[%s16502_s11] ss:$0 sm:$0xff]  ;;  %s16505_s11 = smov 120  }
0x2b4a   : > { %12080 = vmatmul.mubr.msk.bf16.vlgmr.msra.gmra.mrb[200].mxu0 %vm1685_vm2, %v7705_v42  ;;  %12086 = vmatpush3.bf16.msra.mxu1 %v12787_v6 }
0x2b4b   : > { %12092 = vmatpush3.bf16.msra.mxu0 %v12790_v54 }
0x2c10   : > { %v7748_v37 = vpop.f32.mrb[204].mxu1 }
0x2c11   : > { %v12063_v25 = vpop.f32.mrb[205].mxu1 }
0x2c12   : > { %v7751_v45 = vpop.f32.mrb[206].mxu1 }
0x2c13   : > { %v12064_v5 = vpop.f32.mrb[207].mxu1 }
0x2c15   : > { %v7796_v53 = vpop.f32.mrb[196].mxu0 }
0x2c16   : > { %v12728_v50 = vpack.i.bf16 %v7796_v53, %v7748_v37  ;;  %v12069_v7 = vpop.f32.mrb[197].mxu0 }
0x2c17   : > { %v7799_v15 = vpop.f32.mrb[198].mxu0 }
0x2c18   : > { %v12070_v58 = vpop.f32.mrb[199].mxu0  ;;  %12729 = vrot.lane.b32.xlu0 %v12728_v50, %s16499_s7  ;;  %v7844_v10 = vpop.f32.mrb[208].mxu1 }
0x2c19   : > { %v12075_v16 = vpop.f32.mrb[209].mxu1 }
0x2c1a   : > { %v7847_v17 = vpop.f32.mrb[210].mxu1 }
0x2c1b   : > { %v12076_v34 = vpop.f32.mrb[211].mxu1 }
0x2c1d   : > { %v7892_v19 = vpop.f32.mrb[200].mxu0 }
0x2c1e   : > { %v12733_v23 = vpack.i.bf16 %v7892_v19, %v7844_v10  ;;  %v12081_v33 = vpop.f32.mrb[201].mxu0 }
0x2c1f   : > { %v7895_v46 = vpop.f32.mrb[202].mxu0 }
0x2c20   : > { %12734 = vrot.lane.b32.xlu1 %v12733_v23, %s16499_s7  ;;  %v12082_v26 = vpop.f32.mrb[203].mxu0 }
0x2c8a   : > { %v12730_v59 = vpop.permute.xlu0 %12729 }
0x2c8b   : > { %v12732_v13 = vunpack.i.h.bf16 %v12730_v59  ;;  %v12731_v29 = vunpack.i.l.bf16 %v12730_v59  ;;  %v12788_v59 = vld [vmem:[%s16500_s13] sm:$0xff]   ;;  %s16503_s13 = sld [smem:[#allocation82_spill]] }
0x2c8c   : > { %12099 = vmatprep.subr.bf16.mxu1 %v12788_v59 }
0x2c8d   : > { %v7955_v30 = vsel %vm3497_vm6, %v7951_v32, %v12732_v13  ;;  %v7954_v38 = vsel %vm3497_vm6, %v7950_v56, %v12731_v29  ;;  %v12791_v13 = vld [vmem:[%s16501_s8 + $0x8] sm:$0xff]  }
0x2c8e   : > { %v7958_v22 = vpack.c.bf16 %v7955_v30, %v7954_v38  ;;  %12093 = vmatprep.subr.bf16.mxu0 %v12791_v13 }
0x2c8f   : > { %12094 = vmatpush3.bf16.msra.mxu0 %v12791_v13 }
0x2c90   : > { %12087 = vmatprep.mubr.msk.bf16.mxu1 %vm1622_vm0, %v7958_v22  ;;  %12107 = vmatprep.subr.bf16.mxu0 %v13906_v8 }
0x2c92   : > { %v12735_v1 = vpop.permute.xlu1 %12734 }
0x2c93   : > { %v12737_v9 = vunpack.i.h.bf16 %v12735_v1  ;;  %v12736_v11 = vunpack.i.l.bf16 %v12735_v1 }
0x2c95   : > { %v7956_v24 = vsel %vm3497_vm6, %v7952_v12, %v12736_v11  ;;  %v7957_v57 = vsel %vm3497_vm6, %v7953_v36, %v12737_v9 }
0x2c96   : > { %v7959_v49 = vpack.c.bf16 %v7957_v57, %v7956_v24  ;;  %v11052_v24 = vld [vmem:[%s16503_s13] ss:$0 sm:$0xff]  ;;  %s16504_s13 = smov 96  }
0x2c98   : > { %12088 = vmatmul.mubr.msk.bf16.vlgmr.msra.gmra.mrb[212].mxu1 %vm1622_vm0, %v7959_v49 }
0x2c99   : > { %12103 = vmatprep.mubr.msk.bf16.mxu1 %vm1622_vm0, %v15034_v3  ;;  %12100 = vmatpush3.bf16.msra.mxu1 %v12788_v59 }
0x2c9a   : > { %12101 = vmatprep.subr.bf16.mxu1 %v12789_v63 }
0x2c9d   : > { %12102 = vmatpush3.bf16.msra.mxu1 %v12789_v63 }
0x2c9e   : > { %12113 = vmatprep.subr.bf16.mxu1 %v13906_v8 }
0x2ca0   : > { %12104 = vmatmul.mubr.msk.bf16.vlgmr.msra.gmra.mrb[216].mxu1 %vm1622_vm0, %v15038_v21 }
0x2ca1   : > { %12115 = vmatprep.mubr.msk.bf16.mxu1 %vm13907_vm1, %v13906_v8 }
0x2d6b   : > { %v12089_v14 = vpop.f32.mrb[212].mxu1 }
0x2d6c   : > { %v8023_v41 = vpop.f32.mrb[213].mxu1  ;;  %v8032_v61 = vadd.f32 %v12089_v14, %v11046_v39 }
0x2d6d   : > { %v8024_v42 = vadd.f32 %v11046_v39, %v8023_v41  ;;  %v12090_v44 = vpop.f32.mrb[214].mxu1 }
0x2d6e   : > { %v8026_v37 = vpop.f32.mrb[215].mxu1  ;;  %v8040_v5 = vadd.f32 %v8032_v61, %v15460_v51  ;;  %v8035_v6 = vadd.f32 %v12090_v44, %v11046_v39 }
0x2d6f   : > { %v8038_v25 = vadd.f32 %v8024_v42, %v15453_v55  ;;  %v8027_v45 = vadd.f32 %v11046_v39, %v8026_v37 }
0x2d70   : > { %v8041_v7 = vadd.f32 %v8035_v6, %v15462_v60  ;;  %v8050_v15 = vsel %vm1622_vm0, %v8040_v5, 0.0  ;;  %v11058_v6 = vld [vmem:[#allocation34] ss:$0 sm:$0xff] }
0x2d71   : > { %v8039_v53 = vadd.f32 %v8027_v45, %v15455_v4  ;;  %v8044_v50 = vsel %vm1622_vm0, %v8038_v25, 0.0 }
0x2d72   : > { %8045 = vadd.xlane.f32.xlu0 %v8044_v50  ;;  %v8053_v58 = vsel %vm1622_vm0, %v8041_v7, 0.0 }
0x2d73   : > { %v8047_v3 = vsel %vm1622_vm0, %v8039_v53, 0.0 }
0x2d74   : > { %8048 = vadd.xlane.f32.xlu1 %v8047_v3 }
0x2d76   : > { %8051 = vadd.xlane.f32.xlu0 %v8050_v15 }
0x2d7a   : > { %8054 = vadd.xlane.f32.xlu0 %v8053_v58 }
0x2dff   : > { %v8046_v55 = vpop.xlane.xlu0 %8045 }
0x2e00   : > { %v8056_v10 = vmul.f32 0.03125, %v8046_v55 }
0x2e01   : > { %v8049_v51 = vpop.xlane.xlu1 %8048 }
0x2e02   : > { %v8060_v16 = vsub.f32 %v8038_v25, %v8056_v10  ;;  %v8057_v17 = vmul.f32 0.03125, %v8049_v51 }
0x2e03   : > { %v8052_v4 = vpop.xlane.xlu0 %8051 }
0x2e04   : > { %v8061_v34 = vsub.f32 %v8039_v53, %v8057_v17  ;;  %v8058_v19 = vmul.f32 0.03125, %v8052_v4  ;;  %v8064_v23 = vmul.f32 %v8060_v16, %v8060_v16  ;;  %v12105_v53 = vpop.f32.mrb[216].mxu1 }
0x2e05   : > { %v8262_v50 = vadd.f32 %v12105_v53, %v11058_v6  ;;  %v8253_v3 = vpop.f32.mrb[217].mxu1 }
0x2e06   : > { %v8062_v33 = vsub.f32 %v8040_v5, %v8058_v19  ;;  %v8068_v46 = vsel %vm1622_vm0, %v8064_v23, 0.0  ;;  %v8065_v60 = vmul.f32 %v8061_v34, %v8061_v34  ;;  %v12106_v15 = vpop.f32.mrb[218].mxu1 }
0x2e07   : > { %8069 = vadd.xlane.f32.xlu1 %v8068_v46  ;;  %v8055_v26 = vpop.xlane.xlu0 %8054  ;;  %v8265_v58 = vadd.f32 %v12106_v15, %v11058_v6  ;;  %v8256_v55 = vpop.f32.mrb[219].mxu1 }
0x2e08   : > { %v8059_v27 = vmul.f32 0.03125, %v8055_v26  ;;  %v8071_v28 = vsel %vm1622_vm0, %v8065_v60, 0.0  ;;  %v8066_v47 = vmul.f32 %v8062_v33, %v8062_v33  ;;  %v8257_v51 = vadd.f32 %v11058_v6, %v8256_v55 }
0x2e09   : > { %8072 = vadd.xlane.f32.xlu0 %v8071_v28 }
0x2e0a   : > { %v8063_v35 = vsub.f32 %v8041_v7, %v8059_v27  ;;  %v8074_v18 = vsel %vm1622_vm0, %v8066_v47, 0.0  ;;  %v8254_v7 = vadd.f32 %v11058_v6, %v8253_v3  ;;  %v15895_v27 = vpack.c.bf16 %v8265_v58, %v8265_v58 }
0x2e0b   : > { %8075 = vadd.xlane.f32.xlu1 %v8074_v18 }
0x2e0c   : > { %v8067_v48 = vmul.f32 %v8063_v35, %v8063_v35  ;;  %v15883_v10 = vpack.c.bf16 %v8254_v7, %v8254_v7 }
0x2e0e   : > { %v8077_v52 = vsel %vm1622_vm0, %v8067_v48, 0.0  ;;  %v8280_v17 = vsel %vm1685_vm2, %v15883_v10, 0 }
0x2e0f   : > { %8078 = vadd.xlane.f32.xlu0 %v8077_v52  ;;  %v8418_v52 = vsel %vm1685_vm2, %v15895_v27, 0 }
0x2e94   : > { %v8070_v29 = vpop.xlane.xlu1 %8069 }
0x2e95   : > { %v8080_v56 = vmul.f32 0.03125, %v8070_v29 }
0x2e96   : > { %v8073_v32 = vpop.xlane.xlu0 %8072 }
0x2e97   : > { %v8084_v20 = vadd.f32 1e-05, %v8080_v56  ;;  %v8081_v30 = vmul.f32 0.03125, %v8073_v32 }
0x2e98   : > { %v8076_v38 = vpop.xlane.xlu1 %8075 }
0x2e99   : > { %13016 = vrsqrt.f32 %v8084_v20  ;;  %v8085_v21 = vadd.f32 1e-05, %v8081_v30  ;;  %v8082_v22 = vmul.f32 0.03125, %v8076_v38 }
0x2e9b   : > { %13018 = vrsqrt.f32 %v8085_v21  ;;  %v8086_v31 = vadd.f32 1e-05, %v8082_v22 }
0x2e9c   : > { %v8079_v40 = vpop.xlane.xlu0 %8078 }
0x2e9d   : > { %13020 = vrsqrt.f32 %v8086_v31  ;;  %v8083_v62 = vmul.f32 0.03125, %v8079_v40 }
0x2e9f   : > { %v8087_v43 = vadd.f32 1e-05, %v8083_v62 }
0x2ea1   : > { %13022 = vrsqrt.f32 %v8087_v43 }
0x2ea3   : > { %v13017_v1 = vpop.eup %13016 }
0x2ea4   : > { %v8092_v2 = vmul.f32 %v13017_v1, %v8060_v16  ;;  %v15885_v16 = vpack.c.bf16 %v8257_v51, %v8257_v51 }
0x2ea5   : > { %v13019_v9 = vpop.eup %13018 }
0x2ea6   : > { %v8093_v11 = vmul.f32 %v13019_v9, %v8061_v34  ;;  %v8102_v12 = vmul.f32 %v11051_v0, %v8092_v2  ;;  %v8326_v4 = vsel %vm1685_vm2, %v15885_v16, 0  ;;  %v11053_v34 = vld [vmem:[#allocation32] ss:$0 sm:$0xff] }
0x2ea7   : > { %v13021_v36 = vpop.eup %13020  ;;  %12114 = vmatpush3.bf16.xpose.msra.mxu1 %v8326_v4 }
0x2ea8   : > { %v8094_v57 = vmul.f32 %v13021_v36, %v8062_v33  ;;  %v8103_v49 = vmul.f32 %v11051_v0, %v8093_v11  ;;  %v15867_v39 = vadd.f32 %v11052_v24, %v8102_v12  ;;  %12125 = vmatprep.subr.bf16.mxu1 %v13906_v8  ;;  %v15893_v33 = vpack.c.bf16 %v8262_v50, %v8262_v50 }
0x2eaa   : > { %v15869_v14 = vadd.f32 %v11052_v24, %v8103_v49  ;;  %v8104_v61 = vmul.f32 %v11051_v0, %v8094_v57  ;;  %v8372_v18 = vsel %vm1685_vm2, %v15893_v33, 0 }
0x2eab   : > { %v13023_v41 = vpop.eup %13022 }
0x2eac   : > { %v8095_v42 = vmul.f32 %v13023_v41, %v8063_v35  ;;  %v8116_v44 = vpack.c.bf16 %v15869_v14, %v15867_v39  ;;  %v15874_v25 = vadd.f32 %v11052_v24, %v8104_v61 }
0x2eae   : > { %v8105_v37 = vmul.f32 %v11051_v0, %v8095_v42  ;;  %12095 = vmatprep.mubr.msk.bf16.mxu0 %vm1622_vm0, %v8116_v44 }
0x2eb0   : > { %v15876_v45 = vadd.f32 %v11052_v24, %v8105_v37 }
0x2eb2   : > { %v8117_v5 = vpack.c.bf16 %v15876_v45, %v15874_v25 }
0x2eb4   : > { %12096 = vmatmul.mubr.msk.bf16.vlgmr.msra.gmra.mrb[204].mxu0 %vm1622_vm0, %v8117_v5 }
0x2eb5   : > { %12109 = vmatprep.mubr.msk.bf16.mxu0 %vm13907_vm1, %v13906_v8  ;;  %12108 = vmatpush3.bf16.xpose.msra.mxu0 %v8280_v17 }
0x2eb6   : > { %12119 = vmatprep.subr.bf16.mxu0 %v13906_v8 }
0x2f87   : > { %v12097_v19 = vpop.f32.mrb[204].mxu0 }
0x2f88   : > { %v8181_v23 = vpop.f32.mrb[205].mxu0  ;;  %v8190_v48 = vadd.f32 %v12097_v19, %v11053_v34 }
0x2f89   : > { %v8182_v46 = vadd.f32 %v11053_v34, %v8181_v23  ;;  %v12098_v60 = vpop.f32.mrb[206].mxu0 }
0x2f8a   : > { %v8184_v26 = vpop.f32.mrb[207].mxu0  ;;  %v8193_v59 = vadd.f32 %v12098_v60, %v11053_v34  ;;  %v15915_v63 = vpack.c.bf16 %v8190_v48, %v8190_v48 }
0x2f8b   : > { %v15897_v28 = vpack.c.bf16 %v8182_v46, %v8182_v46  ;;  %v8185_v47 = vadd.f32 %v11053_v34, %v8184_v26 }
0x2f8c   : > { %v15917_v54 = vpack.c.bf16 %v8193_v59, %v8193_v59 }
0x2f8d   : > { %v15899_v35 = vpack.c.bf16 %v8185_v47, %v8185_v47  ;;  %12110 = vmatmul.mubr.msk.bf16.vlgmr.msra.gmra.mrb[208].mxu0 %vm1685_vm2, %v15897_v28 }
0x2f8e   : > { %12120 = vmatpush3.bf16.xpose.msra.mxu0 %v8372_v18  ;;  %12121 = vmatprep.mubr.msk.bf16.mxu0 %vm13907_vm1, %v13906_v8 }
0x2f8f   : > { %12116 = vmatmul.mubr.msk.bf16.vlgmr.msra.gmra.mrb[220].mxu1 %vm1685_vm2, %v15899_v35  ;;  %12131 = vmatprep.subr.bf16.mxu0 %v13906_v8 }
0x2f90   : > { %12126 = vmatpush3.bf16.xpose.msra.mxu1 %v8418_v52  ;;  %12127 = vmatprep.mubr.msk.bf16.mxu1 %vm13907_vm1, %v13906_v8 }
0x2f91   : > { %12137 = vmatprep.subr.bf16.mxu1 %v13906_v8 }
0x2f95   : > { %12122 = vmatmul.mubr.msk.bf16.vlgmr.msra.gmra.mrb[212].mxu0 %vm1685_vm2, %v15915_v63 }
0x2f96   : > { %12133 = vmatprep.mubr.msk.bf16.mxu0 %vm13907_vm1, %v13906_v8 }
0x2f97   : > { %12128 = vmatmul.mubr.msk.bf16.vlgmr.msra.gmra.mrb[224].mxu1 %vm1685_vm2, %v15917_v54 }
0x2f98   : > { %12139 = vmatprep.mubr.msk.bf16.mxu1 %vm13907_vm1, %v13906_v8 }
0x3060   : > { %v8316_v13 = vpop.f32.mrb[208].mxu0 }
0x3061   : > { %v12111_v29 = vpop.f32.mrb[209].mxu0  ;;  %v8460_v56 = vsel %vm1685_vm2, %v8316_v13, -inf }
0x3062   : > { %v8362_v32 = vpop.f32.mrb[220].mxu1  ;;  %8461 = vmax.xlane.f32.xlu1 %v8460_v56  ;;  %v8319_v20 = vpop.f32.mrb[210].mxu0 }
0x3063   : > { %v12112_v30 = vpop.f32.mrb[211].mxu0  ;;  %v12117_v38 = vpop.f32.mrb[221].mxu1  ;;  %v8463_v21 = vsel %vm1685_vm2, %v8362_v32, -inf }
0x3064   : > { %8464 = vmax.xlane.f32.xlu0 %v8463_v21  ;;  %v8365_v22 = vpop.f32.mrb[222].mxu1 }
0x3065   : > { %v12118_v31 = vpop.f32.mrb[223].mxu1 }
0x3068   : > { %v8408_v40 = vpop.f32.mrb[212].mxu0 }
0x3069   : > { %v12123_v62 = vpop.f32.mrb[213].mxu0  ;;  %v8466_v43 = vsel %vm1685_vm2, %v8408_v40, -inf }
0x306a   : > { %v8454_v1 = vpop.f32.mrb[224].mxu1  ;;  %8467 = vmax.xlane.f32.xlu1 %v8466_v43  ;;  %v8411_v0 = vpop.f32.mrb[214].mxu0 }
0x306b   : > { %v12124_v2 = vpop.f32.mrb[215].mxu0  ;;  %v12129_v9 = vpop.f32.mrb[225].mxu1  ;;  %v8469_v11 = vsel %vm1685_vm2, %v8454_v1, -inf }
0x306c   : > { %8470 = vmax.xlane.f32.xlu0 %v8469_v11  ;;  %v8457_v12 = vpop.f32.mrb[226].mxu1 }
0x306d   : > { %v12130_v36 = vpop.f32.mrb[227].mxu1 }
0x307b   : > { %8509 = vrot.lane.b32.xlu1 %v15883_v10, %s16504_s13 }
0x30ef   : > { %v8462_v24 = vpop.xlane.xlu1 %8461 }
0x30f0   : > { %v8472_v57 = vsub.f32 %v8316_v13, %v8462_v24 }
0x30f1   : > { %v8465_v49 = vpop.xlane.xlu0 %8464 }
0x30f2   : > { %v8476_v41 = vmul.f32 1.442695, %v8472_v57  ;;  %v8473_v61 = vsub.f32 %v8362_v32, %v8465_v49 }
0x30f4   : > { %13024 = vpow2.f32 %v8476_v41  ;;  %v8478_v42 = vmul.f32 1.442695, %v8473_v61 }
0x30f6   : > { %13026 = vpow2.f32 %v8478_v42 }
0x30f7   : > { %v8468_v44 = vpop.xlane.xlu1 %8467 }
0x30f8   : > { %v8474_v58 = vsub.f32 %v8408_v40, %v8468_v44 }
0x30f9   : > { %v8471_v7 = vpop.xlane.xlu0 %8470 }
0x30fa   : > { %v8475_v15 = vsub.f32 %v8454_v1, %v8471_v7  ;;  %v8480_v51 = vmul.f32 1.442695, %v8474_v58 }
0x30fb   : > { %v8510_v37 = vpop.permute.xlu1 %8509 }
0x30fc   : > { %v8515_v5 = vsel %vm1932_vm4, %v8510_v37, 0  ;;  %v8482_v55 = vmul.f32 1.442695, %v8475_v15 }
0x30fd   : > { %12132 = vmatpush3.bf16.msra.mxu0 %v8515_v5 }
0x30fe   : > { %v13025_v6 = vpop.eup %13024  ;;  %12143 = vmatprep.subr.bf16.mxu0 %v13906_v8  ;;  %13028 = vpow2.f32 %v8482_v55 }
0x30ff   : > { %v8484_v53 = vsel %vm1685_vm2, %v13025_v6, 0.0  ;;  %13030 = vpow2.f32 %v8480_v51 }
0x3100   : > { %v13027_v50 = vpop.eup %13026  ;;  %8485 = vadd.xlane.f32.xlu1 %v8484_v53 }
0x3101   : > { %v8487_v3 = vsel %vm1685_vm2, %v13027_v50, 0.0 }
0x3102   : > { %8488 = vadd.xlane.f32.xlu0 %v8487_v3 }
0x3108   : > { %v13029_v17 = vpop.eup %13028 }
0x3109   : > { %v13031_v4 = vpop.eup %13030  ;;  %v8493_v34 = vsel %vm1685_vm2, %v13029_v17, 0.0 }
0x310a   : > { %v8490_v19 = vsel %vm1685_vm2, %v13031_v4, 0.0 }
0x3111   : > { %8607 = vrot.lane.b32.xlu1 %v15893_v33, %s16504_s13 }
0x3115   : > { %8656 = vrot.lane.b32.xlu1 %v15895_v27, %s16504_s13 }
0x3118   : > { %8558 = vrot.lane.b32.xlu0 %v15885_v16, %s16504_s13  ;;  %s16506_s13 = smov 88  }
0x3137   : > { %8494 = vadd.xlane.f32.xlu0 %v8493_v34 }
0x3139   : > { %8491 = vadd.xlane.f32.xlu1 %v8490_v19 }
0x314a   : > { %8758 = vrot.lane.b32.xlu1 %v15885_v16, %s16505_s11 }
0x314d   : > { %8707 = vrot.lane.b32.xlu0 %v15883_v10, %s16505_s11 }
0x314e   : > { %8756 = vrot.lane.b32.xlu1 %v15899_v35, %s16505_s11 }
0x3151   : > { %8705 = vrot.lane.b32.xlu0 %v15897_v28, %s16505_s11 }
0x3152   : > { %8860 = vrot.lane.b32.xlu1 %v15895_v27, %s16505_s11 }
0x3155   : > { %8809 = vrot.lane.b32.xlu0 %v15893_v33, %s16505_s11 }
0x3156   : > { %8858 = vrot.lane.b32.xlu1 %v15917_v54, %s16505_s11 }
0x3159   : > { %8807 = vrot.lane.b32.xlu0 %v15915_v63, %s16505_s11  ;;  %s16507_s11 = smov 112  }
0x318d   : > { %v8486_v23 = vpop.xlane.xlu1 %8485 }
0x318e   : > { %13032 = vrcp.f32 %v8486_v23 }
0x318f   : > { %v8489_v46 = vpop.xlane.xlu0 %8488 }
0x3190   : > { %13034 = vrcp.f32 %v8489_v46 }
0x3191   : > { %v8608_v47 = vpop.permute.xlu1 %8607 }
0x3192   : > { %v8613_v56 = vsel %vm1932_vm4, %v8608_v47, 0 }
0x3193   : > { %v8559_v60 = vpop.permute.xlu0 %8558 }
0x3194   : > { %v8564_v26 = vsel %vm1932_vm4, %v8559_v60, 0 }
0x3195   : > { %12138 = vmatpush3.bf16.msra.mxu1 %v8564_v26  ;;  %v8657_v29 = vpop.permute.xlu1 %8656 }
0x3196   : > { %12149 = vmatprep.subr.bf16.mxu1 %v13906_v8  ;;  %v8662_v20 = vsel %vm1932_vm4, %v8657_v29, 0 }
0x3198   : > { %v13033_v18 = vpop.eup %13032 }
0x3199   : > { %v8500_v48 = vmul.f32 %v13033_v18, %v13025_v6 }
0x319a   : > { %v13035_v52 = vpop.eup %13034 }
0x319b   : > { %v8501_v59 = vmul.f32 %v13035_v52, %v13027_v50  ;;  %v8504_v13 = vpack.c.bf16 %v8500_v48, %v8500_v48 }
0x319d   : > { %12134 = vmatmul.mubr.msk.bf16.vlgmr.msra.gmra.mrb[216].mxu0 %vm1685_vm2, %v8504_v13  ;;  %v8505_v32 = vpack.c.bf16 %v8501_v59, %v8501_v59 }
0x319e   : > { %12144 = vmatpush3.bf16.msra.mxu0 %v8613_v56  ;;  %12145 = vmatprep.mubr.msk.bf16.mxu0 %vm13907_vm1, %v13906_v8 }
0x319f   : > { %12140 = vmatmul.mubr.msk.bf16.vlgmr.msra.gmra.mrb[228].mxu1 %vm1685_vm2, %v8505_v32  ;;  %12155 = vmatprep.subr.bf16.mxu0 %v13906_v8 }
0x31a0   : > { %12150 = vmatpush3.bf16.msra.mxu1 %v8662_v20  ;;  %12151 = vmatprep.mubr.msk.bf16.mxu1 %vm13907_vm1, %v13906_v8 }
0x31a1   : > { %12161 = vmatprep.subr.bf16.mxu1 %v13906_v8 }
0x31c4   : > { %v8495_v30 = vpop.xlane.xlu0 %8494 }
0x31c5   : > { %13036 = vrcp.f32 %v8495_v30 }
0x31c6   : > { %v8492_v38 = vpop.xlane.xlu1 %8491 }
0x31c7   : > { %13038 = vrcp.f32 %v8492_v38 }
0x31c8   : > { %v8708_v31 = vpop.permute.xlu0 %8707 }
0x31c9   : > { %v8713_v12 = vsel %vm1685_vm2, %v8708_v31, 0 }
0x31ca   : > { %v8759_v21 = vpop.permute.xlu1 %8758 }
0x31cb   : > { %v8764_v2 = vsel %vm1685_vm2, %v8759_v21, 0 }
0x31cc   : > { %v8706_v11 = vpop.permute.xlu0 %8705 }
0x31ce   : > { %v8757_v0 = vpop.permute.xlu1 %8756 }
0x31cf   : > { %v13037_v22 = vpop.eup %13036 }
0x31d0   : > { %v8503_v40 = vmul.f32 %v13037_v22, %v13029_v17  ;;  %v8810_v24 = vpop.permute.xlu0 %8809 }
0x31d1   : > { %v13039_v62 = vpop.eup %13038  ;;  %v8815_v49 = vsel %vm1685_vm2, %v8810_v24, 0 }
0x31d2   : > { %v8502_v43 = vmul.f32 %v13039_v62, %v13031_v4  ;;  %v8507_v1 = vpack.c.bf16 %v8503_v40, %v8503_v40  ;;  %v8861_v36 = vpop.permute.xlu1 %8860 }
0x31d3   : > { %v8866_v57 = vsel %vm1685_vm2, %v8861_v36, 0 }
0x31d4   : > { %12152 = vmatmul.mubr.msk.bf16.vlgmr.msra.gmra.mrb[232].mxu1 %vm1685_vm2, %v8507_v1  ;;  %v8506_v9 = vpack.c.bf16 %v8502_v43, %v8502_v43  ;;  %v8808_v61 = vpop.permute.xlu0 %8807 }
0x31d5   : > { %12162 = vmatpush3.bf16.xpose.msra.mxu1 %v8764_v2  ;;  %12163 = vmatprep.mubr.msk.bf16.mxu1 %vm13907_vm1, %v13906_v8 }
0x31d6   : > { %12146 = vmatmul.mubr.msk.bf16.vlgmr.msra.gmra.mrb[220].mxu0 %vm1685_vm2, %v8506_v9  ;;  %12173 = vmatprep.subr.bf16.mxu1 %v13906_v8  ;;  %v8859_v41 = vpop.permute.xlu1 %8858 }
0x31d7   : > { %12156 = vmatpush3.bf16.xpose.msra.mxu0 %v8713_v12  ;;  %12157 = vmatprep.mubr.msk.bf16.mxu0 %vm13907_vm1, %v13906_v8 }
0x31d8   : > { %12167 = vmatprep.subr.bf16.mxu0 %v13906_v8 }
0x31dc   : > { %12164 = vmatmul.mubr.msk.bf16.vlgmr.msra.gmra.mrb[236].mxu1 %vm1685_vm2, %v8757_v0 }
0x31dd   : > { %12174 = vmatpush3.bf16.xpose.msra.mxu1 %v8866_v57  ;;  %12175 = vmatprep.mubr.msk.bf16.mxu1 %vm13907_vm1, %v13906_v8 }
0x31de   : > { %12158 = vmatmul.mubr.msk.bf16.vlgmr.msra.gmra.mrb[224].mxu0 %vm1685_vm2, %v8706_v11  ;;  %12185 = vmatprep.subr.bf16.mxu1 %v13906_v8 }
0x31df   : > { %12168 = vmatpush3.bf16.xpose.msra.mxu0 %v8815_v49  ;;  %12169 = vmatprep.mubr.msk.bf16.mxu0 %vm13907_vm1, %v13906_v8 }
0x31e0   : > { %12179 = vmatprep.subr.bf16.mxu0 %v13906_v8 }
0x31e4   : > { %12176 = vmatmul.mubr.msk.bf16.vlgmr.msra.gmra.mrb[240].mxu1 %vm1685_vm2, %v8859_v41 }
0x31e5   : > { %12187 = vmatprep.mubr.msk.bf16.mxu1 %vm13907_vm1, %v13906_v8 }
0x31e6   : > { %12170 = vmatmul.mubr.msk.bf16.vlgmr.msra.gmra.mrb[228].mxu0 %vm1685_vm2, %v8808_v61 }
0x31e7   : > { %12181 = vmatprep.mubr.msk.bf16.mxu0 %vm13907_vm1, %v13906_v8 }
0x3270   : > { %v15999_v42 = vpop.f32.mrb[216].mxu0 }
0x3271   : > { %v12135_v44 = vpop.f32.mrb[217].mxu0 }
0x3272   : > { %v8554_v37 = vpop.f32.mrb[218].mxu0  ;;  %v16001_v5 = vpop.f32.mrb[228].mxu1 }
0x3273   : > { %v12136_v6 = vpop.f32.mrb[219].mxu0  ;;  %v12141_v53 = vpop.f32.mrb[229].mxu1 }
0x3274   : > { %v8603_v50 = vpop.f32.mrb[230].mxu1 }
0x3275   : > { %v12142_v3 = vpop.f32.mrb[231].mxu1 }
0x32a7   : > { %v16003_v7 = vpop.f32.mrb[232].mxu1 }
0x32a8   : > { %v12153_v15 = vpop.f32.mrb[233].mxu1 }
0x32a9   : > { %v16005_v58 = vpop.f32.mrb[220].mxu0  ;;  %v8701_v55 = vpop.f32.mrb[234].mxu1 }
0x32aa   : > { %v12147_v51 = vpop.f32.mrb[221].mxu0  ;;  %v12154_v17 = vpop.f32.mrb[235].mxu1 }
0x32ab   : > { %v8652_v4 = vpop.f32.mrb[222].mxu0 }
0x32ac   : > { %v12148_v34 = vpop.f32.mrb[223].mxu0 }
0x32af   : > { %v8800_v19 = vpop.f32.mrb[236].mxu1 }
0x32b0   : > { %v12165_v23 = vpop.f32.mrb[237].mxu1  ;;  %v8911_v46 = vsel %vm1685_vm2, %v8800_v19, -inf }
0x32b1   : > { %8912 = vmax.xlane.f32.xlu1 %v8911_v46  ;;  %v8749_v60 = vpop.f32.mrb[224].mxu0  ;;  %v8803_v26 = vpop.f32.mrb[238].mxu1 }
0x32b2   : > { %v12159_v47 = vpop.f32.mrb[225].mxu0  ;;  %v12166_v18 = vpop.f32.mrb[239].mxu1  ;;  %v8908_v48 = vsel %vm1685_vm2, %v8749_v60, -inf }
0x32b3   : > { %8909 = vmax.xlane.f32.xlu0 %v8908_v48  ;;  %v8752_v52 = vpop.f32.mrb[226].mxu0 }
0x32b4   : > { %v12160_v59 = vpop.f32.mrb[227].mxu0 }
0x32b7   : > { %v8902_v13 = vpop.f32.mrb[240].mxu1 }
0x32b8   : > { %v12177_v29 = vpop.f32.mrb[241].mxu1  ;;  %v8917_v31 = vsel %vm1685_vm2, %v8902_v13, -inf }
0x32b9   : > { %v8851_v56 = vpop.f32.mrb[228].mxu0  ;;  %v8905_v32 = vpop.f32.mrb[242].mxu1 }
0x32ba   : > { %v12171_v20 = vpop.f32.mrb[229].mxu0  ;;  %v12178_v30 = vpop.f32.mrb[243].mxu1  ;;  %v8914_v38 = vsel %vm1685_vm2, %v8851_v56, -inf }
0x32bb   : > { %8915 = vmax.xlane.f32.xlu0 %v8914_v38  ;;  %v8854_v21 = vpop.f32.mrb[230].mxu0 }
0x32bc   : > { %v12172_v22 = vpop.f32.mrb[231].mxu0 }
0x32bf   : > { %8918 = vmax.xlane.f32.xlu0 %v8917_v31 }
0x32c2   : > { %8956 = vrot.lane.b32.xlu1 %v15883_v10, %s16506_s13 }
0x333e   : > { %v8913_v40 = vpop.xlane.xlu1 %8912 }
0x333f   : > { %v8921_v62 = vsub.f32 %v8800_v19, %v8913_v40 }
0x3340   : > { %v8910_v43 = vpop.xlane.xlu0 %8909 }
0x3341   : > { %v8926_v1 = vmul.f32 1.442695, %v8921_v62  ;;  %v8920_v0 = vsub.f32 %v8749_v60, %v8910_v43 }
0x3342   : > { %v8957_v2 = vpop.permute.xlu1 %8956 }
0x3343   : > { %13040 = vpow2.f32 %v8926_v1  ;;  %v8924_v9 = vmul.f32 1.442695, %v8920_v0  ;;  %v8962_v11 = vsel %vm1932_vm4, %v8957_v2, 0 }
0x3344   : > { %12180 = vmatpush3.bf16.msra.mxu0 %v8962_v11 }
0x3345   : > { %13042 = vpow2.f32 %v8924_v9  ;;  %12191 = vmatprep.subr.bf16.mxu0 %v13906_v8 }
0x3348   : > { %v8916_v49 = vpop.xlane.xlu0 %8915 }
0x3349   : > { %v8922_v37 = vsub.f32 %v8851_v56, %v8916_v49 }
0x334b   : > { %v8928_v6 = vmul.f32 1.442695, %v8922_v37 }
0x334c   : > { %v8919_v41 = vpop.xlane.xlu0 %8918 }
0x334d   : > { %v13041_v12 = vpop.eup %13040  ;;  %v8923_v61 = vsub.f32 %v8902_v13, %v8919_v41 }
0x334e   : > { %v8935_v36 = vsel %vm1685_vm2, %v13041_v12, 0.0 }
0x334f   : > { %v13043_v24 = vpop.eup %13042  ;;  %8936 = vadd.xlane.f32.xlu0 %v8935_v36  ;;  %v8930_v44 = vmul.f32 1.442695, %v8923_v61 }
0x3350   : > { %v8932_v57 = vsel %vm1685_vm2, %v13043_v24, 0.0 }
0x3351   : > { %8933 = vadd.xlane.f32.xlu1 %v8932_v57  ;;  %13044 = vpow2.f32 %v8930_v44 }
0x3352   : > { %13046 = vpow2.f32 %v8928_v6 }
0x335b   : > { %v13045_v53 = vpop.eup %13044 }
0x335c   : > { %v8941_v50 = vsel %vm1685_vm2, %v13045_v53, 0.0  ;;  %v13047_v3 = vpop.eup %13046 }
0x335d   : > { %v8938_v15 = vsel %vm1685_vm2, %v13047_v3, 0.0 }
0x3362   : > { %9052 = vrot.lane.b32.xlu1 %v15893_v33, %s16506_s13 }
0x3365   : > { %9004 = vrot.lane.b32.xlu0 %v15885_v16, %s16506_s13 }
0x3366   : > { %9100 = vrot.lane.b32.xlu1 %v15895_v27, %s16506_s13  ;;  %s16508_s13 = smov 80  }
0x3384   : > { %8942 = vadd.xlane.f32.xlu0 %v8941_v50 }
0x338a   : > { %8939 = vadd.xlane.f32.xlu1 %v8938_v15 }
0x339a   : > { %9150 = vrot.lane.b32.xlu0 %v15883_v10, %s16507_s11 }
0x339b   : > { %9200 = vrot.lane.b32.xlu1 %v15885_v16, %s16507_s11 }
0x339e   : > { %9148 = vrot.lane.b32.xlu0 %v15897_v28, %s16507_s11 }
0x339f   : > { %9198 = vrot.lane.b32.xlu1 %v15899_v35, %s16507_s11 }
0x33a2   : > { %9250 = vrot.lane.b32.xlu0 %v15893_v33, %s16507_s11 }
0x33a3   : > { %9300 = vrot.lane.b32.xlu1 %v15895_v27, %s16507_s11 }
0x33a6   : > { %9248 = vrot.lane.b32.xlu0 %v15915_v63, %s16507_s11 }
0x33a7   : > { %9298 = vrot.lane.b32.xlu1 %v15917_v54, %s16507_s11  ;;  %s16514_s11 = sld [smem:[#allocation78_spill]] }
0x33dc   : > { %v8937_v55 = vpop.xlane.xlu0 %8936 }
0x33dd   : > { %13048 = vrcp.f32 %v8937_v55 }
0x33de   : > { %v8934_v51 = vpop.xlane.xlu1 %8933 }
0x33df   : > { %13050 = vrcp.f32 %v8934_v51 }
0x33e0   : > { %v9005_v17 = vpop.permute.xlu0 %9004 }
0x33e1   : > { %v9010_v4 = vsel %vm1932_vm4, %v9005_v17, 0 }
0x33e2   : > { %12186 = vmatpush3.bf16.msra.mxu1 %v9010_v4  ;;  %v9053_v34 = vpop.permute.xlu1 %9052 }
0x33e3   : > { %12197 = vmatprep.subr.bf16.mxu1 %v13906_v8  ;;  %v9058_v52 = vsel %vm1932_vm4, %v9053_v34, 0 }
0x33e6   : > { %v9101_v60 = vpop.permute.xlu1 %9100 }
0x33e7   : > { %v13049_v19 = vpop.eup %13048  ;;  %v9106_v18 = vsel %vm1932_vm4, %v9101_v60, 0 }
0x33e8   : > { %v8949_v23 = vmul.f32 %v13049_v19, %v13041_v12 }
0x33e9   : > { %v13051_v46 = vpop.eup %13050 }
0x33ea   : > { %v8948_v26 = vmul.f32 %v13051_v46, %v13043_v24  ;;  %v8953_v47 = vpack.c.bf16 %v8949_v23, %v8949_v23 }
0x33ec   : > { %12188 = vmatmul.mubr.msk.bf16.vlgmr.msra.gmra.mrb[244].mxu1 %vm1685_vm2, %v8953_v47  ;;  %v8952_v48 = vpack.c.bf16 %v8948_v26, %v8948_v26 }
0x33ed   : > { %12198 = vmatpush3.bf16.msra.mxu1 %v9106_v18  ;;  %12199 = vmatprep.mubr.msk.bf16.mxu1 %vm13907_vm1, %v13906_v8 }
0x33ee   : > { %12182 = vmatmul.mubr.msk.bf16.vlgmr.msra.gmra.mrb[232].mxu0 %vm1685_vm2, %v8952_v48  ;;  %12209 = vmatprep.subr.bf16.mxu1 %v13906_v8 }
0x33ef   : > { %12192 = vmatpush3.bf16.msra.mxu0 %v9058_v52  ;;  %12193 = vmatprep.mubr.msk.bf16.mxu0 %vm13907_vm1, %v13906_v8 }
0x33f0   : > { %12203 = vmatprep.subr.bf16.mxu0 %v13906_v8 }
0x3411   : > { %v8943_v59 = vpop.xlane.xlu0 %8942 }
0x3412   : > { %13052 = vrcp.f32 %v8943_v59 }
0x3415   : > { %v9151_v30 = vpop.permute.xlu0 %9150 }
0x3416   : > { %v9156_v1 = vsel %vm1685_vm2, %v9151_v30, 0 }
0x3417   : > { %v8940_v13 = vpop.xlane.xlu1 %8939 }
0x3418   : > { %13054 = vrcp.f32 %v8940_v13 }
0x3419   : > { %v9149_v62 = vpop.permute.xlu0 %9148 }
0x341b   : > { %v9201_v29 = vpop.permute.xlu1 %9200 }
0x341c   : > { %v13053_v56 = vpop.eup %13052  ;;  %v9206_v21 = vsel %vm1685_vm2, %v9201_v29, 0 }
0x341d   : > { %v8951_v32 = vmul.f32 %v13053_v56, %v13045_v53  ;;  %v9251_v2 = vpop.permute.xlu0 %9250 }
0x341e   : > { %v9256_v9 = vsel %vm1685_vm2, %v9251_v2, 0 }
0x341f   : > { %v8955_v20 = vpack.c.bf16 %v8951_v32, %v8951_v32  ;;  %v9199_v38 = vpop.permute.xlu1 %9198 }
0x3421   : > { %12200 = vmatmul.mubr.msk.bf16.vlgmr.msra.gmra.mrb[248].mxu1 %vm1685_vm2, %v8955_v20  ;;  %v9249_v12 = vpop.permute.xlu0 %9248 }
0x3422   : > { %v13055_v22 = vpop.eup %13054  ;;  %12210 = vmatpush3.bf16.xpose.msra.mxu1 %v9206_v21  ;;  %12211 = vmatprep.mubr.msk.bf16.mxu1 %vm13907_vm1, %v13906_v8 }
0x3423   : > { %v8950_v31 = vmul.f32 %v13055_v22, %v13047_v3  ;;  %12221 = vmatprep.subr.bf16.mxu1 %v13906_v8  ;;  %v9301_v43 = vpop.permute.xlu1 %9300 }
0x3424   : > { %v9306_v0 = vsel %vm1685_vm2, %v9301_v43, 0 }
0x3425   : > { %v8954_v40 = vpack.c.bf16 %v8950_v31, %v8950_v31 }
0x3427   : > { %12194 = vmatmul.mubr.msk.bf16.vlgmr.msra.gmra.mrb[236].mxu0 %vm1685_vm2, %v8954_v40  ;;  %v9299_v11 = vpop.permute.xlu1 %9298 }
0x3428   : > { %12204 = vmatpush3.bf16.xpose.msra.mxu0 %v9156_v1  ;;  %12205 = vmatprep.mubr.msk.bf16.mxu0 %vm13907_vm1, %v13906_v8 }
0x3429   : > { %12212 = vmatmul.mubr.msk.bf16.vlgmr.msra.gmra.mrb[252].mxu1 %vm1685_vm2, %v9199_v38  ;;  %12215 = vmatprep.subr.bf16.mxu0 %v13906_v8 }
0x342a   : > { %12222 = vmatpush3.bf16.xpose.msra.mxu1 %v9306_v0  ;;  %12223 = vmatprep.mubr.msk.bf16.mxu1 %vm13907_vm1, %v13906_v8 }
0x342b   : > { %12233 = vmatprep.subr.bf16.mxu1 %v13906_v8 }
0x342f   : > { %12206 = vmatmul.mubr.msk.bf16.vlgmr.msra.gmra.mrb[240].mxu0 %vm1685_vm2, %v9149_v62 }
0x3430   : > { %12216 = vmatpush3.bf16.xpose.msra.mxu0 %v9256_v9  ;;  %12217 = vmatprep.mubr.msk.bf16.mxu0 %vm13907_vm1, %v13906_v8 }
0x3431   : > { %12224 = vmatmul.mubr.msk.bf16.vlgmr.msra.gmra.mrb[0].mxu1 %vm1685_vm2, %v9299_v11  ;;  %12227 = vmatprep.subr.bf16.mxu0 %v13906_v8 }
0x3432   : > { %12235 = vmatprep.mubr.msk.bf16.mxu1 %vm13907_vm1, %v13906_v8 }
0x3437   : > { %12218 = vmatmul.mubr.msk.bf16.vlgmr.msra.gmra.mrb[244].mxu0 %vm1685_vm2, %v9249_v12 }
0x3438   : > { %12229 = vmatprep.mubr.msk.bf16.mxu0 %vm13907_vm1, %v13906_v8 }
0x34bf   : > { %v16079_v36 = vpop.f32.mrb[244].mxu1 }
0x34c0   : > { %v12189_v24 = vpop.f32.mrb[245].mxu1 }
0x34c1   : > { %v16081_v57 = vpop.f32.mrb[232].mxu0  ;;  %v9049_v49 = vpop.f32.mrb[246].mxu1 }
0x34c2   : > { %v12738_v41 = vpack.i.bf16 %v16079_v36, %v16081_v57  ;;  %v12183_v61 = vpop.f32.mrb[233].mxu0  ;;  %v12190_v44 = vpop.f32.mrb[247].mxu1 }
0x34c3   : > { %v9001_v37 = vpop.f32.mrb[234].mxu0 }
0x34c4   : > { %v12184_v6 = vpop.f32.mrb[235].mxu0 }
0x34f4   : > { %v16085_v53 = vpop.f32.mrb[248].mxu1 }
0x34f5   : > { %v12201_v50 = vpop.f32.mrb[249].mxu1 }
0x34f6   : > { %v9145_v3 = vpop.f32.mrb[250].mxu1 }
0x34f7   : > { %v12202_v15 = vpop.f32.mrb[251].mxu1 }
0x34fa   : > { %v16087_v55 = vpop.f32.mrb[236].mxu0 }
0x34fb   : > { %v12743_v51 = vpack.i.bf16 %v16085_v53, %v16087_v55  ;;  %v12195_v17 = vpop.f32.mrb[237].mxu0 }
0x34fc   : > { %v9097_v4 = vpop.f32.mrb[238].mxu0  ;;  %v9242_v34 = vpop.f32.mrb[252].mxu1 }
0x34fd   : > { %v12196_v19 = vpop.f32.mrb[239].mxu0  ;;  %v12213_v23 = vpop.f32.mrb[253].mxu1  ;;  %v9351_v46 = vsel %vm1685_vm2, %v9242_v34, -inf }
0x34fe   : > { %9352 = vmax.xlane.f32.xlu1 %v9351_v46  ;;  %v9245_v60 = vpop.f32.mrb[254].mxu1 }
0x34ff   : > { %v12214_v26 = vpop.f32.mrb[255].mxu1 }
0x3502   : > { %v9192_v47 = vpop.f32.mrb[240].mxu0 }
0x3503   : > { %v12207_v18 = vpop.f32.mrb[241].mxu0  ;;  %v9348_v48 = vsel %vm1685_vm2, %v9192_v47, -inf }
0x3504   : > { %v9342_v52 = vpop.f32.mrb[0].mxu1  ;;  %9349 = vmax.xlane.f32.xlu0 %v9348_v48  ;;  %v9195_v59 = vpop.f32.mrb[242].mxu0 }
0x3505   : > { %v12208_v13 = vpop.f32.mrb[243].mxu0  ;;  %v12225_v29 = vpop.f32.mrb[1].mxu1  ;;  %v9357_v31 = vsel %vm1685_vm2, %v9342_v52, -inf }
0x3506   : > { %v9345_v56 = vpop.f32.mrb[2].mxu1 }
0x3507   : > { %v12226_v32 = vpop.f32.mrb[3].mxu1 }
0x350a   : > { %v9292_v20 = vpop.f32.mrb[244].mxu0 }
0x350b   : > { %v12219_v30 = vpop.f32.mrb[245].mxu0  ;;  %v9354_v38 = vsel %vm1685_vm2, %v9292_v20, -inf }
0x350c   : > { %9355 = vmax.xlane.f32.xlu0 %v9354_v38  ;;  %v9295_v21 = vpop.f32.mrb[246].mxu0 }
0x350d   : > { %v12220_v22 = vpop.f32.mrb[247].mxu0 }
0x350f   : > { %9396 = vrot.lane.b32.xlu1 %v15883_v10, %s16508_s13 }
0x3510   : > { %9358 = vmax.xlane.f32.xlu0 %v9357_v31 }
0x358b   : > { %v9353_v40 = vpop.xlane.xlu1 %9352 }
0x358c   : > { %v9361_v62 = vsub.f32 %v9242_v34, %v9353_v40 }
0x358e   : > { %v9366_v43 = vmul.f32 1.442695, %v9361_v62 }
0x358f   : > { %v9397_v1 = vpop.permute.xlu1 %9396 }
0x3590   : > { %13056 = vpow2.f32 %v9366_v43  ;;  %v9402_v0 = vsel %vm1932_vm4, %v9397_v1, 0 }
0x3591   : > { %12228 = vmatpush3.bf16.msra.mxu0 %v9402_v0  ;;  %v9350_v2 = vpop.xlane.xlu0 %9349 }
0x3592   : > { %v9360_v9 = vsub.f32 %v9192_v47, %v9350_v2  ;;  %12239 = vmatprep.subr.bf16.mxu0 %v13906_v8 }
0x3594   : > { %v9364_v11 = vmul.f32 1.442695, %v9360_v9 }
0x3596   : > { %13058 = vpow2.f32 %v9364_v11 }
0x3599   : > { %v9356_v44 = vpop.xlane.xlu0 %9355 }
0x359a   : > { %v13057_v12 = vpop.eup %13056  ;;  %v9362_v3 = vsub.f32 %v9292_v20, %v9356_v44 }
0x359b   : > { %v9375_v24 = vsel %vm1685_vm2, %v13057_v12, 0.0 }
0x359c   : > { %9376 = vadd.xlane.f32.xlu0 %v9375_v24  ;;  %v9368_v15 = vmul.f32 1.442695, %v9362_v3 }
0x359d   : > { %v9359_v37 = vpop.xlane.xlu0 %9358 }
0x359e   : > { %v9363_v6 = vsub.f32 %v9342_v52, %v9359_v37 }
0x35a0   : > { %v13059_v49 = vpop.eup %13058  ;;  %v9370_v50 = vmul.f32 1.442695, %v9363_v6 }
0x35a1   : > { %v9372_v61 = vsel %vm1685_vm2, %v13059_v49, 0.0 }
0x35a2   : > { %9373 = vadd.xlane.f32.xlu1 %v9372_v61  ;;  %13060 = vpow2.f32 %v9370_v50 }
0x35a3   : > { %13062 = vpow2.f32 %v9368_v15 }
0x35ac   : > { %v13061_v17 = vpop.eup %13060 }
0x35ad   : > { %v9381_v4 = vsel %vm1685_vm2, %v13061_v17, 0.0  ;;  %v13063_v34 = vpop.eup %13062 }
0x35ae   : > { %v9378_v19 = vsel %vm1685_vm2, %v13063_v34, 0.0 }
0x35b2   : > { %9444 = vrot.lane.b32.xlu0 %v15885_v16, %s16508_s13 }
0x35b3   : > { %9492 = vrot.lane.b32.xlu1 %v15893_v33, %s16508_s13 }
0x35b7   : > { %9540 = vrot.lane.b32.xlu1 %v15895_v27, %s16508_s13  ;;  %s16515_s13 = sld [smem:[#allocation80_spill]] }
0x35d1   : > { %9382 = vadd.xlane.f32.xlu0 %v9381_v4 }
0x35db   : > { %9379 = vadd.xlane.f32.xlu1 %v9378_v19 }
0x35e7   : > { %9590 = vrot.lane.b32.xlu0 %v15883_v10, %s16486_s2 }
0x35eb   : > { %9588 = vrot.lane.b32.xlu0 %v15897_v28, %s16486_s2 }
0x35ec   : > { %9640 = vrot.lane.b32.xlu1 %v15885_v16, %s16486_s2 }
0x35ef   : > { %9690 = vrot.lane.b32.xlu0 %v15893_v33, %s16486_s2 }
0x35f0   : > { %9638 = vrot.lane.b32.xlu1 %v15899_v35, %s16486_s2 }
0x35f3   : > { %9688 = vrot.lane.b32.xlu0 %v15915_v63, %s16486_s2 }
0x35f4   : > { %9740 = vrot.lane.b32.xlu1 %v15895_v27, %s16486_s2 }
0x35f8   : > { %9738 = vrot.lane.b32.xlu1 %v15917_v54, %s16486_s2  ;;  %s16511_s2 = sld [smem:[#allocation79_spill]] }
0x3629   : > { %v9377_v23 = vpop.xlane.xlu0 %9376 }
0x362a   : > { %13064 = vrcp.f32 %v9377_v23 }
0x362d   : > { %v9445_v28 = vpop.permute.xlu0 %9444 }
0x362e   : > { %v9450_v46 = vsel %vm1932_vm4, %v9445_v28, 0 }
0x362f   : > { %v9374_v60 = vpop.xlane.xlu1 %9373  ;;  %12234 = vmatpush3.bf16.msra.mxu1 %v9450_v46 }
0x3630   : > { %13066 = vrcp.f32 %v9374_v60  ;;  %12245 = vmatprep.subr.bf16.mxu1 %v13906_v8 }
0x3633   : > { %v9493_v35 = vpop.permute.xlu1 %9492 }
0x3634   : > { %v13065_v26 = vpop.eup %13064  ;;  %v9498_v13 = vsel %vm1932_vm4, %v9493_v35, 0 }
0x3635   : > { %v9389_v47 = vmul.f32 %v13065_v26, %v13057_v12 }
0x3637   : > { %v9393_v63 = vpack.c.bf16 %v9389_v47, %v9389_v47  ;;  %v9541_v18 = vpop.permute.xlu1 %9540 }
0x3638   : > { %v9546_v48 = vsel %vm1932_vm4, %v9541_v18, 0 }
0x3639   : > { %12236 = vmatmul.mubr.msk.bf16.vlgmr.msra.gmra.mrb[4].mxu1 %vm1685_vm2, %v9393_v63 }
0x363a   : > { %v13067_v54 = vpop.eup %13066  ;;  %12246 = vmatpush3.bf16.msra.mxu1 %v9546_v48  ;;  %12247 = vmatprep.mubr.msk.bf16.mxu1 %vm13907_vm1, %v13906_v8 }
0x363b   : > { %v9388_v52 = vmul.f32 %v13067_v54, %v13059_v49  ;;  %12257 = vmatprep.subr.bf16.mxu1 %v13906_v8 }
0x363d   : > { %v9392_v59 = vpack.c.bf16 %v9388_v52, %v9388_v52 }
0x363f   : > { %12230 = vmatmul.mubr.msk.bf16.vlgmr.msra.gmra.mrb[248].mxu0 %vm1685_vm2, %v9392_v59 }
0x3640   : > { %12240 = vmatpush3.bf16.msra.mxu0 %v9498_v13  ;;  %12241 = vmatprep.mubr.msk.bf16.mxu0 %vm13907_vm1, %v13906_v8 }
0x3641   : > { %12251 = vmatprep.subr.bf16.mxu0 %v13906_v8 }
0x365e   : > { %v9383_v29 = vpop.xlane.xlu0 %9382 }
0x365f   : > { %13068 = vrcp.f32 %v9383_v29 }
0x3662   : > { %v9591_v31 = vpop.permute.xlu0 %9590 }
0x3663   : > { %v9596_v9 = vsel %vm1685_vm2, %v9591_v31, 0 }
0x3666   : > { %v9589_v2 = vpop.permute.xlu0 %9588 }
0x3668   : > { %v9380_v56 = vpop.xlane.xlu1 %9379 }
0x3669   : > { %v13069_v32 = vpop.eup %13068  ;;  %13070 = vrcp.f32 %v9380_v56 }
0x366a   : > { %v9391_v20 = vmul.f32 %v13069_v32, %v13061_v17  ;;  %v9691_v11 = vpop.permute.xlu0 %9690 }
0x366b   : > { %v9696_v24 = vsel %vm1685_vm2, %v9691_v11, 0 }
0x366c   : > { %v9395_v30 = vpack.c.bf16 %v9391_v20, %v9391_v20  ;;  %v9641_v38 = vpop.permute.xlu1 %9640 }
0x366d   : > { %v9646_v21 = vsel %vm1685_vm2, %v9641_v38, 0 }
0x366e   : > { %12248 = vmatmul.mubr.msk.bf16.vlgmr.msra.gmra.mrb[8].mxu1 %vm1685_vm2, %v9395_v30  ;;  %v9689_v49 = vpop.permute.xlu0 %9688 }
0x366f   : > { %12258 = vmatpush3.bf16.xpose.msra.mxu1 %v9646_v21  ;;  %12259 = vmatprep.mubr.msk.bf16.mxu1 %vm13907_vm1, %v13906_v8 }
0x3670   : > { %v9639_v22 = vpop.permute.xlu1 %9638  ;;  %12269 = vmatprep.subr.bf16.mxu1 %v13906_v8 }
0x3673   : > { %v13071_v40 = vpop.eup %13070 }
0x3674   : > { %v9390_v62 = vmul.f32 %v13071_v40, %v13063_v34  ;;  %v9741_v43 = vpop.permute.xlu1 %9740 }
0x3675   : > { %v9746_v1 = vsel %vm1685_vm2, %v9741_v43, 0 }
0x3676   : > { %12260 = vmatmul.mubr.msk.bf16.vlgmr.msra.gmra.mrb[12].mxu1 %vm1685_vm2, %v9639_v22  ;;  %v9394_v0 = vpack.c.bf16 %v9390_v62, %v9390_v62 }
0x3677   : > { %12270 = vmatpush3.bf16.xpose.msra.mxu1 %v9746_v1  ;;  %12271 = vmatprep.mubr.msk.bf16.mxu1 %vm13907_vm1, %v13906_v8 }
0x3678   : > { %12242 = vmatmul.mubr.msk.bf16.vlgmr.msra.gmra.mrb[252].mxu0 %vm1685_vm2, %v9394_v0  ;;  %12281 = vmatprep.subr.bf16.mxu1 %v13906_v8  ;;  %v9739_v12 = vpop.permute.xlu1 %9738 }
0x3679   : > { %12252 = vmatpush3.bf16.xpose.msra.mxu0 %v9596_v9  ;;  %12253 = vmatprep.mubr.msk.bf16.mxu0 %vm13907_vm1, %v13906_v8 }
0x367a   : > { %12263 = vmatprep.subr.bf16.mxu0 %v13906_v8 }
0x367e   : > { %12272 = vmatmul.mubr.msk.bf16.vlgmr.msra.gmra.mrb[16].mxu1 %vm1685_vm2, %v9739_v12 }
0x367f   : > { %12283 = vmatprep.mubr.msk.bf16.mxu1 %vm13907_vm1, %v13906_v8 }
0x3680   : > { %12254 = vmatmul.mubr.msk.bf16.vlgmr.msra.gmra.mrb[0].mxu0 %vm1685_vm2, %v9589_v2 }
0x3681   : > { %12264 = vmatpush3.bf16.xpose.msra.mxu0 %v9696_v24  ;;  %12265 = vmatprep.mubr.msk.bf16.mxu0 %vm13907_vm1, %v13906_v8 }
0x3682   : > { %12275 = vmatprep.subr.bf16.mxu0 %v13906_v8 }
0x3688   : > { %12266 = vmatmul.mubr.msk.bf16.vlgmr.msra.gmra.mrb[4].mxu0 %vm1685_vm2, %v9689_v49 }
0x3689   : > { %12277 = vmatprep.mubr.msk.bf16.mxu0 %vm13907_vm1, %v13906_v8 }
0x370c   : > { %v16163_v61 = vpop.f32.mrb[4].mxu1 }
0x370d   : > { %v12237_v44 = vpop.f32.mrb[5].mxu1 }
0x370e   : > { %v9489_v37 = vpop.f32.mrb[6].mxu1 }
0x370f   : > { %v12238_v6 = vpop.f32.mrb[7].mxu1 }
0x3712   : > { %v16165_v50 = vpop.f32.mrb[248].mxu0 }
0x3713   : > { %v12748_v3 = vpack.i.bf16 %v16163_v61, %v16165_v50  ;;  %v12231_v15 = vpop.f32.mrb[249].mxu0 }
0x3714   : > { %v9441_v17 = vpop.f32.mrb[250].mxu0 }
0x3715   : > { %v12232_v4 = vpop.f32.mrb[251].mxu0 }
0x3741   : > { %v16169_v34 = vpop.f32.mrb[8].mxu1 }
0x3742   : > { %v12249_v19 = vpop.f32.mrb[9].mxu1 }
0x3743   : > { %v9585_v23 = vpop.f32.mrb[10].mxu1 }
0x3744   : > { %v12250_v28 = vpop.f32.mrb[11].mxu1 }
0x3749   : > { %v9682_v46 = vpop.f32.mrb[12].mxu1 }
0x374a   : > { %v12261_v60 = vpop.f32.mrb[13].mxu1  ;;  %v9791_v35 = vsel %vm1685_vm2, %v9682_v46, -inf }
0x374b   : > { %9792 = vmax.xlane.f32.xlu1 %v9791_v35  ;;  %v9534_v26 = vpop.f32.mrb[252].mxu0  ;;  %v9685_v47 = vpop.f32.mrb[14].mxu1 }
0x374c   : > { %v12753_v63 = vpack.i.bf16 %v16169_v34, %v9534_v26  ;;  %v12243_v18 = vpop.f32.mrb[253].mxu0  ;;  %v12262_v48 = vpop.f32.mrb[15].mxu1 }
0x374d   : > { %v9537_v54 = vpop.f32.mrb[254].mxu0 }
0x374e   : > { %v12244_v52 = vpop.f32.mrb[255].mxu0 }
0x3751   : > { %v9782_v59 = vpop.f32.mrb[16].mxu1 }
0x3752   : > { %v12273_v13 = vpop.f32.mrb[17].mxu1  ;;  %v9797_v1 = vsel %vm1685_vm2, %v9782_v59, -inf }
0x3753   : > { %v9632_v29 = vpop.f32.mrb[0].mxu0  ;;  %v9785_v56 = vpop.f32.mrb[18].mxu1 }
0x3754   : > { %v12255_v32 = vpop.f32.mrb[1].mxu0  ;;  %v12274_v20 = vpop.f32.mrb[19].mxu1  ;;  %v9788_v30 = vsel %vm1685_vm2, %v9632_v29, -inf }
0x3755   : > { %9789 = vmax.xlane.f32.xlu0 %v9788_v30  ;;  %v9635_v38 = vpop.f32.mrb[2].mxu0 }
0x3756   : > { %v12256_v21 = vpop.f32.mrb[3].mxu0 }
0x375b   : > { %v9732_v22 = vpop.f32.mrb[4].mxu0 }
0x375c   : > { %9836 = vrot.lane.b32.xlu1 %v15883_v10, %s16487_s5  ;;  %v12267_v31 = vpop.f32.mrb[5].mxu0  ;;  %v9794_v40 = vsel %vm1685_vm2, %v9732_v22, -inf }
0x375d   : > { %9795 = vmax.xlane.f32.xlu0 %v9794_v40  ;;  %v9735_v62 = vpop.f32.mrb[6].mxu0 }
0x375e   : > { %v12268_v43 = vpop.f32.mrb[7].mxu0 }
0x3761   : > { %9798 = vmax.xlane.f32.xlu0 %v9797_v1 }
0x37d8   : > { %v9793_v0 = vpop.xlane.xlu1 %9792 }
0x37d9   : > { %v9801_v2 = vsub.f32 %v9682_v46, %v9793_v0 }
0x37db   : > { %v9806_v9 = vmul.f32 1.442695, %v9801_v2 }
0x37dc   : > { %v9837_v11 = vpop.permute.xlu1 %9836 }
0x37dd   : > { %13072 = vpow2.f32 %v9806_v9  ;;  %v9842_v12 = vsel %vm1932_vm4, %v9837_v11, 0 }
0x37de   : > { %12276 = vmatpush3.bf16.msra.mxu0 %v9842_v12 }
0x37df   : > { %12287 = vmatprep.subr.bf16.mxu0 %v13906_v8 }
0x37e2   : > { %v9790_v10 = vpop.xlane.xlu0 %9789 }
0x37e3   : > { %v9800_v24 = vsub.f32 %v9632_v29, %v9790_v10 }
0x37e5   : > { %v9804_v49 = vmul.f32 1.442695, %v9800_v24 }
0x37e7   : > { %v13073_v44 = vpop.eup %13072  ;;  %13074 = vpow2.f32 %v9804_v49 }
0x37e8   : > { %v9815_v37 = vsel %vm1685_vm2, %v13073_v44, 0.0 }
0x37e9   : > { %9816 = vadd.xlane.f32.xlu0 %v9815_v37 }
0x37ea   : > { %v9796_v6 = vpop.xlane.xlu0 %9795 }
0x37eb   : > { %v9802_v15 = vsub.f32 %v9732_v22, %v9796_v6 }
0x37ed   : > { %v9808_v17 = vmul.f32 1.442695, %v9802_v15 }
0x37ee   : > { %v9799_v4 = vpop.xlane.xlu0 %9798 }
0x37ef   : > { %13076 = vpow2.f32 %v9808_v17  ;;  %v9803_v34 = vsub.f32 %v9782_v59, %v9799_v4 }
0x37f1   : > { %v13075_v19 = vpop.eup %13074  ;;  %v9810_v23 = vmul.f32 1.442695, %v9803_v34 }
0x37f2   : > { %v9812_v28 = vsel %vm1685_vm2, %v13075_v19, 0.0 }
0x37f3   : > { %13078 = vpow2.f32 %v9810_v23  ;;  %9813 = vadd.xlane.f32.xlu1 %v9812_v28 }
0x37f9   : > { %v13077_v46 = vpop.eup %13076 }
0x37fa   : > { %v9818_v60 = vsel %vm1685_vm2, %v13077_v46, 0.0 }
0x37fb   : > { %9819 = vadd.xlane.f32.xlu1 %v9818_v60 }
0x37fd   : > { %v13079_v35 = vpop.eup %13078 }
0x37fe   : > { %v9821_v26 = vsel %vm1685_vm2, %v13079_v35, 0.0 }
0x37ff   : > { %9822 = vadd.xlane.f32.xlu0 %v9821_v26 }
0x380c   : > { %9932 = vrot.lane.b32.xlu1 %v15893_v33, %s16487_s5 }
0x3810   : > { %9980 = vrot.lane.b32.xlu1 %v15895_v27, %s16487_s5 }
0x3814   : > { %12744 = vrot.lane.b32.xlu1 %v12743_v51, %s16496_s28 }
0x3815   : > { %9884 = vrot.lane.b32.xlu0 %v15885_v16, %s16487_s5  ;;  %s16512_s5 = sld [smem:[#allocation83_spill]] }
0x3818   : > { %12754 = vrot.lane.b32.xlu1 %v12753_v63, %s16497_s9 }
0x3819   : > { %12739 = vrot.lane.b32.xlu0 %v12738_v41, %s16496_s28 }
0x381d   : > { %12749 = vrot.lane.b32.xlu0 %v12748_v3, %s16497_s9  ;;  %s16509_s9 = sld [smem:[#allocation75_spill]] }
0x3823   : > { %v12792_v32 = vld [vmem:[%s16509_s9] sm:$0xff]   ;;  %v12793_v22 = vld [vmem:[%s16509_s9 + $0x8] sm:$0xff]  }
0x3876   : > { %v9817_v33 = vpop.xlane.xlu0 %9816 }
0x3880   : > { %v9814_v27 = vpop.xlane.xlu1 %9813 }
0x3881   : > { %13080 = vrcp.f32 %v9814_v27 }
0x3882   : > { %13082 = vrcp.f32 %v9817_v33 }
0x3888   : > { %v9820_v53 = vpop.xlane.xlu1 %9819 }
0x3889   : > { %13084 = vrcp.f32 %v9820_v53 }
0x388b   : > { %v13081_v55 = vpop.eup %13080 }
0x388c   : > { %v13083_v16 = vpop.eup %13082  ;;  %v9828_v51 = vmul.f32 %v13081_v55, %v13075_v19  ;;  %v9933_v47 = vpop.permute.xlu1 %9932 }
0x388d   : > { %v9823_v63 = vpop.xlane.xlu0 %9822  ;;  %v9829_v36 = vmul.f32 %v13083_v16, %v13073_v44  ;;  %v9938_v57 = vsel %vm1932_vm4, %v9933_v47, 0 }
0x388e   : > { %13086 = vrcp.f32 %v9823_v63  ;;  %v9832_v18 = vpack.c.bf16 %v9828_v51, %v9828_v51 }
0x388f   : > { %v9833_v48 = vpack.c.bf16 %v9829_v36, %v9829_v36 }
0x3890   : > { %12278 = vmatmul.mubr.msk.bf16.vlgmr.msra.gmra.mrb[8].mxu0 %vm1685_vm2, %v9832_v18  ;;  %v9981_v50 = vpop.permute.xlu1 %9980 }
0x3891   : > { %v9885_v41 = vpop.permute.xlu0 %9884  ;;  %12288 = vmatpush3.bf16.msra.mxu0 %v9938_v57  ;;  %12289 = vmatprep.mubr.msk.bf16.mxu0 %vm13907_vm1, %v13906_v8  ;;  %v9986_v52 = vsel %vm1932_vm4, %v9981_v50, 0 }
0x3892   : > { %v9890_v61 = vsel %vm1932_vm4, %v9885_v41, 0  ;;  %12299 = vmatprep.subr.bf16.mxu0 %v12792_v32 }
0x3893   : > { %12282 = vmatpush3.bf16.msra.mxu1 %v9890_v61  ;;  %v13085_v3 = vpop.eup %13084 }
0x3894   : > { %12293 = vmatprep.subr.bf16.mxu1 %v13906_v8  ;;  %v9830_v54 = vmul.f32 %v13085_v3, %v13077_v46  ;;  %v12745_v6 = vpop.permute.xlu1 %12744 }
0x3895   : > { %v12740_v44 = vpop.permute.xlu0 %12739  ;;  %v12747_v16 = vunpack.i.h.bf16 %v12745_v6  ;;  %v12746_v51 = vunpack.i.l.bf16 %v12745_v6 }
0x3896   : > { %12284 = vmatmul.mubr.msk.bf16.vlgmr.msra.gmra.mrb[20].mxu1 %vm1685_vm2, %v9833_v48  ;;  %v9834_v59 = vpack.c.bf16 %v9830_v54, %v9830_v54  ;;  %v12742_v15 = vunpack.i.h.bf16 %v12740_v44  ;;  %v12741_v17 = vunpack.i.l.bf16 %v12740_v44 }
0x3897   : > { %12294 = vmatpush3.bf16.msra.mxu1 %v9986_v52  ;;  %12295 = vmatprep.mubr.msk.bf16.mxu1 %vm13907_vm1, %v13906_v8  ;;  %v10079_v63 = vsel %vm1685_vm2, %v16003_v7, %v12747_v16  ;;  %v10078_v18 = vsel %vm1685_vm2, %v16005_v58, %v12746_v51 }
0x3898   : > { %v13087_v13 = vpop.eup %13086  ;;  %12290 = vmatmul.mubr.msk.bf16.vlgmr.msra.gmra.mrb[12].mxu0 %vm1685_vm2, %v9834_v59  ;;  %v10077_v23 = vsel %vm1685_vm2, %v16001_v5, %v12742_v15  ;;  %v10076_v28 = vsel %vm1685_vm2, %v15999_v42, %v12741_v17  ;;  %v12755_v33 = vpop.permute.xlu1 %12754 }
0x3899   : > { %v9831_v29 = vmul.f32 %v13087_v13, %v13079_v35  ;;  %12300 = vmatpush3.bf16.msra.mxu0 %v12792_v32  ;;  %v12750_v37 = vpop.permute.xlu0 %12749  ;;  %v12757_v47 = vunpack.i.h.bf16 %v12755_v33  ;;  %v12756_v5 = vunpack.i.l.bf16 %v12755_v33 }
0x389a   : > { %12301 = vmatprep.subr.bf16.mxu0 %v12793_v22  ;;  %v12752_v4 = vunpack.i.h.bf16 %v12750_v37  ;;  %v12751_v34 = vunpack.i.l.bf16 %v12750_v37 }
0x389b   : > { %v9835_v56 = vpack.c.bf16 %v9831_v29, %v9831_v29  ;;  %v10082_v41 = vsel %vm3492_vm5, %v10078_v18, %v12756_v5  ;;  %v10083_v61 = vsel %vm3492_vm5, %v10079_v63, %v12757_v47 }
0x389c   : > { %v10080_v35 = vsel %vm3492_vm5, %v10076_v28, %v12751_v34  ;;  %v10081_v26 = vsel %vm3492_vm5, %v10077_v23, %v12752_v4  ;;  %v12794_v4 = vld [vmem:[#allocation35] sm:$0xff]   ;;  %v12795_v34 = vld [vmem:[#allocation35 + $0x8] sm:$0xff]  }
0x389d   : > { %12302 = vmatpush3.bf16.msra.mxu0 %v12793_v22  ;;  %12307 = vmatprep.subr.bf16.mxu1 %v12794_v4  ;;  %v12797_v23 = vld [vmem:[%s16511_s2 + $0x8] sm:$0xff]  }
0x389e   : > { %12296 = vmatmul.mubr.msk.bf16.vlgmr.msra.gmra.mrb[24].mxu1 %vm1685_vm2, %v9835_v56 }
0x389f   : > { %12308 = vmatpush3.bf16.msra.mxu1 %v12794_v4 }
0x38a0   : > { %12309 = vmatprep.subr.bf16.mxu1 %v12795_v34 }
0x38a3   : > { %12310 = vmatpush3.bf16.msra.mxu1 %v12795_v34 }
0x3963   : > { %v9878_v20 = vpop.f32.mrb[8].mxu0 }
0x3964   : > { %v12279_v30 = vpop.f32.mrb[9].mxu0 }
0x3965   : > { %v9881_v38 = vpop.f32.mrb[10].mxu0 }
0x3966   : > { %v12280_v21 = vpop.f32.mrb[11].mxu0 }
0x3969   : > { %v9926_v31 = vpop.f32.mrb[20].mxu1 }
0x396a   : > { %v12758_v40 = vpack.i.bf16 %v9926_v31, %v9878_v20  ;;  %v12285_v62 = vpop.f32.mrb[21].mxu1 }
0x396b   : > { %v9929_v8 = vpop.f32.mrb[22].mxu1  ;;  %v9974_v1 = vpop.f32.mrb[12].mxu0 }
0x396c   : > { %v12286_v43 = vpop.f32.mrb[23].mxu1  ;;  %12759 = vrot.lane.b32.xlu0 %v12758_v40, %s16499_s7  ;;  %v12291_v0 = vpop.f32.mrb[13].mxu0 }
0x396d   : > { %v9977_v2 = vpop.f32.mrb[14].mxu0 }
0x396e   : > { %v12292_v9 = vpop.f32.mrb[15].mxu0 }
0x3971   : > { %v10022_v11 = vpop.f32.mrb[24].mxu1 }
0x3972   : > { %v12763_v12 = vpack.i.bf16 %v10022_v11, %v9974_v1  ;;  %v12297_v10 = vpop.f32.mrb[25].mxu1 }
0x3973   : > { %v10025_v24 = vpop.f32.mrb[26].mxu1 }
0x3974   : > { %v12298_v49 = vpop.f32.mrb[27].mxu1  ;;  %12764 = vrot.lane.b32.xlu1 %v12763_v12, %s16499_s7  ;;  %s16510_s7 = sld [smem:[#allocation76_spill]] }
0x397a   : > { %v11095_v54 = vld [vmem:[%s16510_s7] ss:$0 sm:$0xff]  ;;  %s16516_s7 = sld [smem:[#allocation85_spill]] }
0x39de   : > { %v12760_v19 = vpop.permute.xlu0 %12759 }
0x39df   : > { %v12762_v46 = vunpack.i.h.bf16 %v12760_v19  ;;  %v12761_v60 = vunpack.i.l.bf16 %v12760_v19  ;;  %v12796_v19 = vld [vmem:[%s16511_s2] sm:$0xff]  }
0x39e0   : > { %12315 = vmatprep.subr.bf16.mxu0 %v12796_v19 }
0x39e1   : > { %v10085_v27 = vsel %vm3497_vm6, %v10081_v26, %v12762_v46  ;;  %v10084_v53 = vsel %vm3497_vm6, %v10080_v35, %v12761_v60 }
0x39e2   : > { %v10088_v55 = vpack.c.bf16 %v10085_v27, %v10084_v53 }
0x39e4   : > { %12303 = vmatprep.mubr.msk.bf16.mxu0 %vm1622_vm0, %v10088_v55 }
0x39e6   : > { %v12765_v42 = vpop.permute.xlu1 %12764 }
0x39e7   : > { %v12767_v36 = vunpack.i.h.bf16 %v12765_v42  ;;  %v12766_v57 = vunpack.i.l.bf16 %v12765_v42  ;;  %v11100_v42 = vld [vmem:[%s16512_s5] ss:$0 sm:$0xff]  ;;  %s16517_s5 = sld [smem:[#allocation86_spill]] }
0x39e9   : > { %v10087_v50 = vsel %vm3497_vm6, %v10083_v61, %v12767_v36  ;;  %v10086_v3 = vsel %vm3497_vm6, %v10082_v41, %v12766_v57  ;;  %v11101_v61 = vld [vmem:[%s16513_s6] ss:$0 sm:$0xff] }
0x39ea   : > { %v10089_v48 = vpack.c.bf16 %v10087_v50, %v10086_v3 }
0x39ec   : > { %12304 = vmatmul.mubr.msk.bf16.vlgmr.msra.gmra.mrb[16].mxu0 %vm1622_vm0, %v10089_v48 }
0x39ed   : > { %12316 = vmatpush3.bf16.msra.mxu0 %v12796_v19 }
0x39ee   : > { %12317 = vmatprep.subr.bf16.mxu0 %v12797_v23 }
0x39f1   : > { %12318 = vmatpush3.bf16.msra.mxu0 %v12797_v23 }
0x3abf   : > { %v12305_v52 = vpop.f32.mrb[16].mxu0 }
0x3ac0   : > { %v10153_v59 = vpop.f32.mrb[17].mxu0  ;;  %v10162_v7 = vadd.f32 %v12305_v52, %v11095_v54 }
0x3ac1   : > { %v10154_v13 = vadd.f32 %v11095_v54, %v10153_v59  ;;  %v12306_v29 = vpop.f32.mrb[18].mxu0 }
0x3ac2   : > { %v10156_v58 = vpop.f32.mrb[19].mxu0  ;;  %v10170_v20 = vadd.f32 %v10162_v7, %v15874_v25  ;;  %v10165_v30 = vadd.f32 %v12306_v29, %v11095_v54 }
0x3ac3   : > { %v10168_v56 = vadd.f32 %v10154_v13, %v15867_v39  ;;  %v10157_v32 = vadd.f32 %v11095_v54, %v10156_v58 }
0x3ac4   : > { %v10171_v31 = vadd.f32 %v10165_v30, %v15876_v45  ;;  %v10180_v40 = vsel %vm1622_vm0, %v10170_v20, 0.0  ;;  %v12799_v30 = vld [vmem:[%s16511_s2 + $0x18] sm:$0xff]  }
0x3ac5   : > { %v10169_v38 = vadd.f32 %v10157_v32, %v15869_v14  ;;  %v10174_v21 = vsel %vm1622_vm0, %v10168_v56, 0.0 }
0x3ac6   : > { %10175 = vadd.xlane.f32.xlu0 %v10174_v21  ;;  %v10183_v62 = vsel %vm1622_vm0, %v10171_v31, 0.0 }
0x3ac7   : > { %v10177_v22 = vsel %vm1622_vm0, %v10169_v38, 0.0 }
0x3ac8   : > { %10178 = vadd.xlane.f32.xlu1 %v10177_v22 }
0x3aca   : > { %10181 = vadd.xlane.f32.xlu0 %v10180_v40 }
0x3ace   : > { %10184 = vadd.xlane.f32.xlu0 %v10183_v62 }
0x3b53   : > { %v10176_v39 = vpop.xlane.xlu0 %10175 }
0x3b54   : > { %v10186_v8 = vmul.f32 0.03125, %v10176_v39 }
0x3b55   : > { %v10179_v25 = vpop.xlane.xlu1 %10178 }
0x3b56   : > { %v10190_v43 = vsub.f32 %v10168_v56, %v10186_v8  ;;  %v10187_v1 = vmul.f32 0.03125, %v10179_v25 }
0x3b57   : > { %v10182_v14 = vpop.xlane.xlu0 %10181 }
0x3b58   : > { %v10191_v0 = vsub.f32 %v10169_v38, %v10187_v1  ;;  %v10188_v2 = vmul.f32 0.03125, %v10182_v14  ;;  %v10194_v9 = vmul.f32 %v10190_v43, %v10190_v43  ;;  %v11102_v38 = vld [vmem:[%s16514_s11] ss:$0 sm:$0xff]  ;;  %s16518_s11 = sshll.u32 %s14574_s12, 5 }
0x3b5a   : > { %v10192_v11 = vsub.f32 %v10170_v20, %v10188_v2  ;;  %v10198_v12 = vsel %vm1622_vm0, %v10194_v9, 0.0  ;;  %v10195_v10 = vmul.f32 %v10191_v0, %v10191_v0  ;;  %v12798_v20 = vld [vmem:[%s16511_s2 + $0x10] sm:$0xff]   ;;  %s11122_s2 = sshll.u32 %s14166_s26, 9  ;;  %s13923_s26 = smov [#allocation37]  }
0x3b5b   : > { %10199 = vadd.xlane.f32.xlu1 %v10198_v12  ;;  %v10185_v45 = vpop.xlane.xlu0 %10184  ;;  %12319 = vmatprep.subr.bf16.mxu0 %v12798_v20  ;;  %s13730_s9 = sshll.u32 %s13923_s26, 4  ;;  %s13731_s9 = int_to_ptr.vmem [resolvable:$false] %s13730_s9 }
0x3b5c   : > { %v10189_v24 = vmul.f32 0.03125, %v10185_v45  ;;  %v10201_v49 = vsel %vm1622_vm0, %v10195_v10, 0.0  ;;  %v10196_v44 = vmul.f32 %v10192_v11, %v10192_v11  ;;  %12320 = vmatpush3.bf16.msra.mxu0 %v12798_v20 }
0x3b5d   : > { %10202 = vadd.xlane.f32.xlu0 %v10201_v49  ;;  %12321 = vmatprep.subr.bf16.mxu0 %v12799_v30 }
0x3b5e   : > { %v10193_v37 = vsub.f32 %v10171_v31, %v10189_v24  ;;  %v10204_v6 = vsel %vm1622_vm0, %v10196_v44, 0.0 }
0x3b5f   : > { %10205 = vadd.xlane.f32.xlu1 %v10204_v6 }
0x3b60   : > { %v10197_v15 = vmul.f32 %v10193_v37, %v10193_v37  ;;  %12322 = vmatpush3.bf16.msra.mxu0 %v12799_v30 }
0x3b62   : > { %v10207_v17 = vsel %vm1622_vm0, %v10197_v15, 0.0 }
0x3b63   : > { %10208 = vadd.xlane.f32.xlu0 %v10207_v17 }
0x3be8   : > { %v10200_v28 = vpop.xlane.xlu1 %10199 }
0x3be9   : > { %v10210_v46 = vmul.f32 0.03125, %v10200_v28 }
0x3bea   : > { %v10203_v60 = vpop.xlane.xlu0 %10202 }
0x3beb   : > { %v10214_v35 = vadd.f32 1e-05, %v10210_v46  ;;  %v10211_v26 = vmul.f32 0.03125, %v10203_v60 }
0x3bec   : > { %v10206_v33 = vpop.xlane.xlu1 %10205 }
0x3bed   : > { %13088 = vrsqrt.f32 %v10214_v35  ;;  %v10215_v27 = vadd.f32 1e-05, %v10211_v26  ;;  %v10212_v53 = vmul.f32 0.03125, %v10206_v33 }
0x3bef   : > { %13090 = vrsqrt.f32 %v10215_v27  ;;  %v10216_v55 = vadd.f32 1e-05, %v10212_v53 }
0x3bf0   : > { %v10209_v16 = vpop.xlane.xlu0 %10208 }
0x3bf1   : > { %13092 = vrsqrt.f32 %v10216_v55  ;;  %v10213_v51 = vmul.f32 0.03125, %v10209_v16 }
0x3bf3   : > { %v10217_v47 = vadd.f32 1e-05, %v10213_v51 }
0x3bf5   : > { %13094 = vrsqrt.f32 %v10217_v47 }
0x3bf7   : > { %v13089_v5 = vpop.eup %13088 }
0x3bf8   : > { %v10222_v63 = vmul.f32 %v13089_v5, %v10190_v43 }
0x3bf9   : > { %v13091_v18 = vpop.eup %13090 }
0x3bfa   : > { %v10223_v36 = vmul.f32 %v13091_v18, %v10191_v0  ;;  %v10232_v57 = vmul.f32 %v11100_v42, %v10222_v63 }
0x3bfb   : > { %v13093_v41 = vpop.eup %13092 }
0x3bfc   : > { %v10224_v50 = vmul.f32 %v13093_v41, %v10192_v11  ;;  %v10233_v3 = vmul.f32 %v11100_v42, %v10223_v36  ;;  %v10242_v48 = vadd.f32 %v11101_v61, %v10232_v57  ;;  %v11107_v11 = vld [vmem:[%s16515_s13] ss:$0 sm:$0xff]  ;;  %s1573_s13 = scalar_lea.vmem [#allocation37], %s16518_s11  ;;  %s10509_s11 = scalar_lea.sflag [#allocation4], %s14574_s12 }
0x3bfd   : > { %s10522_s6 = sshll.u32 %s1573_s13, 4  ;;  %s16281_s6 = int_to_ptr.vmem [resolvable:$true] %s10522_s6 }
0x3bfe   : > { %v10243_v54 = vadd.f32 %v11101_v61, %v10233_v3  ;;  %v10234_v59 = vmul.f32 %v11100_v42, %v10224_v50  ;;  %s13726_s8 = scalar_lea.vmem %s16281_s6, 512  ;;  %p13733_p0 = scmp.lt.s32.totalorder %s16281_s6, %s13731_s9 }
0x3bff   : > { %v13095_v52 = vpop.eup %13094  ;;  %p13727_p11 = scmp.ne.s32.totalorder %s16281_s6, %s13726_s8 }
0x3c00   : > { %v10225_v7 = vmul.f32 %v13095_v52, %v10193_v37  ;;  %v10246_v13 = vpack.c.bf16 %v10243_v54, %v10242_v48  ;;  %v10244_v58 = vadd.f32 %v11101_v61, %v10234_v59 }
0x3c01   : > { %p13728_p13 = pnand %p13727_p11, %p16519_p3 }
0x3c02   : > { %v10235_v29 = vmul.f32 %v11100_v42, %v10225_v7  ;;  %12311 = vmatprep.mubr.msk.bf16.mxu1 %vm1622_vm0, %v10246_v13 }
0x3c03   : > { %p13729_p7 = pneg %p13728_p13 }
0x3c04   : > { %v10245_v56 = vadd.f32 %v11101_v61, %v10235_v29 }
0x3c06   : > { %v10247_v32 = vpack.c.bf16 %v10245_v56, %v10244_v58 }
0x3c08   : > { %12312 = vmatmul.mubr.msk.bf16.vlgmr.msra.gmra.mrb[28].mxu1 %vm1622_vm0, %v10247_v32 }
0x3cdb   : > { %v12313_v21 = vpop.f32.mrb[28].mxu1 }
0x3cdc   : > { %v10320_v22 = vadd.f32 %v12313_v21, %v11102_v38  ;;  %v10311_v31 = vpop.f32.mrb[29].mxu1  ;;  %v11114_v21 = vld [vmem:[%s14133_s19] ss:$0 sm:$0xff] }
0x3cdd   : > { %v10312_v40 = vadd.f32 %v11102_v38, %v10311_v31  ;;  %v12314_v62 = vpop.f32.mrb[30].mxu1 }
0x3cde   : > { %v10323_v39 = vadd.f32 %v12314_v62, %v11102_v38  ;;  %v10314_v8 = vpop.f32.mrb[31].mxu1  ;;  %v10328_v43 = vmax.f32 %v10320_v22, 0.0 }
0x3cdf   : > { %v10315_v25 = vadd.f32 %v11102_v38, %v10314_v8  ;;  %v10326_v14 = vmax.f32 %v10312_v40, 0.0  ;;  %v11115_v40 = vld [vmem:[%s16516_s7] ss:$0 sm:$0xff]  ;;  %s16278_s7 = scalar_lea.hbm %s16517_s5, %s11122_s2  ;;  %s13732_s2 = scalar_lea.vmem %s13731_s9, 1024 }
0x3ce0   : > { %v10329_v1 = vmax.f32 %v10323_v39, 0.0  ;;  %p13734_p6 = scmp.lt.s32.totalorder %s13732_s2, %s13726_s8 }
0x3ce1   : > { %v10327_v0 = vmax.f32 %v10315_v25, 0.0 }
0x3ce2   : > { %v10331_v2 = vpack.c.bf16 %v10329_v1, %v10328_v43  ;;  %p13735_p9 = por %p13734_p6, %p13733_p0 }
0x3ce3   : > { %v10330_v9 = vpack.c.bf16 %v10327_v0, %v10326_v14 }
0x3ce4   : > { %p13736_p8 = pnand %p13735_p9, %p13729_p7 }
0x3ce5   : > { %12323 = vmatprep.mubr.msk.bf16.mxu0 %vm5924_vm7, %v10330_v9 }
0x3ce6   : > { %12324 = vmatmul.mubr.msk.bf16.vlgmr.msra.gmra.mrb[20].mxu0 %vm5924_vm7, %v10331_v2 }
0x3db9   : > { %v12325_v12 = vpop.f32.mrb[20].mxu0 }
0x3dba   : > { %v10411_v10 = vpop.f32.mrb[21].mxu0  ;;  %v10420_v45 = vadd.f32 %v12325_v12, %v11107_v11 }
0x3dbb   : > { %v10412_v24 = vadd.f32 %v11107_v11, %v10411_v10  ;;  %v12326_v49 = vpop.f32.mrb[22].mxu0 }
0x3dbc   : > { %v10414_v44 = vpop.f32.mrb[23].mxu0  ;;  %v10423_v6 = vadd.f32 %v12326_v49, %v11107_v11  ;;  %v10428_v17 = vadd.f32 %v10420_v45, %v10244_v58 }
0x3dbd   : > { %v10426_v37 = vadd.f32 %v10412_v24, %v10242_v48  ;;  %v10415_v15 = vadd.f32 %v11107_v11, %v10414_v44 }
0x3dbe   : > { %v10429_v19 = vadd.f32 %v10423_v6, %v10245_v56  ;;  %v10438_v28 = vsel %vm1622_vm0, %v10428_v17, 0.0 }
0x3dbf   : > { %v10427_v4 = vadd.f32 %v10415_v15, %v10243_v54  ;;  %v10432_v34 = vsel %vm1622_vm0, %v10426_v37, 0.0 }
0x3dc0   : > { %10433 = vadd.xlane.f32.xlu1 %v10432_v34  ;;  %v10441_v46 = vsel %vm1622_vm0, %v10429_v19, 0.0 }
0x3dc1   : > { %v10435_v23 = vsel %vm1622_vm0, %v10427_v4, 0.0 }
0x3dc2   : > { %10436 = vadd.xlane.f32.xlu0 %v10435_v23 }
0x3dc4   : > { %10439 = vadd.xlane.f32.xlu1 %v10438_v28 }
0x3dc6   : > { %10442 = vadd.xlane.f32.xlu0 %v10441_v46 }
0x3e4d   : > { %v10434_v60 = vpop.xlane.xlu1 %10433 }
0x3e4e   : > { %v10444_v35 = vmul.f32 0.03125, %v10434_v60 }
0x3e4f   : > { %v10437_v26 = vpop.xlane.xlu0 %10436 }
0x3e50   : > { %v10448_v33 = vsub.f32 %v10426_v37, %v10444_v35  ;;  %v10445_v27 = vmul.f32 0.03125, %v10437_v26 }
0x3e51   : > { %v10440_v53 = vpop.xlane.xlu1 %10439 }
0x3e52   : > { %v10449_v55 = vsub.f32 %v10427_v4, %v10445_v27  ;;  %v10446_v16 = vmul.f32 0.03125, %v10440_v53  ;;  %v10452_v51 = vmul.f32 %v10448_v33, %v10448_v33 }
0x3e53   : > { %v10443_v47 = vpop.xlane.xlu0 %10442 }
0x3e54   : > { %v10450_v5 = vsub.f32 %v10428_v17, %v10446_v16  ;;  %v10447_v42 = vmul.f32 0.03125, %v10443_v47  ;;  %v10456_v63 = vsel %vm1622_vm0, %v10452_v51, 0.0  ;;  %v10453_v18 = vmul.f32 %v10449_v55, %v10449_v55 }
0x3e55   : > { %10457 = vadd.xlane.f32.xlu1 %v10456_v63 }
0x3e56   : > { %v10451_v36 = vsub.f32 %v10429_v19, %v10447_v42  ;;  %v10459_v57 = vsel %vm1622_vm0, %v10453_v18, 0.0  ;;  %v10454_v41 = vmul.f32 %v10450_v5, %v10450_v5 }
0x3e57   : > { %10460 = vadd.xlane.f32.xlu0 %v10459_v57 }
0x3e58   : > { %v10462_v61 = vsel %vm1622_vm0, %v10454_v41, 0.0  ;;  %v10455_v50 = vmul.f32 %v10451_v36, %v10451_v36 }
0x3e59   : > { %10463 = vadd.xlane.f32.xlu1 %v10462_v61 }
0x3e5a   : > { %v10465_v3 = vsel %vm1622_vm0, %v10455_v50, 0.0 }
0x3e5b   : > { %10466 = vadd.xlane.f32.xlu0 %v10465_v3 }
0x3ee2   : > { %v10458_v48 = vpop.xlane.xlu1 %10457 }
0x3ee3   : > { %v10468_v54 = vmul.f32 0.03125, %v10458_v48 }
0x3ee4   : > { %v10461_v52 = vpop.xlane.xlu0 %10460 }
0x3ee5   : > { %v10472_v59 = vadd.f32 1e-05, %v10468_v54  ;;  %v10469_v7 = vmul.f32 0.03125, %v10461_v52 }
0x3ee6   : > { %v10464_v13 = vpop.xlane.xlu1 %10463 }
0x3ee7   : > { %13096 = vrsqrt.f32 %v10472_v59  ;;  %v10473_v29 = vadd.f32 1e-05, %v10469_v7  ;;  %v10470_v58 = vmul.f32 0.03125, %v10464_v13 }
0x3ee8   : > { %v10467_v56 = vpop.xlane.xlu0 %10466 }
0x3ee9   : > { %13098 = vrsqrt.f32 %v10473_v29  ;;  %v10474_v32 = vadd.f32 1e-05, %v10470_v58  ;;  %v10471_v20 = vmul.f32 0.03125, %v10467_v56 }
0x3eeb   : > { %13100 = vrsqrt.f32 %v10474_v32  ;;  %v10475_v30 = vadd.f32 1e-05, %v10471_v20 }
0x3eed   : > { %13102 = vrsqrt.f32 %v10475_v30 }
0x3ef1   : > { %v13097_v38 = vpop.eup %13096 }
0x3ef2   : > { %v10480_v22 = vmul.f32 %v13097_v38, %v10448_v33 }
0x3ef3   : > { %v13099_v31 = vpop.eup %13098 }
0x3ef4   : > { %v10490_v62 = vmul.f32 %v11114_v21, %v10480_v22  ;;  %v10481_v39 = vmul.f32 %v13099_v31, %v10449_v55 }
0x3ef5   : > { %v13101_v8 = vpop.eup %13100 }
0x3ef6   : > { %v10500_v25 = vadd.f32 %v11115_v40, %v10490_v62  ;;  %v10491_v43 = vmul.f32 %v11114_v21, %v10481_v39  ;;  %v10482_v1 = vmul.f32 %v13101_v8, %v10450_v5 }
0x3ef7   : > { %v13103_v14 = vpop.eup %13102 }
0x3ef8   : > { %v10501_v0 = vadd.f32 %v11115_v40, %v10491_v43  ;;  %v10492_v2 = vmul.f32 %v11114_v21, %v10482_v1  ;;  %10504 = vst.msk [vmem:[%s1573_s13] sm:$0xff] %vm1622_vm0, %v10500_v25  ;;  %v10483_v9 = vmul.f32 %v13103_v14, %v10451_v36 }
0x3efa   : > { %v10502_v11 = vadd.f32 %v11115_v40, %v10492_v2  ;;  %10505 = vst.msk [vmem:[%s1573_s13 + $0x8] sm:$0xff] %vm1622_vm0, %v10501_v0  ;;  %v10493_v12 = vmul.f32 %v11114_v21, %v10483_v9 }
0x3efc   : > { %10506 = vst.msk [vmem:[%s1573_s13 + $0x10] sm:$0xff] %vm1622_vm0, %v10502_v11  ;;  %v10503_v10 = vadd.f32 %v11115_v40, %v10493_v12 }
0x3efe   : > { %10507 = vst.msk [vmem:[%s1573_s13 + $0x18] sm:$0xff] %vm1622_vm0, %v10503_v10 }
0x3eff   : > { %13739 = shalt.err (!%p13736_p8)
}
0x3f00   : > { %s13740_s13 = scalar_lea.hbm %s16278_s7, 512  ;;  %s13744_s26 = scalar_lea.hbm %s16517_s5, 1024 }
0x3f01   : > { %p13741_p12 = scmp.ne.s32.totalorder %s16278_s7, %s13740_s13  ;;  %p13745_p2 = scmp.lt.u32.totalorder %s16278_s7, %s16517_s5 }
0x3f02   : > { %p13746_p5 = scmp.lt.u32.totalorder %s13744_s26, %s13740_s13  ;;  %p13748_p11 = scmp.lt.u32.totalorder %s13740_s13, %s16278_s7 }
0x3f03   : > { %p13742_p1 = pnand %p13741_p12, %p16519_p3 }
0x3f04   : > { %p13747_p10 = por %p13746_p5, %p13745_p2 }
0x3f05   : > { %p13743_p4 = pneg %p13742_p1 }
0x3f06   : > { %p13749_p13 = por %p13748_p11, %p13747_p10 }
0x3f08   : > { %p13750_p7 = pnand %p13749_p13, %p13743_p4 }
0x3f0a   : > { %13753 = shalt.err (!%p13750_p7)
}
0x3f0b   : > { %s13924_s8 = smov 128  }
0x3f0c   : > { %12413 = dma.vmem_to_hbm [thread:$0]  (%p16519_p3), %s16281_s6, 512, %s16278_s7, %s10509_s11, %s13924_s8, %s13924_s8, %s16496_s28  }
0x3f0d PF: > { %s10537_s9 = sand.u32 1, %s13824_s15   ;;  %p16520_p0 = scmp.ne.s32.totalorder %s16458_s10, 0 }
0x3f0e   : > { %p16521_p6 = scmp.ge.s32.totalorder %s13836_s18, 2  ;;  %s10538_s2 = scalar_lea.sflag [#allocation4], %s10537_s9 }
0x3f10   : > { %p12484_p9 = pnand %p16521_p6, %p16520_p0 }
0x3f12   : > { %13819 = dma.done.wait (!%p12484_p9), %s10538_s2, 512  }
0x3f13   : > { %13821 = vsyncadd (!%p12484_p9), %s10538_s2, 4294966784  ;;  %p109_p8 = scmp.ge.s32.totalorder %s14507_s1, 4   ;;  %s16522_s15 = smov %s13828_s16 }
0x3f14   : > { %s16523_s16 = smov %s13832_s0  ;;  %s16524_s0 = smov %s14519_s4 }
0x3f15   : > { %s16525_s18 = smov %s14507_s1  ;;  %111 = sbr.rel (!%p109_p8) target bundleno = 99 (0x63), region = 362 }
0x3f1c   :  { %10543 = vsyncpa [#allocation3], 1 }
0x3f1d   :  { %10545 = vsyncpa [#allocation3 + $0x1], 1 }
0x3f1e   :  { %10546 = vsyncpa [#allocation6], 1 }
0x3f1f   :  { %10547 = vsyncpa [#allocation9], 1 }
0x3f20   :  { %10548 = vsyncpa [#allocation12], 1 }
0x3f21   :  { %10549 = vsyncpa [#allocation15], 1 }
0x3f22   :  { %10550 = vsyncpa [#allocation18], 1 }
0x3f23   :  { %10551 = vsyncpa [#allocation21], 1 }
0x3f24   :  { %10552 = vsyncpa [#allocation24], 1 }
0x3f25   :  { %10553 = vsyncpa [#allocation27], 1 }
0x3f26   :  { %10554 = vsyncpa [#allocation30], 1 }
0x3f27   :  { %10555 = vsyncpa [#allocation33], 1 }
0x3f28   :  { %10556 = vsyncpa [#allocation36], 1 }
0x3f29   :  { %10557 = vsyncpa [#allocation4], 1 }
0x3f2a   :  { %10559 = vsyncpa [#allocation4 + $0x1], 1 }

</bundles_post_ra>
